<compile_context>
chip_gen: v7x
topology: tpu7x:2x2x1
jax: 0.10.0
libtpu: 0.0.40
codegen_flags: <defaults>
</compile_context>

<pallas_src>
import math
import functools
from typing import NamedTuple

import jax
import jax.numpy as jnp
from jax import lax
from jax.experimental import pallas as pl
from jax.experimental.pallas import tpu as pltpu

NEG_INF = -1e30
_VMEM = functools.partial(pl.BlockSpec, memory_space=pltpu.MemorySpace.VMEM)


class SwapGNNOutput(NamedTuple):
    logits: jax.Array
    actions: jax.Array
    log_probs: jax.Array


# --------------------------- Fused Pallas kernel -----------------------------

def _fused_kernel(x_ref, emat_ref, bias_ref,
                  wqkvs_ref, bqkvs_ref, wedge_ref, wbeta_ref,
                  wtr_ref, btr_ref, bng_ref, bnb_ref,
                  w0_ref, b0_ref, w1_ref, b1_ref, w2_ref, b2_ref,
                  wrm_ref, wadd_ref, badd_ref,
                  masks_ref, gumbel_ref,
                  logits_ref, act_ref, lp_ref,
                  *, n_layers, heads, dhead, n, eps):
    hd = heads * dhead
    scale = 1.0 / math.sqrt(dhead)

    emat = emat_ref[...]                 # (n, n) raw edge attribute
    bias = bias_ref[...]                 # (n, n) additive adjacency bias (0 / -1e30)

    x = x_ref[...]                       # (n, fin_pad)

    # ---------------- NetworkGraphEmbeddingConstructor: 5 conv layers --------
    for l in range(n_layers):
        # Q | K | V | skip in one lane-dense matmul: (n, 4*hd)
        qkvs = jnp.dot(x, wqkvs_ref[l], preferred_element_type=jnp.float32) + bqkvs_ref[l]
        # Fold the 1/sqrt(d) softmax scale into Q once (covers both q.k and q.w_edge).
        q = qkvs[:, 0 * hd:1 * hd] * scale
        k = qkvs[:, 1 * hd:2 * hd]
        v = qkvs[:, 2 * hd:3 * hd]
        skip = qkvs[:, 3 * hd:4 * hd]
        we = wedge_ref[l]                                  # (1, hd)

        head_outs = []
        for h in range(heads):                             # static, unrolled
            sl = slice(h * dhead, (h + 1) * dhead)
            qh, kh, vh, weh = q[:, sl], k[:, sl], v[:, sl], we[:, sl]
            # alpha_ij = (q_i . (k_j + e_ij * w_edge)) / sqrt(d)   (scale already in qh)
            qk = lax.dot_general(qh, kh, (((1,), (1,)), ((), ())),
                                 preferred_element_type=jnp.float32)       # (n, n)
            qe = jnp.sum(qh * weh, axis=-1, keepdims=True)                  # (n, 1)
            s = qk + qe * emat + bias
            m = jnp.max(s, axis=-1, keepdims=True)
            p = jnp.exp(jnp.maximum(s - m, -60.0))          # masked entries -> ~0
            inv = pl.reciprocal(jnp.sum(p, axis=-1, keepdims=True), approx=True)
            a = p * inv
            # message_j = v_j + e_ij * w_edge
            oh = jnp.dot(a, vh, preferred_element_type=jnp.float32)
            oh = oh + jnp.sum(a * emat, axis=-1, keepdims=True) * weh
            head_outs.append(oh)
        out = jnp.concatenate(head_outs, axis=-1)                           # (n, hd)

        # beta gate: sigmoid(lin_beta([out, skip, out - skip]))
        # folded: out.w0 + skip.w1 + (out-skip).w2 = out.(w0+w2) + skip.(w1-w2)
        wb = wbeta_ref[l]                                                   # (3, hd)
        wb_out = wb[0:1, :] + wb[2:3, :]
        wb_skip = wb[1:2, :] - wb[2:3, :]
        beta_z = jnp.sum(out * wb_out + skip * wb_skip, axis=-1, keepdims=True)  # (n, 1)
        beta = pl.reciprocal(1.0 + jnp.exp(-beta_z), approx=True)
        mixed = out + beta * (skip - out)                                   # (n, hd)

        # transf linear + ReLU + BatchNorm1d (training-mode batch stats)
        t = jnp.dot(mixed, wtr_ref[l], preferred_element_type=jnp.float32) + btr_ref[l]
        t = jnp.maximum(t, 0.0)
        mean = jnp.mean(t, axis=0, keepdims=True)
        var = jnp.mean(jnp.square(t - mean), axis=0, keepdims=True)
        x = (t - mean) * lax.rsqrt(var + eps) * bng_ref[l] + bnb_ref[l]     # (n, 32)

    # ---------------- embedding_transformation MLP ---------------------------
    x = jnp.maximum(jnp.dot(x, w0_ref[...], preferred_element_type=jnp.float32)
                    + b0_ref[...], 0.0)
    x = jnp.maximum(jnp.dot(x, w1_ref[...], preferred_element_type=jnp.float32)
                    + b1_ref[...], 0.0)
    x = jnp.dot(x, w2_ref[...], preferred_element_type=jnp.float32) + b2_ref[...]

    # ---------------- policy heads + Gumbel-max sampling ----------------------
    masks = masks_ref[...]               # (n, 2): col0 = remove_mask + b_rm, col1 = mask
    gum = gumbel_ref[...]                # (n, 2) Gumbel noise
    rmask, amask = masks[:, 0:1], masks[:, 1:2]
    g1, g2 = gum[:, 0:1], gum[:, 1:2]

    iota = lax.broadcasted_iota(jnp.int32, (n, 1), 0).astype(jnp.float32)

    # remove-facility head (Linear(d2, 1), bias folded into rmask)
    rm_logits = jnp.sum(x * wrm_ref[...], axis=-1, keepdims=True) + rmask   # (n, 1)
    pert1 = rm_logits + g1
    a1f = jnp.min(jnp.where(pert1 >= jnp.max(pert1, axis=0, keepdims=True),
                            iota, float(n)), axis=0, keepdims=True)         # (1, 1)
    sel1 = iota == a1f
    m1 = jnp.max(rm_logits, axis=0, keepdims=True)
    lse1 = m1 + jnp.log(jnp.sum(jnp.exp(jnp.maximum(rm_logits - m1, -60.0)),
                                axis=0, keepdims=True))
    lp1 = jnp.sum(jnp.where(sel1, rm_logits, 0.0), axis=0, keepdims=True) - lse1

    # add-facility head: x @ tanh(W_add x[action1] + b_add)
    amask2 = jnp.where(sel1, 0.0, amask)                                     # mask[action1] = 0
    x_sel = jnp.sum(jnp.where(sel1, x, 0.0), axis=0, keepdims=True)          # (1, d2)
    proj = jnp.tanh(jnp.dot(x_sel, wadd_ref[...], preferred_element_type=jnp.float32)
                    + badd_ref[...])                                         # (1, d2)
    new_logits = jnp.sum(x * proj, axis=-1, keepdims=True) + amask2          # (n, 1)
    pert2 = new_logits + g2
    a2f = jnp.min(jnp.where(pert2 >= jnp.max(pert2, axis=0, keepdims=True),
                            iota, float(n)), axis=0, keepdims=True)
    sel2 = iota == a2f
    m2 = jnp.max(new_logits, axis=0, keepdims=True)
    lse2 = m2 + jnp.log(jnp.sum(jnp.exp(jnp.maximum(new_logits - m2, -60.0)),
                                axis=0, keepdims=True))
    lp2 = jnp.sum(jnp.where(sel2, new_logits, 0.0), axis=0, keepdims=True) - lse2

    logits_ref[...] = jnp.concatenate([rm_logits, new_logits], axis=-1)      # (n, 2)
    act_ref[...] = jnp.concatenate([a1f, a2f], axis=-1).astype(jnp.int32)    # (1, 2)
    lp_ref[...] = jnp.concatenate([lp1, lp2], axis=-1)                       # (1, 2)


# --------------------------- Forward wrapper ---------------------------------

def transformer_swap_gnn_forward(params, data, key, *, num_locations=15,
                                 for_active=True):
    heads, dhead, n_layers = params["heads"], params["dhead"], params["n_layers"]
    fs, fpad = params["feature_size"], params["fin_pad"]
    n = data["type"].shape[0]

    # x = cat([type, requests], dim=1) -> (N, 2), zero-padded to the stacked
    # weight width (padded weight rows are zero, so results are identical).
    x0 = jnp.stack([data["type"], data["requests"]], axis=1).astype(jnp.float32)
    x0 = jnp.pad(x0, ((0, 0), (0, fpad - fs)))

    emat = data["emat"].astype(jnp.float32)
    attn_bias = jnp.where(data["adj"] > 0.5, 0.0, NEG_INF).astype(jnp.float32)

    # remove_mask: flip 0 <-> -inf for the first num_locations entries.
    mask = (data["active_mask"] if for_active else data["passive_mask"]).astype(jnp.float32)
    head_mask = mask[:num_locations]
    remove_head = jnp.where(head_mask == 0.0, -jnp.inf,
                            jnp.where(jnp.isneginf(head_mask), 0.0, head_mask))
    remove_mask = jnp.concatenate([remove_head, mask[num_locations:]]) + params["b_rm"]
    masks = jnp.stack([remove_mask, mask], axis=1)                  # (N, 2)
    gumbel = jax.random.gumbel(key, (n, 2), jnp.float32)

    kernel = functools.partial(_fused_kernel, n_layers=n_layers, heads=heads,
                               dhead=dhead, n=n, eps=1e-5)
    logits_col, actions, log_probs = pl.pallas_call(
        kernel,
        out_shape=(jax.ShapeDtypeStruct((n, 2), jnp.float32),
                   jax.ShapeDtypeStruct((1, 2), jnp.int32),
                   jax.ShapeDtypeStruct((1, 2), jnp.float32)),
        in_specs=[_VMEM()] * 22,
        out_specs=(_VMEM(), _VMEM(), _VMEM()),
    )(x0, emat, attn_bias,
      params["w_qkvs"], params["b_qkvs"], params["w_edge"], params["w_beta"],
      params["w_tr"], params["b_tr"], params["bn_g"], params["bn_b"],
      params["w0"], params["b0"], params["w1"], params["b1"],
      params["w2"], params["b2"],
      params["w_rm"], params["w_add"], params["b_add"],
      masks, gumbel)

    return SwapGNNOutput(logits=logits_col.T,           # (2, N)
                         actions=actions.reshape(2),    # (2,) int32
                         log_probs=log_probs.reshape(2))


# --------------------------- Parameter init ----------------------------------

def _linear_init(kw, kb, fin, fout):
    lim = 1.0 / math.sqrt(fin)
    w = jax.random.uniform(kw, (fin, fout), jnp.float32, -lim, lim)
    b = jax.random.uniform(kb, (fout,), jnp.float32, -lim, lim)
    return w, b


def init_params(key, *, feature_size=2, embedding_size=32, n_heads=4,
                dense_neurons=128, n_embed_layers=5):
    heads, dhead = n_heads, embedding_size
    hd = heads * dhead
    fin_pad = embedding_size                       # width all layer inputs are padded to
    L = n_embed_layers
    keys = jax.random.split(key, 16 * L + 16)
    it = iter(range(len(keys)))
    nk = lambda: keys[next(it)]

    w_qkvs_l, b_qkvs_l, w_edge_l, w_beta_l, w_tr_l, b_tr_l = [], [], [], [], [], []
    fin = feature_size
    for _ in range(L):                             # conv1 + 4 inner layers
        ws, bs = [], []
        for _ in range(4):                         # lin_query, lin_key, lin_value, lin_skip
            w, b = _linear_init(nk(), nk(), fin, hd)
            ws.append(jnp.zeros((fin_pad, hd), jnp.float32).at[:fin].set(w))
            bs.append(b)
        w_qkvs_l.append(jnp.concatenate(ws, axis=1))            # (fin_pad, 4*hd)
        b_qkvs_l.append(jnp.concatenate(bs).reshape(1, 4 * hd))
        we, _ = _linear_init(nk(), nk(), 1, hd)                  # lin_edge (no bias)
        w_edge_l.append(we.reshape(1, hd))
        wb, _ = _linear_init(nk(), nk(), 3 * hd, 1)              # lin_beta (no bias)
        w_beta_l.append(wb.reshape(3, hd))                       # rows: [out, skip, out-skip]
        wt, bt = _linear_init(nk(), nk(), hd, embedding_size)    # transf linear
        w_tr_l.append(wt)
        b_tr_l.append(bt.reshape(1, embedding_size))
        fin = embedding_size

    d2 = dense_neurons // 2
    w0, b0 = _linear_init(nk(), nk(), embedding_size, dense_neurons)
    w1, b1 = _linear_init(nk(), nk(), dense_neurons, d2)
    w2, b2 = _linear_init(nk(), nk(), d2, d2)
    w_rm, b_rm = _linear_init(nk(), nk(), d2, 1)                 # remove_facility_layer
    w_add, b_add = _linear_init(nk(), nk(), d2, d2)              # add_facility_projector

    return dict(
        heads=heads, dhead=dhead, n_layers=L,
        feature_size=feature_size, fin_pad=fin_pad,
        w_qkvs=jnp.stack(w_qkvs_l), b_qkvs=jnp.stack(b_qkvs_l),
        w_edge=jnp.stack(w_edge_l), w_beta=jnp.stack(w_beta_l),
        w_tr=jnp.stack(w_tr_l), b_tr=jnp.stack(b_tr_l),
        bn_g=jnp.ones((L, 1, embedding_size), jnp.float32),
        bn_b=jnp.zeros((L, 1, embedding_size), jnp.float32),
        w0=w0, b0=b0.reshape(1, -1), w1=w1, b1=b1.reshape(1, -1),
        w2=w2, b2=b2.reshape(1, -1),
        w_rm=w_rm.reshape(1, d2), b_rm=b_rm[0],
        w_add=w_add, b_add=b_add.reshape(1, -1),
    )


# --------------------------- Main ---------------------------------------------

if __name__ == "__main__":
    key = jax.random.PRNGKey(0)
    kp, kd, ks = jax.random.split(key, 3)

    N = 20
    NUM_LOCATIONS = 15
    params = init_params(kp)

    # Deterministic synthetic graph: every node gets 3 incoming edges.
    src_l, dst_l = [], []
    for i in range(N):
        for off in (1, 5, 9):
            src_l.append((i + off) % N)
            dst_l.append(i)
    src = jnp.asarray(src_l, jnp.int32)
    dst = jnp.asarray(dst_l, jnp.int32)

    kd1, kd2, kd3 = jax.random.split(kd, 3)
    latency = jax.random.uniform(kd1, (src.shape[0],), jnp.float32)
    adj = jnp.zeros((N, N), jnp.float32).at[dst, src].set(1.0)
    emat = jnp.zeros((N, N), jnp.float32).at[dst, src].set(latency)

    node_type = jax.random.randint(kd2, (N,), 0, 3).astype(jnp.float32)
    requests = jax.random.uniform(kd3, (N,), jnp.float32) * 10.0

    active_idx = jnp.asarray([1, 3, 4, 6, 9])
    active_mask = jnp.full((N,), -jnp.inf, jnp.float32).at[active_idx].set(0.0)

    data = dict(type=node_type, requests=requests, emat=emat, adj=adj,
                active_mask=active_mask, passive_mask=active_mask)

    out = transformer_swap_gnn_forward(params, data, ks,
                                       num_locations=NUM_LOCATIONS,
                                       for_active=True)
    jax.block_until_ready((out.logits, out.actions, out.log_probs))
    assert out.logits.shape == (2, N)
    assert out.actions.shape == (2,)
    assert out.log_probs.shape == (2,)
    assert bool(jnp.all((out.actions >= 0) & (out.actions < N)))
    print("KERNEL_OK")
</pallas_src>

<mosaic_0001>
module attributes {stable_mosaic.version = 11 : i64} {
  func.func @_fused_kernel(%arg0: memref<20x32xf32, #tpu.memory_space<vmem>>, %arg1: memref<20x20xf32, #tpu.memory_space<vmem>>, %arg2: memref<20x20xf32, #tpu.memory_space<vmem>>, %arg3: memref<5x32x512xf32, #tpu.memory_space<vmem>>, %arg4: memref<5x1x512xf32, #tpu.memory_space<vmem>>, %arg5: memref<5x1x128xf32, #tpu.memory_space<vmem>>, %arg6: memref<5x3x128xf32, #tpu.memory_space<vmem>>, %arg7: memref<5x128x32xf32, #tpu.memory_space<vmem>>, %arg8: memref<5x1x32xf32, #tpu.memory_space<vmem>>, %arg9: memref<5x1x32xf32, #tpu.memory_space<vmem>>, %arg10: memref<5x1x32xf32, #tpu.memory_space<vmem>>, %arg11: memref<32x128xf32, #tpu.memory_space<vmem>>, %arg12: memref<1x128xf32, #tpu.memory_space<vmem>>, %arg13: memref<128x64xf32, #tpu.memory_space<vmem>>, %arg14: memref<1x64xf32, #tpu.memory_space<vmem>>, %arg15: memref<64x64xf32, #tpu.memory_space<vmem>>, %arg16: memref<1x64xf32, #tpu.memory_space<vmem>>, %arg17: memref<1x64xf32, #tpu.memory_space<vmem>>, %arg18: memref<64x64xf32, #tpu.memory_space<vmem>>, %arg19: memref<1x64xf32, #tpu.memory_space<vmem>>, %arg20: memref<20x2xf32, #tpu.memory_space<vmem>>, %arg21: memref<20x2xf32, #tpu.memory_space<vmem>>, %arg22: memref<20x2xf32, #tpu.memory_space<vmem>>, %arg23: memref<1x2xi32, #tpu.memory_space<vmem>>, %arg24: memref<1x2xf32, #tpu.memory_space<vmem>>) attributes {dimension_semantics = [], scalar_prefetch = 0 : i64, scratch_operands = 0 : i64, tpu.core_type = #tpu.core_type<tc>} {
    %c0 = arith.constant 0 : index
    %c0_0 = arith.constant 0 : index
    %0 = vector.load %arg1[%c0, %c0_0] : memref<20x20xf32, #tpu.memory_space<vmem>>, vector<20x20xf32>
    %c0_1 = arith.constant 0 : index
    %c0_2 = arith.constant 0 : index
    %1 = vector.load %arg2[%c0_1, %c0_2] : memref<20x20xf32, #tpu.memory_space<vmem>>, vector<20x20xf32>
    %c0_3 = arith.constant 0 : index
    %c0_4 = arith.constant 0 : index
    %2 = vector.load %arg0[%c0_3, %c0_4] : memref<20x32xf32, #tpu.memory_space<vmem>>, vector<20x32xf32>
    %c0_5 = arith.constant 0 : index
    %c0_6 = arith.constant 0 : index
    %c0_7 = arith.constant 0 : index
    %3 = vector.load %arg3[%c0_5, %c0_6, %c0_7] : memref<5x32x512xf32, #tpu.memory_space<vmem>>, vector<1x32x512xf32>
    %4 = vector.shape_cast %3 : vector<1x32x512xf32> to vector<32x512xf32>
    %cst = arith.constant dense<0.000000e+00> : vector<20x512xf32>
    %5 = tpu.matmul %2, %4, %cst {dimension_numbers = #tpu.dot_dimension_numbers<[1], [0], [0], [1], [0, 0, 1, 1], [], []>} : vector<20x32xf32>, vector<32x512xf32>, vector<20x512xf32> -> vector<20x512xf32>
    %c0_8 = arith.constant 0 : index
    %c0_9 = arith.constant 0 : index
    %c0_10 = arith.constant 0 : index
    %6 = vector.load %arg4[%c0_8, %c0_9, %c0_10] : memref<5x1x512xf32, #tpu.memory_space<vmem>>, vector<1x1x512xf32>
    %7 = vector.shape_cast %6 : vector<1x1x512xf32> to vector<1x512xf32>
    %8 = vector.broadcast %7 : vector<1x512xf32> to vector<20x512xf32>
    %9 = arith.addf %5, %8 : vector<20x512xf32>
    %10 = vector.extract_strided_slice %9 {offsets = [0, 0], sizes = [20, 128], strides = [1, 1]} : vector<20x512xf32> to vector<20x128xf32>
    %cst_11 = arith.constant 0.176776692 : f32
    %11 = vector.broadcast %cst_11 : f32 to vector<20x128xf32>
    %12 = arith.mulf %10, %11 : vector<20x128xf32>
    %13 = vector.extract_strided_slice %9 {offsets = [0, 128], sizes = [20, 128], strides = [1, 1]} : vector<20x512xf32> to vector<20x128xf32>
    %14 = vector.extract_strided_slice %9 {offsets = [0, 256], sizes = [20, 128], strides = [1, 1]} : vector<20x512xf32> to vector<20x128xf32>
    %15 = vector.extract_strided_slice %9 {offsets = [0, 384], sizes = [20, 128], strides = [1, 1]} : vector<20x512xf32> to vector<20x128xf32>
    %c0_12 = arith.constant 0 : index
    %c0_13 = arith.constant 0 : index
    %c0_14 = arith.constant 0 : index
    %16 = vector.load %arg5[%c0_12, %c0_13, %c0_14] : memref<5x1x128xf32, #tpu.memory_space<vmem>>, vector<1x1x128xf32>
    %17 = vector.shape_cast %16 : vector<1x1x128xf32> to vector<1x128xf32>
    %18 = vector.extract_strided_slice %12 {offsets = [0, 0], sizes = [20, 32], strides = [1, 1]} : vector<20x128xf32> to vector<20x32xf32>
    %19 = vector.extract_strided_slice %13 {offsets = [0, 0], sizes = [20, 32], strides = [1, 1]} : vector<20x128xf32> to vector<20x32xf32>
    %20 = vector.extract_strided_slice %14 {offsets = [0, 0], sizes = [20, 32], strides = [1, 1]} : vector<20x128xf32> to vector<20x32xf32>
    %21 = vector.extract_strided_slice %17 {offsets = [0, 0], sizes = [1, 32], strides = [1, 1]} : vector<1x128xf32> to vector<1x32xf32>
    %cst_15 = arith.constant dense<0.000000e+00> : vector<20x20xf32>
    %22 = tpu.matmul %18, %19, %cst_15 {dimension_numbers = #tpu.dot_dimension_numbers<[1], [1], [0], [0], [0, 0, 1, 0], [], []>} : vector<20x32xf32>, vector<20x32xf32>, vector<20x20xf32> -> vector<20x20xf32>
    %23 = vector.broadcast %21 : vector<1x32xf32> to vector<20x32xf32>
    %24 = arith.mulf %18, %23 : vector<20x32xf32>
    %cst_16 = arith.constant dense<0.000000e+00> : vector<20xf32>
    %25 = vector.multi_reduction <add>, %24, %cst_16 [1] : vector<20x32xf32> to vector<20xf32>
    %26 = vector.shape_cast %25 : vector<20xf32> to vector<20x1xf32>
    %27 = vector.broadcast %26 : vector<20x1xf32> to vector<20x20xf32>
    %28 = arith.mulf %27, %0 : vector<20x20xf32>
    %29 = arith.addf %22, %28 : vector<20x20xf32>
    %30 = arith.addf %29, %1 : vector<20x20xf32>
    %cst_17 = arith.constant dense<0xFF800000> : vector<20xf32>
    %31 = vector.multi_reduction <maximumf>, %30, %cst_17 [1] : vector<20x20xf32> to vector<20xf32>
    %32 = vector.shape_cast %31 : vector<20xf32> to vector<20x1xf32>
    %33 = vector.broadcast %32 : vector<20x1xf32> to vector<20x20xf32>
    %34 = arith.subf %30, %33 : vector<20x20xf32>
    %cst_18 = arith.constant -6.000000e+01 : f32
    %35 = vector.broadcast %cst_18 : f32 to vector<20x20xf32>
    %36 = arith.maximumf %34, %35 : vector<20x20xf32>
    %37 = math.exp %36 : vector<20x20xf32>
    %cst_19 = arith.constant dense<0.000000e+00> : vector<20xf32>
    %38 = vector.multi_reduction <add>, %37, %cst_19 [1] : vector<20x20xf32> to vector<20xf32>
    %39 = vector.shape_cast %38 : vector<20xf32> to vector<20x1xf32>
    %40 = tpu.reciprocal %39 {approx = true} : vector<20x1xf32> -> vector<20x1xf32>
    %41 = vector.broadcast %40 : vector<20x1xf32> to vector<20x20xf32>
    %42 = arith.mulf %37, %41 : vector<20x20xf32>
    %cst_20 = arith.constant dense<0.000000e+00> : vector<20x32xf32>
    %43 = tpu.matmul %42, %20, %cst_20 {dimension_numbers = #tpu.dot_dimension_numbers<[1], [0], [0], [1], [0, 0, 1, 1], [], []>} : vector<20x20xf32>, vector<20x32xf32>, vector<20x32xf32> -> vector<20x32xf32>
    %44 = arith.mulf %42, %0 : vector<20x20xf32>
    %cst_21 = arith.constant dense<0.000000e+00> : vector<20xf32>
    %45 = vector.multi_reduction <add>, %44, %cst_21 [1] : vector<20x20xf32> to vector<20xf32>
    %46 = vector.shape_cast %45 : vector<20xf32> to vector<20x1xf32>
    %47 = vector.broadcast %46 : vector<20x1xf32> to vector<20x32xf32>
    %48 = vector.broadcast %21 : vector<1x32xf32> to vector<20x32xf32>
    %49 = arith.mulf %47, %48 : vector<20x32xf32>
    %50 = arith.addf %43, %49 : vector<20x32xf32>
    %51 = vector.extract_strided_slice %12 {offsets = [0, 32], sizes = [20, 32], strides = [1, 1]} : vector<20x128xf32> to vector<20x32xf32>
    %52 = vector.extract_strided_slice %13 {offsets = [0, 32], sizes = [20, 32], strides = [1, 1]} : vector<20x128xf32> to vector<20x32xf32>
    %53 = vector.extract_strided_slice %14 {offsets = [0, 32], sizes = [20, 32], strides = [1, 1]} : vector<20x128xf32> to vector<20x32xf32>
    %54 = vector.extract_strided_slice %17 {offsets = [0, 32], sizes = [1, 32], strides = [1, 1]} : vector<1x128xf32> to vector<1x32xf32>
    %cst_22 = arith.constant dense<0.000000e+00> : vector<20x20xf32>
    %55 = tpu.matmul %51, %52, %cst_22 {dimension_numbers = #tpu.dot_dimension_numbers<[1], [1], [0], [0], [0, 0, 1, 0], [], []>} : vector<20x32xf32>, vector<20x32xf32>, vector<20x20xf32> -> vector<20x20xf32>
    %56 = vector.broadcast %54 : vector<1x32xf32> to vector<20x32xf32>
    %57 = arith.mulf %51, %56 : vector<20x32xf32>
    %cst_23 = arith.constant dense<0.000000e+00> : vector<20xf32>
    %58 = vector.multi_reduction <add>, %57, %cst_23 [1] : vector<20x32xf32> to vector<20xf32>
    %59 = vector.shape_cast %58 : vector<20xf32> to vector<20x1xf32>
    %60 = vector.broadcast %59 : vector<20x1xf32> to vector<20x20xf32>
    %61 = arith.mulf %60, %0 : vector<20x20xf32>
    %62 = arith.addf %55, %61 : vector<20x20xf32>
    %63 = arith.addf %62, %1 : vector<20x20xf32>
    %cst_24 = arith.constant dense<0xFF800000> : vector<20xf32>
    %64 = vector.multi_reduction <maximumf>, %63, %cst_24 [1] : vector<20x20xf32> to vector<20xf32>
    %65 = vector.shape_cast %64 : vector<20xf32> to vector<20x1xf32>
    %66 = vector.broadcast %65 : vector<20x1xf32> to vector<20x20xf32>
    %67 = arith.subf %63, %66 : vector<20x20xf32>
    %cst_25 = arith.constant -6.000000e+01 : f32
    %68 = vector.broadcast %cst_25 : f32 to vector<20x20xf32>
    %69 = arith.maximumf %67, %68 : vector<20x20xf32>
    %70 = math.exp %69 : vector<20x20xf32>
    %cst_26 = arith.constant dense<0.000000e+00> : vector<20xf32>
    %71 = vector.multi_reduction <add>, %70, %cst_26 [1] : vector<20x20xf32> to vector<20xf32>
    %72 = vector.shape_cast %71 : vector<20xf32> to vector<20x1xf32>
    %73 = tpu.reciprocal %72 {approx = true} : vector<20x1xf32> -> vector<20x1xf32>
    %74 = vector.broadcast %73 : vector<20x1xf32> to vector<20x20xf32>
    %75 = arith.mulf %70, %74 : vector<20x20xf32>
    %cst_27 = arith.constant dense<0.000000e+00> : vector<20x32xf32>
    %76 = tpu.matmul %75, %53, %cst_27 {dimension_numbers = #tpu.dot_dimension_numbers<[1], [0], [0], [1], [0, 0, 1, 1], [], []>} : vector<20x20xf32>, vector<20x32xf32>, vector<20x32xf32> -> vector<20x32xf32>
    %77 = arith.mulf %75, %0 : vector<20x20xf32>
    %cst_28 = arith.constant dense<0.000000e+00> : vector<20xf32>
    %78 = vector.multi_reduction <add>, %77, %cst_28 [1] : vector<20x20xf32> to vector<20xf32>
    %79 = vector.shape_cast %78 : vector<20xf32> to vector<20x1xf32>
    %80 = vector.broadcast %79 : vector<20x1xf32> to vector<20x32xf32>
    %81 = vector.broadcast %54 : vector<1x32xf32> to vector<20x32xf32>
    %82 = arith.mulf %80, %81 : vector<20x32xf32>
    %83 = arith.addf %76, %82 : vector<20x32xf32>
    %84 = vector.extract_strided_slice %12 {offsets = [0, 64], sizes = [20, 32], strides = [1, 1]} : vector<20x128xf32> to vector<20x32xf32>
    %85 = vector.extract_strided_slice %13 {offsets = [0, 64], sizes = [20, 32], strides = [1, 1]} : vector<20x128xf32> to vector<20x32xf32>
    %86 = vector.extract_strided_slice %14 {offsets = [0, 64], sizes = [20, 32], strides = [1, 1]} : vector<20x128xf32> to vector<20x32xf32>
    %87 = vector.extract_strided_slice %17 {offsets = [0, 64], sizes = [1, 32], strides = [1, 1]} : vector<1x128xf32> to vector<1x32xf32>
    %cst_29 = arith.constant dense<0.000000e+00> : vector<20x20xf32>
    %88 = tpu.matmul %84, %85, %cst_29 {dimension_numbers = #tpu.dot_dimension_numbers<[1], [1], [0], [0], [0, 0, 1, 0], [], []>} : vector<20x32xf32>, vector<20x32xf32>, vector<20x20xf32> -> vector<20x20xf32>
    %89 = vector.broadcast %87 : vector<1x32xf32> to vector<20x32xf32>
    %90 = arith.mulf %84, %89 : vector<20x32xf32>
    %cst_30 = arith.constant dense<0.000000e+00> : vector<20xf32>
    %91 = vector.multi_reduction <add>, %90, %cst_30 [1] : vector<20x32xf32> to vector<20xf32>
    %92 = vector.shape_cast %91 : vector<20xf32> to vector<20x1xf32>
    %93 = vector.broadcast %92 : vector<20x1xf32> to vector<20x20xf32>
    %94 = arith.mulf %93, %0 : vector<20x20xf32>
    %95 = arith.addf %88, %94 : vector<20x20xf32>
    %96 = arith.addf %95, %1 : vector<20x20xf32>
    %cst_31 = arith.constant dense<0xFF800000> : vector<20xf32>
    %97 = vector.multi_reduction <maximumf>, %96, %cst_31 [1] : vector<20x20xf32> to vector<20xf32>
    %98 = vector.shape_cast %97 : vector<20xf32> to vector<20x1xf32>
    %99 = vector.broadcast %98 : vector<20x1xf32> to vector<20x20xf32>
    %100 = arith.subf %96, %99 : vector<20x20xf32>
    %cst_32 = arith.constant -6.000000e+01 : f32
    %101 = vector.broadcast %cst_32 : f32 to vector<20x20xf32>
    %102 = arith.maximumf %100, %101 : vector<20x20xf32>
    %103 = math.exp %102 : vector<20x20xf32>
    %cst_33 = arith.constant dense<0.000000e+00> : vector<20xf32>
    %104 = vector.multi_reduction <add>, %103, %cst_33 [1] : vector<20x20xf32> to vector<20xf32>
    %105 = vector.shape_cast %104 : vector<20xf32> to vector<20x1xf32>
    %106 = tpu.reciprocal %105 {approx = true} : vector<20x1xf32> -> vector<20x1xf32>
    %107 = vector.broadcast %106 : vector<20x1xf32> to vector<20x20xf32>
    %108 = arith.mulf %103, %107 : vector<20x20xf32>
    %cst_34 = arith.constant dense<0.000000e+00> : vector<20x32xf32>
    %109 = tpu.matmul %108, %86, %cst_34 {dimension_numbers = #tpu.dot_dimension_numbers<[1], [0], [0], [1], [0, 0, 1, 1], [], []>} : vector<20x20xf32>, vector<20x32xf32>, vector<20x32xf32> -> vector<20x32xf32>
    %110 = arith.mulf %108, %0 : vector<20x20xf32>
    %cst_35 = arith.constant dense<0.000000e+00> : vector<20xf32>
    %111 = vector.multi_reduction <add>, %110, %cst_35 [1] : vector<20x20xf32> to vector<20xf32>
    %112 = vector.shape_cast %111 : vector<20xf32> to vector<20x1xf32>
    %113 = vector.broadcast %112 : vector<20x1xf32> to vector<20x32xf32>
    %114 = vector.broadcast %87 : vector<1x32xf32> to vector<20x32xf32>
    %115 = arith.mulf %113, %114 : vector<20x32xf32>
    %116 = arith.addf %109, %115 : vector<20x32xf32>
    %117 = vector.extract_strided_slice %12 {offsets = [0, 96], sizes = [20, 32], strides = [1, 1]} : vector<20x128xf32> to vector<20x32xf32>
    %118 = vector.extract_strided_slice %13 {offsets = [0, 96], sizes = [20, 32], strides = [1, 1]} : vector<20x128xf32> to vector<20x32xf32>
    %119 = vector.extract_strided_slice %14 {offsets = [0, 96], sizes = [20, 32], strides = [1, 1]} : vector<20x128xf32> to vector<20x32xf32>
    %120 = vector.extract_strided_slice %17 {offsets = [0, 96], sizes = [1, 32], strides = [1, 1]} : vector<1x128xf32> to vector<1x32xf32>
    %cst_36 = arith.constant dense<0.000000e+00> : vector<20x20xf32>
    %121 = tpu.matmul %117, %118, %cst_36 {dimension_numbers = #tpu.dot_dimension_numbers<[1], [1], [0], [0], [0, 0, 1, 0], [], []>} : vector<20x32xf32>, vector<20x32xf32>, vector<20x20xf32> -> vector<20x20xf32>
    %122 = vector.broadcast %120 : vector<1x32xf32> to vector<20x32xf32>
    %123 = arith.mulf %117, %122 : vector<20x32xf32>
    %cst_37 = arith.constant dense<0.000000e+00> : vector<20xf32>
    %124 = vector.multi_reduction <add>, %123, %cst_37 [1] : vector<20x32xf32> to vector<20xf32>
    %125 = vector.shape_cast %124 : vector<20xf32> to vector<20x1xf32>
    %126 = vector.broadcast %125 : vector<20x1xf32> to vector<20x20xf32>
    %127 = arith.mulf %126, %0 : vector<20x20xf32>
    %128 = arith.addf %121, %127 : vector<20x20xf32>
    %129 = arith.addf %128, %1 : vector<20x20xf32>
    %cst_38 = arith.constant dense<0xFF800000> : vector<20xf32>
    %130 = vector.multi_reduction <maximumf>, %129, %cst_38 [1] : vector<20x20xf32> to vector<20xf32>
    %131 = vector.shape_cast %130 : vector<20xf32> to vector<20x1xf32>
    %132 = vector.broadcast %131 : vector<20x1xf32> to vector<20x20xf32>
    %133 = arith.subf %129, %132 : vector<20x20xf32>
    %cst_39 = arith.constant -6.000000e+01 : f32
    %134 = vector.broadcast %cst_39 : f32 to vector<20x20xf32>
    %135 = arith.maximumf %133, %134 : vector<20x20xf32>
    %136 = math.exp %135 : vector<20x20xf32>
    %cst_40 = arith.constant dense<0.000000e+00> : vector<20xf32>
    %137 = vector.multi_reduction <add>, %136, %cst_40 [1] : vector<20x20xf32> to vector<20xf32>
    %138 = vector.shape_cast %137 : vector<20xf32> to vector<20x1xf32>
    %139 = tpu.reciprocal %138 {approx = true} : vector<20x1xf32> -> vector<20x1xf32>
    %140 = vector.broadcast %139 : vector<20x1xf32> to vector<20x20xf32>
    %141 = arith.mulf %136, %140 : vector<20x20xf32>
    %cst_41 = arith.constant dense<0.000000e+00> : vector<20x32xf32>
    %142 = tpu.matmul %141, %119, %cst_41 {dimension_numbers = #tpu.dot_dimension_numbers<[1], [0], [0], [1], [0, 0, 1, 1], [], []>} : vector<20x20xf32>, vector<20x32xf32>, vector<20x32xf32> -> vector<20x32xf32>
    %143 = arith.mulf %141, %0 : vector<20x20xf32>
    %cst_42 = arith.constant dense<0.000000e+00> : vector<20xf32>
    %144 = vector.multi_reduction <add>, %143, %cst_42 [1] : vector<20x20xf32> to vector<20xf32>
    %145 = vector.shape_cast %144 : vector<20xf32> to vector<20x1xf32>
    %146 = vector.broadcast %145 : vector<20x1xf32> to vector<20x32xf32>
    %147 = vector.broadcast %120 : vector<1x32xf32> to vector<20x32xf32>
    %148 = arith.mulf %146, %147 : vector<20x32xf32>
    %149 = arith.addf %142, %148 : vector<20x32xf32>
    %150 = tpu.concatenate %50, %83, %116, %149 in 1 : vector<20x32xf32>, vector<20x32xf32>, vector<20x32xf32>, vector<20x32xf32> -> vector<20x128xf32>
    %c0_43 = arith.constant 0 : index
    %c0_44 = arith.constant 0 : index
    %c0_45 = arith.constant 0 : index
    %151 = vector.load %arg6[%c0_43, %c0_44, %c0_45] : memref<5x3x128xf32, #tpu.memory_space<vmem>>, vector<1x3x128xf32>
    %152 = vector.shape_cast %151 : vector<1x3x128xf32> to vector<3x128xf32>
    %153 = vector.extract_strided_slice %152 {offsets = [0, 0], sizes = [1, 128], strides = [1, 1]} : vector<3x128xf32> to vector<1x128xf32>
    %154 = vector.extract_strided_slice %152 {offsets = [2, 0], sizes = [1, 128], strides = [1, 1]} : vector<3x128xf32> to vector<1x128xf32>
    %155 = arith.addf %153, %154 : vector<1x128xf32>
    %156 = vector.extract_strided_slice %152 {offsets = [1, 0], sizes = [1, 128], strides = [1, 1]} : vector<3x128xf32> to vector<1x128xf32>
    %157 = vector.extract_strided_slice %152 {offsets = [2, 0], sizes = [1, 128], strides = [1, 1]} : vector<3x128xf32> to vector<1x128xf32>
    %158 = arith.subf %156, %157 : vector<1x128xf32>
    %159 = vector.broadcast %155 : vector<1x128xf32> to vector<20x128xf32>
    %160 = arith.mulf %150, %159 : vector<20x128xf32>
    %161 = vector.broadcast %158 : vector<1x128xf32> to vector<20x128xf32>
    %162 = arith.mulf %15, %161 : vector<20x128xf32>
    %163 = arith.addf %160, %162 : vector<20x128xf32>
    %cst_46 = arith.constant dense<0.000000e+00> : vector<20xf32>
    %164 = vector.multi_reduction <add>, %163, %cst_46 [1] : vector<20x128xf32> to vector<20xf32>
    %165 = vector.shape_cast %164 : vector<20xf32> to vector<20x1xf32>
    %cst_47 = arith.constant 0.000000e+00 : f32
    %166 = vector.broadcast %cst_47 : f32 to vector<20x1xf32>
    %167 = arith.subf %166, %165 : vector<20x1xf32>
    %168 = math.exp %167 : vector<20x1xf32>
    %cst_48 = arith.constant 1.000000e+00 : f32
    %169 = vector.broadcast %cst_48 : f32 to vector<20x1xf32>
    %170 = arith.addf %169, %168 : vector<20x1xf32>
    %171 = tpu.reciprocal %170 {approx = true} : vector<20x1xf32> -> vector<20x1xf32>
    %172 = arith.subf %15, %150 : vector<20x128xf32>
    %173 = vector.broadcast %171 : vector<20x1xf32> to vector<20x128xf32>
    %174 = arith.mulf %173, %172 : vector<20x128xf32>
    %175 = arith.addf %150, %174 : vector<20x128xf32>
    %c0_49 = arith.constant 0 : index
    %c0_50 = arith.constant 0 : index
    %c0_51 = arith.constant 0 : index
    %176 = vector.load %arg7[%c0_49, %c0_50, %c0_51] : memref<5x128x32xf32, #tpu.memory_space<vmem>>, vector<1x128x32xf32>
    %177 = vector.shape_cast %176 : vector<1x128x32xf32> to vector<128x32xf32>
    %cst_52 = arith.constant dense<0.000000e+00> : vector<20x32xf32>
    %178 = tpu.matmul %175, %177, %cst_52 {dimension_numbers = #tpu.dot_dimension_numbers<[1], [0], [0], [1], [0, 0, 1, 1], [], []>} : vector<20x128xf32>, vector<128x32xf32>, vector<20x32xf32> -> vector<20x32xf32>
    %c0_53 = arith.constant 0 : index
    %c0_54 = arith.constant 0 : index
    %c0_55 = arith.constant 0 : index
    %179 = vector.load %arg8[%c0_53, %c0_54, %c0_55] : memref<5x1x32xf32, #tpu.memory_space<vmem>>, vector<1x1x32xf32>
    %180 = vector.shape_cast %179 : vector<1x1x32xf32> to vector<1x32xf32>
    %181 = vector.broadcast %180 : vector<1x32xf32> to vector<20x32xf32>
    %182 = arith.addf %178, %181 : vector<20x32xf32>
    %cst_56 = arith.constant 0.000000e+00 : f32
    %183 = vector.broadcast %cst_56 : f32 to vector<20x32xf32>
    %184 = arith.maximumf %182, %183 : vector<20x32xf32>
    %cst_57 = arith.constant dense<0.000000e+00> : vector<32xf32>
    %185 = vector.multi_reduction <add>, %184, %cst_57 [0] : vector<20x32xf32> to vector<32xf32>
    %186 = vector.shape_cast %185 : vector<32xf32> to vector<1x32xf32>
    %cst_58 = arith.constant 2.000000e+01 : f32
    %187 = vector.broadcast %cst_58 : f32 to vector<1x32xf32>
    %188 = arith.divf %186, %187 : vector<1x32xf32>
    %189 = vector.broadcast %188 : vector<1x32xf32> to vector<20x32xf32>
    %190 = arith.subf %184, %189 : vector<20x32xf32>
    %191 = arith.mulf %190, %190 : vector<20x32xf32>
    %cst_59 = arith.constant dense<0.000000e+00> : vector<32xf32>
    %192 = vector.multi_reduction <add>, %191, %cst_59 [0] : vector<20x32xf32> to vector<32xf32>
    %193 = vector.shape_cast %192 : vector<32xf32> to vector<1x32xf32>
    %cst_60 = arith.constant 2.000000e+01 : f32
    %194 = vector.broadcast %cst_60 : f32 to vector<1x32xf32>
    %195 = arith.divf %193, %194 : vector<1x32xf32>
    %196 = vector.broadcast %188 : vector<1x32xf32> to vector<20x32xf32>
    %197 = arith.subf %184, %196 : vector<20x32xf32>
    %cst_61 = arith.constant 9.99999974E-6 : f32
    %198 = vector.broadcast %cst_61 : f32 to vector<1x32xf32>
    %199 = arith.addf %195, %198 : vector<1x32xf32>
    %200 = math.rsqrt %199 : vector<1x32xf32>
    %201 = vector.broadcast %200 : vector<1x32xf32> to vector<20x32xf32>
    %202 = arith.mulf %197, %201 : vector<20x32xf32>
    %c0_62 = arith.constant 0 : index
    %c0_63 = arith.constant 0 : index
    %c0_64 = arith.constant 0 : index
    %203 = vector.load %arg9[%c0_62, %c0_63, %c0_64] : memref<5x1x32xf32, #tpu.memory_space<vmem>>, vector<1x1x32xf32>
    %204 = vector.shape_cast %203 : vector<1x1x32xf32> to vector<1x32xf32>
    %205 = vector.broadcast %204 : vector<1x32xf32> to vector<20x32xf32>
    %206 = arith.mulf %202, %205 : vector<20x32xf32>
    %c0_65 = arith.constant 0 : index
    %c0_66 = arith.constant 0 : index
    %c0_67 = arith.constant 0 : index
    %207 = vector.load %arg10[%c0_65, %c0_66, %c0_67] : memref<5x1x32xf32, #tpu.memory_space<vmem>>, vector<1x1x32xf32>
    %208 = vector.shape_cast %207 : vector<1x1x32xf32> to vector<1x32xf32>
    %209 = vector.broadcast %208 : vector<1x32xf32> to vector<20x32xf32>
    %210 = arith.addf %206, %209 : vector<20x32xf32>
    %c1 = arith.constant 1 : index
    %c0_68 = arith.constant 0 : index
    %c0_69 = arith.constant 0 : index
    %211 = vector.load %arg3[%c1, %c0_68, %c0_69] : memref<5x32x512xf32, #tpu.memory_space<vmem>>, vector<1x32x512xf32>
    %212 = vector.shape_cast %211 : vector<1x32x512xf32> to vector<32x512xf32>
    %cst_70 = arith.constant dense<0.000000e+00> : vector<20x512xf32>
    %213 = tpu.matmul %210, %212, %cst_70 {dimension_numbers = #tpu.dot_dimension_numbers<[1], [0], [0], [1], [0, 0, 1, 1], [], []>} : vector<20x32xf32>, vector<32x512xf32>, vector<20x512xf32> -> vector<20x512xf32>
    %c1_71 = arith.constant 1 : index
    %c0_72 = arith.constant 0 : index
    %c0_73 = arith.constant 0 : index
    %214 = vector.load %arg4[%c1_71, %c0_72, %c0_73] : memref<5x1x512xf32, #tpu.memory_space<vmem>>, vector<1x1x512xf32>
    %215 = vector.shape_cast %214 : vector<1x1x512xf32> to vector<1x512xf32>
    %216 = vector.broadcast %215 : vector<1x512xf32> to vector<20x512xf32>
    %217 = arith.addf %213, %216 : vector<20x512xf32>
    %218 = vector.extract_strided_slice %217 {offsets = [0, 0], sizes = [20, 128], strides = [1, 1]} : vector<20x512xf32> to vector<20x128xf32>
    %cst_74 = arith.constant 0.176776692 : f32
    %219 = vector.broadcast %cst_74 : f32 to vector<20x128xf32>
    %220 = arith.mulf %218, %219 : vector<20x128xf32>
    %221 = vector.extract_strided_slice %217 {offsets = [0, 128], sizes = [20, 128], strides = [1, 1]} : vector<20x512xf32> to vector<20x128xf32>
    %222 = vector.extract_strided_slice %217 {offsets = [0, 256], sizes = [20, 128], strides = [1, 1]} : vector<20x512xf32> to vector<20x128xf32>
    %223 = vector.extract_strided_slice %217 {offsets = [0, 384], sizes = [20, 128], strides = [1, 1]} : vector<20x512xf32> to vector<20x128xf32>
    %c1_75 = arith.constant 1 : index
    %c0_76 = arith.constant 0 : index
    %c0_77 = arith.constant 0 : index
    %224 = vector.load %arg5[%c1_75, %c0_76, %c0_77] : memref<5x1x128xf32, #tpu.memory_space<vmem>>, vector<1x1x128xf32>
    %225 = vector.shape_cast %224 : vector<1x1x128xf32> to vector<1x128xf32>
    %226 = vector.extract_strided_slice %220 {offsets = [0, 0], sizes = [20, 32], strides = [1, 1]} : vector<20x128xf32> to vector<20x32xf32>
    %227 = vector.extract_strided_slice %221 {offsets = [0, 0], sizes = [20, 32], strides = [1, 1]} : vector<20x128xf32> to vector<20x32xf32>
    %228 = vector.extract_strided_slice %222 {offsets = [0, 0], sizes = [20, 32], strides = [1, 1]} : vector<20x128xf32> to vector<20x32xf32>
    %229 = vector.extract_strided_slice %225 {offsets = [0, 0], sizes = [1, 32], strides = [1, 1]} : vector<1x128xf32> to vector<1x32xf32>
    %cst_78 = arith.constant dense<0.000000e+00> : vector<20x20xf32>
    %230 = tpu.matmul %226, %227, %cst_78 {dimension_numbers = #tpu.dot_dimension_numbers<[1], [1], [0], [0], [0, 0, 1, 0], [], []>} : vector<20x32xf32>, vector<20x32xf32>, vector<20x20xf32> -> vector<20x20xf32>
    %231 = vector.broadcast %229 : vector<1x32xf32> to vector<20x32xf32>
    %232 = arith.mulf %226, %231 : vector<20x32xf32>
    %cst_79 = arith.constant dense<0.000000e+00> : vector<20xf32>
    %233 = vector.multi_reduction <add>, %232, %cst_79 [1] : vector<20x32xf32> to vector<20xf32>
    %234 = vector.shape_cast %233 : vector<20xf32> to vector<20x1xf32>
    %235 = vector.broadcast %234 : vector<20x1xf32> to vector<20x20xf32>
    %236 = arith.mulf %235, %0 : vector<20x20xf32>
    %237 = arith.addf %230, %236 : vector<20x20xf32>
    %238 = arith.addf %237, %1 : vector<20x20xf32>
    %cst_80 = arith.constant dense<0xFF800000> : vector<20xf32>
    %239 = vector.multi_reduction <maximumf>, %238, %cst_80 [1] : vector<20x20xf32> to vector<20xf32>
    %240 = vector.shape_cast %239 : vector<20xf32> to vector<20x1xf32>
    %241 = vector.broadcast %240 : vector<20x1xf32> to vector<20x20xf32>
    %242 = arith.subf %238, %241 : vector<20x20xf32>
    %cst_81 = arith.constant -6.000000e+01 : f32
    %243 = vector.broadcast %cst_81 : f32 to vector<20x20xf32>
    %244 = arith.maximumf %242, %243 : vector<20x20xf32>
    %245 = math.exp %244 : vector<20x20xf32>
    %cst_82 = arith.constant dense<0.000000e+00> : vector<20xf32>
    %246 = vector.multi_reduction <add>, %245, %cst_82 [1] : vector<20x20xf32> to vector<20xf32>
    %247 = vector.shape_cast %246 : vector<20xf32> to vector<20x1xf32>
    %248 = tpu.reciprocal %247 {approx = true} : vector<20x1xf32> -> vector<20x1xf32>
    %249 = vector.broadcast %248 : vector<20x1xf32> to vector<20x20xf32>
    %250 = arith.mulf %245, %249 : vector<20x20xf32>
    %cst_83 = arith.constant dense<0.000000e+00> : vector<20x32xf32>
    %251 = tpu.matmul %250, %228, %cst_83 {dimension_numbers = #tpu.dot_dimension_numbers<[1], [0], [0], [1], [0, 0, 1, 1], [], []>} : vector<20x20xf32>, vector<20x32xf32>, vector<20x32xf32> -> vector<20x32xf32>
    %252 = arith.mulf %250, %0 : vector<20x20xf32>
    %cst_84 = arith.constant dense<0.000000e+00> : vector<20xf32>
    %253 = vector.multi_reduction <add>, %252, %cst_84 [1] : vector<20x20xf32> to vector<20xf32>
    %254 = vector.shape_cast %253 : vector<20xf32> to vector<20x1xf32>
    %255 = vector.broadcast %254 : vector<20x1xf32> to vector<20x32xf32>
    %256 = vector.broadcast %229 : vector<1x32xf32> to vector<20x32xf32>
    %257 = arith.mulf %255, %256 : vector<20x32xf32>
    %258 = arith.addf %251, %257 : vector<20x32xf32>
    %259 = vector.extract_strided_slice %220 {offsets = [0, 32], sizes = [20, 32], strides = [1, 1]} : vector<20x128xf32> to vector<20x32xf32>
    %260 = vector.extract_strided_slice %221 {offsets = [0, 32], sizes = [20, 32], strides = [1, 1]} : vector<20x128xf32> to vector<20x32xf32>
    %261 = vector.extract_strided_slice %222 {offsets = [0, 32], sizes = [20, 32], strides = [1, 1]} : vector<20x128xf32> to vector<20x32xf32>
    %262 = vector.extract_strided_slice %225 {offsets = [0, 32], sizes = [1, 32], strides = [1, 1]} : vector<1x128xf32> to vector<1x32xf32>
    %cst_85 = arith.constant dense<0.000000e+00> : vector<20x20xf32>
    %263 = tpu.matmul %259, %260, %cst_85 {dimension_numbers = #tpu.dot_dimension_numbers<[1], [1], [0], [0], [0, 0, 1, 0], [], []>} : vector<20x32xf32>, vector<20x32xf32>, vector<20x20xf32> -> vector<20x20xf32>
    %264 = vector.broadcast %262 : vector<1x32xf32> to vector<20x32xf32>
    %265 = arith.mulf %259, %264 : vector<20x32xf32>
    %cst_86 = arith.constant dense<0.000000e+00> : vector<20xf32>
    %266 = vector.multi_reduction <add>, %265, %cst_86 [1] : vector<20x32xf32> to vector<20xf32>
    %267 = vector.shape_cast %266 : vector<20xf32> to vector<20x1xf32>
    %268 = vector.broadcast %267 : vector<20x1xf32> to vector<20x20xf32>
    %269 = arith.mulf %268, %0 : vector<20x20xf32>
    %270 = arith.addf %263, %269 : vector<20x20xf32>
    %271 = arith.addf %270, %1 : vector<20x20xf32>
    %cst_87 = arith.constant dense<0xFF800000> : vector<20xf32>
    %272 = vector.multi_reduction <maximumf>, %271, %cst_87 [1] : vector<20x20xf32> to vector<20xf32>
    %273 = vector.shape_cast %272 : vector<20xf32> to vector<20x1xf32>
    %274 = vector.broadcast %273 : vector<20x1xf32> to vector<20x20xf32>
    %275 = arith.subf %271, %274 : vector<20x20xf32>
    %cst_88 = arith.constant -6.000000e+01 : f32
    %276 = vector.broadcast %cst_88 : f32 to vector<20x20xf32>
    %277 = arith.maximumf %275, %276 : vector<20x20xf32>
    %278 = math.exp %277 : vector<20x20xf32>
    %cst_89 = arith.constant dense<0.000000e+00> : vector<20xf32>
    %279 = vector.multi_reduction <add>, %278, %cst_89 [1] : vector<20x20xf32> to vector<20xf32>
    %280 = vector.shape_cast %279 : vector<20xf32> to vector<20x1xf32>
    %281 = tpu.reciprocal %280 {approx = true} : vector<20x1xf32> -> vector<20x1xf32>
    %282 = vector.broadcast %281 : vector<20x1xf32> to vector<20x20xf32>
    %283 = arith.mulf %278, %282 : vector<20x20xf32>
    %cst_90 = arith.constant dense<0.000000e+00> : vector<20x32xf32>
    %284 = tpu.matmul %283, %261, %cst_90 {dimension_numbers = #tpu.dot_dimension_numbers<[1], [0], [0], [1], [0, 0, 1, 1], [], []>} : vector<20x20xf32>, vector<20x32xf32>, vector<20x32xf32> -> vector<20x32xf32>
    %285 = arith.mulf %283, %0 : vector<20x20xf32>
    %cst_91 = arith.constant dense<0.000000e+00> : vector<20xf32>
    %286 = vector.multi_reduction <add>, %285, %cst_91 [1] : vector<20x20xf32> to vector<20xf32>
    %287 = vector.shape_cast %286 : vector<20xf32> to vector<20x1xf32>
    %288 = vector.broadcast %287 : vector<20x1xf32> to vector<20x32xf32>
    %289 = vector.broadcast %262 : vector<1x32xf32> to vector<20x32xf32>
    %290 = arith.mulf %288, %289 : vector<20x32xf32>
    %291 = arith.addf %284, %290 : vector<20x32xf32>
    %292 = vector.extract_strided_slice %220 {offsets = [0, 64], sizes = [20, 32], strides = [1, 1]} : vector<20x128xf32> to vector<20x32xf32>
    %293 = vector.extract_strided_slice %221 {offsets = [0, 64], sizes = [20, 32], strides = [1, 1]} : vector<20x128xf32> to vector<20x32xf32>
    %294 = vector.extract_strided_slice %222 {offsets = [0, 64], sizes = [20, 32], strides = [1, 1]} : vector<20x128xf32> to vector<20x32xf32>
    %295 = vector.extract_strided_slice %225 {offsets = [0, 64], sizes = [1, 32], strides = [1, 1]} : vector<1x128xf32> to vector<1x32xf32>
    %cst_92 = arith.constant dense<0.000000e+00> : vector<20x20xf32>
    %296 = tpu.matmul %292, %293, %cst_92 {dimension_numbers = #tpu.dot_dimension_numbers<[1], [1], [0], [0], [0, 0, 1, 0], [], []>} : vector<20x32xf32>, vector<20x32xf32>, vector<20x20xf32> -> vector<20x20xf32>
    %297 = vector.broadcast %295 : vector<1x32xf32> to vector<20x32xf32>
    %298 = arith.mulf %292, %297 : vector<20x32xf32>
    %cst_93 = arith.constant dense<0.000000e+00> : vector<20xf32>
    %299 = vector.multi_reduction <add>, %298, %cst_93 [1] : vector<20x32xf32> to vector<20xf32>
    %300 = vector.shape_cast %299 : vector<20xf32> to vector<20x1xf32>
    %301 = vector.broadcast %300 : vector<20x1xf32> to vector<20x20xf32>
    %302 = arith.mulf %301, %0 : vector<20x20xf32>
    %303 = arith.addf %296, %302 : vector<20x20xf32>
    %304 = arith.addf %303, %1 : vector<20x20xf32>
    %cst_94 = arith.constant dense<0xFF800000> : vector<20xf32>
    %305 = vector.multi_reduction <maximumf>, %304, %cst_94 [1] : vector<20x20xf32> to vector<20xf32>
    %306 = vector.shape_cast %305 : vector<20xf32> to vector<20x1xf32>
    %307 = vector.broadcast %306 : vector<20x1xf32> to vector<20x20xf32>
    %308 = arith.subf %304, %307 : vector<20x20xf32>
    %cst_95 = arith.constant -6.000000e+01 : f32
    %309 = vector.broadcast %cst_95 : f32 to vector<20x20xf32>
    %310 = arith.maximumf %308, %309 : vector<20x20xf32>
    %311 = math.exp %310 : vector<20x20xf32>
    %cst_96 = arith.constant dense<0.000000e+00> : vector<20xf32>
    %312 = vector.multi_reduction <add>, %311, %cst_96 [1] : vector<20x20xf32> to vector<20xf32>
    %313 = vector.shape_cast %312 : vector<20xf32> to vector<20x1xf32>
    %314 = tpu.reciprocal %313 {approx = true} : vector<20x1xf32> -> vector<20x1xf32>
    %315 = vector.broadcast %314 : vector<20x1xf32> to vector<20x20xf32>
    %316 = arith.mulf %311, %315 : vector<20x20xf32>
    %cst_97 = arith.constant dense<0.000000e+00> : vector<20x32xf32>
    %317 = tpu.matmul %316, %294, %cst_97 {dimension_numbers = #tpu.dot_dimension_numbers<[1], [0], [0], [1], [0, 0, 1, 1], [], []>} : vector<20x20xf32>, vector<20x32xf32>, vector<20x32xf32> -> vector<20x32xf32>
    %318 = arith.mulf %316, %0 : vector<20x20xf32>
    %cst_98 = arith.constant dense<0.000000e+00> : vector<20xf32>
    %319 = vector.multi_reduction <add>, %318, %cst_98 [1] : vector<20x20xf32> to vector<20xf32>
    %320 = vector.shape_cast %319 : vector<20xf32> to vector<20x1xf32>
    %321 = vector.broadcast %320 : vector<20x1xf32> to vector<20x32xf32>
    %322 = vector.broadcast %295 : vector<1x32xf32> to vector<20x32xf32>
    %323 = arith.mulf %321, %322 : vector<20x32xf32>
    %324 = arith.addf %317, %323 : vector<20x32xf32>
    %325 = vector.extract_strided_slice %220 {offsets = [0, 96], sizes = [20, 32], strides = [1, 1]} : vector<20x128xf32> to vector<20x32xf32>
    %326 = vector.extract_strided_slice %221 {offsets = [0, 96], sizes = [20, 32], strides = [1, 1]} : vector<20x128xf32> to vector<20x32xf32>
    %327 = vector.extract_strided_slice %222 {offsets = [0, 96], sizes = [20, 32], strides = [1, 1]} : vector<20x128xf32> to vector<20x32xf32>
    %328 = vector.extract_strided_slice %225 {offsets = [0, 96], sizes = [1, 32], strides = [1, 1]} : vector<1x128xf32> to vector<1x32xf32>
    %cst_99 = arith.constant dense<0.000000e+00> : vector<20x20xf32>
    %329 = tpu.matmul %325, %326, %cst_99 {dimension_numbers = #tpu.dot_dimension_numbers<[1], [1], [0], [0], [0, 0, 1, 0], [], []>} : vector<20x32xf32>, vector<20x32xf32>, vector<20x20xf32> -> vector<20x20xf32>
    %330 = vector.broadcast %328 : vector<1x32xf32> to vector<20x32xf32>
    %331 = arith.mulf %325, %330 : vector<20x32xf32>
    %cst_100 = arith.constant dense<0.000000e+00> : vector<20xf32>
    %332 = vector.multi_reduction <add>, %331, %cst_100 [1] : vector<20x32xf32> to vector<20xf32>
    %333 = vector.shape_cast %332 : vector<20xf32> to vector<20x1xf32>
    %334 = vector.broadcast %333 : vector<20x1xf32> to vector<20x20xf32>
    %335 = arith.mulf %334, %0 : vector<20x20xf32>
    %336 = arith.addf %329, %335 : vector<20x20xf32>
    %337 = arith.addf %336, %1 : vector<20x20xf32>
    %cst_101 = arith.constant dense<0xFF800000> : vector<20xf32>
    %338 = vector.multi_reduction <maximumf>, %337, %cst_101 [1] : vector<20x20xf32> to vector<20xf32>
    %339 = vector.shape_cast %338 : vector<20xf32> to vector<20x1xf32>
    %340 = vector.broadcast %339 : vector<20x1xf32> to vector<20x20xf32>
    %341 = arith.subf %337, %340 : vector<20x20xf32>
    %cst_102 = arith.constant -6.000000e+01 : f32
    %342 = vector.broadcast %cst_102 : f32 to vector<20x20xf32>
    %343 = arith.maximumf %341, %342 : vector<20x20xf32>
    %344 = math.exp %343 : vector<20x20xf32>
    %cst_103 = arith.constant dense<0.000000e+00> : vector<20xf32>
    %345 = vector.multi_reduction <add>, %344, %cst_103 [1] : vector<20x20xf32> to vector<20xf32>
    %346 = vector.shape_cast %345 : vector<20xf32> to vector<20x1xf32>
    %347 = tpu.reciprocal %346 {approx = true} : vector<20x1xf32> -> vector<20x1xf32>
    %348 = vector.broadcast %347 : vector<20x1xf32> to vector<20x20xf32>
    %349 = arith.mulf %344, %348 : vector<20x20xf32>
    %cst_104 = arith.constant dense<0.000000e+00> : vector<20x32xf32>
    %350 = tpu.matmul %349, %327, %cst_104 {dimension_numbers = #tpu.dot_dimension_numbers<[1], [0], [0], [1], [0, 0, 1, 1], [], []>} : vector<20x20xf32>, vector<20x32xf32>, vector<20x32xf32> -> vector<20x32xf32>
    %351 = arith.mulf %349, %0 : vector<20x20xf32>
    %cst_105 = arith.constant dense<0.000000e+00> : vector<20xf32>
    %352 = vector.multi_reduction <add>, %351, %cst_105 [1] : vector<20x20xf32> to vector<20xf32>
    %353 = vector.shape_cast %352 : vector<20xf32> to vector<20x1xf32>
    %354 = vector.broadcast %353 : vector<20x1xf32> to vector<20x32xf32>
    %355 = vector.broadcast %328 : vector<1x32xf32> to vector<20x32xf32>
    %356 = arith.mulf %354, %355 : vector<20x32xf32>
    %357 = arith.addf %350, %356 : vector<20x32xf32>
    %358 = tpu.concatenate %258, %291, %324, %357 in 1 : vector<20x32xf32>, vector<20x32xf32>, vector<20x32xf32>, vector<20x32xf32> -> vector<20x128xf32>
    %c1_106 = arith.constant 1 : index
    %c0_107 = arith.constant 0 : index
    %c0_108 = arith.constant 0 : index
    %359 = vector.load %arg6[%c1_106, %c0_107, %c0_108] : memref<5x3x128xf32, #tpu.memory_space<vmem>>, vector<1x3x128xf32>
    %360 = vector.shape_cast %359 : vector<1x3x128xf32> to vector<3x128xf32>
    %361 = vector.extract_strided_slice %360 {offsets = [0, 0], sizes = [1, 128], strides = [1, 1]} : vector<3x128xf32> to vector<1x128xf32>
    %362 = vector.extract_strided_slice %360 {offsets = [2, 0], sizes = [1, 128], strides = [1, 1]} : vector<3x128xf32> to vector<1x128xf32>
    %363 = arith.addf %361, %362 : vector<1x128xf32>
    %364 = vector.extract_strided_slice %360 {offsets = [1, 0], sizes = [1, 128], strides = [1, 1]} : vector<3x128xf32> to vector<1x128xf32>
    %365 = vector.extract_strided_slice %360 {offsets = [2, 0], sizes = [1, 128], strides = [1, 1]} : vector<3x128xf32> to vector<1x128xf32>
    %366 = arith.subf %364, %365 : vector<1x128xf32>
    %367 = vector.broadcast %363 : vector<1x128xf32> to vector<20x128xf32>
    %368 = arith.mulf %358, %367 : vector<20x128xf32>
    %369 = vector.broadcast %366 : vector<1x128xf32> to vector<20x128xf32>
    %370 = arith.mulf %223, %369 : vector<20x128xf32>
    %371 = arith.addf %368, %370 : vector<20x128xf32>
    %cst_109 = arith.constant dense<0.000000e+00> : vector<20xf32>
    %372 = vector.multi_reduction <add>, %371, %cst_109 [1] : vector<20x128xf32> to vector<20xf32>
    %373 = vector.shape_cast %372 : vector<20xf32> to vector<20x1xf32>
    %cst_110 = arith.constant 0.000000e+00 : f32
    %374 = vector.broadcast %cst_110 : f32 to vector<20x1xf32>
    %375 = arith.subf %374, %373 : vector<20x1xf32>
    %376 = math.exp %375 : vector<20x1xf32>
    %cst_111 = arith.constant 1.000000e+00 : f32
    %377 = vector.broadcast %cst_111 : f32 to vector<20x1xf32>
    %378 = arith.addf %377, %376 : vector<20x1xf32>
    %379 = tpu.reciprocal %378 {approx = true} : vector<20x1xf32> -> vector<20x1xf32>
    %380 = arith.subf %223, %358 : vector<20x128xf32>
    %381 = vector.broadcast %379 : vector<20x1xf32> to vector<20x128xf32>
    %382 = arith.mulf %381, %380 : vector<20x128xf32>
    %383 = arith.addf %358, %382 : vector<20x128xf32>
    %c1_112 = arith.constant 1 : index
    %c0_113 = arith.constant 0 : index
    %c0_114 = arith.constant 0 : index
    %384 = vector.load %arg7[%c1_112, %c0_113, %c0_114] : memref<5x128x32xf32, #tpu.memory_space<vmem>>, vector<1x128x32xf32>
    %385 = vector.shape_cast %384 : vector<1x128x32xf32> to vector<128x32xf32>
    %cst_115 = arith.constant dense<0.000000e+00> : vector<20x32xf32>
    %386 = tpu.matmul %383, %385, %cst_115 {dimension_numbers = #tpu.dot_dimension_numbers<[1], [0], [0], [1], [0, 0, 1, 1], [], []>} : vector<20x128xf32>, vector<128x32xf32>, vector<20x32xf32> -> vector<20x32xf32>
    %c1_116 = arith.constant 1 : index
    %c0_117 = arith.constant 0 : index
    %c0_118 = arith.constant 0 : index
    %387 = vector.load %arg8[%c1_116, %c0_117, %c0_118] : memref<5x1x32xf32, #tpu.memory_space<vmem>>, vector<1x1x32xf32>
    %388 = vector.shape_cast %387 : vector<1x1x32xf32> to vector<1x32xf32>
    %389 = vector.broadcast %388 : vector<1x32xf32> to vector<20x32xf32>
    %390 = arith.addf %386, %389 : vector<20x32xf32>
    %cst_119 = arith.constant 0.000000e+00 : f32
    %391 = vector.broadcast %cst_119 : f32 to vector<20x32xf32>
    %392 = arith.maximumf %390, %391 : vector<20x32xf32>
    %cst_120 = arith.constant dense<0.000000e+00> : vector<32xf32>
    %393 = vector.multi_reduction <add>, %392, %cst_120 [0] : vector<20x32xf32> to vector<32xf32>
    %394 = vector.shape_cast %393 : vector<32xf32> to vector<1x32xf32>
    %cst_121 = arith.constant 2.000000e+01 : f32
    %395 = vector.broadcast %cst_121 : f32 to vector<1x32xf32>
    %396 = arith.divf %394, %395 : vector<1x32xf32>
    %397 = vector.broadcast %396 : vector<1x32xf32> to vector<20x32xf32>
    %398 = arith.subf %392, %397 : vector<20x32xf32>
    %399 = arith.mulf %398, %398 : vector<20x32xf32>
    %cst_122 = arith.constant dense<0.000000e+00> : vector<32xf32>
    %400 = vector.multi_reduction <add>, %399, %cst_122 [0] : vector<20x32xf32> to vector<32xf32>
    %401 = vector.shape_cast %400 : vector<32xf32> to vector<1x32xf32>
    %cst_123 = arith.constant 2.000000e+01 : f32
    %402 = vector.broadcast %cst_123 : f32 to vector<1x32xf32>
    %403 = arith.divf %401, %402 : vector<1x32xf32>
    %404 = vector.broadcast %396 : vector<1x32xf32> to vector<20x32xf32>
    %405 = arith.subf %392, %404 : vector<20x32xf32>
    %cst_124 = arith.constant 9.99999974E-6 : f32
    %406 = vector.broadcast %cst_124 : f32 to vector<1x32xf32>
    %407 = arith.addf %403, %406 : vector<1x32xf32>
    %408 = math.rsqrt %407 : vector<1x32xf32>
    %409 = vector.broadcast %408 : vector<1x32xf32> to vector<20x32xf32>
    %410 = arith.mulf %405, %409 : vector<20x32xf32>
    %c1_125 = arith.constant 1 : index
    %c0_126 = arith.constant 0 : index
    %c0_127 = arith.constant 0 : index
    %411 = vector.load %arg9[%c1_125, %c0_126, %c0_127] : memref<5x1x32xf32, #tpu.memory_space<vmem>>, vector<1x1x32xf32>
    %412 = vector.shape_cast %411 : vector<1x1x32xf32> to vector<1x32xf32>
    %413 = vector.broadcast %412 : vector<1x32xf32> to vector<20x32xf32>
    %414 = arith.mulf %410, %413 : vector<20x32xf32>
    %c1_128 = arith.constant 1 : index
    %c0_129 = arith.constant 0 : index
    %c0_130 = arith.constant 0 : index
    %415 = vector.load %arg10[%c1_128, %c0_129, %c0_130] : memref<5x1x32xf32, #tpu.memory_space<vmem>>, vector<1x1x32xf32>
    %416 = vector.shape_cast %415 : vector<1x1x32xf32> to vector<1x32xf32>
    %417 = vector.broadcast %416 : vector<1x32xf32> to vector<20x32xf32>
    %418 = arith.addf %414, %417 : vector<20x32xf32>
    %c2 = arith.constant 2 : index
    %c0_131 = arith.constant 0 : index
    %c0_132 = arith.constant 0 : index
    %419 = vector.load %arg3[%c2, %c0_131, %c0_132] : memref<5x32x512xf32, #tpu.memory_space<vmem>>, vector<1x32x512xf32>
    %420 = vector.shape_cast %419 : vector<1x32x512xf32> to vector<32x512xf32>
    %cst_133 = arith.constant dense<0.000000e+00> : vector<20x512xf32>
    %421 = tpu.matmul %418, %420, %cst_133 {dimension_numbers = #tpu.dot_dimension_numbers<[1], [0], [0], [1], [0, 0, 1, 1], [], []>} : vector<20x32xf32>, vector<32x512xf32>, vector<20x512xf32> -> vector<20x512xf32>
    %c2_134 = arith.constant 2 : index
    %c0_135 = arith.constant 0 : index
    %c0_136 = arith.constant 0 : index
    %422 = vector.load %arg4[%c2_134, %c0_135, %c0_136] : memref<5x1x512xf32, #tpu.memory_space<vmem>>, vector<1x1x512xf32>
    %423 = vector.shape_cast %422 : vector<1x1x512xf32> to vector<1x512xf32>
    %424 = vector.broadcast %423 : vector<1x512xf32> to vector<20x512xf32>
    %425 = arith.addf %421, %424 : vector<20x512xf32>
    %426 = vector.extract_strided_slice %425 {offsets = [0, 0], sizes = [20, 128], strides = [1, 1]} : vector<20x512xf32> to vector<20x128xf32>
    %cst_137 = arith.constant 0.176776692 : f32
    %427 = vector.broadcast %cst_137 : f32 to vector<20x128xf32>
    %428 = arith.mulf %426, %427 : vector<20x128xf32>
    %429 = vector.extract_strided_slice %425 {offsets = [0, 128], sizes = [20, 128], strides = [1, 1]} : vector<20x512xf32> to vector<20x128xf32>
    %430 = vector.extract_strided_slice %425 {offsets = [0, 256], sizes = [20, 128], strides = [1, 1]} : vector<20x512xf32> to vector<20x128xf32>
    %431 = vector.extract_strided_slice %425 {offsets = [0, 384], sizes = [20, 128], strides = [1, 1]} : vector<20x512xf32> to vector<20x128xf32>
    %c2_138 = arith.constant 2 : index
    %c0_139 = arith.constant 0 : index
    %c0_140 = arith.constant 0 : index
    %432 = vector.load %arg5[%c2_138, %c0_139, %c0_140] : memref<5x1x128xf32, #tpu.memory_space<vmem>>, vector<1x1x128xf32>
    %433 = vector.shape_cast %432 : vector<1x1x128xf32> to vector<1x128xf32>
    %434 = vector.extract_strided_slice %428 {offsets = [0, 0], sizes = [20, 32], strides = [1, 1]} : vector<20x128xf32> to vector<20x32xf32>
    %435 = vector.extract_strided_slice %429 {offsets = [0, 0], sizes = [20, 32], strides = [1, 1]} : vector<20x128xf32> to vector<20x32xf32>
    %436 = vector.extract_strided_slice %430 {offsets = [0, 0], sizes = [20, 32], strides = [1, 1]} : vector<20x128xf32> to vector<20x32xf32>
    %437 = vector.extract_strided_slice %433 {offsets = [0, 0], sizes = [1, 32], strides = [1, 1]} : vector<1x128xf32> to vector<1x32xf32>
    %cst_141 = arith.constant dense<0.000000e+00> : vector<20x20xf32>
    %438 = tpu.matmul %434, %435, %cst_141 {dimension_numbers = #tpu.dot_dimension_numbers<[1], [1], [0], [0], [0, 0, 1, 0], [], []>} : vector<20x32xf32>, vector<20x32xf32>, vector<20x20xf32> -> vector<20x20xf32>
    %439 = vector.broadcast %437 : vector<1x32xf32> to vector<20x32xf32>
    %440 = arith.mulf %434, %439 : vector<20x32xf32>
    %cst_142 = arith.constant dense<0.000000e+00> : vector<20xf32>
    %441 = vector.multi_reduction <add>, %440, %cst_142 [1] : vector<20x32xf32> to vector<20xf32>
    %442 = vector.shape_cast %441 : vector<20xf32> to vector<20x1xf32>
    %443 = vector.broadcast %442 : vector<20x1xf32> to vector<20x20xf32>
    %444 = arith.mulf %443, %0 : vector<20x20xf32>
    %445 = arith.addf %438, %444 : vector<20x20xf32>
    %446 = arith.addf %445, %1 : vector<20x20xf32>
    %cst_143 = arith.constant dense<0xFF800000> : vector<20xf32>
    %447 = vector.multi_reduction <maximumf>, %446, %cst_143 [1] : vector<20x20xf32> to vector<20xf32>
    %448 = vector.shape_cast %447 : vector<20xf32> to vector<20x1xf32>
    %449 = vector.broadcast %448 : vector<20x1xf32> to vector<20x20xf32>
    %450 = arith.subf %446, %449 : vector<20x20xf32>
    %cst_144 = arith.constant -6.000000e+01 : f32
    %451 = vector.broadcast %cst_144 : f32 to vector<20x20xf32>
    %452 = arith.maximumf %450, %451 : vector<20x20xf32>
    %453 = math.exp %452 : vector<20x20xf32>
    %cst_145 = arith.constant dense<0.000000e+00> : vector<20xf32>
    %454 = vector.multi_reduction <add>, %453, %cst_145 [1] : vector<20x20xf32> to vector<20xf32>
    %455 = vector.shape_cast %454 : vector<20xf32> to vector<20x1xf32>
    %456 = tpu.reciprocal %455 {approx = true} : vector<20x1xf32> -> vector<20x1xf32>
    %457 = vector.broadcast %456 : vector<20x1xf32> to vector<20x20xf32>
    %458 = arith.mulf %453, %457 : vector<20x20xf32>
    %cst_146 = arith.constant dense<0.000000e+00> : vector<20x32xf32>
    %459 = tpu.matmul %458, %436, %cst_146 {dimension_numbers = #tpu.dot_dimension_numbers<[1], [0], [0], [1], [0, 0, 1, 1], [], []>} : vector<20x20xf32>, vector<20x32xf32>, vector<20x32xf32> -> vector<20x32xf32>
    %460 = arith.mulf %458, %0 : vector<20x20xf32>
    %cst_147 = arith.constant dense<0.000000e+00> : vector<20xf32>
    %461 = vector.multi_reduction <add>, %460, %cst_147 [1] : vector<20x20xf32> to vector<20xf32>
    %462 = vector.shape_cast %461 : vector<20xf32> to vector<20x1xf32>
    %463 = vector.broadcast %462 : vector<20x1xf32> to vector<20x32xf32>
    %464 = vector.broadcast %437 : vector<1x32xf32> to vector<20x32xf32>
    %465 = arith.mulf %463, %464 : vector<20x32xf32>
    %466 = arith.addf %459, %465 : vector<20x32xf32>
    %467 = vector.extract_strided_slice %428 {offsets = [0, 32], sizes = [20, 32], strides = [1, 1]} : vector<20x128xf32> to vector<20x32xf32>
    %468 = vector.extract_strided_slice %429 {offsets = [0, 32], sizes = [20, 32], strides = [1, 1]} : vector<20x128xf32> to vector<20x32xf32>
    %469 = vector.extract_strided_slice %430 {offsets = [0, 32], sizes = [20, 32], strides = [1, 1]} : vector<20x128xf32> to vector<20x32xf32>
    %470 = vector.extract_strided_slice %433 {offsets = [0, 32], sizes = [1, 32], strides = [1, 1]} : vector<1x128xf32> to vector<1x32xf32>
    %cst_148 = arith.constant dense<0.000000e+00> : vector<20x20xf32>
    %471 = tpu.matmul %467, %468, %cst_148 {dimension_numbers = #tpu.dot_dimension_numbers<[1], [1], [0], [0], [0, 0, 1, 0], [], []>} : vector<20x32xf32>, vector<20x32xf32>, vector<20x20xf32> -> vector<20x20xf32>
    %472 = vector.broadcast %470 : vector<1x32xf32> to vector<20x32xf32>
    %473 = arith.mulf %467, %472 : vector<20x32xf32>
    %cst_149 = arith.constant dense<0.000000e+00> : vector<20xf32>
    %474 = vector.multi_reduction <add>, %473, %cst_149 [1] : vector<20x32xf32> to vector<20xf32>
    %475 = vector.shape_cast %474 : vector<20xf32> to vector<20x1xf32>
    %476 = vector.broadcast %475 : vector<20x1xf32> to vector<20x20xf32>
    %477 = arith.mulf %476, %0 : vector<20x20xf32>
    %478 = arith.addf %471, %477 : vector<20x20xf32>
    %479 = arith.addf %478, %1 : vector<20x20xf32>
    %cst_150 = arith.constant dense<0xFF800000> : vector<20xf32>
    %480 = vector.multi_reduction <maximumf>, %479, %cst_150 [1] : vector<20x20xf32> to vector<20xf32>
    %481 = vector.shape_cast %480 : vector<20xf32> to vector<20x1xf32>
    %482 = vector.broadcast %481 : vector<20x1xf32> to vector<20x20xf32>
    %483 = arith.subf %479, %482 : vector<20x20xf32>
    %cst_151 = arith.constant -6.000000e+01 : f32
    %484 = vector.broadcast %cst_151 : f32 to vector<20x20xf32>
    %485 = arith.maximumf %483, %484 : vector<20x20xf32>
    %486 = math.exp %485 : vector<20x20xf32>
    %cst_152 = arith.constant dense<0.000000e+00> : vector<20xf32>
    %487 = vector.multi_reduction <add>, %486, %cst_152 [1] : vector<20x20xf32> to vector<20xf32>
    %488 = vector.shape_cast %487 : vector<20xf32> to vector<20x1xf32>
    %489 = tpu.reciprocal %488 {approx = true} : vector<20x1xf32> -> vector<20x1xf32>
    %490 = vector.broadcast %489 : vector<20x1xf32> to vector<20x20xf32>
    %491 = arith.mulf %486, %490 : vector<20x20xf32>
    %cst_153 = arith.constant dense<0.000000e+00> : vector<20x32xf32>
    %492 = tpu.matmul %491, %469, %cst_153 {dimension_numbers = #tpu.dot_dimension_numbers<[1], [0], [0], [1], [0, 0, 1, 1], [], []>} : vector<20x20xf32>, vector<20x32xf32>, vector<20x32xf32> -> vector<20x32xf32>
    %493 = arith.mulf %491, %0 : vector<20x20xf32>
    %cst_154 = arith.constant dense<0.000000e+00> : vector<20xf32>
    %494 = vector.multi_reduction <add>, %493, %cst_154 [1] : vector<20x20xf32> to vector<20xf32>
    %495 = vector.shape_cast %494 : vector<20xf32> to vector<20x1xf32>
    %496 = vector.broadcast %495 : vector<20x1xf32> to vector<20x32xf32>
    %497 = vector.broadcast %470 : vector<1x32xf32> to vector<20x32xf32>
    %498 = arith.mulf %496, %497 : vector<20x32xf32>
    %499 = arith.addf %492, %498 : vector<20x32xf32>
    %500 = vector.extract_strided_slice %428 {offsets = [0, 64], sizes = [20, 32], strides = [1, 1]} : vector<20x128xf32> to vector<20x32xf32>
    %501 = vector.extract_strided_slice %429 {offsets = [0, 64], sizes = [20, 32], strides = [1, 1]} : vector<20x128xf32> to vector<20x32xf32>
    %502 = vector.extract_strided_slice %430 {offsets = [0, 64], sizes = [20, 32], strides = [1, 1]} : vector<20x128xf32> to vector<20x32xf32>
    %503 = vector.extract_strided_slice %433 {offsets = [0, 64], sizes = [1, 32], strides = [1, 1]} : vector<1x128xf32> to vector<1x32xf32>
    %cst_155 = arith.constant dense<0.000000e+00> : vector<20x20xf32>
    %504 = tpu.matmul %500, %501, %cst_155 {dimension_numbers = #tpu.dot_dimension_numbers<[1], [1], [0], [0], [0, 0, 1, 0], [], []>} : vector<20x32xf32>, vector<20x32xf32>, vector<20x20xf32> -> vector<20x20xf32>
    %505 = vector.broadcast %503 : vector<1x32xf32> to vector<20x32xf32>
    %506 = arith.mulf %500, %505 : vector<20x32xf32>
    %cst_156 = arith.constant dense<0.000000e+00> : vector<20xf32>
    %507 = vector.multi_reduction <add>, %506, %cst_156 [1] : vector<20x32xf32> to vector<20xf32>
    %508 = vector.shape_cast %507 : vector<20xf32> to vector<20x1xf32>
    %509 = vector.broadcast %508 : vector<20x1xf32> to vector<20x20xf32>
    %510 = arith.mulf %509, %0 : vector<20x20xf32>
    %511 = arith.addf %504, %510 : vector<20x20xf32>
    %512 = arith.addf %511, %1 : vector<20x20xf32>
    %cst_157 = arith.constant dense<0xFF800000> : vector<20xf32>
    %513 = vector.multi_reduction <maximumf>, %512, %cst_157 [1] : vector<20x20xf32> to vector<20xf32>
    %514 = vector.shape_cast %513 : vector<20xf32> to vector<20x1xf32>
    %515 = vector.broadcast %514 : vector<20x1xf32> to vector<20x20xf32>
    %516 = arith.subf %512, %515 : vector<20x20xf32>
    %cst_158 = arith.constant -6.000000e+01 : f32
    %517 = vector.broadcast %cst_158 : f32 to vector<20x20xf32>
    %518 = arith.maximumf %516, %517 : vector<20x20xf32>
    %519 = math.exp %518 : vector<20x20xf32>
    %cst_159 = arith.constant dense<0.000000e+00> : vector<20xf32>
    %520 = vector.multi_reduction <add>, %519, %cst_159 [1] : vector<20x20xf32> to vector<20xf32>
    %521 = vector.shape_cast %520 : vector<20xf32> to vector<20x1xf32>
    %522 = tpu.reciprocal %521 {approx = true} : vector<20x1xf32> -> vector<20x1xf32>
    %523 = vector.broadcast %522 : vector<20x1xf32> to vector<20x20xf32>
    %524 = arith.mulf %519, %523 : vector<20x20xf32>
    %cst_160 = arith.constant dense<0.000000e+00> : vector<20x32xf32>
    %525 = tpu.matmul %524, %502, %cst_160 {dimension_numbers = #tpu.dot_dimension_numbers<[1], [0], [0], [1], [0, 0, 1, 1], [], []>} : vector<20x20xf32>, vector<20x32xf32>, vector<20x32xf32> -> vector<20x32xf32>
    %526 = arith.mulf %524, %0 : vector<20x20xf32>
    %cst_161 = arith.constant dense<0.000000e+00> : vector<20xf32>
    %527 = vector.multi_reduction <add>, %526, %cst_161 [1] : vector<20x20xf32> to vector<20xf32>
    %528 = vector.shape_cast %527 : vector<20xf32> to vector<20x1xf32>
    %529 = vector.broadcast %528 : vector<20x1xf32> to vector<20x32xf32>
    %530 = vector.broadcast %503 : vector<1x32xf32> to vector<20x32xf32>
    %531 = arith.mulf %529, %530 : vector<20x32xf32>
    %532 = arith.addf %525, %531 : vector<20x32xf32>
    %533 = vector.extract_strided_slice %428 {offsets = [0, 96], sizes = [20, 32], strides = [1, 1]} : vector<20x128xf32> to vector<20x32xf32>
    %534 = vector.extract_strided_slice %429 {offsets = [0, 96], sizes = [20, 32], strides = [1, 1]} : vector<20x128xf32> to vector<20x32xf32>
    %535 = vector.extract_strided_slice %430 {offsets = [0, 96], sizes = [20, 32], strides = [1, 1]} : vector<20x128xf32> to vector<20x32xf32>
    %536 = vector.extract_strided_slice %433 {offsets = [0, 96], sizes = [1, 32], strides = [1, 1]} : vector<1x128xf32> to vector<1x32xf32>
    %cst_162 = arith.constant dense<0.000000e+00> : vector<20x20xf32>
    %537 = tpu.matmul %533, %534, %cst_162 {dimension_numbers = #tpu.dot_dimension_numbers<[1], [1], [0], [0], [0, 0, 1, 0], [], []>} : vector<20x32xf32>, vector<20x32xf32>, vector<20x20xf32> -> vector<20x20xf32>
    %538 = vector.broadcast %536 : vector<1x32xf32> to vector<20x32xf32>
    %539 = arith.mulf %533, %538 : vector<20x32xf32>
    %cst_163 = arith.constant dense<0.000000e+00> : vector<20xf32>
    %540 = vector.multi_reduction <add>, %539, %cst_163 [1] : vector<20x32xf32> to vector<20xf32>
    %541 = vector.shape_cast %540 : vector<20xf32> to vector<20x1xf32>
    %542 = vector.broadcast %541 : vector<20x1xf32> to vector<20x20xf32>
    %543 = arith.mulf %542, %0 : vector<20x20xf32>
    %544 = arith.addf %537, %543 : vector<20x20xf32>
    %545 = arith.addf %544, %1 : vector<20x20xf32>
    %cst_164 = arith.constant dense<0xFF800000> : vector<20xf32>
    %546 = vector.multi_reduction <maximumf>, %545, %cst_164 [1] : vector<20x20xf32> to vector<20xf32>
    %547 = vector.shape_cast %546 : vector<20xf32> to vector<20x1xf32>
    %548 = vector.broadcast %547 : vector<20x1xf32> to vector<20x20xf32>
    %549 = arith.subf %545, %548 : vector<20x20xf32>
    %cst_165 = arith.constant -6.000000e+01 : f32
    %550 = vector.broadcast %cst_165 : f32 to vector<20x20xf32>
    %551 = arith.maximumf %549, %550 : vector<20x20xf32>
    %552 = math.exp %551 : vector<20x20xf32>
    %cst_166 = arith.constant dense<0.000000e+00> : vector<20xf32>
    %553 = vector.multi_reduction <add>, %552, %cst_166 [1] : vector<20x20xf32> to vector<20xf32>
    %554 = vector.shape_cast %553 : vector<20xf32> to vector<20x1xf32>
    %555 = tpu.reciprocal %554 {approx = true} : vector<20x1xf32> -> vector<20x1xf32>
    %556 = vector.broadcast %555 : vector<20x1xf32> to vector<20x20xf32>
    %557 = arith.mulf %552, %556 : vector<20x20xf32>
    %cst_167 = arith.constant dense<0.000000e+00> : vector<20x32xf32>
    %558 = tpu.matmul %557, %535, %cst_167 {dimension_numbers = #tpu.dot_dimension_numbers<[1], [0], [0], [1], [0, 0, 1, 1], [], []>} : vector<20x20xf32>, vector<20x32xf32>, vector<20x32xf32> -> vector<20x32xf32>
    %559 = arith.mulf %557, %0 : vector<20x20xf32>
    %cst_168 = arith.constant dense<0.000000e+00> : vector<20xf32>
    %560 = vector.multi_reduction <add>, %559, %cst_168 [1] : vector<20x20xf32> to vector<20xf32>
    %561 = vector.shape_cast %560 : vector<20xf32> to vector<20x1xf32>
    %562 = vector.broadcast %561 : vector<20x1xf32> to vector<20x32xf32>
    %563 = vector.broadcast %536 : vector<1x32xf32> to vector<20x32xf32>
    %564 = arith.mulf %562, %563 : vector<20x32xf32>
    %565 = arith.addf %558, %564 : vector<20x32xf32>
    %566 = tpu.concatenate %466, %499, %532, %565 in 1 : vector<20x32xf32>, vector<20x32xf32>, vector<20x32xf32>, vector<20x32xf32> -> vector<20x128xf32>
    %c2_169 = arith.constant 2 : index
    %c0_170 = arith.constant 0 : index
    %c0_171 = arith.constant 0 : index
    %567 = vector.load %arg6[%c2_169, %c0_170, %c0_171] : memref<5x3x128xf32, #tpu.memory_space<vmem>>, vector<1x3x128xf32>
    %568 = vector.shape_cast %567 : vector<1x3x128xf32> to vector<3x128xf32>
    %569 = vector.extract_strided_slice %568 {offsets = [0, 0], sizes = [1, 128], strides = [1, 1]} : vector<3x128xf32> to vector<1x128xf32>
    %570 = vector.extract_strided_slice %568 {offsets = [2, 0], sizes = [1, 128], strides = [1, 1]} : vector<3x128xf32> to vector<1x128xf32>
    %571 = arith.addf %569, %570 : vector<1x128xf32>
    %572 = vector.extract_strided_slice %568 {offsets = [1, 0], sizes = [1, 128], strides = [1, 1]} : vector<3x128xf32> to vector<1x128xf32>
    %573 = vector.extract_strided_slice %568 {offsets = [2, 0], sizes = [1, 128], strides = [1, 1]} : vector<3x128xf32> to vector<1x128xf32>
    %574 = arith.subf %572, %573 : vector<1x128xf32>
    %575 = vector.broadcast %571 : vector<1x128xf32> to vector<20x128xf32>
    %576 = arith.mulf %566, %575 : vector<20x128xf32>
    %577 = vector.broadcast %574 : vector<1x128xf32> to vector<20x128xf32>
    %578 = arith.mulf %431, %577 : vector<20x128xf32>
    %579 = arith.addf %576, %578 : vector<20x128xf32>
    %cst_172 = arith.constant dense<0.000000e+00> : vector<20xf32>
    %580 = vector.multi_reduction <add>, %579, %cst_172 [1] : vector<20x128xf32> to vector<20xf32>
    %581 = vector.shape_cast %580 : vector<20xf32> to vector<20x1xf32>
    %cst_173 = arith.constant 0.000000e+00 : f32
    %582 = vector.broadcast %cst_173 : f32 to vector<20x1xf32>
    %583 = arith.subf %582, %581 : vector<20x1xf32>
    %584 = math.exp %583 : vector<20x1xf32>
    %cst_174 = arith.constant 1.000000e+00 : f32
    %585 = vector.broadcast %cst_174 : f32 to vector<20x1xf32>
    %586 = arith.addf %585, %584 : vector<20x1xf32>
    %587 = tpu.reciprocal %586 {approx = true} : vector<20x1xf32> -> vector<20x1xf32>
    %588 = arith.subf %431, %566 : vector<20x128xf32>
    %589 = vector.broadcast %587 : vector<20x1xf32> to vector<20x128xf32>
    %590 = arith.mulf %589, %588 : vector<20x128xf32>
    %591 = arith.addf %566, %590 : vector<20x128xf32>
    %c2_175 = arith.constant 2 : index
    %c0_176 = arith.constant 0 : index
    %c0_177 = arith.constant 0 : index
    %592 = vector.load %arg7[%c2_175, %c0_176, %c0_177] : memref<5x128x32xf32, #tpu.memory_space<vmem>>, vector<1x128x32xf32>
    %593 = vector.shape_cast %592 : vector<1x128x32xf32> to vector<128x32xf32>
    %cst_178 = arith.constant dense<0.000000e+00> : vector<20x32xf32>
    %594 = tpu.matmul %591, %593, %cst_178 {dimension_numbers = #tpu.dot_dimension_numbers<[1], [0], [0], [1], [0, 0, 1, 1], [], []>} : vector<20x128xf32>, vector<128x32xf32>, vector<20x32xf32> -> vector<20x32xf32>
    %c2_179 = arith.constant 2 : index
    %c0_180 = arith.constant 0 : index
    %c0_181 = arith.constant 0 : index
    %595 = vector.load %arg8[%c2_179, %c0_180, %c0_181] : memref<5x1x32xf32, #tpu.memory_space<vmem>>, vector<1x1x32xf32>
    %596 = vector.shape_cast %595 : vector<1x1x32xf32> to vector<1x32xf32>
    %597 = vector.broadcast %596 : vector<1x32xf32> to vector<20x32xf32>
    %598 = arith.addf %594, %597 : vector<20x32xf32>
    %cst_182 = arith.constant 0.000000e+00 : f32
    %599 = vector.broadcast %cst_182 : f32 to vector<20x32xf32>
    %600 = arith.maximumf %598, %599 : vector<20x32xf32>
    %cst_183 = arith.constant dense<0.000000e+00> : vector<32xf32>
    %601 = vector.multi_reduction <add>, %600, %cst_183 [0] : vector<20x32xf32> to vector<32xf32>
    %602 = vector.shape_cast %601 : vector<32xf32> to vector<1x32xf32>
    %cst_184 = arith.constant 2.000000e+01 : f32
    %603 = vector.broadcast %cst_184 : f32 to vector<1x32xf32>
    %604 = arith.divf %602, %603 : vector<1x32xf32>
    %605 = vector.broadcast %604 : vector<1x32xf32> to vector<20x32xf32>
    %606 = arith.subf %600, %605 : vector<20x32xf32>
    %607 = arith.mulf %606, %606 : vector<20x32xf32>
    %cst_185 = arith.constant dense<0.000000e+00> : vector<32xf32>
    %608 = vector.multi_reduction <add>, %607, %cst_185 [0] : vector<20x32xf32> to vector<32xf32>
    %609 = vector.shape_cast %608 : vector<32xf32> to vector<1x32xf32>
    %cst_186 = arith.constant 2.000000e+01 : f32
    %610 = vector.broadcast %cst_186 : f32 to vector<1x32xf32>
    %611 = arith.divf %609, %610 : vector<1x32xf32>
    %612 = vector.broadcast %604 : vector<1x32xf32> to vector<20x32xf32>
    %613 = arith.subf %600, %612 : vector<20x32xf32>
    %cst_187 = arith.constant 9.99999974E-6 : f32
    %614 = vector.broadcast %cst_187 : f32 to vector<1x32xf32>
    %615 = arith.addf %611, %614 : vector<1x32xf32>
    %616 = math.rsqrt %615 : vector<1x32xf32>
    %617 = vector.broadcast %616 : vector<1x32xf32> to vector<20x32xf32>
    %618 = arith.mulf %613, %617 : vector<20x32xf32>
    %c2_188 = arith.constant 2 : index
    %c0_189 = arith.constant 0 : index
    %c0_190 = arith.constant 0 : index
    %619 = vector.load %arg9[%c2_188, %c0_189, %c0_190] : memref<5x1x32xf32, #tpu.memory_space<vmem>>, vector<1x1x32xf32>
    %620 = vector.shape_cast %619 : vector<1x1x32xf32> to vector<1x32xf32>
    %621 = vector.broadcast %620 : vector<1x32xf32> to vector<20x32xf32>
    %622 = arith.mulf %618, %621 : vector<20x32xf32>
    %c2_191 = arith.constant 2 : index
    %c0_192 = arith.constant 0 : index
    %c0_193 = arith.constant 0 : index
    %623 = vector.load %arg10[%c2_191, %c0_192, %c0_193] : memref<5x1x32xf32, #tpu.memory_space<vmem>>, vector<1x1x32xf32>
    %624 = vector.shape_cast %623 : vector<1x1x32xf32> to vector<1x32xf32>
    %625 = vector.broadcast %624 : vector<1x32xf32> to vector<20x32xf32>
    %626 = arith.addf %622, %625 : vector<20x32xf32>
    %c3 = arith.constant 3 : index
    %c0_194 = arith.constant 0 : index
    %c0_195 = arith.constant 0 : index
    %627 = vector.load %arg3[%c3, %c0_194, %c0_195] : memref<5x32x512xf32, #tpu.memory_space<vmem>>, vector<1x32x512xf32>
    %628 = vector.shape_cast %627 : vector<1x32x512xf32> to vector<32x512xf32>
    %cst_196 = arith.constant dense<0.000000e+00> : vector<20x512xf32>
    %629 = tpu.matmul %626, %628, %cst_196 {dimension_numbers = #tpu.dot_dimension_numbers<[1], [0], [0], [1], [0, 0, 1, 1], [], []>} : vector<20x32xf32>, vector<32x512xf32>, vector<20x512xf32> -> vector<20x512xf32>
    %c3_197 = arith.constant 3 : index
    %c0_198 = arith.constant 0 : index
    %c0_199 = arith.constant 0 : index
    %630 = vector.load %arg4[%c3_197, %c0_198, %c0_199] : memref<5x1x512xf32, #tpu.memory_space<vmem>>, vector<1x1x512xf32>
    %631 = vector.shape_cast %630 : vector<1x1x512xf32> to vector<1x512xf32>
    %632 = vector.broadcast %631 : vector<1x512xf32> to vector<20x512xf32>
    %633 = arith.addf %629, %632 : vector<20x512xf32>
    %634 = vector.extract_strided_slice %633 {offsets = [0, 0], sizes = [20, 128], strides = [1, 1]} : vector<20x512xf32> to vector<20x128xf32>
    %cst_200 = arith.constant 0.176776692 : f32
    %635 = vector.broadcast %cst_200 : f32 to vector<20x128xf32>
    %636 = arith.mulf %634, %635 : vector<20x128xf32>
    %637 = vector.extract_strided_slice %633 {offsets = [0, 128], sizes = [20, 128], strides = [1, 1]} : vector<20x512xf32> to vector<20x128xf32>
    %638 = vector.extract_strided_slice %633 {offsets = [0, 256], sizes = [20, 128], strides = [1, 1]} : vector<20x512xf32> to vector<20x128xf32>
    %639 = vector.extract_strided_slice %633 {offsets = [0, 384], sizes = [20, 128], strides = [1, 1]} : vector<20x512xf32> to vector<20x128xf32>
    %c3_201 = arith.constant 3 : index
    %c0_202 = arith.constant 0 : index
    %c0_203 = arith.constant 0 : index
    %640 = vector.load %arg5[%c3_201, %c0_202, %c0_203] : memref<5x1x128xf32, #tpu.memory_space<vmem>>, vector<1x1x128xf32>
    %641 = vector.shape_cast %640 : vector<1x1x128xf32> to vector<1x128xf32>
    %642 = vector.extract_strided_slice %636 {offsets = [0, 0], sizes = [20, 32], strides = [1, 1]} : vector<20x128xf32> to vector<20x32xf32>
    %643 = vector.extract_strided_slice %637 {offsets = [0, 0], sizes = [20, 32], strides = [1, 1]} : vector<20x128xf32> to vector<20x32xf32>
    %644 = vector.extract_strided_slice %638 {offsets = [0, 0], sizes = [20, 32], strides = [1, 1]} : vector<20x128xf32> to vector<20x32xf32>
    %645 = vector.extract_strided_slice %641 {offsets = [0, 0], sizes = [1, 32], strides = [1, 1]} : vector<1x128xf32> to vector<1x32xf32>
    %cst_204 = arith.constant dense<0.000000e+00> : vector<20x20xf32>
    %646 = tpu.matmul %642, %643, %cst_204 {dimension_numbers = #tpu.dot_dimension_numbers<[1], [1], [0], [0], [0, 0, 1, 0], [], []>} : vector<20x32xf32>, vector<20x32xf32>, vector<20x20xf32> -> vector<20x20xf32>
    %647 = vector.broadcast %645 : vector<1x32xf32> to vector<20x32xf32>
    %648 = arith.mulf %642, %647 : vector<20x32xf32>
    %cst_205 = arith.constant dense<0.000000e+00> : vector<20xf32>
    %649 = vector.multi_reduction <add>, %648, %cst_205 [1] : vector<20x32xf32> to vector<20xf32>
    %650 = vector.shape_cast %649 : vector<20xf32> to vector<20x1xf32>
    %651 = vector.broadcast %650 : vector<20x1xf32> to vector<20x20xf32>
    %652 = arith.mulf %651, %0 : vector<20x20xf32>
    %653 = arith.addf %646, %652 : vector<20x20xf32>
    %654 = arith.addf %653, %1 : vector<20x20xf32>
    %cst_206 = arith.constant dense<0xFF800000> : vector<20xf32>
    %655 = vector.multi_reduction <maximumf>, %654, %cst_206 [1] : vector<20x20xf32> to vector<20xf32>
    %656 = vector.shape_cast %655 : vector<20xf32> to vector<20x1xf32>
    %657 = vector.broadcast %656 : vector<20x1xf32> to vector<20x20xf32>
    %658 = arith.subf %654, %657 : vector<20x20xf32>
    %cst_207 = arith.constant -6.000000e+01 : f32
    %659 = vector.broadcast %cst_207 : f32 to vector<20x20xf32>
    %660 = arith.maximumf %658, %659 : vector<20x20xf32>
    %661 = math.exp %660 : vector<20x20xf32>
    %cst_208 = arith.constant dense<0.000000e+00> : vector<20xf32>
    %662 = vector.multi_reduction <add>, %661, %cst_208 [1] : vector<20x20xf32> to vector<20xf32>
    %663 = vector.shape_cast %662 : vector<20xf32> to vector<20x1xf32>
    %664 = tpu.reciprocal %663 {approx = true} : vector<20x1xf32> -> vector<20x1xf32>
    %665 = vector.broadcast %664 : vector<20x1xf32> to vector<20x20xf32>
    %666 = arith.mulf %661, %665 : vector<20x20xf32>
    %cst_209 = arith.constant dense<0.000000e+00> : vector<20x32xf32>
    %667 = tpu.matmul %666, %644, %cst_209 {dimension_numbers = #tpu.dot_dimension_numbers<[1], [0], [0], [1], [0, 0, 1, 1], [], []>} : vector<20x20xf32>, vector<20x32xf32>, vector<20x32xf32> -> vector<20x32xf32>
    %668 = arith.mulf %666, %0 : vector<20x20xf32>
    %cst_210 = arith.constant dense<0.000000e+00> : vector<20xf32>
    %669 = vector.multi_reduction <add>, %668, %cst_210 [1] : vector<20x20xf32> to vector<20xf32>
    %670 = vector.shape_cast %669 : vector<20xf32> to vector<20x1xf32>
    %671 = vector.broadcast %670 : vector<20x1xf32> to vector<20x32xf32>
    %672 = vector.broadcast %645 : vector<1x32xf32> to vector<20x32xf32>
    %673 = arith.mulf %671, %672 : vector<20x32xf32>
    %674 = arith.addf %667, %673 : vector<20x32xf32>
    %675 = vector.extract_strided_slice %636 {offsets = [0, 32], sizes = [20, 32], strides = [1, 1]} : vector<20x128xf32> to vector<20x32xf32>
    %676 = vector.extract_strided_slice %637 {offsets = [0, 32], sizes = [20, 32], strides = [1, 1]} : vector<20x128xf32> to vector<20x32xf32>
    %677 = vector.extract_strided_slice %638 {offsets = [0, 32], sizes = [20, 32], strides = [1, 1]} : vector<20x128xf32> to vector<20x32xf32>
    %678 = vector.extract_strided_slice %641 {offsets = [0, 32], sizes = [1, 32], strides = [1, 1]} : vector<1x128xf32> to vector<1x32xf32>
    %cst_211 = arith.constant dense<0.000000e+00> : vector<20x20xf32>
    %679 = tpu.matmul %675, %676, %cst_211 {dimension_numbers = #tpu.dot_dimension_numbers<[1], [1], [0], [0], [0, 0, 1, 0], [], []>} : vector<20x32xf32>, vector<20x32xf32>, vector<20x20xf32> -> vector<20x20xf32>
    %680 = vector.broadcast %678 : vector<1x32xf32> to vector<20x32xf32>
    %681 = arith.mulf %675, %680 : vector<20x32xf32>
    %cst_212 = arith.constant dense<0.000000e+00> : vector<20xf32>
    %682 = vector.multi_reduction <add>, %681, %cst_212 [1] : vector<20x32xf32> to vector<20xf32>
    %683 = vector.shape_cast %682 : vector<20xf32> to vector<20x1xf32>
    %684 = vector.broadcast %683 : vector<20x1xf32> to vector<20x20xf32>
    %685 = arith.mulf %684, %0 : vector<20x20xf32>
    %686 = arith.addf %679, %685 : vector<20x20xf32>
    %687 = arith.addf %686, %1 : vector<20x20xf32>
    %cst_213 = arith.constant dense<0xFF800000> : vector<20xf32>
    %688 = vector.multi_reduction <maximumf>, %687, %cst_213 [1] : vector<20x20xf32> to vector<20xf32>
    %689 = vector.shape_cast %688 : vector<20xf32> to vector<20x1xf32>
    %690 = vector.broadcast %689 : vector<20x1xf32> to vector<20x20xf32>
    %691 = arith.subf %687, %690 : vector<20x20xf32>
    %cst_214 = arith.constant -6.000000e+01 : f32
    %692 = vector.broadcast %cst_214 : f32 to vector<20x20xf32>
    %693 = arith.maximumf %691, %692 : vector<20x20xf32>
    %694 = math.exp %693 : vector<20x20xf32>
    %cst_215 = arith.constant dense<0.000000e+00> : vector<20xf32>
    %695 = vector.multi_reduction <add>, %694, %cst_215 [1] : vector<20x20xf32> to vector<20xf32>
    %696 = vector.shape_cast %695 : vector<20xf32> to vector<20x1xf32>
    %697 = tpu.reciprocal %696 {approx = true} : vector<20x1xf32> -> vector<20x1xf32>
    %698 = vector.broadcast %697 : vector<20x1xf32> to vector<20x20xf32>
    %699 = arith.mulf %694, %698 : vector<20x20xf32>
    %cst_216 = arith.constant dense<0.000000e+00> : vector<20x32xf32>
    %700 = tpu.matmul %699, %677, %cst_216 {dimension_numbers = #tpu.dot_dimension_numbers<[1], [0], [0], [1], [0, 0, 1, 1], [], []>} : vector<20x20xf32>, vector<20x32xf32>, vector<20x32xf32> -> vector<20x32xf32>
    %701 = arith.mulf %699, %0 : vector<20x20xf32>
    %cst_217 = arith.constant dense<0.000000e+00> : vector<20xf32>
    %702 = vector.multi_reduction <add>, %701, %cst_217 [1] : vector<20x20xf32> to vector<20xf32>
    %703 = vector.shape_cast %702 : vector<20xf32> to vector<20x1xf32>
    %704 = vector.broadcast %703 : vector<20x1xf32> to vector<20x32xf32>
    %705 = vector.broadcast %678 : vector<1x32xf32> to vector<20x32xf32>
    %706 = arith.mulf %704, %705 : vector<20x32xf32>
    %707 = arith.addf %700, %706 : vector<20x32xf32>
    %708 = vector.extract_strided_slice %636 {offsets = [0, 64], sizes = [20, 32], strides = [1, 1]} : vector<20x128xf32> to vector<20x32xf32>
    %709 = vector.extract_strided_slice %637 {offsets = [0, 64], sizes = [20, 32], strides = [1, 1]} : vector<20x128xf32> to vector<20x32xf32>
    %710 = vector.extract_strided_slice %638 {offsets = [0, 64], sizes = [20, 32], strides = [1, 1]} : vector<20x128xf32> to vector<20x32xf32>
    %711 = vector.extract_strided_slice %641 {offsets = [0, 64], sizes = [1, 32], strides = [1, 1]} : vector<1x128xf32> to vector<1x32xf32>
    %cst_218 = arith.constant dense<0.000000e+00> : vector<20x20xf32>
    %712 = tpu.matmul %708, %709, %cst_218 {dimension_numbers = #tpu.dot_dimension_numbers<[1], [1], [0], [0], [0, 0, 1, 0], [], []>} : vector<20x32xf32>, vector<20x32xf32>, vector<20x20xf32> -> vector<20x20xf32>
    %713 = vector.broadcast %711 : vector<1x32xf32> to vector<20x32xf32>
    %714 = arith.mulf %708, %713 : vector<20x32xf32>
    %cst_219 = arith.constant dense<0.000000e+00> : vector<20xf32>
    %715 = vector.multi_reduction <add>, %714, %cst_219 [1] : vector<20x32xf32> to vector<20xf32>
    %716 = vector.shape_cast %715 : vector<20xf32> to vector<20x1xf32>
    %717 = vector.broadcast %716 : vector<20x1xf32> to vector<20x20xf32>
    %718 = arith.mulf %717, %0 : vector<20x20xf32>
    %719 = arith.addf %712, %718 : vector<20x20xf32>
    %720 = arith.addf %719, %1 : vector<20x20xf32>
    %cst_220 = arith.constant dense<0xFF800000> : vector<20xf32>
    %721 = vector.multi_reduction <maximumf>, %720, %cst_220 [1] : vector<20x20xf32> to vector<20xf32>
    %722 = vector.shape_cast %721 : vector<20xf32> to vector<20x1xf32>
    %723 = vector.broadcast %722 : vector<20x1xf32> to vector<20x20xf32>
    %724 = arith.subf %720, %723 : vector<20x20xf32>
    %cst_221 = arith.constant -6.000000e+01 : f32
    %725 = vector.broadcast %cst_221 : f32 to vector<20x20xf32>
    %726 = arith.maximumf %724, %725 : vector<20x20xf32>
    %727 = math.exp %726 : vector<20x20xf32>
    %cst_222 = arith.constant dense<0.000000e+00> : vector<20xf32>
    %728 = vector.multi_reduction <add>, %727, %cst_222 [1] : vector<20x20xf32> to vector<20xf32>
    %729 = vector.shape_cast %728 : vector<20xf32> to vector<20x1xf32>
    %730 = tpu.reciprocal %729 {approx = true} : vector<20x1xf32> -> vector<20x1xf32>
    %731 = vector.broadcast %730 : vector<20x1xf32> to vector<20x20xf32>
    %732 = arith.mulf %727, %731 : vector<20x20xf32>
    %cst_223 = arith.constant dense<0.000000e+00> : vector<20x32xf32>
    %733 = tpu.matmul %732, %710, %cst_223 {dimension_numbers = #tpu.dot_dimension_numbers<[1], [0], [0], [1], [0, 0, 1, 1], [], []>} : vector<20x20xf32>, vector<20x32xf32>, vector<20x32xf32> -> vector<20x32xf32>
    %734 = arith.mulf %732, %0 : vector<20x20xf32>
    %cst_224 = arith.constant dense<0.000000e+00> : vector<20xf32>
    %735 = vector.multi_reduction <add>, %734, %cst_224 [1] : vector<20x20xf32> to vector<20xf32>
    %736 = vector.shape_cast %735 : vector<20xf32> to vector<20x1xf32>
    %737 = vector.broadcast %736 : vector<20x1xf32> to vector<20x32xf32>
    %738 = vector.broadcast %711 : vector<1x32xf32> to vector<20x32xf32>
    %739 = arith.mulf %737, %738 : vector<20x32xf32>
    %740 = arith.addf %733, %739 : vector<20x32xf32>
    %741 = vector.extract_strided_slice %636 {offsets = [0, 96], sizes = [20, 32], strides = [1, 1]} : vector<20x128xf32> to vector<20x32xf32>
    %742 = vector.extract_strided_slice %637 {offsets = [0, 96], sizes = [20, 32], strides = [1, 1]} : vector<20x128xf32> to vector<20x32xf32>
    %743 = vector.extract_strided_slice %638 {offsets = [0, 96], sizes = [20, 32], strides = [1, 1]} : vector<20x128xf32> to vector<20x32xf32>
    %744 = vector.extract_strided_slice %641 {offsets = [0, 96], sizes = [1, 32], strides = [1, 1]} : vector<1x128xf32> to vector<1x32xf32>
    %cst_225 = arith.constant dense<0.000000e+00> : vector<20x20xf32>
    %745 = tpu.matmul %741, %742, %cst_225 {dimension_numbers = #tpu.dot_dimension_numbers<[1], [1], [0], [0], [0, 0, 1, 0], [], []>} : vector<20x32xf32>, vector<20x32xf32>, vector<20x20xf32> -> vector<20x20xf32>
    %746 = vector.broadcast %744 : vector<1x32xf32> to vector<20x32xf32>
    %747 = arith.mulf %741, %746 : vector<20x32xf32>
    %cst_226 = arith.constant dense<0.000000e+00> : vector<20xf32>
    %748 = vector.multi_reduction <add>, %747, %cst_226 [1] : vector<20x32xf32> to vector<20xf32>
    %749 = vector.shape_cast %748 : vector<20xf32> to vector<20x1xf32>
    %750 = vector.broadcast %749 : vector<20x1xf32> to vector<20x20xf32>
    %751 = arith.mulf %750, %0 : vector<20x20xf32>
    %752 = arith.addf %745, %751 : vector<20x20xf32>
    %753 = arith.addf %752, %1 : vector<20x20xf32>
    %cst_227 = arith.constant dense<0xFF800000> : vector<20xf32>
    %754 = vector.multi_reduction <maximumf>, %753, %cst_227 [1] : vector<20x20xf32> to vector<20xf32>
    %755 = vector.shape_cast %754 : vector<20xf32> to vector<20x1xf32>
    %756 = vector.broadcast %755 : vector<20x1xf32> to vector<20x20xf32>
    %757 = arith.subf %753, %756 : vector<20x20xf32>
    %cst_228 = arith.constant -6.000000e+01 : f32
    %758 = vector.broadcast %cst_228 : f32 to vector<20x20xf32>
    %759 = arith.maximumf %757, %758 : vector<20x20xf32>
    %760 = math.exp %759 : vector<20x20xf32>
    %cst_229 = arith.constant dense<0.000000e+00> : vector<20xf32>
    %761 = vector.multi_reduction <add>, %760, %cst_229 [1] : vector<20x20xf32> to vector<20xf32>
    %762 = vector.shape_cast %761 : vector<20xf32> to vector<20x1xf32>
    %763 = tpu.reciprocal %762 {approx = true} : vector<20x1xf32> -> vector<20x1xf32>
    %764 = vector.broadcast %763 : vector<20x1xf32> to vector<20x20xf32>
    %765 = arith.mulf %760, %764 : vector<20x20xf32>
    %cst_230 = arith.constant dense<0.000000e+00> : vector<20x32xf32>
    %766 = tpu.matmul %765, %743, %cst_230 {dimension_numbers = #tpu.dot_dimension_numbers<[1], [0], [0], [1], [0, 0, 1, 1], [], []>} : vector<20x20xf32>, vector<20x32xf32>, vector<20x32xf32> -> vector<20x32xf32>
    %767 = arith.mulf %765, %0 : vector<20x20xf32>
    %cst_231 = arith.constant dense<0.000000e+00> : vector<20xf32>
    %768 = vector.multi_reduction <add>, %767, %cst_231 [1] : vector<20x20xf32> to vector<20xf32>
    %769 = vector.shape_cast %768 : vector<20xf32> to vector<20x1xf32>
    %770 = vector.broadcast %769 : vector<20x1xf32> to vector<20x32xf32>
    %771 = vector.broadcast %744 : vector<1x32xf32> to vector<20x32xf32>
    %772 = arith.mulf %770, %771 : vector<20x32xf32>
    %773 = arith.addf %766, %772 : vector<20x32xf32>
    %774 = tpu.concatenate %674, %707, %740, %773 in 1 : vector<20x32xf32>, vector<20x32xf32>, vector<20x32xf32>, vector<20x32xf32> -> vector<20x128xf32>
    %c3_232 = arith.constant 3 : index
    %c0_233 = arith.constant 0 : index
    %c0_234 = arith.constant 0 : index
    %775 = vector.load %arg6[%c3_232, %c0_233, %c0_234] : memref<5x3x128xf32, #tpu.memory_space<vmem>>, vector<1x3x128xf32>
    %776 = vector.shape_cast %775 : vector<1x3x128xf32> to vector<3x128xf32>
    %777 = vector.extract_strided_slice %776 {offsets = [0, 0], sizes = [1, 128], strides = [1, 1]} : vector<3x128xf32> to vector<1x128xf32>
    %778 = vector.extract_strided_slice %776 {offsets = [2, 0], sizes = [1, 128], strides = [1, 1]} : vector<3x128xf32> to vector<1x128xf32>
    %779 = arith.addf %777, %778 : vector<1x128xf32>
    %780 = vector.extract_strided_slice %776 {offsets = [1, 0], sizes = [1, 128], strides = [1, 1]} : vector<3x128xf32> to vector<1x128xf32>
    %781 = vector.extract_strided_slice %776 {offsets = [2, 0], sizes = [1, 128], strides = [1, 1]} : vector<3x128xf32> to vector<1x128xf32>
    %782 = arith.subf %780, %781 : vector<1x128xf32>
    %783 = vector.broadcast %779 : vector<1x128xf32> to vector<20x128xf32>
    %784 = arith.mulf %774, %783 : vector<20x128xf32>
    %785 = vector.broadcast %782 : vector<1x128xf32> to vector<20x128xf32>
    %786 = arith.mulf %639, %785 : vector<20x128xf32>
    %787 = arith.addf %784, %786 : vector<20x128xf32>
    %cst_235 = arith.constant dense<0.000000e+00> : vector<20xf32>
    %788 = vector.multi_reduction <add>, %787, %cst_235 [1] : vector<20x128xf32> to vector<20xf32>
    %789 = vector.shape_cast %788 : vector<20xf32> to vector<20x1xf32>
    %cst_236 = arith.constant 0.000000e+00 : f32
    %790 = vector.broadcast %cst_236 : f32 to vector<20x1xf32>
    %791 = arith.subf %790, %789 : vector<20x1xf32>
    %792 = math.exp %791 : vector<20x1xf32>
    %cst_237 = arith.constant 1.000000e+00 : f32
    %793 = vector.broadcast %cst_237 : f32 to vector<20x1xf32>
    %794 = arith.addf %793, %792 : vector<20x1xf32>
    %795 = tpu.reciprocal %794 {approx = true} : vector<20x1xf32> -> vector<20x1xf32>
    %796 = arith.subf %639, %774 : vector<20x128xf32>
    %797 = vector.broadcast %795 : vector<20x1xf32> to vector<20x128xf32>
    %798 = arith.mulf %797, %796 : vector<20x128xf32>
    %799 = arith.addf %774, %798 : vector<20x128xf32>
    %c3_238 = arith.constant 3 : index
    %c0_239 = arith.constant 0 : index
    %c0_240 = arith.constant 0 : index
    %800 = vector.load %arg7[%c3_238, %c0_239, %c0_240] : memref<5x128x32xf32, #tpu.memory_space<vmem>>, vector<1x128x32xf32>
    %801 = vector.shape_cast %800 : vector<1x128x32xf32> to vector<128x32xf32>
    %cst_241 = arith.constant dense<0.000000e+00> : vector<20x32xf32>
    %802 = tpu.matmul %799, %801, %cst_241 {dimension_numbers = #tpu.dot_dimension_numbers<[1], [0], [0], [1], [0, 0, 1, 1], [], []>} : vector<20x128xf32>, vector<128x32xf32>, vector<20x32xf32> -> vector<20x32xf32>
    %c3_242 = arith.constant 3 : index
    %c0_243 = arith.constant 0 : index
    %c0_244 = arith.constant 0 : index
    %803 = vector.load %arg8[%c3_242, %c0_243, %c0_244] : memref<5x1x32xf32, #tpu.memory_space<vmem>>, vector<1x1x32xf32>
    %804 = vector.shape_cast %803 : vector<1x1x32xf32> to vector<1x32xf32>
    %805 = vector.broadcast %804 : vector<1x32xf32> to vector<20x32xf32>
    %806 = arith.addf %802, %805 : vector<20x32xf32>
    %cst_245 = arith.constant 0.000000e+00 : f32
    %807 = vector.broadcast %cst_245 : f32 to vector<20x32xf32>
    %808 = arith.maximumf %806, %807 : vector<20x32xf32>
    %cst_246 = arith.constant dense<0.000000e+00> : vector<32xf32>
    %809 = vector.multi_reduction <add>, %808, %cst_246 [0] : vector<20x32xf32> to vector<32xf32>
    %810 = vector.shape_cast %809 : vector<32xf32> to vector<1x32xf32>
    %cst_247 = arith.constant 2.000000e+01 : f32
    %811 = vector.broadcast %cst_247 : f32 to vector<1x32xf32>
    %812 = arith.divf %810, %811 : vector<1x32xf32>
    %813 = vector.broadcast %812 : vector<1x32xf32> to vector<20x32xf32>
    %814 = arith.subf %808, %813 : vector<20x32xf32>
    %815 = arith.mulf %814, %814 : vector<20x32xf32>
    %cst_248 = arith.constant dense<0.000000e+00> : vector<32xf32>
    %816 = vector.multi_reduction <add>, %815, %cst_248 [0] : vector<20x32xf32> to vector<32xf32>
    %817 = vector.shape_cast %816 : vector<32xf32> to vector<1x32xf32>
    %cst_249 = arith.constant 2.000000e+01 : f32
    %818 = vector.broadcast %cst_249 : f32 to vector<1x32xf32>
    %819 = arith.divf %817, %818 : vector<1x32xf32>
    %820 = vector.broadcast %812 : vector<1x32xf32> to vector<20x32xf32>
    %821 = arith.subf %808, %820 : vector<20x32xf32>
    %cst_250 = arith.constant 9.99999974E-6 : f32
    %822 = vector.broadcast %cst_250 : f32 to vector<1x32xf32>
    %823 = arith.addf %819, %822 : vector<1x32xf32>
    %824 = math.rsqrt %823 : vector<1x32xf32>
    %825 = vector.broadcast %824 : vector<1x32xf32> to vector<20x32xf32>
    %826 = arith.mulf %821, %825 : vector<20x32xf32>
    %c3_251 = arith.constant 3 : index
    %c0_252 = arith.constant 0 : index
    %c0_253 = arith.constant 0 : index
    %827 = vector.load %arg9[%c3_251, %c0_252, %c0_253] : memref<5x1x32xf32, #tpu.memory_space<vmem>>, vector<1x1x32xf32>
    %828 = vector.shape_cast %827 : vector<1x1x32xf32> to vector<1x32xf32>
    %829 = vector.broadcast %828 : vector<1x32xf32> to vector<20x32xf32>
    %830 = arith.mulf %826, %829 : vector<20x32xf32>
    %c3_254 = arith.constant 3 : index
    %c0_255 = arith.constant 0 : index
    %c0_256 = arith.constant 0 : index
    %831 = vector.load %arg10[%c3_254, %c0_255, %c0_256] : memref<5x1x32xf32, #tpu.memory_space<vmem>>, vector<1x1x32xf32>
    %832 = vector.shape_cast %831 : vector<1x1x32xf32> to vector<1x32xf32>
    %833 = vector.broadcast %832 : vector<1x32xf32> to vector<20x32xf32>
    %834 = arith.addf %830, %833 : vector<20x32xf32>
    %c4 = arith.constant 4 : index
    %c0_257 = arith.constant 0 : index
    %c0_258 = arith.constant 0 : index
    %835 = vector.load %arg3[%c4, %c0_257, %c0_258] : memref<5x32x512xf32, #tpu.memory_space<vmem>>, vector<1x32x512xf32>
    %836 = vector.shape_cast %835 : vector<1x32x512xf32> to vector<32x512xf32>
    %cst_259 = arith.constant dense<0.000000e+00> : vector<20x512xf32>
    %837 = tpu.matmul %834, %836, %cst_259 {dimension_numbers = #tpu.dot_dimension_numbers<[1], [0], [0], [1], [0, 0, 1, 1], [], []>} : vector<20x32xf32>, vector<32x512xf32>, vector<20x512xf32> -> vector<20x512xf32>
    %c4_260 = arith.constant 4 : index
    %c0_261 = arith.constant 0 : index
    %c0_262 = arith.constant 0 : index
    %838 = vector.load %arg4[%c4_260, %c0_261, %c0_262] : memref<5x1x512xf32, #tpu.memory_space<vmem>>, vector<1x1x512xf32>
    %839 = vector.shape_cast %838 : vector<1x1x512xf32> to vector<1x512xf32>
    %840 = vector.broadcast %839 : vector<1x512xf32> to vector<20x512xf32>
    %841 = arith.addf %837, %840 : vector<20x512xf32>
    %842 = vector.extract_strided_slice %841 {offsets = [0, 0], sizes = [20, 128], strides = [1, 1]} : vector<20x512xf32> to vector<20x128xf32>
    %cst_263 = arith.constant 0.176776692 : f32
    %843 = vector.broadcast %cst_263 : f32 to vector<20x128xf32>
    %844 = arith.mulf %842, %843 : vector<20x128xf32>
    %845 = vector.extract_strided_slice %841 {offsets = [0, 128], sizes = [20, 128], strides = [1, 1]} : vector<20x512xf32> to vector<20x128xf32>
    %846 = vector.extract_strided_slice %841 {offsets = [0, 256], sizes = [20, 128], strides = [1, 1]} : vector<20x512xf32> to vector<20x128xf32>
    %847 = vector.extract_strided_slice %841 {offsets = [0, 384], sizes = [20, 128], strides = [1, 1]} : vector<20x512xf32> to vector<20x128xf32>
    %c4_264 = arith.constant 4 : index
    %c0_265 = arith.constant 0 : index
    %c0_266 = arith.constant 0 : index
    %848 = vector.load %arg5[%c4_264, %c0_265, %c0_266] : memref<5x1x128xf32, #tpu.memory_space<vmem>>, vector<1x1x128xf32>
    %849 = vector.shape_cast %848 : vector<1x1x128xf32> to vector<1x128xf32>
    %850 = vector.extract_strided_slice %844 {offsets = [0, 0], sizes = [20, 32], strides = [1, 1]} : vector<20x128xf32> to vector<20x32xf32>
    %851 = vector.extract_strided_slice %845 {offsets = [0, 0], sizes = [20, 32], strides = [1, 1]} : vector<20x128xf32> to vector<20x32xf32>
    %852 = vector.extract_strided_slice %846 {offsets = [0, 0], sizes = [20, 32], strides = [1, 1]} : vector<20x128xf32> to vector<20x32xf32>
    %853 = vector.extract_strided_slice %849 {offsets = [0, 0], sizes = [1, 32], strides = [1, 1]} : vector<1x128xf32> to vector<1x32xf32>
    %cst_267 = arith.constant dense<0.000000e+00> : vector<20x20xf32>
    %854 = tpu.matmul %850, %851, %cst_267 {dimension_numbers = #tpu.dot_dimension_numbers<[1], [1], [0], [0], [0, 0, 1, 0], [], []>} : vector<20x32xf32>, vector<20x32xf32>, vector<20x20xf32> -> vector<20x20xf32>
    %855 = vector.broadcast %853 : vector<1x32xf32> to vector<20x32xf32>
    %856 = arith.mulf %850, %855 : vector<20x32xf32>
    %cst_268 = arith.constant dense<0.000000e+00> : vector<20xf32>
    %857 = vector.multi_reduction <add>, %856, %cst_268 [1] : vector<20x32xf32> to vector<20xf32>
    %858 = vector.shape_cast %857 : vector<20xf32> to vector<20x1xf32>
    %859 = vector.broadcast %858 : vector<20x1xf32> to vector<20x20xf32>
    %860 = arith.mulf %859, %0 : vector<20x20xf32>
    %861 = arith.addf %854, %860 : vector<20x20xf32>
    %862 = arith.addf %861, %1 : vector<20x20xf32>
    %cst_269 = arith.constant dense<0xFF800000> : vector<20xf32>
    %863 = vector.multi_reduction <maximumf>, %862, %cst_269 [1] : vector<20x20xf32> to vector<20xf32>
    %864 = vector.shape_cast %863 : vector<20xf32> to vector<20x1xf32>
    %865 = vector.broadcast %864 : vector<20x1xf32> to vector<20x20xf32>
    %866 = arith.subf %862, %865 : vector<20x20xf32>
    %cst_270 = arith.constant -6.000000e+01 : f32
    %867 = vector.broadcast %cst_270 : f32 to vector<20x20xf32>
    %868 = arith.maximumf %866, %867 : vector<20x20xf32>
    %869 = math.exp %868 : vector<20x20xf32>
    %cst_271 = arith.constant dense<0.000000e+00> : vector<20xf32>
    %870 = vector.multi_reduction <add>, %869, %cst_271 [1] : vector<20x20xf32> to vector<20xf32>
    %871 = vector.shape_cast %870 : vector<20xf32> to vector<20x1xf32>
    %872 = tpu.reciprocal %871 {approx = true} : vector<20x1xf32> -> vector<20x1xf32>
    %873 = vector.broadcast %872 : vector<20x1xf32> to vector<20x20xf32>
    %874 = arith.mulf %869, %873 : vector<20x20xf32>
    %cst_272 = arith.constant dense<0.000000e+00> : vector<20x32xf32>
    %875 = tpu.matmul %874, %852, %cst_272 {dimension_numbers = #tpu.dot_dimension_numbers<[1], [0], [0], [1], [0, 0, 1, 1], [], []>} : vector<20x20xf32>, vector<20x32xf32>, vector<20x32xf32> -> vector<20x32xf32>
    %876 = arith.mulf %874, %0 : vector<20x20xf32>
    %cst_273 = arith.constant dense<0.000000e+00> : vector<20xf32>
    %877 = vector.multi_reduction <add>, %876, %cst_273 [1] : vector<20x20xf32> to vector<20xf32>
    %878 = vector.shape_cast %877 : vector<20xf32> to vector<20x1xf32>
    %879 = vector.broadcast %878 : vector<20x1xf32> to vector<20x32xf32>
    %880 = vector.broadcast %853 : vector<1x32xf32> to vector<20x32xf32>
    %881 = arith.mulf %879, %880 : vector<20x32xf32>
    %882 = arith.addf %875, %881 : vector<20x32xf32>
    %883 = vector.extract_strided_slice %844 {offsets = [0, 32], sizes = [20, 32], strides = [1, 1]} : vector<20x128xf32> to vector<20x32xf32>
    %884 = vector.extract_strided_slice %845 {offsets = [0, 32], sizes = [20, 32], strides = [1, 1]} : vector<20x128xf32> to vector<20x32xf32>
    %885 = vector.extract_strided_slice %846 {offsets = [0, 32], sizes = [20, 32], strides = [1, 1]} : vector<20x128xf32> to vector<20x32xf32>
    %886 = vector.extract_strided_slice %849 {offsets = [0, 32], sizes = [1, 32], strides = [1, 1]} : vector<1x128xf32> to vector<1x32xf32>
    %cst_274 = arith.constant dense<0.000000e+00> : vector<20x20xf32>
    %887 = tpu.matmul %883, %884, %cst_274 {dimension_numbers = #tpu.dot_dimension_numbers<[1], [1], [0], [0], [0, 0, 1, 0], [], []>} : vector<20x32xf32>, vector<20x32xf32>, vector<20x20xf32> -> vector<20x20xf32>
    %888 = vector.broadcast %886 : vector<1x32xf32> to vector<20x32xf32>
    %889 = arith.mulf %883, %888 : vector<20x32xf32>
    %cst_275 = arith.constant dense<0.000000e+00> : vector<20xf32>
    %890 = vector.multi_reduction <add>, %889, %cst_275 [1] : vector<20x32xf32> to vector<20xf32>
    %891 = vector.shape_cast %890 : vector<20xf32> to vector<20x1xf32>
    %892 = vector.broadcast %891 : vector<20x1xf32> to vector<20x20xf32>
    %893 = arith.mulf %892, %0 : vector<20x20xf32>
    %894 = arith.addf %887, %893 : vector<20x20xf32>
    %895 = arith.addf %894, %1 : vector<20x20xf32>
    %cst_276 = arith.constant dense<0xFF800000> : vector<20xf32>
    %896 = vector.multi_reduction <maximumf>, %895, %cst_276 [1] : vector<20x20xf32> to vector<20xf32>
    %897 = vector.shape_cast %896 : vector<20xf32> to vector<20x1xf32>
    %898 = vector.broadcast %897 : vector<20x1xf32> to vector<20x20xf32>
    %899 = arith.subf %895, %898 : vector<20x20xf32>
    %cst_277 = arith.constant -6.000000e+01 : f32
    %900 = vector.broadcast %cst_277 : f32 to vector<20x20xf32>
    %901 = arith.maximumf %899, %900 : vector<20x20xf32>
    %902 = math.exp %901 : vector<20x20xf32>
    %cst_278 = arith.constant dense<0.000000e+00> : vector<20xf32>
    %903 = vector.multi_reduction <add>, %902, %cst_278 [1] : vector<20x20xf32> to vector<20xf32>
    %904 = vector.shape_cast %903 : vector<20xf32> to vector<20x1xf32>
    %905 = tpu.reciprocal %904 {approx = true} : vector<20x1xf32> -> vector<20x1xf32>
    %906 = vector.broadcast %905 : vector<20x1xf32> to vector<20x20xf32>
    %907 = arith.mulf %902, %906 : vector<20x20xf32>
    %cst_279 = arith.constant dense<0.000000e+00> : vector<20x32xf32>
    %908 = tpu.matmul %907, %885, %cst_279 {dimension_numbers = #tpu.dot_dimension_numbers<[1], [0], [0], [1], [0, 0, 1, 1], [], []>} : vector<20x20xf32>, vector<20x32xf32>, vector<20x32xf32> -> vector<20x32xf32>
    %909 = arith.mulf %907, %0 : vector<20x20xf32>
    %cst_280 = arith.constant dense<0.000000e+00> : vector<20xf32>
    %910 = vector.multi_reduction <add>, %909, %cst_280 [1] : vector<20x20xf32> to vector<20xf32>
    %911 = vector.shape_cast %910 : vector<20xf32> to vector<20x1xf32>
    %912 = vector.broadcast %911 : vector<20x1xf32> to vector<20x32xf32>
    %913 = vector.broadcast %886 : vector<1x32xf32> to vector<20x32xf32>
    %914 = arith.mulf %912, %913 : vector<20x32xf32>
    %915 = arith.addf %908, %914 : vector<20x32xf32>
    %916 = vector.extract_strided_slice %844 {offsets = [0, 64], sizes = [20, 32], strides = [1, 1]} : vector<20x128xf32> to vector<20x32xf32>
    %917 = vector.extract_strided_slice %845 {offsets = [0, 64], sizes = [20, 32], strides = [1, 1]} : vector<20x128xf32> to vector<20x32xf32>
    %918 = vector.extract_strided_slice %846 {offsets = [0, 64], sizes = [20, 32], strides = [1, 1]} : vector<20x128xf32> to vector<20x32xf32>
    %919 = vector.extract_strided_slice %849 {offsets = [0, 64], sizes = [1, 32], strides = [1, 1]} : vector<1x128xf32> to vector<1x32xf32>
    %cst_281 = arith.constant dense<0.000000e+00> : vector<20x20xf32>
    %920 = tpu.matmul %916, %917, %cst_281 {dimension_numbers = #tpu.dot_dimension_numbers<[1], [1], [0], [0], [0, 0, 1, 0], [], []>} : vector<20x32xf32>, vector<20x32xf32>, vector<20x20xf32> -> vector<20x20xf32>
    %921 = vector.broadcast %919 : vector<1x32xf32> to vector<20x32xf32>
    %922 = arith.mulf %916, %921 : vector<20x32xf32>
    %cst_282 = arith.constant dense<0.000000e+00> : vector<20xf32>
    %923 = vector.multi_reduction <add>, %922, %cst_282 [1] : vector<20x32xf32> to vector<20xf32>
    %924 = vector.shape_cast %923 : vector<20xf32> to vector<20x1xf32>
    %925 = vector.broadcast %924 : vector<20x1xf32> to vector<20x20xf32>
    %926 = arith.mulf %925, %0 : vector<20x20xf32>
    %927 = arith.addf %920, %926 : vector<20x20xf32>
    %928 = arith.addf %927, %1 : vector<20x20xf32>
    %cst_283 = arith.constant dense<0xFF800000> : vector<20xf32>
    %929 = vector.multi_reduction <maximumf>, %928, %cst_283 [1] : vector<20x20xf32> to vector<20xf32>
    %930 = vector.shape_cast %929 : vector<20xf32> to vector<20x1xf32>
    %931 = vector.broadcast %930 : vector<20x1xf32> to vector<20x20xf32>
    %932 = arith.subf %928, %931 : vector<20x20xf32>
    %cst_284 = arith.constant -6.000000e+01 : f32
    %933 = vector.broadcast %cst_284 : f32 to vector<20x20xf32>
    %934 = arith.maximumf %932, %933 : vector<20x20xf32>
    %935 = math.exp %934 : vector<20x20xf32>
    %cst_285 = arith.constant dense<0.000000e+00> : vector<20xf32>
    %936 = vector.multi_reduction <add>, %935, %cst_285 [1] : vector<20x20xf32> to vector<20xf32>
    %937 = vector.shape_cast %936 : vector<20xf32> to vector<20x1xf32>
    %938 = tpu.reciprocal %937 {approx = true} : vector<20x1xf32> -> vector<20x1xf32>
    %939 = vector.broadcast %938 : vector<20x1xf32> to vector<20x20xf32>
    %940 = arith.mulf %935, %939 : vector<20x20xf32>
    %cst_286 = arith.constant dense<0.000000e+00> : vector<20x32xf32>
    %941 = tpu.matmul %940, %918, %cst_286 {dimension_numbers = #tpu.dot_dimension_numbers<[1], [0], [0], [1], [0, 0, 1, 1], [], []>} : vector<20x20xf32>, vector<20x32xf32>, vector<20x32xf32> -> vector<20x32xf32>
    %942 = arith.mulf %940, %0 : vector<20x20xf32>
    %cst_287 = arith.constant dense<0.000000e+00> : vector<20xf32>
    %943 = vector.multi_reduction <add>, %942, %cst_287 [1] : vector<20x20xf32> to vector<20xf32>
    %944 = vector.shape_cast %943 : vector<20xf32> to vector<20x1xf32>
    %945 = vector.broadcast %944 : vector<20x1xf32> to vector<20x32xf32>
    %946 = vector.broadcast %919 : vector<1x32xf32> to vector<20x32xf32>
    %947 = arith.mulf %945, %946 : vector<20x32xf32>
    %948 = arith.addf %941, %947 : vector<20x32xf32>
    %949 = vector.extract_strided_slice %844 {offsets = [0, 96], sizes = [20, 32], strides = [1, 1]} : vector<20x128xf32> to vector<20x32xf32>
    %950 = vector.extract_strided_slice %845 {offsets = [0, 96], sizes = [20, 32], strides = [1, 1]} : vector<20x128xf32> to vector<20x32xf32>
    %951 = vector.extract_strided_slice %846 {offsets = [0, 96], sizes = [20, 32], strides = [1, 1]} : vector<20x128xf32> to vector<20x32xf32>
    %952 = vector.extract_strided_slice %849 {offsets = [0, 96], sizes = [1, 32], strides = [1, 1]} : vector<1x128xf32> to vector<1x32xf32>
    %cst_288 = arith.constant dense<0.000000e+00> : vector<20x20xf32>
    %953 = tpu.matmul %949, %950, %cst_288 {dimension_numbers = #tpu.dot_dimension_numbers<[1], [1], [0], [0], [0, 0, 1, 0], [], []>} : vector<20x32xf32>, vector<20x32xf32>, vector<20x20xf32> -> vector<20x20xf32>
    %954 = vector.broadcast %952 : vector<1x32xf32> to vector<20x32xf32>
    %955 = arith.mulf %949, %954 : vector<20x32xf32>
    %cst_289 = arith.constant dense<0.000000e+00> : vector<20xf32>
    %956 = vector.multi_reduction <add>, %955, %cst_289 [1] : vector<20x32xf32> to vector<20xf32>
    %957 = vector.shape_cast %956 : vector<20xf32> to vector<20x1xf32>
    %958 = vector.broadcast %957 : vector<20x1xf32> to vector<20x20xf32>
    %959 = arith.mulf %958, %0 : vector<20x20xf32>
    %960 = arith.addf %953, %959 : vector<20x20xf32>
    %961 = arith.addf %960, %1 : vector<20x20xf32>
    %cst_290 = arith.constant dense<0xFF800000> : vector<20xf32>
    %962 = vector.multi_reduction <maximumf>, %961, %cst_290 [1] : vector<20x20xf32> to vector<20xf32>
    %963 = vector.shape_cast %962 : vector<20xf32> to vector<20x1xf32>
    %964 = vector.broadcast %963 : vector<20x1xf32> to vector<20x20xf32>
    %965 = arith.subf %961, %964 : vector<20x20xf32>
    %cst_291 = arith.constant -6.000000e+01 : f32
    %966 = vector.broadcast %cst_291 : f32 to vector<20x20xf32>
    %967 = arith.maximumf %965, %966 : vector<20x20xf32>
    %968 = math.exp %967 : vector<20x20xf32>
    %cst_292 = arith.constant dense<0.000000e+00> : vector<20xf32>
    %969 = vector.multi_reduction <add>, %968, %cst_292 [1] : vector<20x20xf32> to vector<20xf32>
    %970 = vector.shape_cast %969 : vector<20xf32> to vector<20x1xf32>
    %971 = tpu.reciprocal %970 {approx = true} : vector<20x1xf32> -> vector<20x1xf32>
    %972 = vector.broadcast %971 : vector<20x1xf32> to vector<20x20xf32>
    %973 = arith.mulf %968, %972 : vector<20x20xf32>
    %cst_293 = arith.constant dense<0.000000e+00> : vector<20x32xf32>
    %974 = tpu.matmul %973, %951, %cst_293 {dimension_numbers = #tpu.dot_dimension_numbers<[1], [0], [0], [1], [0, 0, 1, 1], [], []>} : vector<20x20xf32>, vector<20x32xf32>, vector<20x32xf32> -> vector<20x32xf32>
    %975 = arith.mulf %973, %0 : vector<20x20xf32>
    %cst_294 = arith.constant dense<0.000000e+00> : vector<20xf32>
    %976 = vector.multi_reduction <add>, %975, %cst_294 [1] : vector<20x20xf32> to vector<20xf32>
    %977 = vector.shape_cast %976 : vector<20xf32> to vector<20x1xf32>
    %978 = vector.broadcast %977 : vector<20x1xf32> to vector<20x32xf32>
    %979 = vector.broadcast %952 : vector<1x32xf32> to vector<20x32xf32>
    %980 = arith.mulf %978, %979 : vector<20x32xf32>
    %981 = arith.addf %974, %980 : vector<20x32xf32>
    %982 = tpu.concatenate %882, %915, %948, %981 in 1 : vector<20x32xf32>, vector<20x32xf32>, vector<20x32xf32>, vector<20x32xf32> -> vector<20x128xf32>
    %c4_295 = arith.constant 4 : index
    %c0_296 = arith.constant 0 : index
    %c0_297 = arith.constant 0 : index
    %983 = vector.load %arg6[%c4_295, %c0_296, %c0_297] : memref<5x3x128xf32, #tpu.memory_space<vmem>>, vector<1x3x128xf32>
    %984 = vector.shape_cast %983 : vector<1x3x128xf32> to vector<3x128xf32>
    %985 = vector.extract_strided_slice %984 {offsets = [0, 0], sizes = [1, 128], strides = [1, 1]} : vector<3x128xf32> to vector<1x128xf32>
    %986 = vector.extract_strided_slice %984 {offsets = [2, 0], sizes = [1, 128], strides = [1, 1]} : vector<3x128xf32> to vector<1x128xf32>
    %987 = arith.addf %985, %986 : vector<1x128xf32>
    %988 = vector.extract_strided_slice %984 {offsets = [1, 0], sizes = [1, 128], strides = [1, 1]} : vector<3x128xf32> to vector<1x128xf32>
    %989 = vector.extract_strided_slice %984 {offsets = [2, 0], sizes = [1, 128], strides = [1, 1]} : vector<3x128xf32> to vector<1x128xf32>
    %990 = arith.subf %988, %989 : vector<1x128xf32>
    %991 = vector.broadcast %987 : vector<1x128xf32> to vector<20x128xf32>
    %992 = arith.mulf %982, %991 : vector<20x128xf32>
    %993 = vector.broadcast %990 : vector<1x128xf32> to vector<20x128xf32>
    %994 = arith.mulf %847, %993 : vector<20x128xf32>
    %995 = arith.addf %992, %994 : vector<20x128xf32>
    %cst_298 = arith.constant dense<0.000000e+00> : vector<20xf32>
    %996 = vector.multi_reduction <add>, %995, %cst_298 [1] : vector<20x128xf32> to vector<20xf32>
    %997 = vector.shape_cast %996 : vector<20xf32> to vector<20x1xf32>
    %cst_299 = arith.constant 0.000000e+00 : f32
    %998 = vector.broadcast %cst_299 : f32 to vector<20x1xf32>
    %999 = arith.subf %998, %997 : vector<20x1xf32>
    %1000 = math.exp %999 : vector<20x1xf32>
    %cst_300 = arith.constant 1.000000e+00 : f32
    %1001 = vector.broadcast %cst_300 : f32 to vector<20x1xf32>
    %1002 = arith.addf %1001, %1000 : vector<20x1xf32>
    %1003 = tpu.reciprocal %1002 {approx = true} : vector<20x1xf32> -> vector<20x1xf32>
    %1004 = arith.subf %847, %982 : vector<20x128xf32>
    %1005 = vector.broadcast %1003 : vector<20x1xf32> to vector<20x128xf32>
    %1006 = arith.mulf %1005, %1004 : vector<20x128xf32>
    %1007 = arith.addf %982, %1006 : vector<20x128xf32>
    %c4_301 = arith.constant 4 : index
    %c0_302 = arith.constant 0 : index
    %c0_303 = arith.constant 0 : index
    %1008 = vector.load %arg7[%c4_301, %c0_302, %c0_303] : memref<5x128x32xf32, #tpu.memory_space<vmem>>, vector<1x128x32xf32>
    %1009 = vector.shape_cast %1008 : vector<1x128x32xf32> to vector<128x32xf32>
    %cst_304 = arith.constant dense<0.000000e+00> : vector<20x32xf32>
    %1010 = tpu.matmul %1007, %1009, %cst_304 {dimension_numbers = #tpu.dot_dimension_numbers<[1], [0], [0], [1], [0, 0, 1, 1], [], []>} : vector<20x128xf32>, vector<128x32xf32>, vector<20x32xf32> -> vector<20x32xf32>
    %c4_305 = arith.constant 4 : index
    %c0_306 = arith.constant 0 : index
    %c0_307 = arith.constant 0 : index
    %1011 = vector.load %arg8[%c4_305, %c0_306, %c0_307] : memref<5x1x32xf32, #tpu.memory_space<vmem>>, vector<1x1x32xf32>
    %1012 = vector.shape_cast %1011 : vector<1x1x32xf32> to vector<1x32xf32>
    %1013 = vector.broadcast %1012 : vector<1x32xf32> to vector<20x32xf32>
    %1014 = arith.addf %1010, %1013 : vector<20x32xf32>
    %cst_308 = arith.constant 0.000000e+00 : f32
    %1015 = vector.broadcast %cst_308 : f32 to vector<20x32xf32>
    %1016 = arith.maximumf %1014, %1015 : vector<20x32xf32>
    %cst_309 = arith.constant dense<0.000000e+00> : vector<32xf32>
    %1017 = vector.multi_reduction <add>, %1016, %cst_309 [0] : vector<20x32xf32> to vector<32xf32>
    %1018 = vector.shape_cast %1017 : vector<32xf32> to vector<1x32xf32>
    %cst_310 = arith.constant 2.000000e+01 : f32
    %1019 = vector.broadcast %cst_310 : f32 to vector<1x32xf32>
    %1020 = arith.divf %1018, %1019 : vector<1x32xf32>
    %1021 = vector.broadcast %1020 : vector<1x32xf32> to vector<20x32xf32>
    %1022 = arith.subf %1016, %1021 : vector<20x32xf32>
    %1023 = arith.mulf %1022, %1022 : vector<20x32xf32>
    %cst_311 = arith.constant dense<0.000000e+00> : vector<32xf32>
    %1024 = vector.multi_reduction <add>, %1023, %cst_311 [0] : vector<20x32xf32> to vector<32xf32>
    %1025 = vector.shape_cast %1024 : vector<32xf32> to vector<1x32xf32>
    %cst_312 = arith.constant 2.000000e+01 : f32
    %1026 = vector.broadcast %cst_312 : f32 to vector<1x32xf32>
    %1027 = arith.divf %1025, %1026 : vector<1x32xf32>
    %1028 = vector.broadcast %1020 : vector<1x32xf32> to vector<20x32xf32>
    %1029 = arith.subf %1016, %1028 : vector<20x32xf32>
    %cst_313 = arith.constant 9.99999974E-6 : f32
    %1030 = vector.broadcast %cst_313 : f32 to vector<1x32xf32>
    %1031 = arith.addf %1027, %1030 : vector<1x32xf32>
    %1032 = math.rsqrt %1031 : vector<1x32xf32>
    %1033 = vector.broadcast %1032 : vector<1x32xf32> to vector<20x32xf32>
    %1034 = arith.mulf %1029, %1033 : vector<20x32xf32>
    %c4_314 = arith.constant 4 : index
    %c0_315 = arith.constant 0 : index
    %c0_316 = arith.constant 0 : index
    %1035 = vector.load %arg9[%c4_314, %c0_315, %c0_316] : memref<5x1x32xf32, #tpu.memory_space<vmem>>, vector<1x1x32xf32>
    %1036 = vector.shape_cast %1035 : vector<1x1x32xf32> to vector<1x32xf32>
    %1037 = vector.broadcast %1036 : vector<1x32xf32> to vector<20x32xf32>
    %1038 = arith.mulf %1034, %1037 : vector<20x32xf32>
    %c4_317 = arith.constant 4 : index
    %c0_318 = arith.constant 0 : index
    %c0_319 = arith.constant 0 : index
    %1039 = vector.load %arg10[%c4_317, %c0_318, %c0_319] : memref<5x1x32xf32, #tpu.memory_space<vmem>>, vector<1x1x32xf32>
    %1040 = vector.shape_cast %1039 : vector<1x1x32xf32> to vector<1x32xf32>
    %1041 = vector.broadcast %1040 : vector<1x32xf32> to vector<20x32xf32>
    %1042 = arith.addf %1038, %1041 : vector<20x32xf32>
    %c0_320 = arith.constant 0 : index
    %c0_321 = arith.constant 0 : index
    %1043 = vector.load %arg11[%c0_320, %c0_321] : memref<32x128xf32, #tpu.memory_space<vmem>>, vector<32x128xf32>
    %cst_322 = arith.constant dense<0.000000e+00> : vector<20x128xf32>
    %1044 = tpu.matmul %1042, %1043, %cst_322 {dimension_numbers = #tpu.dot_dimension_numbers<[1], [0], [0], [1], [0, 0, 1, 1], [], []>} : vector<20x32xf32>, vector<32x128xf32>, vector<20x128xf32> -> vector<20x128xf32>
    %c0_323 = arith.constant 0 : index
    %c0_324 = arith.constant 0 : index
    %1045 = vector.load %arg12[%c0_323, %c0_324] : memref<1x128xf32, #tpu.memory_space<vmem>>, vector<1x128xf32>
    %1046 = vector.broadcast %1045 : vector<1x128xf32> to vector<20x128xf32>
    %1047 = arith.addf %1044, %1046 : vector<20x128xf32>
    %cst_325 = arith.constant 0.000000e+00 : f32
    %1048 = vector.broadcast %cst_325 : f32 to vector<20x128xf32>
    %1049 = arith.maximumf %1047, %1048 : vector<20x128xf32>
    %c0_326 = arith.constant 0 : index
    %c0_327 = arith.constant 0 : index
    %1050 = vector.load %arg13[%c0_326, %c0_327] : memref<128x64xf32, #tpu.memory_space<vmem>>, vector<128x64xf32>
    %cst_328 = arith.constant dense<0.000000e+00> : vector<20x64xf32>
    %1051 = tpu.matmul %1049, %1050, %cst_328 {dimension_numbers = #tpu.dot_dimension_numbers<[1], [0], [0], [1], [0, 0, 1, 1], [], []>} : vector<20x128xf32>, vector<128x64xf32>, vector<20x64xf32> -> vector<20x64xf32>
    %c0_329 = arith.constant 0 : index
    %c0_330 = arith.constant 0 : index
    %1052 = vector.load %arg14[%c0_329, %c0_330] : memref<1x64xf32, #tpu.memory_space<vmem>>, vector<1x64xf32>
    %1053 = vector.broadcast %1052 : vector<1x64xf32> to vector<20x64xf32>
    %1054 = arith.addf %1051, %1053 : vector<20x64xf32>
    %cst_331 = arith.constant 0.000000e+00 : f32
    %1055 = vector.broadcast %cst_331 : f32 to vector<20x64xf32>
    %1056 = arith.maximumf %1054, %1055 : vector<20x64xf32>
    %c0_332 = arith.constant 0 : index
    %c0_333 = arith.constant 0 : index
    %1057 = vector.load %arg15[%c0_332, %c0_333] : memref<64x64xf32, #tpu.memory_space<vmem>>, vector<64x64xf32>
    %cst_334 = arith.constant dense<0.000000e+00> : vector<20x64xf32>
    %1058 = tpu.matmul %1056, %1057, %cst_334 {dimension_numbers = #tpu.dot_dimension_numbers<[1], [0], [0], [1], [0, 0, 1, 1], [], []>} : vector<20x64xf32>, vector<64x64xf32>, vector<20x64xf32> -> vector<20x64xf32>
    %c0_335 = arith.constant 0 : index
    %c0_336 = arith.constant 0 : index
    %1059 = vector.load %arg16[%c0_335, %c0_336] : memref<1x64xf32, #tpu.memory_space<vmem>>, vector<1x64xf32>
    %1060 = vector.broadcast %1059 : vector<1x64xf32> to vector<20x64xf32>
    %1061 = arith.addf %1058, %1060 : vector<20x64xf32>
    %c0_337 = arith.constant 0 : index
    %c0_338 = arith.constant 0 : index
    %1062 = vector.load %arg20[%c0_337, %c0_338] : memref<20x2xf32, #tpu.memory_space<vmem>>, vector<20x2xf32>
    %c0_339 = arith.constant 0 : index
    %c0_340 = arith.constant 0 : index
    %1063 = vector.load %arg21[%c0_339, %c0_340] : memref<20x2xf32, #tpu.memory_space<vmem>>, vector<20x2xf32>
    %1064 = vector.extract_strided_slice %1062 {offsets = [0, 0], sizes = [20, 1], strides = [1, 1]} : vector<20x2xf32> to vector<20x1xf32>
    %1065 = vector.extract_strided_slice %1062 {offsets = [0, 1], sizes = [20, 1], strides = [1, 1]} : vector<20x2xf32> to vector<20x1xf32>
    %1066 = vector.extract_strided_slice %1063 {offsets = [0, 0], sizes = [20, 1], strides = [1, 1]} : vector<20x2xf32> to vector<20x1xf32>
    %1067 = vector.extract_strided_slice %1063 {offsets = [0, 1], sizes = [20, 1], strides = [1, 1]} : vector<20x2xf32> to vector<20x1xf32>
    %1068 = tpu.iota {dimensions = array<i32: 0>} : vector<20x1xi32>
    %1069 = arith.sitofp %1068 : vector<20x1xi32> to vector<20x1xf32>
    %c0_341 = arith.constant 0 : index
    %c0_342 = arith.constant 0 : index
    %1070 = vector.load %arg17[%c0_341, %c0_342] : memref<1x64xf32, #tpu.memory_space<vmem>>, vector<1x64xf32>
    %1071 = vector.broadcast %1070 : vector<1x64xf32> to vector<20x64xf32>
    %1072 = arith.mulf %1061, %1071 : vector<20x64xf32>
    %cst_343 = arith.constant dense<0.000000e+00> : vector<20xf32>
    %1073 = vector.multi_reduction <add>, %1072, %cst_343 [1] : vector<20x64xf32> to vector<20xf32>
    %1074 = vector.shape_cast %1073 : vector<20xf32> to vector<20x1xf32>
    %1075 = arith.addf %1074, %1064 : vector<20x1xf32>
    %1076 = arith.addf %1075, %1066 : vector<20x1xf32>
    %cst_344 = arith.constant dense<0xFF800000> : vector<1xf32>
    %1077 = vector.multi_reduction <maximumf>, %1076, %cst_344 [0] : vector<20x1xf32> to vector<1xf32>
    %1078 = vector.shape_cast %1077 : vector<1xf32> to vector<1x1xf32>
    %1079 = vector.broadcast %1078 : vector<1x1xf32> to vector<20x1xf32>
    %1080 = arith.cmpf oge, %1076, %1079 : vector<20x1xf32>
    %cst_345 = arith.constant 2.000000e+01 : f32
    %1081 = vector.broadcast %cst_345 : f32 to vector<20x1xf32>
    %1082 = arith.select %1080, %1069, %1081 : vector<20x1xi1>, vector<20x1xf32>
    %cst_346 = arith.constant dense<0x7F800000> : vector<1xf32>
    %1083 = vector.multi_reduction <minimumf>, %1082, %cst_346 [0] : vector<20x1xf32> to vector<1xf32>
    %1084 = vector.shape_cast %1083 : vector<1xf32> to vector<1x1xf32>
    %1085 = vector.broadcast %1084 : vector<1x1xf32> to vector<20x1xf32>
    %1086 = arith.cmpf oeq, %1069, %1085 : vector<20x1xf32>
    %cst_347 = arith.constant dense<0xFF800000> : vector<1xf32>
    %1087 = vector.multi_reduction <maximumf>, %1075, %cst_347 [0] : vector<20x1xf32> to vector<1xf32>
    %1088 = vector.shape_cast %1087 : vector<1xf32> to vector<1x1xf32>
    %1089 = vector.broadcast %1088 : vector<1x1xf32> to vector<20x1xf32>
    %1090 = arith.subf %1075, %1089 : vector<20x1xf32>
    %cst_348 = arith.constant -6.000000e+01 : f32
    %1091 = vector.broadcast %cst_348 : f32 to vector<20x1xf32>
    %1092 = arith.maximumf %1090, %1091 : vector<20x1xf32>
    %1093 = math.exp %1092 : vector<20x1xf32>
    %cst_349 = arith.constant dense<0.000000e+00> : vector<1xf32>
    %1094 = vector.multi_reduction <add>, %1093, %cst_349 [0] : vector<20x1xf32> to vector<1xf32>
    %1095 = vector.shape_cast %1094 : vector<1xf32> to vector<1x1xf32>
    %1096 = math.log %1095 : vector<1x1xf32>
    %1097 = arith.addf %1088, %1096 : vector<1x1xf32>
    %cst_350 = arith.constant 0.000000e+00 : f32
    %1098 = vector.broadcast %cst_350 : f32 to vector<20x1xf32>
    %1099 = arith.select %1086, %1075, %1098 : vector<20x1xi1>, vector<20x1xf32>
    %cst_351 = arith.constant dense<0.000000e+00> : vector<1xf32>
    %1100 = vector.multi_reduction <add>, %1099, %cst_351 [0] : vector<20x1xf32> to vector<1xf32>
    %1101 = vector.shape_cast %1100 : vector<1xf32> to vector<1x1xf32>
    %1102 = arith.subf %1101, %1097 : vector<1x1xf32>
    %cst_352 = arith.constant 0.000000e+00 : f32
    %1103 = vector.broadcast %cst_352 : f32 to vector<20x1xf32>
    %1104 = arith.select %1086, %1103, %1065 : vector<20x1xi1>, vector<20x1xf32>
    %cst_353 = arith.constant 0.000000e+00 : f32
    %1105 = vector.shape_cast %1086 : vector<20x1xi1> to vector<20x1xi1>
    %1106 = vector.broadcast %1105 : vector<20x1xi1> to vector<20x64xi1>
    %1107 = vector.broadcast %cst_353 : f32 to vector<20x64xf32>
    %1108 = arith.select %1106, %1061, %1107 : vector<20x64xi1>, vector<20x64xf32>
    %cst_354 = arith.constant dense<0.000000e+00> : vector<64xf32>
    %1109 = vector.multi_reduction <add>, %1108, %cst_354 [0] : vector<20x64xf32> to vector<64xf32>
    %1110 = vector.shape_cast %1109 : vector<64xf32> to vector<1x64xf32>
    %c0_355 = arith.constant 0 : index
    %c0_356 = arith.constant 0 : index
    %1111 = vector.load %arg18[%c0_355, %c0_356] : memref<64x64xf32, #tpu.memory_space<vmem>>, vector<64x64xf32>
    %cst_357 = arith.constant dense<0.000000e+00> : vector<1x64xf32>
    %1112 = tpu.matmul %1110, %1111, %cst_357 {dimension_numbers = #tpu.dot_dimension_numbers<[1], [0], [0], [1], [0, 0, 1, 1], [], []>} : vector<1x64xf32>, vector<64x64xf32>, vector<1x64xf32> -> vector<1x64xf32>
    %c0_358 = arith.constant 0 : index
    %c0_359 = arith.constant 0 : index
    %1113 = vector.load %arg19[%c0_358, %c0_359] : memref<1x64xf32, #tpu.memory_space<vmem>>, vector<1x64xf32>
    %1114 = arith.addf %1112, %1113 : vector<1x64xf32>
    %1115 = math.tanh %1114 : vector<1x64xf32>
    %1116 = vector.broadcast %1115 : vector<1x64xf32> to vector<20x64xf32>
    %1117 = arith.mulf %1061, %1116 : vector<20x64xf32>
    %cst_360 = arith.constant dense<0.000000e+00> : vector<20xf32>
    %1118 = vector.multi_reduction <add>, %1117, %cst_360 [1] : vector<20x64xf32> to vector<20xf32>
    %1119 = vector.shape_cast %1118 : vector<20xf32> to vector<20x1xf32>
    %1120 = arith.addf %1119, %1104 : vector<20x1xf32>
    %1121 = arith.addf %1120, %1067 : vector<20x1xf32>
    %cst_361 = arith.constant dense<0xFF800000> : vector<1xf32>
    %1122 = vector.multi_reduction <maximumf>, %1121, %cst_361 [0] : vector<20x1xf32> to vector<1xf32>
    %1123 = vector.shape_cast %1122 : vector<1xf32> to vector<1x1xf32>
    %1124 = vector.broadcast %1123 : vector<1x1xf32> to vector<20x1xf32>
    %1125 = arith.cmpf oge, %1121, %1124 : vector<20x1xf32>
    %cst_362 = arith.constant 2.000000e+01 : f32
    %1126 = vector.broadcast %cst_362 : f32 to vector<20x1xf32>
    %1127 = arith.select %1125, %1069, %1126 : vector<20x1xi1>, vector<20x1xf32>
    %cst_363 = arith.constant dense<0x7F800000> : vector<1xf32>
    %1128 = vector.multi_reduction <minimumf>, %1127, %cst_363 [0] : vector<20x1xf32> to vector<1xf32>
    %1129 = vector.shape_cast %1128 : vector<1xf32> to vector<1x1xf32>
    %1130 = vector.broadcast %1129 : vector<1x1xf32> to vector<20x1xf32>
    %1131 = arith.cmpf oeq, %1069, %1130 : vector<20x1xf32>
    %cst_364 = arith.constant dense<0xFF800000> : vector<1xf32>
    %1132 = vector.multi_reduction <maximumf>, %1120, %cst_364 [0] : vector<20x1xf32> to vector<1xf32>
    %1133 = vector.shape_cast %1132 : vector<1xf32> to vector<1x1xf32>
    %1134 = vector.broadcast %1133 : vector<1x1xf32> to vector<20x1xf32>
    %1135 = arith.subf %1120, %1134 : vector<20x1xf32>
    %cst_365 = arith.constant -6.000000e+01 : f32
    %1136 = vector.broadcast %cst_365 : f32 to vector<20x1xf32>
    %1137 = arith.maximumf %1135, %1136 : vector<20x1xf32>
    %1138 = math.exp %1137 : vector<20x1xf32>
    %cst_366 = arith.constant dense<0.000000e+00> : vector<1xf32>
    %1139 = vector.multi_reduction <add>, %1138, %cst_366 [0] : vector<20x1xf32> to vector<1xf32>
    %1140 = vector.shape_cast %1139 : vector<1xf32> to vector<1x1xf32>
    %1141 = math.log %1140 : vector<1x1xf32>
    %1142 = arith.addf %1133, %1141 : vector<1x1xf32>
    %cst_367 = arith.constant 0.000000e+00 : f32
    %1143 = vector.broadcast %cst_367 : f32 to vector<20x1xf32>
    %1144 = arith.select %1131, %1120, %1143 : vector<20x1xi1>, vector<20x1xf32>
    %cst_368 = arith.constant dense<0.000000e+00> : vector<1xf32>
    %1145 = vector.multi_reduction <add>, %1144, %cst_368 [0] : vector<20x1xf32> to vector<1xf32>
    %1146 = vector.shape_cast %1145 : vector<1xf32> to vector<1x1xf32>
    %1147 = arith.subf %1146, %1142 : vector<1x1xf32>
    %1148 = tpu.concatenate %1075, %1120 in 1 : vector<20x1xf32>, vector<20x1xf32> -> vector<20x2xf32>
    %c0_369 = arith.constant 0 : index
    %c0_370 = arith.constant 0 : index
    %1149 = vector.load %arg22[%c0_369, %c0_370] : memref<20x2xf32, #tpu.memory_space<vmem>>, vector<20x2xf32>
    tpu.vector_store %arg22[%c0_369, %c0_370], %1148 {strides = array<i32>} : memref<20x2xf32, #tpu.memory_space<vmem>>, vector<20x2xf32>,
    %1150 = tpu.concatenate %1084, %1129 in 1 : vector<1x1xf32>, vector<1x1xf32> -> vector<1x2xf32>
    %1151 = arith.fptosi %1150 : vector<1x2xf32> to vector<1x2xi32>
    %c0_371 = arith.constant 0 : index
    %c0_372 = arith.constant 0 : index
    %1152 = vector.load %arg23[%c0_371, %c0_372] : memref<1x2xi32, #tpu.memory_space<vmem>>, vector<1x2xi32>
    tpu.vector_store %arg23[%c0_371, %c0_372], %1151 {strides = array<i32>} : memref<1x2xi32, #tpu.memory_space<vmem>>, vector<1x2xi32>,
    %1153 = tpu.concatenate %1102, %1147 in 1 : vector<1x1xf32>, vector<1x1xf32> -> vector<1x2xf32>
    %c0_373 = arith.constant 0 : index
    %c0_374 = arith.constant 0 : index
    %1154 = vector.load %arg24[%c0_373, %c0_374] : memref<1x2xf32, #tpu.memory_space<vmem>>, vector<1x2xf32>
    tpu.vector_store %arg24[%c0_373, %c0_374], %1153 {strides = array<i32>} : memref<1x2xf32, #tpu.memory_space<vmem>>, vector<1x2xf32>,
    return
  }
}

</mosaic_0001>

<bundles_post_ra>
// kernel: tpu_custom_call.1
= control target key start
LH: loop header
LB: loop body
LE: loop exit
PB: predicated region body
PF: predicated region fallthrough
CT: control target
= control target key end

     0   :  { %s15532_s0 = inlined_call_operand.vmem [shape: f32[20,32], index: 0, kind: input, shape index: {}]   ;;  %s15533_s1 = inlined_call_operand.vmem [shape: f32[20,20], index: 1, kind: input, shape index: {}]   ;;  %s15534_s2 = inlined_call_operand.hbm [shape: f32[20,20], index: 2, kind: input, shape index: {}]   ;;  %s15535_s3 = inlined_call_operand.vmem [shape: f32[5,32,512], index: 3, kind: input, shape index: {}]   ;;  %s15536_s4 = inlined_call_operand.vmem [shape: f32[5,1,512], index: 4, kind: input, shape index: {}]   ;;  %s15537_s5 = inlined_call_operand.hbm [shape: f32[5,1,128], index: 5, kind: input, shape index: {}]   ;;  %s15538_s6 = inlined_call_operand.hbm [shape: f32[5,3,128], index: 6, kind: input, shape index: {}]   ;;  %s15539_s7 = inlined_call_operand.vmem [shape: f32[5,128,32], index: 7, kind: input, shape index: {}]   ;;  %s15540_s8 = inlined_call_operand.hbm [shape: f32[5,1,32], index: 8, kind: input, shape index: {}]   ;;  %s15541_s9 = inlined_call_operand.hbm [shape: f32[5,1,32], index: 9, kind: input, shape index: {}]   ;;  %s15542_s10 = inlined_call_operand.hbm [shape: f32[5,1,32], index: 10, kind: input, shape index: {}]   ;;  %s15543_s11 = inlined_call_operand.vmem [shape: f32[32,128], index: 11, kind: input, shape index: {}]   ;;  %s15544_s12 = inlined_call_operand.vmem [shape: f32[1,128], index: 12, kind: input, shape index: {}]   ;;  %s15545_s13 = inlined_call_operand.vmem [shape: f32[128,64], index: 13, kind: input, shape index: {}]   ;;  %s15546_s14 = inlined_call_operand.hbm [shape: f32[1,64], index: 14, kind: input, shape index: {}]   ;;  %s15547_s15 = inlined_call_operand.vmem [shape: f32[64,64], index: 15, kind: input, shape index: {}]   ;;  %s15548_s16 = inlined_call_operand.vmem [shape: f32[1,64], index: 16, kind: input, shape index: {}]   ;;  %s15549_s17 = inlined_call_operand.vmem [shape: f32[1,64], index: 17, kind: input, shape index: {}]   ;;  %s15550_s18 = inlined_call_operand.vmem [shape: f32[64,64], index: 18, kind: input, shape index: {}]   ;;  %s15551_s19 = inlined_call_operand.vmem [shape: f32[1,64], index: 19, kind: input, shape index: {}]   ;;  %s15552_s20 = inlined_call_operand.vmem [shape: f32[20,2], index: 20, kind: input, shape index: {}]   ;;  %s15553_s21 = inlined_call_operand.vmem [shape: f32[20,2], index: 21, kind: input, shape index: {}]   ;;  %s15554_s22 = inlined_call_operand.vmem [shape: f32[20,2], index: 22, kind: output, shape index: {0}]   ;;  %s15555_s23 = inlined_call_operand.hbm [shape: s32[1,2], index: 23, kind: output, shape index: {1}]   ;;  %s15556_s24 = inlined_call_operand.hbm [shape: f32[1,2], index: 24, kind: output, shape index: {2}]  }
   0x1   :  { %15569 = sst [smem:[#allocation23_spill]] %s15532_s0 }
   0x2   :  { %15570 = sst [smem:[#allocation24_spill]] %s15533_s1 }
   0x3   :  { %15571 = sst [smem:[#allocation25_spill]] %s15534_s2 }
   0x4   :  { %15572 = sst [smem:[#allocation26_spill]] %s15535_s3 }
   0x5   :  { %15573 = sst [smem:[#allocation27_spill]] %s15536_s4 }
   0x6   :  { %15574 = sst [smem:[#allocation28_spill]] %s15537_s5 }
   0x7   :  { %15575 = sst [smem:[#allocation29_spill]] %s15538_s6 }
   0x8   :  { %15576 = sst [smem:[#allocation30_spill]] %s15539_s7 }
   0x9   :  { %15577 = sst [smem:[#allocation31_spill]] %s15540_s8 }
   0xa   :  { %15578 = sst [smem:[#allocation32_spill]] %s15554_s22 }
   0xb   :  { %15579 = sst [smem:[#allocation33_spill]] %s15555_s23 }
   0xc   :  { %15580 = sst [smem:[#allocation34_spill]] %s15556_s24 }
   0xd   :  { %30 = vsyncpa [#allocation3], 0 }
   0xe   :  { %31 = vsyncpa [#allocation6], 0 }
   0xf   :  { %32 = vsyncpa [#allocation9], 0 }
  0x10   :  { %33 = vsyncpa [#allocation12], 0 }
  0x11   :  { %34 = vsyncpa [#allocation4], 0 }
  0x12   :  { %35 = vsyncpa [#allocation16], 0  ;;  %s11887_s5 = smov [#allocation5]   ;;  %s15581_s6 = sld [smem:[#allocation28_spill]] }
  0x13   :  { %s61_s26 = sshll.u32 %s11887_s5, 4  ;;  %s62_s26 = int_to_ptr.vmem [resolvable:$true] %s61_s26 }
  0x18   :  { %s11677_s2 = scalar_lea.hbm %s15581_s6, 80 }
  0x19   :  { %p11678_p0 = scmp.ne.s32.totalorder %s15581_s6, %s11677_s2  ;;  %p11681_p1 = scmp.lt.u32.totalorder %s11677_s2, %s15581_s6 }
  0x1b   :  { %p11683_p2 = pnand %p11681_p1, %p11678_p0 }
  0x1d   :  { %11686 = shalt.err (!%p11683_p2)
}
  0x1e   :  { %s11687_s3 = scalar_lea.vmem %s62_s26, 80  ;;  %s11691_s25 = scalar_lea.vmem %s62_s26, 96 }
  0x1f   :  { %p11688_p3 = scmp.ne.s32.totalorder %s62_s26, %s11687_s3  ;;  %p11692_p4 = scmp.lt.s32.totalorder %s62_s26, %s62_s26 }
  0x20   :  { %p11693_p5 = scmp.lt.s32.totalorder %s11691_s25, %s11687_s3 }
  0x22   :  { %p11694_p6 = por %p11693_p5, %p11692_p4 }
  0x24   :  { %p11695_p7 = pnand %p11694_p6, %p11688_p3 }
  0x26   :  { %11698 = shalt.err (!%p11695_p7)
}
  0x27   :  { %s11888_s8 = smov 16   ;;  %s11889_s4 = smov 1  }
  0x28   :  { %67 = dma.hbm_to_vmem [thread:$0]  %s15581_s6, 80, %s62_s26, [#allocation6], %s11888_s8, %s11888_s8, %s11889_s4  }
  0x29   :  { %s11890_s27 = smov [#allocation8]   ;;  %s11891_s2 = smov [#allocation11]  }
  0x2a   :  { %s87_s28 = sshll.u32 %s11890_s27, 4  ;;  %s111_s29 = sshll.u32 %s11891_s2, 4  ;;  %s88_s28 = int_to_ptr.vmem [resolvable:$true] %s87_s28  ;;  %s112_s29 = int_to_ptr.vmem [resolvable:$true] %s111_s29 }
  0x2b   :  { %s15582_s30 = sld [smem:[#allocation31_spill]] }
  0x31   :  { %s11699_s3 = scalar_lea.hbm %s15582_s30, 80 }
  0x32   :  { %p11700_p8 = scmp.ne.s32.totalorder %s15582_s30, %s11699_s3  ;;  %p11703_p9 = scmp.lt.u32.totalorder %s11699_s3, %s15582_s30 }
  0x34   :  { %p11705_p10 = pnand %p11703_p9, %p11700_p8 }
  0x36   :  { %11708 = shalt.err (!%p11705_p10)
}
  0x37   :  { %s11709_s26 = scalar_lea.vmem %s88_s28, 80  ;;  %s11713_s6 = scalar_lea.vmem %s88_s28, 96 }
  0x38   :  { %p11710_p11 = scmp.ne.s32.totalorder %s88_s28, %s11709_s26  ;;  %p11714_p12 = scmp.lt.s32.totalorder %s88_s28, %s88_s28 }
  0x39   :  { %p11715_p13 = scmp.lt.s32.totalorder %s11713_s6, %s11709_s26 }
  0x3b   :  { %p11716_p0 = por %p11715_p13, %p11714_p12 }
  0x3d   :  { %p11717_p1 = pnand %p11716_p0, %p11710_p11 }
  0x3f   :  { %11720 = shalt.err (!%p11717_p1)
}
  0x40   :  { %93 = dma.hbm_to_vmem [thread:$0]  %s15582_s30, 80, %s88_s28, [#allocation9], %s11888_s8, %s11888_s8, %s11889_s4  }
  0x41   :  { %s11721_s5 = scalar_lea.hbm %s15542_s10, 80 }
  0x42   :  { %p11722_p2 = scmp.ne.s32.totalorder %s15542_s10, %s11721_s5  ;;  %p11725_p3 = scmp.lt.u32.totalorder %s11721_s5, %s15542_s10 }
  0x44   :  { %p11727_p4 = pnand %p11725_p3, %p11722_p2 }
  0x46   :  { %11730 = shalt.err (!%p11727_p4)
}
  0x47   :  { %s11731_s3 = scalar_lea.vmem %s112_s29, 80  ;;  %s11735_s25 = scalar_lea.vmem %s112_s29, 96 }
  0x48   :  { %p11732_p5 = scmp.ne.s32.totalorder %s112_s29, %s11731_s3  ;;  %p11736_p6 = scmp.lt.s32.totalorder %s112_s29, %s112_s29 }
  0x49   :  { %p11737_p7 = scmp.lt.s32.totalorder %s11735_s25, %s11731_s3 }
  0x4b   :  { %p11738_p8 = por %p11737_p7, %p11736_p6 }
  0x4d   :  { %p11739_p9 = pnand %p11738_p8, %p11732_p5 }
  0x4f   :  { %11742 = shalt.err (!%p11739_p9)
}
  0x50   :  { %117 = dma.hbm_to_vmem [thread:$0]  %s15542_s10, 80, %s112_s29, [#allocation12], %s11888_s8, %s11888_s8, %s11889_s4  }
  0x51   :  { %s11892_s26 = smov [#allocation2]   ;;  %s15583_s22 = sld [smem:[#allocation25_spill]] }
  0x52   :  { %s45_s6 = sshll.u32 %s11892_s26, 4  ;;  %s46_s6 = int_to_ptr.vmem [resolvable:$true] %s45_s6 }
  0x57   :  { %s11743_s23 = scalar_lea.hbm %s15583_s22, 384 }
  0x58   :  { %p11744_p10 = scmp.ne.s32.totalorder %s15583_s22, %s11743_s23  ;;  %p11747_p11 = scmp.lt.u32.totalorder %s11743_s23, %s15583_s22 }
  0x5a   :  { %p11749_p12 = pnand %p11747_p11, %p11744_p10 }
  0x5c   :  { %11752 = shalt.err (!%p11749_p12)
}
  0x5d   :  { %s11753_s7 = scalar_lea.vmem %s46_s6, 384  ;;  %p11758_p0 = scmp.lt.s32.totalorder %s46_s6, %s46_s6 }
  0x5e   :  { %p11754_p13 = scmp.ne.s32.totalorder %s46_s6, %s11753_s7  ;;  %p11759_p1 = scmp.lt.s32.totalorder %s11753_s7, %s11753_s7 }
  0x60   :  { %p11760_p2 = por %p11759_p1, %p11758_p0 }
  0x62   :  { %p11761_p3 = pnand %p11760_p2, %p11754_p13 }
  0x64   :  { %11764 = shalt.err (!%p11761_p3)
}
  0x65   :  { %s11893_s10 = smov 128   ;;  %s11894_s29 = smov 8  }
  0x66   :  { %51 = dma.hbm_to_vmem [thread:$0]  %s15583_s22, 384, %s46_s6, [#allocation3], %s11893_s10, %s11893_s10, %s11894_s29  }
  0x67   :  { %s11895_s28 = smov [#allocation7]   ;;  %s15584_s24 = sld [smem:[#allocation29_spill]] }
  0x68   :  { %s73_s30 = sshll.u32 %s11895_s28, 4  ;;  %s74_s30 = int_to_ptr.vmem [resolvable:$true] %s73_s30 }
  0x6d   :  { %s11765_s23 = scalar_lea.hbm %s15584_s24, 320 }
  0x6e   :  { %p11766_p4 = scmp.ne.s32.totalorder %s15584_s24, %s11765_s23  ;;  %p11769_p5 = scmp.lt.u32.totalorder %s11765_s23, %s15584_s24 }
  0x70   :  { %p11771_p6 = pnand %p11769_p5, %p11766_p4 }
  0x72   :  { %11774 = shalt.err (!%p11771_p6)
}
  0x73   :  { %s11775_s7 = scalar_lea.vmem %s74_s30, 320  ;;  %p11780_p8 = scmp.lt.s32.totalorder %s74_s30, %s74_s30 }
  0x74   :  { %p11776_p7 = scmp.ne.s32.totalorder %s74_s30, %s11775_s7  ;;  %p11781_p9 = scmp.lt.s32.totalorder %s11775_s7, %s11775_s7 }
  0x76   :  { %p11782_p10 = por %p11781_p9, %p11780_p8 }
  0x78   :  { %p11783_p11 = pnand %p11782_p10, %p11776_p7 }
  0x7a   :  { %11786 = shalt.err (!%p11783_p11)
}
  0x7b   :  { %s11896_s6 = smov 64   ;;  %s11897_s22 = smov 4  }
  0x7c   :  { %79 = dma.hbm_to_vmem [thread:$0]  %s15584_s24, 320, %s74_s30, [#allocation6], %s11896_s6, %s11896_s6, %s11897_s22  }
  0x7d   :  { %s11898_s3 = smov [#allocation10]   ;;  %s11899_s28 = smov [#allocation13]  }
  0x7e   :  { %s99_s25 = sshll.u32 %s11898_s3, 4  ;;  %s130_s26 = sshll.u32 %s11899_s28, 4  ;;  %s100_s25 = int_to_ptr.vmem [resolvable:$true] %s99_s25  ;;  %s131_s26 = int_to_ptr.vmem [resolvable:$true] %s130_s26 }
  0x7f   :  { %s11787_s5 = scalar_lea.hbm %s15541_s9, 80 }
  0x80   :  { %p11788_p12 = scmp.ne.s32.totalorder %s15541_s9, %s11787_s5  ;;  %p11791_p13 = scmp.lt.u32.totalorder %s11787_s5, %s15541_s9 }
  0x82   :  { %p11793_p0 = pnand %p11791_p13, %p11788_p12 }
  0x84   :  { %11796 = shalt.err (!%p11793_p0)
}
  0x85   :  { %s11797_s30 = scalar_lea.vmem %s100_s25, 80  ;;  %s11801_s24 = scalar_lea.vmem %s100_s25, 96 }
  0x86   :  { %p11798_p1 = scmp.ne.s32.totalorder %s100_s25, %s11797_s30  ;;  %p11802_p2 = scmp.lt.s32.totalorder %s100_s25, %s100_s25 }
  0x87   :  { %p11803_p3 = scmp.lt.s32.totalorder %s11801_s24, %s11797_s30 }
  0x89   :  { %p11804_p4 = por %p11803_p3, %p11802_p2 }
  0x8b   :  { %p11805_p5 = pnand %p11804_p4, %p11798_p1 }
  0x8d   :  { %11808 = shalt.err (!%p11805_p5)
}
  0x8e   :  { %105 = dma.hbm_to_vmem [thread:$0]  %s15541_s9, 80, %s100_s25, [#allocation9], %s11888_s8, %s11888_s8, %s11889_s4  }
  0x8f   :  { %s11809_s28 = scalar_lea.hbm %s15546_s14, 16 }
  0x90   :  { %p11810_p6 = scmp.ne.s32.totalorder %s15546_s14, %s11809_s28  ;;  %p11813_p7 = scmp.lt.u32.totalorder %s11809_s28, %s15546_s14 }
  0x92   :  { %p11815_p8 = pnand %p11813_p7, %p11810_p6 }
  0x94   :  { %11818 = shalt.err (!%p11815_p8)
}
  0x95   :  { %s11819_s2 = scalar_lea.vmem %s131_s26, 16  ;;  %s11823_s0 = scalar_lea.vmem %s131_s26, 32 }
  0x96   :  { %p11820_p9 = scmp.ne.s32.totalorder %s131_s26, %s11819_s2  ;;  %p11824_p10 = scmp.lt.s32.totalorder %s131_s26, %s131_s26 }
  0x97   :  { %p11825_p11 = scmp.lt.s32.totalorder %s11823_s0, %s11819_s2 }
  0x99   :  { %p11826_p12 = por %p11825_p11, %p11824_p10 }
  0x9b   :  { %p11827_p13 = pnand %p11826_p12, %p11820_p9 }
  0x9d   :  { %11830 = shalt.err (!%p11827_p13)
}
  0x9e   :  { %133 = dma.hbm_to_vmem [thread:$0]  %s15546_s14, 16, %s131_s26, [#allocation12]  }
  0x9f   :  { %11875 = dma.done.wait [#allocation3], 384  }
  0xa0   :  { %11876 = vsyncadd [#allocation3], 4294966912 }
  0xa1   :  { %11877 = dma.done.wait [#allocation6], 400  }
  0xa2   :  { %11878 = vsyncadd [#allocation6], 4294966896 }
  0xa3   :  { %11879 = dma.done.wait [#allocation9], 160  }
  0xa4   :  { %11880 = vsyncadd [#allocation9], 4294967136 }
  0xa5   :  { %11881 = dma.done.wait [#allocation12], 96  }
  0xa6   :  { %11882 = vsyncadd [#allocation12], 4294967200  ;;  %v11900_v0 = vmov 0.0   ;;  %s15585_s30 = sld [smem:[#allocation26_spill]]  ;;  %s15586_s25 = sld [smem:[#allocation23_spill]]  ;;  %vm216_vm0 = vcmask 261120   ;;  %v196_v17 = vlaneseq }
  0xa7   :  { %290 = vmatprep.mubr.f32.mxu0 %v11900_v0  ;;  %373 = vmatprep.mubr.f32.mxu1 %v11900_v0  ;;  %v11901_v16 = vmov 0.0|0.0   ;;  %vm11902_vm1 = vmmov 0   ;;  %s15587_s29 = sld [smem:[#allocation27_spill]]  ;;  %vm12203_vm2 = vmpackc.low %vm216_vm0, %vm216_vm0  ;;  %s11903_s3 = smov 96   ;;  %v12234_v42 = vld [vmem:[#allocation5] ss:$0 sm:$0xff] }
  0xa8   :  { %v12184_v18 = vshrl.u32 %v196_v17, 7  ;;  %s11904_s28 = smov 32   ;;  %vm411_vm3 = vcmask 257024   ;;  %s15590_s27 = sld [smem:[#allocation24_spill]]  ;;  %vm519_vm4 = vcmask 162816   ;;  %vm526_vm5 = vcmask 158720  }
  0xa9   :  { %vm581_vm6 = vcmask 1043456   ;;  %vm1579_vm7 = vcmask 523264   ;;  %vm1583_vm8 = vcmask 785408   ;;  %s15591_s14 = sld [smem:[#allocation30_spill]]  ;;  %vm8655_vm9 = vcmask 519168   ;;  %s15592_s24 = sld [smem:[#allocation32_spill]] }
  0xaa   :  { %v12187_v19 = vsub.s32 1, %v12184_v18  ;;  %v12195_v21 = vsub.s32 0, %v12184_v18  ;;  %vm8665_vm10 = vcmask 7168   ;;  %vm8668_vm11 = vcmask 3072   ;;  %s11907_s26 = smov [#allocation14]  }
  0xac   :  { %v179_v1 = vld [vmem:[%s15585_s30 + $0x8] sm:$0xff]  ;;  %v178_v3 = vld [vmem:[%s15585_s30] sm:$0xff]  ;;  %v12177_v15 = vld [vmem:[%s15586_s25 + $0x10] sm:$0xf] }
  0xad   :  { %v183_v2 = vld [vmem:[%s15585_s30 + $0x28] sm:$0xff]  ;;  %v182_v5 = vld [vmem:[%s15585_s30 + $0x20] sm:$0xff]  ;;  %v181_v44 = vld [vmem:[%s15585_s30 + $0x18] sm:$0xff] }
  0xae   :  { %v10745_v4 = vpack.c.bf16 %v183_v2, %v179_v1  ;;  %v187_v6 = vld [vmem:[%s15585_s30 + $0x48] sm:$0xff]  ;;  %v10747_v8 = vpack.c.bf16 %v182_v5, %v178_v3  ;;  %v186_v10 = vld [vmem:[%s15585_s30 + $0x40] sm:$0xff]  ;;  %v185_v45 = vld [vmem:[%s15585_s30 + $0x38] sm:$0xff] }
  0xaf   :  { %v191_v7 = vld [vmem:[%s15585_s30 + $0x68] sm:$0xff]  ;;  %v190_v11 = vld [vmem:[%s15585_s30 + $0x60] sm:$0xff]  ;;  %v10753_v47 = vpack.c.bf16 %v185_v45, %v181_v44  ;;  %v180_v48 = vld [vmem:[%s15585_s30 + $0x10] sm:$0xff] }
  0xb0   :  { %v10749_v9 = vpack.c.bf16 %v191_v7, %v187_v6  ;;  %10746 = vmatprep.subr.bf16.mxu0 %v10745_v4  ;;  %v10751_v12 = vpack.c.bf16 %v190_v11, %v186_v10  ;;  %v12161_v13 = vld [vmem:[%s15586_s25] sm:$0xff]  ;;  %v12169_v14 = vld [vmem:[%s15586_s25 + $0x8] sm:$0xff]  ;;  %v184_v49 = vld [vmem:[%s15585_s30 + $0x30] sm:$0xff] }
  0xb1   :  { %10748 = vmatpush1.bf16.msra.mxu0 %v10747_v8  ;;  %v12192_v20 = vld [vmem:[%s15587_s29] sm:$0xf]  ;;  %v10755_v51 = vpack.c.bf16 %v184_v49, %v180_v48  ;;  %10754 = vmatprep.subr.bf16.mxu1 %v10753_v47  ;;  %v189_v52 = vld [vmem:[%s15585_s30 + $0x58] sm:$0xff]  ;;  %v188_v55 = vld [vmem:[%s15585_s30 + $0x50] sm:$0xff] }
  0xb2   :  { %10750 = vmatprep.subr.bf16.mxu0 %v10749_v9  ;;  %v203_v24 = vrot.slane %v12192_v20, %v12187_v19  ;;  %v199_v25 = vrot.slane %v12192_v20, %v12195_v21  ;;  %v193_v53 = vld [vmem:[%s15585_s30 + $0x78] sm:$0xff]  ;;  %v192_v56 = vld [vmem:[%s15585_s30 + $0x70] sm:$0xff]  ;;  %v12342_v48 = vld [vmem:[%s15590_s27] sm:$0xff] }
  0xb3   :  { %10756 = vmatpush1.bf16.msra.mxu1 %v10755_v51  ;;  %v10757_v54 = vpack.c.bf16 %v193_v53, %v189_v52  ;;  %v10759_v57 = vpack.c.bf16 %v192_v56, %v188_v55  ;;  %v12348_v51 = vld [vmem:[%s15590_s27 + $0x8] sm:$0xff]  ;;  %v12350_v53 = vld [vmem:[#allocation2] sm:$0xff] }
  0xb5   :  { %10752 = vmatpush1.bf16.msra.mxu0 %v10751_v12  ;;  %10758 = vmatprep.subr.bf16.mxu1 %v10757_v54 }
  0xb6   :  { %10761 = vmatprep.subr.bf16.mxu0 %v11901_v16 }
  0xb7   :  { %10760 = vmatpush1.bf16.msra.mxu1 %v10759_v57 }
  0xb8   :  { %9064 = vmatmul.mubr.msk.f32.vlgmr.msra.gmra.mrb[0].mxu0 %vm216_vm0, %v12161_v13  ;;  %10765 = vmatprep.subr.bf16.mxu1 %v11901_v16 }
  0xb9   :  { %296 = vmatprep.mubr.f32.mxu0 %v11900_v0 }
  0xba   :  { %9067 = vmatmul.mubr.msk.f32.vlgmr.msra.gmra.mrb[0].mxu1 %vm216_vm0, %v12161_v13 }
  0xbb   :  { %379 = vmatprep.mubr.f32.mxu1 %v11900_v0 }
  0xbc   :  { %9065 = vmatmul.mubr.msk.f32.gmra.mrb[2].mxu0 %vm216_vm0, %v12169_v14 }
  0xbd   :  { %302 = vmatprep.mubr.f32.mxu0 %v11900_v0 }
  0xbe   :  { %9068 = vmatmul.mubr.msk.f32.gmra.mrb[2].mxu1 %vm216_vm0, %v12169_v14 }
  0xbf   :  { %385 = vmatprep.mubr.f32.mxu1 %v11900_v0 }
  0xc0   :  { %9066 = vmatmul.mubr.msk.f32.gmra.mrb[4].mxu0 %vm216_vm0, %v12177_v15 }
  0xc1   :  { %9844 = vmatprep.mubr.msk.f32.mxu0 %vm11902_vm1, %v11900_v0 }
  0xc2   :  { %9069 = vmatmul.mubr.msk.f32.gmra.mrb[4].mxu1 %vm216_vm0, %v12177_v15 }
  0xc3   :  { %9859 = vmatprep.mubr.msk.f32.mxu1 %vm11902_vm1, %v11900_v0 }
 0x18b   :  { %v292_v22 = vpop.f32.mrb[0].mxu0 }
 0x18c   :  { %v294_v23 = vpop.f32.mrb[1].mxu0  ;;  %v293_v30 = vadd.f32 %v292_v22, %v199_v25 }
 0x18d   :  { %v295_v28 = vadd.f32 %v294_v23, %v203_v24 }
 0x18e   :  { %v392_v38 = vmul.f32 0.17677669, %v293_v30 }
 0x18f   :  { %v298_v26 = vpop.f32.mrb[2].mxu0 }
 0x190   :  { %v300_v27 = vpop.f32.mrb[3].mxu0  ;;  %v299_v39 = vadd.f32 %v298_v26, %v199_v25  ;;  %v402_v43 = vmul.f32 %v12234_v42, %v392_v38 }
 0x191   :  { %v301_v29 = vadd.f32 %v300_v27, %v203_v24 }
 0x192   :  { %v393_v41 = vmul.f32 0.17677669, %v299_v39  ;;  %v405_v58 = vsel %vm216_vm0, %v402_v43, 0.0 }
 0x193   :  { %v10762_v31 = vpack.c.bf16 %v301_v29, %v295_v28  ;;  %v304_v32 = vpop.f32.mrb[4].mxu0  ;;  %v11168_v33 = vpack.i.bf16 %v301_v29, %v295_v28 }
 0x194   :  { %v306_v35 = vpop.f32.mrb[5].mxu0  ;;  %v305_v36 = vadd.f32 %v304_v32, %v199_v25  ;;  %v403_v46 = vmul.f32 %v12234_v42, %v393_v41 }
 0x195   :  { %11169 = vrot.lane.b32.xlu1 %v11168_v33, %s11896_s6  ;;  %11164 = vrot.lane.b32.xlu0 %v11168_v33, %s11903_s3  ;;  %v307_v37 = vadd.f32 %v306_v35, %v203_v24 }
 0x196   :  { %10764 = vmatpush3.bf16.xpose.msk.msra.mxu0 %vm12203_vm2, %v10762_v31  ;;  %v394_v40 = vmul.f32 0.17677669, %v305_v36  ;;  %v408_v60 = vsel %vm216_vm0, %v403_v46, 0.0 }
 0x197   :  { %9842 = vmatprep.subr.mxu0 %v11900_v0 }
 0x198   :  { %v404_v50 = vmul.f32 %v12234_v42, %v394_v40 }
 0x199   :  { %699 = vrot.lane.b32.xlu0 %v307_v37, %s11903_s3  ;;  %689 = vrot.lane.b32.xlu1 %v392_v38, %s11903_s3 }
 0x19a   :  { %v412_v59 = vsel %vm411_vm3, %v404_v50, 0.0 }
 0x19d   :  { %691 = vrot.lane.b32.xlu0 %v393_v41, %s11903_s3  ;;  %693 = vrot.lane.b32.xlu1 %v394_v40, %s11903_s3 }
 0x19e   :  { %9843 = vmatpush3.xpose.msk.msra.mxu0 %vm216_vm0, %v307_v37 }
 0x19f   :  { %10768 = vmatprep.subr.bf16.mxu0 %v11901_v16 }
 0x1a1   :  { %9845 = vmatmul.mubr.msk.f32.vlgmr.msra.gmra.mrb[6].mxu0 %vm216_vm0, %v392_v38  ;;  %991 = vrot.lane.b32.xlu0 %v307_v37, %s11896_s6 }
 0x1a2   :  { %11174 = vrot.lane.b32.xlu1 %v11168_v33, %s11904_s28  ;;  %9847 = vmatprep.mubr.msk.f32.mxu0 %vm11902_vm1, %v11900_v0 }
 0x1a5   :  { %9848 = vmatmul.mubr.msk.f32.gmra.mrb[8].mxu0 %vm216_vm0, %v393_v41  ;;  %981 = vrot.lane.b32.xlu0 %v392_v38, %s11896_s6 }
 0x1a6   :  { %983 = vrot.lane.b32.xlu1 %v393_v41, %s11896_s6  ;;  %9850 = vmatprep.mubr.msk.f32.mxu0 %vm11902_vm1, %v11900_v0 }
 0x1a9   :  { %9851 = vmatmul.mubr.msk.f32.gmra.mrb[10].mxu0 %vm216_vm0, %v394_v40  ;;  %985 = vrot.lane.b32.xlu0 %v394_v40, %s11896_s6 }
 0x1aa   :  { %1281 = vrot.lane.b32.xlu1 %v307_v37, %s11904_s28  ;;  %9874 = vmatprep.mubr.msk.f32.mxu0 %vm11902_vm1, %v11900_v0 }
 0x1ad   :  { %1271 = vrot.lane.b32.xlu0 %v392_v38, %s11904_s28 }
 0x1ae   :  { %1273 = vrot.lane.b32.xlu1 %v393_v41, %s11904_s28 }
 0x1b1   :  { %1275 = vrot.lane.b32.xlu0 %v394_v40, %s11904_s28 }
 0x1b2   :  { %668 = vrot.lane.b32.xlu1 %v402_v43, %s11903_s3 }
 0x1b5   :  { %670 = vrot.lane.b32.xlu0 %v403_v46, %s11903_s3 }
 0x1b6   :  { %672 = vrot.lane.b32.xlu1 %v404_v50, %s11903_s3 }
 0x1b9   :  { %960 = vrot.lane.b32.xlu0 %v402_v43, %s11896_s6 }
 0x1ba   :  { %962 = vrot.lane.b32.xlu1 %v403_v46, %s11896_s6 }
 0x1bd   :  { %964 = vrot.lane.b32.xlu0 %v404_v50, %s11896_s6 }
 0x1be   :  { %1250 = vrot.lane.b32.xlu1 %v402_v43, %s11904_s28 }
 0x1c1   :  { %1252 = vrot.lane.b32.xlu0 %v403_v46, %s11904_s28 }
 0x1c2   :  { %1254 = vrot.lane.b32.xlu1 %v404_v50, %s11904_s28 }
 0x1e0   :  { %406 = vadd.xlane.f32.xlu0 %v405_v58 }
 0x1e4   :  { %413 = vadd.xlane.f32.xlu0 %v412_v59  ;;  %v12359_v59 = vld [vmem:[%s15590_s27 + $0x10] sm:$0xf] }
 0x1e6   :  { %409 = vadd.xlane.f32.xlu1 %v408_v60 }
 0x207   :  { %v11170_v61 = vpop.permute.xlu1 %11169  ;;  %v11165_v62 = vpop.permute.xlu0 %11164 }
 0x208   :  { %v11167_v63 = vunpack.i.h.bf16 %v11165_v62  ;;  %v11166_v1 = vunpack.i.l.bf16 %v11165_v62  ;;  %v11172_v7 = vunpack.i.h.bf16 %v11170_v61  ;;  %v11171_v8 = vunpack.i.l.bf16 %v11170_v61  ;;  %v12361_v61 = vld [vmem:[#allocation2 + $0x8] sm:$0xff] }
 0x20a   :  { %v10769_v2 = vpack.c.bf16 %v11167_v63, %v11166_v1  ;;  %v10776_v11 = vpack.c.bf16 %v11172_v7, %v11171_v8 }
 0x20b   :  { %v700_v3 = vpop.permute.xlu0 %699  ;;  %v690_v4 = vpop.permute.xlu1 %689 }
 0x20c   :  { %10771 = vmatpush3.bf16.xpose.msk.msra.mxu0 %vm12203_vm2, %v10769_v2 }
 0x20d   :  { %9872 = vmatprep.subr.mxu0 %v11900_v0 }
 0x20f   :  { %v692_v5 = vpop.permute.xlu0 %691  ;;  %v694_v6 = vpop.permute.xlu1 %693 }
 0x213   :  { %v992_v9 = vpop.permute.xlu0 %991 }
 0x214   :  { %v11175_v10 = vpop.permute.xlu1 %11174  ;;  %9873 = vmatpush3.xpose.msk.msra.mxu0 %vm216_vm0, %v700_v3 }
 0x215   :  { %10775 = vmatprep.subr.bf16.mxu0 %v11901_v16  ;;  %v11177_v17 = vunpack.i.h.bf16 %v11175_v10  ;;  %v11176_v22 = vunpack.i.l.bf16 %v11175_v10 }
 0x217   :  { %v982_v12 = vpop.permute.xlu0 %981  ;;  %9875 = vmatmul.mubr.msk.f32.vlgmr.msra.gmra.mrb[12].mxu0 %vm216_vm0, %v690_v4  ;;  %v10783_v25 = vpack.c.bf16 %v11177_v17, %v11176_v22 }
 0x218   :  { %v984_v13 = vpop.permute.xlu1 %983  ;;  %10778 = vmatpush3.bf16.xpose.msk.msra.mxu0 %vm12203_vm2, %v10776_v11  ;;  %9877 = vmatprep.mubr.msk.f32.mxu0 %vm11902_vm1, %v11900_v0  ;;  %v12379_v11 = vsub.s32 2, %v12184_v18 }
 0x219   :  { %9902 = vmatprep.subr.mxu0 %v11900_v0 }
 0x21b   :  { %v986_v14 = vpop.permute.xlu0 %985  ;;  %9878 = vmatmul.mubr.msk.f32.gmra.mrb[14].mxu0 %vm216_vm0, %v692_v5  ;;  %v12369_v5 = vld [vmem:[#allocation2 + $0x10] sm:$0xf] }
 0x21c   :  { %v1282_v15 = vpop.permute.xlu1 %1281  ;;  %9880 = vmatprep.mubr.msk.f32.mxu0 %vm11902_vm1, %v11900_v0 }
 0x21f   :  { %v1272_v23 = vpop.permute.xlu0 %1271  ;;  %9881 = vmatmul.mubr.msk.f32.gmra.mrb[16].mxu0 %vm216_vm0, %v694_v6 }
 0x220   :  { %v1274_v24 = vpop.permute.xlu1 %1273  ;;  %9903 = vmatpush3.xpose.msk.msra.mxu0 %vm216_vm0, %v992_v9  ;;  %9904 = vmatprep.mubr.msk.f32.mxu0 %vm11902_vm1, %v11900_v0 }
 0x221   :  { %10782 = vmatprep.subr.bf16.mxu0 %v11901_v16 }
 0x223   :  { %v1276_v26 = vpop.permute.xlu0 %1275  ;;  %9905 = vmatmul.mubr.msk.f32.vlgmr.msra.gmra.mrb[18].mxu0 %vm216_vm0, %v982_v12  ;;  %v375_v12 = vpop.f32.mrb[0].mxu1 }
 0x224   :  { %v669_v27 = vpop.permute.xlu1 %668  ;;  %10785 = vmatpush3.bf16.xpose.msk.msra.mxu0 %vm12203_vm2, %v10783_v25  ;;  %9907 = vmatprep.mubr.msk.f32.mxu0 %vm11902_vm1, %v11900_v0 }
 0x225   :  { %v677_v28 = vsel %vm216_vm0, %v669_v27, 0.0  ;;  %9932 = vmatprep.subr.mxu0 %v11900_v0 }
 0x226   :  { %678 = vadd.xlane.f32.xlu0 %v677_v28 }
 0x227   :  { %v671_v29 = vpop.permute.xlu0 %670  ;;  %9908 = vmatmul.mubr.msk.f32.gmra.mrb[20].mxu0 %vm216_vm0, %v984_v13  ;;  %v207_v13 = vrot.slane %v12192_v20, %v12379_v11 }
 0x228   :  { %v673_v30 = vpop.permute.xlu1 %672  ;;  %v680_v31 = vsel %vm216_vm0, %v671_v29, 0.0  ;;  %9910 = vmatprep.mubr.msk.f32.mxu0 %vm11902_vm1, %v11900_v0 }
 0x229   :  { %681 = vadd.xlane.f32.xlu1 %v680_v31  ;;  %v683_v32 = vsel %vm411_vm3, %v673_v30, 0.0  ;;  %v376_v17 = vadd.f32 %v375_v12, %v207_v13 }
 0x22a   :  { %684 = vadd.xlane.f32.xlu0 %v683_v32 }
 0x22b   :  { %9911 = vmatmul.mubr.msk.f32.gmra.mrb[22].mxu0 %vm216_vm0, %v986_v14  ;;  %v961_v33 = vpop.permute.xlu0 %960  ;;  %v12383_v14 = vpop.f32.mrb[1].mxu1 }
 0x22c   :  { %v963_v35 = vpop.permute.xlu1 %962  ;;  %9933 = vmatpush3.xpose.msk.msra.mxu0 %vm216_vm0, %v1282_v15  ;;  %v969_v36 = vsel %vm216_vm0, %v961_v33, 0.0  ;;  %9934 = vmatprep.mubr.msk.f32.mxu0 %vm11902_vm1, %v11900_v0  ;;  %v381_v15 = vpop.f32.mrb[2].mxu1 }
 0x22d   :  { %970 = vadd.xlane.f32.xlu1 %v969_v36  ;;  %v972_v37 = vsel %vm216_vm0, %v963_v35, 0.0  ;;  %10789 = vmatprep.subr.bf16.mxu0 %v11901_v16  ;;  %v382_v22 = vadd.f32 %v381_v15, %v207_v13 }
 0x22e   :  { %973 = vadd.xlane.f32.xlu0 %v972_v37 }
 0x22f   :  { %9935 = vmatmul.mubr.msk.f32.vlgmr.msra.gmra.mrb[24].mxu0 %vm216_vm0, %v1272_v23  ;;  %v965_v38 = vpop.permute.xlu0 %964  ;;  %v12385_v23 = vpop.f32.mrb[3].mxu1  ;;  %v12387_v25 = vpack.i.bf16 %v382_v22, %v376_v17 }
 0x230   :  { %v1251_v39 = vpop.permute.xlu1 %1250  ;;  %v975_v40 = vsel %vm411_vm3, %v965_v38, 0.0  ;;  %9937 = vmatprep.mubr.msk.f32.mxu0 %vm11902_vm1, %v11900_v0 }
 0x231   :  { %976 = vadd.xlane.f32.xlu1 %v975_v40  ;;  %v1259_v41 = vsel %vm216_vm0, %v1251_v39, 0.0 }
 0x232   :  { %1260 = vadd.xlane.f32.xlu0 %v1259_v41 }
 0x233   :  { %9938 = vmatmul.mubr.msk.f32.gmra.mrb[26].mxu0 %vm216_vm0, %v1274_v24  ;;  %v1253_v43 = vpop.permute.xlu0 %1252  ;;  %v10766_v24 = vpack.c.bf16 %v382_v22, %v376_v17 }
 0x234   :  { %v1255_v44 = vpop.permute.xlu1 %1254  ;;  %v1262_v45 = vsel %vm216_vm0, %v1253_v43, 0.0  ;;  %9940 = vmatprep.mubr.msk.f32.mxu0 %vm11902_vm1, %v11900_v0 }
 0x235   :  { %1263 = vadd.xlane.f32.xlu1 %v1262_v45  ;;  %v1265_v46 = vsel %vm411_vm3, %v1255_v44, 0.0  ;;  %10767 = vmatpush3.bf16.msra.mxu1 %v10766_v24 }
 0x236   :  { %1266 = vadd.xlane.f32.xlu0 %v1265_v46  ;;  %9857 = vmatprep.subr.mxu1 %v11900_v0 }
 0x237   :  { %9941 = vmatmul.mubr.msk.f32.gmra.mrb[28].mxu0 %vm216_vm0, %v1276_v26  ;;  %v387_v26 = vpop.f32.mrb[4].mxu1 }
 0x238   :  { %9990 = vmatprep.mubr.msk.f32.mxu0 %vm11902_vm1, %v11900_v0  ;;  %v12389_v27 = vpop.f32.mrb[5].mxu1  ;;  %v12391_v28 = vadd.f32 %v387_v26, %v207_v13 }
 0x23a   :  { %9858 = vmatpush3.msk.msra.mxu1 %vm581_vm6, %v12391_v28 }
 0x23b   :  { %10772 = vmatprep.subr.bf16.mxu1 %v11901_v16 }
 0x26d   :  { %v407_v47 = vpop.xlane.xlu0 %406 }
 0x26e   :  { %v415_v49 = vmul.f32 %v407_v47, %v12342_v48 }
 0x271   :  { %v414_v58 = vpop.xlane.xlu0 %413 }
 0x272   :  { %v417_v2 = vmul.f32 %v414_v58, %v12359_v59 }
 0x273   :  { %v410_v50 = vpop.xlane.xlu1 %409 }
 0x274   :  { %v502_v52 = vpop.f32.mrb[6].mxu0  ;;  %v416_v56 = vmul.f32 %v410_v50, %v12348_v51 }
 0x275   :  { %v503_v54 = vadd.f32 %v502_v52, %v415_v49  ;;  %v9846_v55 = vpop.f32.mrb[7].mxu0 }
 0x277   :  { %v12354_v57 = vadd.f32 %v503_v54, %v12350_v53 }
 0x278   :  { %v507_v60 = vpop.f32.mrb[8].mxu0 }
 0x279   :  { %v508_v62 = vadd.f32 %v507_v60, %v416_v56  ;;  %v9849_v63 = vpop.f32.mrb[9].mxu0  ;;  %v520_v1 = vsel %vm519_vm4, %v12354_v57, -inf }
 0x27a   :  { %521 = vmax.xlane.f32.xlu1 %v520_v1 }
 0x27b   :  { %v12367_v3 = vadd.f32 %v508_v62, %v12361_v61 }
 0x27c   :  { %v512_v4 = vpop.f32.mrb[10].mxu0 }
 0x27d   :  { %v513_v6 = vadd.f32 %v512_v4, %v417_v2  ;;  %v9852_v7 = vpop.f32.mrb[11].mxu0  ;;  %v523_v8 = vsel %vm519_vm4, %v12367_v3, -inf }
 0x27e   :  { %524 = vmax.xlane.f32.xlu0 %v523_v8 }
 0x27f   :  { %v12374_v9 = vadd.f32 %v513_v6, %v12369_v5 }
 0x281   :  { %v527_v10 = vsel %vm526_vm5, %v12374_v9, -inf }
 0x282   :  { %528 = vmax.xlane.f32.xlu1 %v527_v10 }
 0x2b3   :  { %v679_v20 = vpop.xlane.xlu0 %678 }
 0x2b4   :  { %v686_v29 = vmul.f32 %v679_v20, %v12342_v48 }
 0x2b6   :  { %v682_v30 = vpop.xlane.xlu1 %681 }
 0x2b7   :  { %v687_v35 = vmul.f32 %v682_v30, %v12348_v51  ;;  %v685_v37 = vpop.xlane.xlu0 %684 }
 0x2b8   :  { %v688_v43 = vmul.f32 %v685_v37, %v12359_v59 }
 0x2ba   :  { %v971_v45 = vpop.xlane.xlu1 %970 }
 0x2bb   :  { %v978_v52 = vmul.f32 %v971_v45, %v12342_v48  ;;  %v974_v55 = vpop.xlane.xlu0 %973 }
 0x2bc   :  { %v979_v63 = vmul.f32 %v974_v55, %v12348_v51 }
 0x2be   :  { %v977_v2 = vpop.xlane.xlu1 %976 }
 0x2bf   :  { %v980_v10 = vmul.f32 %v977_v2, %v12359_v59  ;;  %v1261_v13 = vpop.xlane.xlu0 %1260 }
 0x2c0   :  { %v1268_v26 = vmul.f32 %v1261_v13, %v12342_v48 }
 0x2c3   :  { %v1267_v55 = vpop.xlane.xlu0 %1266 }
 0x2ea   :  { %v779_v31 = vpop.f32.mrb[12].mxu0 }
 0x2eb   :  { %v780_v32 = vadd.f32 %v779_v31, %v686_v29  ;;  %v9876_v33 = vpop.f32.mrb[13].mxu0  ;;  %v1264_v29 = vpop.xlane.xlu1 %1263 }
 0x2ed   :  { %v12400_v36 = vadd.f32 %v780_v32, %v12350_v53 }
 0x2ee   :  { %v784_v38 = vpop.f32.mrb[14].mxu0 }
 0x2ef   :  { %v785_v39 = vadd.f32 %v784_v38, %v687_v35  ;;  %v9879_v40 = vpop.f32.mrb[15].mxu0  ;;  %v796_v41 = vsel %vm519_vm4, %v12400_v36, -inf  ;;  %v1269_v35 = vmul.f32 %v1264_v29, %v12348_v51 }
 0x2f0   :  { %797 = vmax.xlane.f32.xlu0 %v796_v41 }
 0x2f1   :  { %v12406_v44 = vadd.f32 %v785_v39, %v12361_v61 }
 0x2f2   :  { %v789_v46 = vpop.f32.mrb[16].mxu0 }
 0x2f3   :  { %v790_v47 = vadd.f32 %v789_v46, %v688_v43  ;;  %v9882_v49 = vpop.f32.mrb[17].mxu0  ;;  %v799_v50 = vsel %vm519_vm4, %v12406_v44, -inf }
 0x2f4   :  { %800 = vmax.xlane.f32.xlu1 %v799_v50 }
 0x2f5   :  { %v12412_v54 = vadd.f32 %v790_v47, %v12369_v5 }
 0x2f6   :  { %v1071_v56 = vpop.f32.mrb[18].mxu0 }
 0x2f7   :  { %v1072_v58 = vadd.f32 %v1071_v56, %v978_v52  ;;  %v9906_v60 = vpop.f32.mrb[19].mxu0  ;;  %v802_v62 = vsel %vm526_vm5, %v12412_v54, -inf }
 0x2f8   :  { %803 = vmax.xlane.f32.xlu0 %v802_v62  ;;  %v1270_v60 = vmul.f32 %v1267_v55, %v12359_v59 }
 0x2f9   :  { %v12418_v1 = vadd.f32 %v1072_v58, %v12350_v53 }
 0x2fa   :  { %v1076_v4 = vpop.f32.mrb[20].mxu0 }
 0x2fb   :  { %v1077_v6 = vadd.f32 %v1076_v4, %v979_v63  ;;  %v9909_v7 = vpop.f32.mrb[21].mxu0  ;;  %v1088_v8 = vsel %vm519_vm4, %v12418_v1, -inf }
 0x2fc   :  { %1089 = vmax.xlane.f32.xlu1 %v1088_v8 }
 0x2fd   :  { %v12424_v12 = vadd.f32 %v1077_v6, %v12361_v61 }
 0x2fe   :  { %v1081_v15 = vpop.f32.mrb[22].mxu0 }
 0x2ff   :  { %v1082_v17 = vadd.f32 %v1081_v15, %v980_v10  ;;  %v9912_v22 = vpop.f32.mrb[23].mxu0  ;;  %v1091_v24 = vsel %vm519_vm4, %v12424_v12, -inf }
 0x300   :  { %1092 = vmax.xlane.f32.xlu0 %v1091_v24 }
 0x301   :  { %v12430_v20 = vadd.f32 %v1082_v17, %v12369_v5 }
 0x302   :  { %v1361_v30 = vpop.f32.mrb[24].mxu0 }
 0x303   :  { %v1362_v31 = vadd.f32 %v1361_v30, %v1268_v26  ;;  %v9936_v32 = vpop.f32.mrb[25].mxu0  ;;  %v1094_v33 = vsel %vm526_vm5, %v12430_v20, -inf }
 0x304   :  { %1095 = vmax.xlane.f32.xlu1 %v1094_v33 }
 0x305   :  { %v12436_v37 = vadd.f32 %v1362_v31, %v12350_v53 }
 0x306   :  { %v1366_v38 = vpop.f32.mrb[26].mxu0 }
 0x307   :  { %v1367_v39 = vadd.f32 %v1366_v38, %v1269_v35  ;;  %v9939_v40 = vpop.f32.mrb[27].mxu0  ;;  %v1378_v41 = vsel %vm519_vm4, %v12436_v37, -inf  ;;  %v522_v53 = vpop.xlane.xlu1 %521 }
 0x308   :  { %1379 = vmax.xlane.f32.xlu0 %v1378_v41  ;;  %v530_v49 = vsub.f32 %v12354_v57, %v522_v53 }
 0x309   :  { %v12441_v43 = vadd.f32 %v1367_v39, %v12361_v61 }
 0x30a   :  { %v1371_v45 = vpop.f32.mrb[28].mxu0  ;;  %v533_v52 = vmax.f32 %v530_v49, -60.0 }
 0x30b   :  { %v9942_v46 = vpop.f32.mrb[29].mxu0  ;;  %v1381_v47 = vsel %vm519_vm4, %v12441_v43, -inf  ;;  %v1372_v63 = vadd.f32 %v1371_v45, %v1270_v60 }
 0x30c   :  { %1382 = vmax.xlane.f32.xlu1 %v1381_v47  ;;  %v536_v56 = vmul.f32 1.442695, %v533_v52 }
 0x30d   :  { %v12453_v2 = vadd.f32 %v1372_v63, %v12369_v5  ;;  %v525_v5 = vpop.xlane.xlu0 %524 }
 0x30e   :  { %11315 = vpow2.f32 %v536_v56  ;;  %v531_v8 = vsub.f32 %v12367_v3, %v525_v5 }
 0x30f   :  { %v529_v50 = vpop.xlane.xlu1 %528  ;;  %v1384_v4 = vsel %vm526_vm5, %v12453_v2, -inf }
 0x310   :  { %v532_v61 = vsub.f32 %v12374_v9, %v529_v50  ;;  %v534_v10 = vmax.f32 %v531_v8, -60.0 }
 0x312   :  { %v535_v58 = vmax.f32 %v532_v61, -60.0  ;;  %v538_v13 = vmul.f32 1.442695, %v534_v10 }
 0x314   :  { %v540_v62 = vmul.f32 1.442695, %v535_v58 }
 0x316   :  { %11317 = vpow2.f32 %v540_v62 }
 0x317   :  { %11319 = vpow2.f32 %v538_v13 }
 0x318   :  { %v12457_v57 = vpop.eup %11315 }
 0x319   :  { %v542_v9 = vsel %vm519_vm4, %v12457_v57, 0.0 }
 0x31d   :  { %11179 = vrot.lane.b32.xlu1 %v12387_v25, %s11903_s3 }
 0x31e   :  { %853 = vrot.lane.b32.xlu0 %v12391_v28, %s11903_s3 }
 0x320   :  { %v12461_v6 = vpop.eup %11317 }
 0x321   :  { %v548_v7 = vsel %vm526_vm5, %v12461_v6, 0.0  ;;  %v12468_v15 = vpop.eup %11319 }
 0x322   :  { %v545_v17 = vsel %vm519_vm4, %v12468_v15, 0.0 }
 0x33d   :  { %1385 = vmax.xlane.f32.xlu0 %v1384_v4 }
 0x341   :  { %543 = vadd.xlane.f32.xlu1 %v542_v9 }
 0x345   :  { %549 = vadd.xlane.f32.xlu1 %v548_v7 }
 0x353   :  { %11184 = vrot.lane.b32.xlu0 %v12387_v25, %s11896_s6 }
 0x372   :  { %546 = vadd.xlane.f32.xlu0 %v545_v17 }
 0x37d   :  { %v798_v22 = vpop.xlane.xlu0 %797 }
 0x37e   :  { %v805_v24 = vsub.f32 %v12400_v36, %v798_v22 }
 0x380   :  { %v808_v26 = vmax.f32 %v805_v24, -60.0 }
 0x381   :  { %v801_v29 = vpop.xlane.xlu1 %800 }
 0x382   :  { %v811_v30 = vmul.f32 1.442695, %v808_v26  ;;  %v806_v31 = vsub.f32 %v12406_v44, %v801_v29 }
 0x384   :  { %11321 = vpow2.f32 %v811_v30  ;;  %v809_v32 = vmax.f32 %v806_v31, -60.0 }
 0x385   :  { %v804_v3 = vpop.xlane.xlu0 %803 }
 0x386   :  { %v813_v33 = vmul.f32 1.442695, %v809_v32  ;;  %v807_v35 = vsub.f32 %v12412_v54, %v804_v3 }
 0x388   :  { %11323 = vpow2.f32 %v813_v33  ;;  %v810_v38 = vmax.f32 %v807_v35, -60.0 }
 0x389   :  { %v1090_v40 = vpop.xlane.xlu1 %1089 }
 0x38a   :  { %v815_v39 = vmul.f32 1.442695, %v810_v38  ;;  %v1097_v5 = vsub.f32 %v12418_v1, %v1090_v40 }
 0x38c   :  { %11325 = vpow2.f32 %v815_v39  ;;  %v1100_v10 = vmax.f32 %v1097_v5, -60.0 }
 0x38d   :  { %v1093_v41 = vpop.xlane.xlu0 %1092 }
 0x38e   :  { %v12475_v45 = vpop.eup %11321  ;;  %v1098_v36 = vsub.f32 %v12424_v12, %v1093_v41  ;;  %v1103_v17 = vmul.f32 1.442695, %v1100_v10 }
 0x38f   :  { %v817_v46 = vsel %vm519_vm4, %v12475_v45, 0.0 }
 0x390   :  { %v1101_v44 = vmax.f32 %v1098_v36, -60.0  ;;  %818 = vadd.xlane.f32.xlu0 %v817_v46 }
 0x391   :  { %v1096_v47 = vpop.xlane.xlu1 %1095 }
 0x392   :  { %v12480_v53 = vpop.eup %11323  ;;  %v1105_v49 = vmul.f32 1.442695, %v1101_v44  ;;  %v1099_v54 = vsub.f32 %v12430_v20, %v1096_v47 }
 0x393   :  { %v820_v50 = vsel %vm519_vm4, %v12480_v53, 0.0 }
 0x394   :  { %11327 = vpow2.f32 %v1105_v49  ;;  %v1102_v52 = vmax.f32 %v1099_v54, -60.0  ;;  %821 = vadd.xlane.f32.xlu1 %v820_v50 }
 0x395   :  { %v1380_v61 = vpop.xlane.xlu0 %1379 }
 0x396   :  { %v12485_v55 = vpop.eup %11325  ;;  %v1107_v12 = vmul.f32 1.442695, %v1102_v52  ;;  %v1387_v56 = vsub.f32 %v12436_v37, %v1380_v61 }
 0x397   :  { %v823_v58 = vsel %vm526_vm5, %v12485_v55, 0.0 }
 0x398   :  { %11329 = vpow2.f32 %v1107_v12  ;;  %v1390_v60 = vmax.f32 %v1387_v56, -60.0  ;;  %824 = vadd.xlane.f32.xlu0 %v823_v58 }
 0x399   :  { %v1383_v8 = vpop.xlane.xlu1 %1382  ;;  %v854_v29 = vpop.permute.xlu0 %853 }
 0x39a   :  { %v1393_v62 = vmul.f32 1.442695, %v1390_v60  ;;  %v1388_v13 = vsub.f32 %v12441_v43, %v1383_v8 }
 0x39c   :  { %11331 = vpow2.f32 %v1393_v62  ;;  %v1391_v22 = vmax.f32 %v1388_v13, -60.0 }
 0x39d   :  { %11333 = vpow2.f32 %v1103_v17  ;;  %v11180_v32 = vpop.permute.xlu1 %11179 }
 0x39e   :  { %v12490_v20 = vpop.eup %11327  ;;  %v1395_v24 = vmul.f32 1.442695, %v1391_v22  ;;  %v11182_v39 = vunpack.i.h.bf16 %v11180_v32  ;;  %v11181_v40 = vunpack.i.l.bf16 %v11180_v32 }
 0x39f   :  { %v1112_v63 = vsel %vm519_vm4, %v12490_v20, 0.0 }
 0x3a0   :  { %1113 = vadd.xlane.f32.xlu0 %v1112_v63  ;;  %11335 = vpow2.f32 %v1395_v24  ;;  %v10773_v44 = vpack.c.bf16 %v11182_v39, %v11181_v40 }
 0x3a2   :  { %v12494_v4 = vpop.eup %11329 }
 0x3a3   :  { %v1115_v9 = vsel %vm526_vm5, %v12494_v4, 0.0 }
 0x3a4   :  { %1116 = vadd.xlane.f32.xlu0 %v1115_v9 }
 0x3a5   :  { %1143 = vrot.lane.b32.xlu1 %v12391_v28, %s11896_s6 }
 0x3a6   :  { %v12500_v37 = vpop.eup %11331 }
 0x3a7   :  { %v1399_v7 = vsel %vm519_vm4, %v12500_v37, 0.0  ;;  %v12506_v26 = vpop.eup %11333 }
 0x3a8   :  { %1400 = vadd.xlane.f32.xlu0 %v1399_v7  ;;  %v1109_v30 = vsel %vm519_vm4, %v12506_v26, 0.0 }
 0x3aa   :  { %v12510_v31 = vpop.eup %11335 }
 0x3ab   :  { %v1402_v43 = vsel %vm519_vm4, %v12510_v31, 0.0 }
 0x3c9   :  { %1110 = vadd.xlane.f32.xlu1 %v1109_v30 }
 0x3ca   :  { %v1386_v1 = vpop.xlane.xlu0 %1385 }
 0x3cb   :  { %v1389_v3 = vsub.f32 %v12453_v2, %v1386_v1 }
 0x3cd   :  { %v1392_v33 = vmax.f32 %v1389_v3, -60.0  ;;  %1403 = vadd.xlane.f32.xlu1 %v1402_v43 }
 0x3ce   :  { %v544_v35 = vpop.xlane.xlu1 %543 }
 0x3cf   :  { %v1397_v38 = vmul.f32 1.442695, %v1392_v33  ;;  %11337 = vrcp.f32 %v544_v35 }
 0x3d1   :  { %11339 = vpow2.f32 %v1397_v38 }
 0x3d2   :  { %v550_v47 = vpop.xlane.xlu1 %549 }
 0x3d9   :  { %v11338_v41 = vpop.eup %11337 }
 0x3da   :  { %v12516_v36 = vmul.f32 %v11338_v41, %v12457_v57  ;;  %v11185_v57 = vpop.permute.xlu0 %11184 }
 0x3db   :  { %v12518_v46 = vpop.eup %11339  ;;  %v11187_v12 = vunpack.i.h.bf16 %v11185_v57  ;;  %v11186_v56 = vunpack.i.l.bf16 %v11185_v57 }
 0x3dc   :  { %9860 = vmatmul.mubr.msk.f32.vlgmr.msra.gmra.mrb[6].mxu1 %vm519_vm4, %v12516_v36  ;;  %v1405_v2 = vsel %vm526_vm5, %v12518_v46, 0.0 }
 0x3dd   :  { %10774 = vmatpush3.bf16.msra.mxu1 %v10773_v44  ;;  %1406 = vadd.xlane.f32.xlu0 %v1405_v2  ;;  %v10780_v62 = vpack.c.bf16 %v11187_v12, %v11186_v56 }
 0x3de   :  { %1433 = vrot.lane.b32.xlu1 %v12391_v28, %s11904_s28  ;;  %9887 = vmatprep.subr.mxu1 %v11900_v0 }
 0x3df   :  { %9862 = vmatprep.mubr.msk.f32.mxu1 %vm11902_vm1, %v11900_v0 }
 0x3e1   :  { %9888 = vmatpush3.msk.msra.mxu1 %vm581_vm6, %v854_v29 }
 0x3e2   :  { %10779 = vmatprep.subr.bf16.mxu1 %v11901_v16 }
 0x3f3   :  { %11189 = vrot.lane.b32.xlu0 %v12387_v25, %s11904_s28 }
 0x3ff   :  { %v547_v49 = vpop.xlane.xlu0 %546 }
 0x400   :  { %11341 = vrcp.f32 %v547_v49 }
 0x401   :  { %11343 = vrcp.f32 %v550_v47 }
 0x40a   :  { %v11342_v54 = vpop.eup %11341 }
 0x40b   :  { %v12534_v28 = vmul.f32 %v11342_v54, %v12468_v15  ;;  %v11344_v50 = vpop.eup %11343 }
 0x40c   :  { %v12541_v52 = vmul.f32 %v11344_v50, %v12461_v6 }
 0x40d   :  { %9863 = vmatmul.mubr.msk.f32.gmra.mrb[8].mxu1 %vm519_vm4, %v12534_v28 }
 0x40e   :  { %9865 = vmatprep.mubr.msk.f32.mxu1 %vm11902_vm1, %v11900_v0 }
 0x411   :  { %9866 = vmatmul.mubr.msk.f32.gmra.mrb[10].mxu1 %vm519_vm4, %v12541_v52 }
 0x412   :  { %9889 = vmatprep.mubr.msk.f32.mxu1 %vm11902_vm1, %v11900_v0 }
 0x41d   :  { %v819_v25 = vpop.xlane.xlu0 %818 }
 0x41e   :  { %11345 = vrcp.f32 %v819_v25  ;;  %v557_v25 = vmul.f32 %v12516_v36, %v12342_v48 }
 0x420   :  { %v560_v56 = vsel %vm519_vm4, %v557_v25, 0.0 }
 0x421   :  { %v822_v15 = vpop.xlane.xlu1 %821 }
 0x422   :  { %11347 = vrcp.f32 %v822_v15 }
 0x425   :  { %v825_v61 = vpop.xlane.xlu0 %824 }
 0x426   :  { %11349 = vrcp.f32 %v825_v61 }
 0x428   :  { %v11346_v58 = vpop.eup %11345 }
 0x429   :  { %v829_v60 = vmul.f32 %v11346_v58, %v12475_v45  ;;  %v1144_v45 = vpop.permute.xlu1 %1143 }
 0x42b   :  { %9890 = vmatmul.mubr.msk.f32.vlgmr.msra.gmra.mrb[12].mxu1 %vm519_vm4, %v829_v60  ;;  %v832_v6 = vmul.f32 %v829_v60, %v12342_v48 }
 0x42c   :  { %v11348_v63 = vpop.eup %11347  ;;  %10781 = vmatpush3.bf16.msra.mxu1 %v10780_v62  ;;  %9892 = vmatprep.mubr.msk.f32.mxu1 %vm11902_vm1, %v11900_v0 }
 0x42d   :  { %v1114_v9 = vpop.xlane.xlu0 %1113  ;;  %v835_v7 = vsel %vm519_vm4, %v832_v6, 0.0  ;;  %9917 = vmatprep.subr.mxu1 %v11900_v0  ;;  %v830_v5 = vmul.f32 %v11348_v63, %v12480_v53 }
 0x42e   :  { %11351 = vrcp.f32 %v1114_v9  ;;  %836 = vadd.xlane.f32.xlu1 %v835_v7 }
 0x42f   :  { %9893 = vmatmul.mubr.msk.f32.gmra.mrb[14].mxu1 %vm519_vm4, %v830_v5  ;;  %v833_v8 = vmul.f32 %v830_v5, %v12348_v51 }
 0x430   :  { %v11350_v10 = vpop.eup %11349  ;;  %9918 = vmatpush3.msk.msra.mxu1 %vm581_vm6, %v1144_v45  ;;  %9895 = vmatprep.mubr.msk.f32.mxu1 %vm11902_vm1, %v11900_v0 }
 0x431   :  { %v1117_v13 = vpop.xlane.xlu0 %1116  ;;  %v838_v17 = vsel %vm519_vm4, %v833_v8, 0.0  ;;  %v831_v22 = vmul.f32 %v11350_v10, %v12485_v55  ;;  %10786 = vmatprep.subr.bf16.mxu1 %v11901_v16 }
 0x432   :  { %839 = vadd.xlane.f32.xlu1 %v838_v17 }
 0x433   :  { %9896 = vmatmul.mubr.msk.f32.gmra.mrb[16].mxu1 %vm519_vm4, %v831_v22  ;;  %v834_v33 = vmul.f32 %v831_v22, %v12359_v59 }
 0x434   :  { %9919 = vmatprep.mubr.msk.f32.mxu1 %vm11902_vm1, %v11900_v0 }
 0x435   :  { %v1401_v53 = vpop.xlane.xlu0 %1400  ;;  %v841_v35 = vsel %vm526_vm5, %v834_v33, 0.0 }
 0x436   :  { %11353 = vrcp.f32 %v1401_v53 }
 0x438   :  { %v11352_v24 = vpop.eup %11351 }
 0x439   :  { %v1122_v29 = vmul.f32 %v11352_v24, %v12490_v20 }
 0x43b   :  { %v1125_v30 = vmul.f32 %v1122_v29, %v12348_v51 }
 0x43d   :  { %v1130_v32 = vsel %vm519_vm4, %v1125_v30, 0.0 }
 0x43e   :  { %1131 = vadd.xlane.f32.xlu1 %v1130_v32 }
 0x440   :  { %v11354_v1 = vpop.eup %11353 }
 0x441   :  { %v1411_v55 = vmul.f32 %v11354_v1, %v12500_v37 }
 0x443   :  { %v1414_v3 = vmul.f32 %v1411_v55, %v12342_v48 }
 0x445   :  { %v1417_v43 = vsel %vm519_vm4, %v1414_v3, 0.0 }
 0x446   :  { %1418 = vadd.xlane.f32.xlu1 %v1417_v43 }
 0x44a   :  { %842 = vadd.xlane.f32.xlu1 %v841_v35 }
 0x456   :  { %v1111_v38 = vpop.xlane.xlu1 %1110 }
 0x457   :  { %11355 = vrcp.f32 %v1111_v38 }
 0x458   :  { %11357 = vrcp.f32 %v1117_v13 }
 0x45a   :  { %v1404_v20 = vpop.xlane.xlu1 %1403 }
 0x45b   :  { %11359 = vrcp.f32 %v1404_v20 }
 0x45e   :  { %v1434_v60 = vpop.permute.xlu1 %1433 }
 0x461   :  { %v11356_v39 = vpop.eup %11355 }
 0x462   :  { %v1121_v40 = vmul.f32 %v11356_v39, %v12506_v26  ;;  %v11358_v41 = vpop.eup %11357 }
 0x463   :  { %v1123_v47 = vmul.f32 %v11358_v41, %v12494_v4 }
 0x464   :  { %9920 = vmatmul.mubr.msk.f32.vlgmr.msra.gmra.mrb[18].mxu1 %vm519_vm4, %v1121_v40  ;;  %v1124_v37 = vmul.f32 %v1121_v40, %v12342_v48 }
 0x465   :  { %v11360_v44 = vpop.eup %11359  ;;  %9922 = vmatprep.mubr.msk.f32.mxu1 %vm11902_vm1, %v11900_v0  ;;  %v1126_v50 = vmul.f32 %v1123_v47, %v12359_v59 }
 0x466   :  { %v1127_v2 = vsel %vm519_vm4, %v1124_v37, 0.0  ;;  %v1412_v57 = vmul.f32 %v11360_v44, %v12510_v31  ;;  %v12630_v44 = vld [vmem:[#allocation5] ss:$0 sm:$0xff] }
 0x467   :  { %1128 = vadd.xlane.f32.xlu0 %v1127_v2  ;;  %v1133_v31 = vsel %vm526_vm5, %v1126_v50, 0.0 }
 0x468   :  { %9923 = vmatmul.mubr.msk.f32.gmra.mrb[20].mxu1 %vm519_vm4, %v1122_v29  ;;  %v1415_v26 = vmul.f32 %v1412_v57, %v12348_v51 }
 0x469   :  { %9925 = vmatprep.mubr.msk.f32.mxu1 %vm11902_vm1, %v11900_v0 }
 0x46a   :  { %v1407_v49 = vpop.xlane.xlu0 %1406  ;;  %v1420_v54 = vsel %vm519_vm4, %v1415_v26, 0.0 }
 0x46b   :  { %11361 = vrcp.f32 %v1407_v49  ;;  %1421 = vadd.xlane.f32.xlu0 %v1420_v54 }
 0x46c   :  { %9926 = vmatmul.mubr.msk.f32.gmra.mrb[22].mxu1 %vm519_vm4, %v1123_v47 }
 0x46d   :  { %9949 = vmatprep.mubr.msk.f32.mxu1 %vm11902_vm1, %v11900_v0 }
 0x46e   :  { %v11190_v4 = vpop.permute.xlu0 %11189 }
 0x46f   :  { %v11192_v15 = vunpack.i.h.bf16 %v11190_v4  ;;  %v11191_v61 = vunpack.i.l.bf16 %v11190_v4  ;;  %1134 = vadd.xlane.f32.xlu0 %v1133_v31 }
 0x471   :  { %v10787_v12 = vpack.c.bf16 %v11192_v15, %v11191_v61 }
 0x473   :  { %561 = vadd.xlane.f32.xlu0 %v560_v56  ;;  %10788 = vmatpush3.bf16.msra.mxu1 %v10787_v12 }
 0x474   :  { %9947 = vmatprep.subr.mxu1 %v11900_v0 }
 0x475   :  { %v11362_v58 = vpop.eup %11361 }
 0x476   :  { %v1413_v62 = vmul.f32 %v11362_v58, %v12518_v46 }
 0x477   :  { %9948 = vmatpush3.msk.msra.mxu1 %vm581_vm6, %v1434_v60 }
 0x478   :  { %9950 = vmatmul.mubr.msk.f32.vlgmr.msra.gmra.mrb[24].mxu1 %vm519_vm4, %v1411_v55  ;;  %v1416_v48 = vmul.f32 %v1413_v62, %v12359_v59 }
 0x479   :  { %9952 = vmatprep.mubr.msk.f32.mxu1 %vm11902_vm1, %v11900_v0 }
 0x47a   :  { %v1423_v36 = vsel %vm526_vm5, %v1416_v48, 0.0 }
 0x47b   :  { %1424 = vadd.xlane.f32.xlu1 %v1423_v36 }
 0x47c   :  { %9953 = vmatmul.mubr.msk.f32.gmra.mrb[26].mxu1 %vm519_vm4, %v1412_v57  ;;  %v559_v57 = vmul.f32 %v12541_v52, %v12359_v59 }
 0x47d   :  { %9955 = vmatprep.mubr.msk.f32.mxu1 %vm11902_vm1, %v11900_v0 }
 0x47e   :  { %v566_v47 = vsel %vm526_vm5, %v559_v57, 0.0 }
 0x480   :  { %9956 = vmatmul.mubr.msk.f32.gmra.mrb[28].mxu1 %vm519_vm4, %v1413_v62 }
 0x481   :  { %1918 = vmatprep.mubr.f32.mxu1 %v11900_v0 }
 0x4af   :  { %v12608_v46 = vpop.f32.mrb[6].mxu1 }
 0x4b0   :  { %v9861_v6 = vpop.f32.mrb[7].mxu1 }
 0x4bb   :  { %v837_v63 = vpop.xlane.xlu1 %836 }
 0x4bc   :  { %v844_v9 = vmul.f32 %v12234_v42, %v837_v63 }
 0x4be   :  { %860 = vrot.lane.b32.xlu0 %v844_v9, %s11903_s3 }
 0x4bf   :  { %v840_v7 = vpop.xlane.xlu1 %839 }
 0x4c0   :  { %v845_v5 = vmul.f32 %v12234_v42, %v840_v7 }
 0x4c2   :  { %862 = vrot.lane.b32.xlu0 %v845_v5, %s11903_s3 }
 0x4cb   :  { %v1132_v45 = vpop.xlane.xlu1 %1131 }
 0x4cc   :  { %v1137_v1 = vmul.f32 %v12234_v42, %v1132_v45 }
 0x4d3   :  { %v1419_v8 = vpop.xlane.xlu1 %1418 }
 0x4d4   :  { %v1426_v3 = vmul.f32 %v12234_v42, %v1419_v8 }
 0x4d7   :  { %v843_v10 = vpop.xlane.xlu1 %842 }
 0x4d8   :  { %v846_v13 = vmul.f32 %v12234_v42, %v843_v10 }
 0x4da   :  { %864 = vrot.lane.b32.xlu1 %v846_v13, %s11903_s3 }
 0x4e0   :  { %v12616_v17 = vpop.f32.mrb[8].mxu1 }
 0x4e1   :  { %v9864_v22 = vpop.f32.mrb[9].mxu1 }
 0x4e4   :  { %v12618_v53 = vpop.f32.mrb[10].mxu1 }
 0x4e5   :  { %v9867_v24 = vpop.f32.mrb[11].mxu1 }
 0x4f4   :  { %v1129_v29 = vpop.xlane.xlu0 %1128 }
 0x4f5   :  { %v1136_v30 = vmul.f32 %v12234_v42, %v1129_v29 }
 0x4f7   :  { %1150 = vrot.lane.b32.xlu1 %v1136_v30, %s11896_s6  ;;  %v1587_v30 = vld [vmem:[#allocation7] sm:$0x7] }
 0x4f8   :  { %v1422_v32 = vpop.xlane.xlu0 %1421 }
 0x4f9   :  { %v1427_v38 = vmul.f32 %v12234_v42, %v1422_v32 }
 0x4fb   :  { %1152 = vrot.lane.b32.xlu1 %v1137_v1, %s11896_s6 }
 0x4fc   :  { %v1135_v55 = vpop.xlane.xlu0 %1134 }
 0x4fd   :  { %v1138_v43 = vmul.f32 %v12234_v42, %v1135_v55  ;;  %v558_v42 = vmul.f32 %v12534_v28, %v12348_v51  ;;  %v12650_v55 = vsub.s32 3, %v12184_v18 }
 0x4fe   :  { %v946_v33 = vpop.f32.mrb[12].mxu1 }
 0x4ff   :  { %1154 = vrot.lane.b32.xlu0 %v1138_v43, %s11896_s6  ;;  %1440 = vrot.lane.b32.xlu1 %v1426_v3, %s11904_s28  ;;  %v9891_v35 = vpop.f32.mrb[13].mxu1  ;;  %v563_v49 = vsel %vm519_vm4, %v558_v42, 0.0  ;;  %v1592_v3 = vrot.slane %v1587_v30, 1  ;;  %v1589_v43 = vrot.slane %v1587_v30, 2 }
 0x500   :  { %v562_v26 = vpop.xlane.xlu0 %561 }
 0x501   :  { %v569_v35 = vmul.f32 %v12630_v44, %v562_v26 }
 0x502   :  { %v951_v20 = vpop.f32.mrb[14].mxu1 }
 0x503   :  { %1442 = vrot.lane.b32.xlu0 %v1427_v38, %s11904_s28  ;;  %v9894_v39 = vpop.f32.mrb[15].mxu1  ;;  %v11644_v38 = vld [vmem:[%s15587_s29] sm:$0xf]  ;;  %v652_v57 = vadd.f32 %v12608_v46, %v569_v35 }
 0x504   :  { %v1594_v39 = vsub.f32 %v1587_v30, %v1592_v3 }
 0x506   :  { %v956_v40 = vpop.f32.mrb[16].mxu1  ;;  %v1605_v42 = vrot.slane %v1594_v39, %v12187_v19 }
 0x507   :  { %v9897_v41 = vpop.f32.mrb[17].mxu1 }
 0x508   :  { %v1425_v37 = vpop.xlane.xlu1 %1424  ;;  %v1591_v41 = vadd.f32 %v1589_v43, %v1587_v30  ;;  %v1651_v43 = vld [vmem:[%s15591_s14 + $0x40] sm:$0xff] }
 0x509   :  { %v1428_v2 = vmul.f32 %v12630_v44, %v1425_v37 }
 0x50a   :  { %v1598_v26 = vrot.slane %v1591_v41, %v12195_v21  ;;  %v1656_v41 = vld [vmem:[%s15591_s14 + $0x68] sm:$0xff] }
 0x50b   :  { %1444 = vrot.lane.b32.xlu1 %v1428_v2, %s11904_s28 }
 0x522   :  { %567 = vadd.xlane.f32.xlu0 %v566_v47 }
 0x52f   :  { %564 = vadd.xlane.f32.xlu1 %v563_v49 }
 0x530   :  { %v861_v54 = vpop.permute.xlu0 %860 }
 0x531   :  { %v947_v50 = vadd.f32 %v946_v33, %v861_v54 }
 0x534   :  { %v863_v4 = vpop.permute.xlu0 %862 }
 0x535   :  { %v952_v15 = vadd.f32 %v951_v20, %v863_v4  ;;  %v211_v20 = vrot.slane %v11644_v38, %v12650_v55  ;;  %v1653_v38 = vld [vmem:[%s15591_s14 + $0x50] sm:$0xff] }
 0x537   :  { %v1236_v31 = vpop.f32.mrb[18].mxu1  ;;  %v12660_v47 = vadd.f32 %v12383_v14, %v211_v20  ;;  %v12672_v14 = vadd.f32 %v12385_v23, %v211_v20 }
 0x538   :  { %1543 = vrot.lane.b32.xlu0 %v947_v50, %s11904_s28  ;;  %v9921_v25 = vpop.f32.mrb[19].mxu1 }
 0x539   :  { %v1606_v46 = vmul.f32 %v1605_v42, %v12660_v47 }
 0x53b   :  { %v1241_v61 = vpop.f32.mrb[20].mxu1 }
 0x53c   :  { %1545 = vrot.lane.b32.xlu0 %v952_v15, %s11904_s28  ;;  %v9924_v59 = vpop.f32.mrb[21].mxu1 }
 0x53f   :  { %v1246_v52 = vpop.f32.mrb[22].mxu1 }
 0x540   :  { %v9927_v12 = vpop.f32.mrb[23].mxu1 }
 0x54b   :  { %v1526_v56 = vpop.f32.mrb[24].mxu1 }
 0x54c   :  { %v9951_v51 = vpop.f32.mrb[25].mxu1  ;;  %v865_v48 = vpop.permute.xlu1 %864 }
 0x54d   :  { %v957_v10 = vadd.f32 %v956_v40, %v865_v48  ;;  %v1607_v51 = vmul.f32 %v1605_v42, %v12672_v14  ;;  %v12685_v48 = vadd.f32 %v12389_v27, %v211_v20  ;;  %v1643_v27 = vld [vmem:[%s15591_s14] sm:$0xff]  ;;  %v1654_v20 = vld [vmem:[%s15591_s14 + $0x58] sm:$0xff] }
 0x54e   :  { %v10805_v39 = vpack.c.bf16 %v1654_v20, %v1653_v38 }
 0x54f   :  { %v1531_v28 = vpop.f32.mrb[26].mxu1 }
 0x550   :  { %v9954_v58 = vpop.f32.mrb[27].mxu1 }
 0x553   :  { %v1536_v60 = vpop.f32.mrb[28].mxu1 }
 0x554   :  { %v9957_v62 = vpop.f32.mrb[29].mxu1 }
 0x569   :  { %v1151_v36 = vpop.permute.xlu1 %1150 }
 0x56a   :  { %v1237_v6 = vadd.f32 %v1236_v31, %v1151_v36 }
 0x56c   :  { %1555 = vrot.lane.b32.xlu1 %v1237_v6, %s11896_s6 }
 0x56d   :  { %v1153_v63 = vpop.permute.xlu1 %1152 }
 0x56e   :  { %v1242_v9 = vadd.f32 %v1241_v61, %v1153_v63 }
 0x570   :  { %1557 = vrot.lane.b32.xlu1 %v1242_v9, %s11896_s6  ;;  %v1608_v9 = vmul.f32 %v1605_v42, %v12685_v48 }
 0x571   :  { %v1155_v7 = vpop.permute.xlu0 %1154  ;;  %v1441_v5 = vpop.permute.xlu1 %1440 }
 0x572   :  { %v1527_v45 = vadd.f32 %v1526_v56, %v1441_v5  ;;  %v1247_v22 = vadd.f32 %v1246_v52, %v1155_v7 }
 0x574   :  { %1567 = vrot.lane.b32.xlu1 %v1527_v45, %s11903_s3  ;;  %v1644_v45 = vld [vmem:[%s15591_s14 + $0x8] sm:$0xff] }
 0x575   :  { %v1443_v8 = vpop.permute.xlu0 %1442 }
 0x576   :  { %v1532_v13 = vadd.f32 %v1531_v28, %v1443_v8  ;;  %v10790_v8 = vpack.c.bf16 %v1644_v45, %v1643_v27  ;;  %v9123_v45 = vld [vmem:[%s15585_s30 + $0xc8] sm:$0xff] }
 0x578   :  { %1547 = vrot.lane.b32.xlu1 %v957_v10, %s11904_s28  ;;  %1569 = vrot.lane.b32.xlu0 %v1532_v13, %s11903_s3  ;;  %v1645_v10 = vld [vmem:[%s15591_s14 + $0x10] sm:$0xff]  ;;  %v1646_v13 = vld [vmem:[%s15591_s14 + $0x18] sm:$0xff] }
 0x579   :  { %10791 = vmatpush3.bf16.msra.mxu0 %v10790_v8  ;;  %v9127_v8 = vld [vmem:[%s15585_s30 + $0xe8] sm:$0xff] }
 0x57a   :  { %10792 = vmatprep.subr.bf16.mxu0 %v11901_v16 }
 0x57c   :  { %1559 = vrot.lane.b32.xlu0 %v1247_v22, %s11896_s6  ;;  %v10793_v22 = vpack.c.bf16 %v1646_v13, %v1645_v10  ;;  %v10817_v10 = vpack.c.bf16 %v9127_v8, %v9123_v45  ;;  %v9122_v13 = vld [vmem:[%s15585_s30 + $0xc0] sm:$0xff] }
 0x57d   :  { %v1445_v24 = vpop.permute.xlu1 %1444 }
 0x57e   :  { %v1537_v29 = vadd.f32 %v1536_v60, %v1445_v24  ;;  %10794 = vmatpush3.bf16.msra.mxu0 %v10793_v22  ;;  %v1647_v24 = vld [vmem:[%s15591_s14 + $0x20] sm:$0xff] }
 0x57f   :  { %10795 = vmatprep.subr.bf16.mxu0 %v11901_v16  ;;  %v9126_v22 = vld [vmem:[%s15585_s30 + $0xe0] sm:$0xff] }
 0x580   :  { %1571 = vrot.lane.b32.xlu1 %v1537_v29, %s11903_s3  ;;  %v1648_v29 = vld [vmem:[%s15591_s14 + $0x28] sm:$0xff] }
 0x581   :  { %v10796_v30 = vpack.c.bf16 %v1648_v29, %v1647_v24  ;;  %v10819_v24 = vpack.c.bf16 %v9126_v22, %v9122_v13  ;;  %v9117_v29 = vld [vmem:[%s15585_s30 + $0x98] sm:$0xff]  ;;  %v9120_v13 = vld [vmem:[%s15585_s30 + $0xb0] sm:$0xff] }
 0x582   :  { %v9113_v22 = vld [vmem:[#allocation11] ss:$0 sm:$0xff] }
 0x583   :  { %10797 = vmatpush3.bf16.msra.mxu0 %v10796_v30  ;;  %v9121_v30 = vld [vmem:[%s15585_s30 + $0xb8] sm:$0xff] }
 0x584   :  { %10798 = vmatprep.subr.bf16.mxu0 %v11901_v16 }
 0x5af   :  { %v568_v32 = vpop.xlane.xlu0 %567 }
 0x5b0   :  { %v571_v12 = vmul.f32 %v12630_v44, %v568_v32  ;;  %v1649_v32 = vld [vmem:[%s15591_s14 + $0x30] sm:$0xff] }
 0x5b2   :  { %v662_v60 = vadd.f32 %v12618_v53, %v571_v12 }
 0x5b3   :  { %v1544_v40 = vpop.permute.xlu0 %1543 }
 0x5b4   :  { %v1576_v49 = vsel %vm216_vm0, %v652_v57, %v1544_v40  ;;  %v1655_v40 = vld [vmem:[%s15591_s14 + $0x60] sm:$0xff]  ;;  %v1658_v57 = vld [vmem:[%s15591_s14 + $0x78] sm:$0xff] }
 0x5b7   :  { %v1546_v50 = vpop.permute.xlu0 %1545 }
 0x5bc   :  { %v565_v1 = vpop.xlane.xlu1 %564 }
 0x5bd   :  { %v570_v37 = vmul.f32 %v12630_v44, %v565_v1  ;;  %v1650_v1 = vld [vmem:[%s15591_s14 + $0x38] sm:$0xff] }
 0x5be   :  { %v10799_v3 = vpack.c.bf16 %v1650_v1, %v1649_v32  ;;  %v10821_v32 = vpack.c.bf16 %v9121_v30, %v9117_v29  ;;  %v9111_v1 = vld [vmem:[#allocation8] ss:$0 sm:$0xff]  ;;  %v9129_v29 = vld [vmem:[%s15585_s30 + $0xf8] sm:$0xff] }
 0x5bf   :  { %v657_v54 = vadd.f32 %v12616_v17, %v570_v37  ;;  %v10808_v37 = vpack.c.bf16 %v1656_v41, %v1655_v40 }
 0x5c0   :  { %10800 = vmatpush3.bf16.msra.mxu0 %v10799_v3 }
 0x5c1   :  { %v1577_v61 = vsel %vm216_vm0, %v657_v54, %v1546_v50  ;;  %10801 = vmatprep.subr.bf16.mxu0 %v11901_v16 }
 0x5de   :  { %v1556_v33 = vpop.permute.xlu1 %1555 }
 0x5df   :  { %v1580_v4 = vsel %vm1579_vm7, %v1576_v49, %v1556_v33  ;;  %v1652_v33 = vld [vmem:[%s15591_s14 + $0x48] sm:$0xff] }
 0x5e0   :  { %v10802_v35 = vpack.c.bf16 %v1652_v33, %v1651_v43 }
 0x5e2   :  { %v1558_v2 = vpop.permute.xlu1 %1557  ;;  %10803 = vmatpush3.bf16.msra.mxu0 %v10802_v35 }
 0x5e3   :  { %v1581_v59 = vsel %vm1579_vm7, %v1577_v61, %v1558_v2  ;;  %10804 = vmatprep.subr.bf16.mxu0 %v11901_v16  ;;  %v1657_v2 = vld [vmem:[%s15591_s14 + $0x70] sm:$0xff] }
 0x5e4   :  { %v10811_v42 = vpack.c.bf16 %v1658_v57, %v1657_v2 }
 0x5e6   :  { %v1568_v31 = vpop.permute.xlu1 %1567  ;;  %10806 = vmatpush3.bf16.msra.mxu0 %v10805_v39 }
 0x5e7   :  { %v12668_v25 = vsel %vm1583_vm8, %v1580_v4, %v1568_v31  ;;  %10807 = vmatprep.subr.bf16.mxu0 %v11901_v16 }
 0x5e8   :  { %v1599_v15 = vmul.f32 %v1598_v26, %v12668_v25 }
 0x5ea   :  { %v1570_v52 = vpop.permute.xlu0 %1569  ;;  %v1609_v17 = vadd.f32 %v1606_v46, %v1599_v15  ;;  %v1548_v23 = vpop.permute.xlu1 %1547  ;;  %10809 = vmatpush3.bf16.msra.mxu0 %v10808_v37 }
 0x5eb   :  { %v12679_v56 = vsel %vm1583_vm8, %v1581_v59, %v1570_v52  ;;  %v1578_v36 = vsel %vm216_vm0, %v662_v60, %v1548_v23  ;;  %10810 = vmatprep.subr.bf16.mxu0 %v11901_v16 }
 0x5ec   :  { %1612 = vadd.xlane.f32.xlu0 %v1609_v17  ;;  %v1600_v28 = vmul.f32 %v1598_v26, %v12679_v56 }
 0x5ee   :  { %v1610_v58 = vadd.f32 %v1607_v51, %v1600_v28  ;;  %v1560_v62 = vpop.permute.xlu0 %1559  ;;  %10812 = vmatpush3.bf16.msra.mxu0 %v10811_v42  ;;  %v1634_v51 = vsub.f32 %v12660_v47, %v12668_v25 }
 0x5ef   :  { %v1582_v44 = vsel %vm1579_vm7, %v1578_v36, %v1560_v62  ;;  %10833 = vmatprep.subr.bf16.mxu0 %v11901_v16  ;;  %v1635_v62 = vsub.f32 %v12672_v14, %v12679_v56 }
 0x5f0   :  { %1614 = vadd.xlane.f32.xlu1 %v1610_v58 }
 0x5f2   :  { %v1572_v6 = vpop.permute.xlu1 %1571 }
 0x5f3   :  { %v12690_v63 = vsel %vm1583_vm8, %v1582_v44, %v1572_v6 }
 0x5f4   :  { %v1601_v7 = vmul.f32 %v1598_v26, %v12690_v63  ;;  %v1636_v47 = vsub.f32 %v12685_v48, %v12690_v63  ;;  %v9114_v48 = vld [vmem:[%s15585_s30 + $0x80] sm:$0xff] }
 0x5f6   :  { %v1611_v5 = vadd.f32 %v1608_v9, %v1601_v7 }
 0x5f8   :  { %v1616_v53 = vsel %vm581_vm6, %v1611_v5, 0.0  ;;  %v9115_v5 = vld [vmem:[%s15585_s30 + $0x88] sm:$0xff] }
 0x5f9   :  { %1617 = vadd.xlane.f32.xlu0 %v1616_v53 }
 0x679   :  { %v1613_v26 = vpop.xlane.xlu0 %1612 }
 0x67a   :  { %v1619_v49 = vsub.f32 0.0, %v1613_v26 }
 0x67c   :  { %v1622_v54 = vmul.f32 1.442695, %v1619_v49 }
 0x67d   :  { %v1615_v50 = vpop.xlane.xlu1 %1614 }
 0x67e   :  { %11363 = vpow2.f32 %v1622_v54  ;;  %v1620_v4 = vsub.f32 0.0, %v1615_v50 }
 0x680   :  { %v1624_v31 = vmul.f32 1.442695, %v1620_v4 }
 0x682   :  { %11365 = vpow2.f32 %v1624_v31 }
 0x686   :  { %v1618_v46 = vpop.xlane.xlu0 %1617 }
 0x687   :  { %v1621_v15 = vsub.f32 0.0, %v1618_v46 }
 0x688   :  { %v11364_v61 = vpop.eup %11363 }
 0x689   :  { %v1628_v59 = vadd.f32 1.0, %v11364_v61  ;;  %v1626_v52 = vmul.f32 1.442695, %v1621_v15 }
 0x68b   :  { %11367 = vrcp.f32 %v1628_v59 }
 0x68c   :  { %v11366_v17 = vpop.eup %11365  ;;  %11369 = vpow2.f32 %v1626_v52 }
 0x68d   :  { %v1629_v12 = vadd.f32 1.0, %v11366_v17 }
 0x68f   :  { %11371 = vrcp.f32 %v1629_v12 }
 0x695   :  { %v11368_v28 = vpop.eup %11367 }
 0x696   :  { %v11370_v23 = vpop.eup %11369  ;;  %v1637_v58 = vmul.f32 %v11368_v28, %v1634_v51 }
 0x697   :  { %v1630_v60 = vadd.f32 1.0, %v11370_v23 }
 0x698   :  { %v1640_v36 = vadd.f32 %v1637_v58, %v12668_v25 }
 0x699   :  { %v11372_v44 = vpop.eup %11371  ;;  %11373 = vrcp.f32 %v1630_v60 }
 0x69a   :  { %9991 = vmatmul.mubr.f32.vlgmr.msra.gmra.mrb[30].mxu0 %v1640_v36  ;;  %v1638_v6 = vmul.f32 %v11372_v44, %v1635_v62 }
 0x69b   :  { %9993 = vmatprep.mubr.msk.f32.mxu0 %vm11902_vm1, %v11900_v0 }
 0x69c   :  { %v1641_v9 = vadd.f32 %v1638_v6, %v12679_v56  ;;  %v9119_v56 = vld [vmem:[%s15585_s30 + $0xa8] sm:$0xff] }
 0x69d   :  { %v10813_v53 = vpack.c.bf16 %v9119_v56, %v9115_v5 }
 0x69e   :  { %9994 = vmatmul.mubr.f32.gmra.mrb[32].mxu0 %v1641_v9 }
 0x69f   :  { %9996 = vmatprep.mubr.msk.f32.mxu0 %vm11902_vm1, %v11900_v0  ;;  %10814 = vmatprep.subr.bf16.mxu1 %v10813_v53 }
 0x6a3   :  { %v11374_v7 = vpop.eup %11373 }
 0x6a4   :  { %v1639_v14 = vmul.f32 %v11374_v7, %v1636_v47 }
 0x6a6   :  { %v1642_v25 = vadd.f32 %v1639_v14, %v12690_v63  ;;  %v9118_v63 = vld [vmem:[%s15585_s30 + $0xa0] sm:$0xff] }
 0x6a7   :  { %v10815_v27 = vpack.c.bf16 %v9118_v63, %v9114_v48  ;;  %v9112_v63 = vld [vmem:[#allocation10] ss:$0 sm:$0xff] }
 0x6a8   :  { %9997 = vmatmul.mubr.f32.gmra.mrb[34].mxu0 %v1642_v25 }
 0x6a9   :  { %10020 = vmatprep.mubr.msk.f32.mxu0 %vm11902_vm1, %v11900_v0  ;;  %10816 = vmatpush1.bf16.msra.mxu1 %v10815_v27 }
 0x6aa   :  { %10818 = vmatprep.subr.bf16.mxu1 %v10817_v10  ;;  %v9116_v10 = vld [vmem:[%s15585_s30 + $0x90] sm:$0xff] }
 0x6ad   :  { %10820 = vmatpush1.bf16.msra.mxu1 %v10819_v24  ;;  %v9125_v24 = vld [vmem:[%s15585_s30 + $0xd8] sm:$0xff] }
 0x6ae   :  { %10822 = vmatprep.subr.bf16.mxu1 %v10821_v32  ;;  %v10823_v32 = vpack.c.bf16 %v9120_v13, %v9116_v10 }
 0x76d   :  { %v1732_v3 = vpop.f32.mrb[30].mxu0 }
 0x76e   :  { %v1733_v43 = vadd.f32 %v9111_v1, %v1732_v3  ;;  %v9992_v33 = vpop.f32.mrb[31].mxu0 }
 0x76f   :  { %v9124_v33 = vld [vmem:[%s15585_s30 + $0xd0] sm:$0xff] }
 0x770   :  { %v1746_v38 = vmax.f32 %v1733_v43, 0.0  ;;  %v10825_v43 = vpack.c.bf16 %v9129_v29, %v9125_v24 }
 0x771   :  { %v1737_v35 = vpop.f32.mrb[32].mxu0 }
 0x772   :  { %v1738_v20 = vadd.f32 %v9111_v1, %v1737_v35  ;;  %v9995_v39 = vpop.f32.mrb[33].mxu0  ;;  %v1749_v41 = vsel %vm216_vm0, %v1746_v38, 0.0  ;;  %v9128_v35 = vld [vmem:[%s15585_s30 + $0xf0] sm:$0xff] }
 0x774   :  { %v1747_v40 = vmax.f32 %v1738_v20, 0.0 }
 0x776   :  { %v1750_v37 = vsel %vm216_vm0, %v1747_v40, 0.0 }
 0x777   :  { %v1751_v2 = vadd.f32 %v1750_v37, %v1749_v41  ;;  %v9130_v41 = vld [vmem:[%s15587_s29 + $0x4] sm:$0xf] }
 0x77b   :  { %v1742_v57 = vpop.f32.mrb[34].mxu0 }
 0x77c   :  { %v1743_v42 = vadd.f32 %v9111_v1, %v1742_v57  ;;  %v9998_v26 = vpop.f32.mrb[35].mxu0  ;;  %v1832_v57 = vrot.slane %v9130_v41, %v12187_v19 }
 0x77e   :  { %v1748_v49 = vmax.f32 %v1743_v42, 0.0  ;;  %v1828_v42 = vrot.slane %v9130_v41, %v12195_v21 }
 0x780   :  { %v1752_v54 = vsel %vm411_vm3, %v1748_v49, 0.0 }
 0x781   :  { %v1753_v50 = vadd.f32 %v1752_v54, %v1751_v2 }
 0x783   :  { %v1754_v4 = vrot.slane %v1753_v50, 4 }
 0x785   :  { %v1755_v31 = vadd.f32 %v1754_v4, %v1753_v50 }
 0x787   :  { %v1756_v46 = vrot.slane %v1755_v31, 2 }
 0x789   :  { %v1757_v15 = vadd.f32 %v1756_v46, %v1755_v31 }
 0x78b   :  { %v1758_v61 = vrot.slane %v1757_v15, 1 }
 0x78d   :  { %v1759_v59 = vadd.f32 %v1758_v61, %v1757_v15 }
 0x78f   :  { %v1761_v52 = vmul.f32 0.05, %v1759_v59 }
 0x791   :  { %v1762_v17 = vsub.f32 %v1746_v38, %v1761_v52  ;;  %v1763_v12 = vsub.f32 %v1747_v40, %v1761_v52  ;;  %v1764_v51 = vsub.f32 %v1748_v49, %v1761_v52  ;;  %v10827_v38 = vpack.c.bf16 %v9128_v35, %v9124_v33 }
 0x793   :  { %v1765_v28 = vmul.f32 %v1762_v17, %v1762_v17  ;;  %v1766_v23 = vmul.f32 %v1763_v12, %v1763_v12  ;;  %v1767_v58 = vmul.f32 %v1764_v51, %v1764_v51 }
 0x795   :  { %v1768_v60 = vsel %vm216_vm0, %v1765_v28, 0.0  ;;  %v1769_v62 = vsel %vm216_vm0, %v1766_v23, 0.0  ;;  %v1771_v44 = vsel %vm411_vm3, %v1767_v58, 0.0 }
 0x796   :  { %v1770_v36 = vadd.f32 %v1769_v62, %v1768_v60 }
 0x798   :  { %v1772_v6 = vadd.f32 %v1771_v44, %v1770_v36 }
 0x79a   :  { %v1773_v9 = vrot.slane %v1772_v6, 4 }
 0x79c   :  { %v1774_v47 = vadd.f32 %v1773_v9, %v1772_v6 }
 0x79e   :  { %v1775_v7 = vrot.slane %v1774_v47, 2 }
 0x7a0   :  { %v1776_v14 = vadd.f32 %v1775_v7, %v1774_v47 }
 0x7a2   :  { %v1777_v25 = vrot.slane %v1776_v14, 1 }
 0x7a4   :  { %v1778_v5 = vadd.f32 %v1777_v25, %v1776_v14 }
 0x7a6   :  { %v1779_v56 = vmul.f32 0.05, %v1778_v5  ;;  %v12880_v5 = vld [vmem:[#allocation5 + $0x1] ss:$0 sm:$0xff] }
 0x7a8   :  { %v1780_v53 = vadd.f32 1e-05, %v1779_v56 }
 0x7aa   :  { %11375 = vrsqrt.f32 %v1780_v53 }
 0x7b4   :  { %v11376_v48 = vpop.eup %11375 }
 0x7b5   :  { %v1782_v27 = vmul.f32 %v11376_v48, %v1762_v17  ;;  %v1784_v45 = vmul.f32 %v11376_v48, %v1764_v51  ;;  %v1783_v8 = vmul.f32 %v11376_v48, %v1763_v12  ;;  %v1836_v51 = vrot.slane %v9130_v41, %v12379_v11 }
 0x7b7   :  { %v1792_v30 = vmul.f32 %v9112_v63, %v1782_v27  ;;  %v1793_v3 = vmul.f32 %v9112_v63, %v1783_v8  ;;  %v1794_v20 = vmul.f32 %v9112_v63, %v1784_v45 }
 0x7b9   :  { %v1802_v1 = vadd.f32 %v9113_v22, %v1792_v30  ;;  %v1803_v39 = vadd.f32 %v9113_v22, %v1793_v3  ;;  %v1804_v40 = vadd.f32 %v9113_v22, %v1794_v20 }
 0x7bb   :  { %9131 = vmatmul.mubr.msk.f32.vlgmr.msra.gmra.mrb[30].mxu1 %vm216_vm0, %v1802_v1 }
 0x7bc   :  { %1924 = vmatprep.mubr.f32.mxu1 %v11900_v0  ;;  %10824 = vmatpush1.bf16.msra.mxu1 %v10823_v32 }
 0x7bd   :  { %10826 = vmatprep.subr.bf16.mxu1 %v10825_v43 }
 0x7bf   :  { %9132 = vmatmul.mubr.msk.f32.gmra.mrb[32].mxu1 %vm216_vm0, %v1803_v39 }
 0x7c0   :  { %1930 = vmatprep.mubr.f32.mxu1 %v11900_v0  ;;  %10828 = vmatpush1.bf16.msra.mxu1 %v10827_v38 }
 0x7c1   :  { %10829 = vmatprep.subr.bf16.mxu1 %v11901_v16 }
 0x7c3   :  { %9133 = vmatmul.mubr.msk.f32.gmra.mrb[34].mxu1 %vm216_vm0, %v1804_v40 }
 0x7c4   :  { %2001 = vmatprep.mubr.f32.mxu1 %v11900_v0 }
 0x7c7   :  { %9134 = vmatmul.mubr.msk.f32.vlgmr.msra.gmra.mrb[36].mxu1 %vm216_vm0, %v1802_v1 }
 0x7c8   :  { %2007 = vmatprep.mubr.f32.mxu1 %v11900_v0 }
 0x7cb   :  { %9135 = vmatmul.mubr.msk.f32.gmra.mrb[38].mxu1 %vm216_vm0, %v1803_v39 }
 0x7cc   :  { %2013 = vmatprep.mubr.f32.mxu1 %v11900_v0 }
 0x7cf   :  { %9136 = vmatmul.mubr.msk.f32.gmra.mrb[40].mxu1 %vm216_vm0, %v1804_v40 }
 0x7d0   :  { %10005 = vmatprep.mubr.msk.f32.mxu1 %vm11902_vm1, %v11900_v0 }
 0x88e   :  { %v1920_v37 = vpop.f32.mrb[30].mxu1 }
 0x88f   :  { %v1922_v2 = vpop.f32.mrb[31].mxu1  ;;  %v1921_v4 = vadd.f32 %v1920_v37, %v1828_v42 }
 0x890   :  { %v1923_v54 = vadd.f32 %v1922_v2, %v1832_v57 }
 0x891   :  { %v2020_v52 = vmul.f32 0.17677669, %v1921_v4 }
 0x892   :  { %v1926_v26 = vpop.f32.mrb[32].mxu1 }
 0x893   :  { %v1928_v49 = vpop.f32.mrb[33].mxu1  ;;  %v1927_v23 = vadd.f32 %v1926_v26, %v1828_v42  ;;  %v2031_v56 = vmul.f32 %v12880_v5, %v2020_v52 }
 0x894   :  { %v1929_v50 = vadd.f32 %v1928_v49, %v1832_v57 }
 0x895   :  { %v2021_v6 = vmul.f32 0.17677669, %v1927_v23  ;;  %v2034_v45 = vsel %vm216_vm0, %v2031_v56, 0.0 }
 0x896   :  { %v10830_v31 = vpack.c.bf16 %v1929_v50, %v1923_v54  ;;  %v1932_v46 = vpop.f32.mrb[34].mxu1  ;;  %v11193_v15 = vpack.i.bf16 %v1929_v50, %v1923_v54 }
 0x897   :  { %v1934_v61 = vpop.f32.mrb[35].mxu1  ;;  %v1933_v17 = vadd.f32 %v1932_v46, %v1828_v42  ;;  %v2032_v48 = vmul.f32 %v12880_v5, %v2021_v6 }
 0x898   :  { %v1935_v59 = vadd.f32 %v1934_v61, %v1832_v57  ;;  %11194 = vrot.lane.b32.xlu0 %v11193_v15, %s11903_s3  ;;  %10832 = vmatpush3.bf16.xpose.msk.msra.mxu1 %vm12203_vm2, %v10830_v31 }
 0x899   :  { %10003 = vmatprep.subr.mxu1 %v11900_v0  ;;  %v2022_v58 = vmul.f32 0.17677669, %v1933_v17  ;;  %v2037_v63 = vsel %vm216_vm0, %v2032_v48, 0.0 }
 0x89a   :  { %v2003_v12 = vpop.f32.mrb[36].mxu1  ;;  %2324 = vrot.lane.b32.xlu1 %v1935_v59, %s11903_s3 }
 0x89b   :  { %v12845_v28 = vpop.f32.mrb[37].mxu1  ;;  %v2004_v62 = vadd.f32 %v2003_v12, %v1836_v51  ;;  %v2033_v53 = vmul.f32 %v12880_v5, %v2022_v58 }
 0x89c   :  { %2314 = vrot.lane.b32.xlu0 %v2020_v52, %s11903_s3 }
 0x89d   :  { %v2040_v27 = vsel %vm411_vm3, %v2033_v53, 0.0 }
 0x89e   :  { %v2009_v60 = vpop.f32.mrb[38].mxu1  ;;  %11199 = vrot.lane.b32.xlu1 %v11193_v15, %s11896_s6 }
 0x89f   :  { %v2010_v36 = vadd.f32 %v2009_v60, %v1836_v51  ;;  %v12849_v44 = vpop.f32.mrb[39].mxu1 }
 0x8a0   :  { %10004 = vmatpush3.xpose.msk.msra.mxu1 %vm216_vm0, %v1935_v59  ;;  %2318 = vrot.lane.b32.xlu0 %v2022_v58, %s11903_s3 }
 0x8a1   :  { %v10834_v9 = vpack.c.bf16 %v2010_v36, %v2004_v62  ;;  %10836 = vmatprep.subr.bf16.mxu1 %v11901_v16  ;;  %v12854_v47 = vpack.i.bf16 %v2010_v36, %v2004_v62 }
 0x8a2   :  { %v2015_v7 = vpop.f32.mrb[40].mxu1  ;;  %2316 = vrot.lane.b32.xlu1 %v2021_v6, %s11903_s3 }
 0x8a3   :  { %v12857_v14 = vpop.f32.mrb[41].mxu1  ;;  %10006 = vmatmul.mubr.msk.f32.vlgmr.msra.gmra.mrb[42].mxu1 %vm216_vm0, %v2020_v52  ;;  %10835 = vmatpush3.bf16.msra.mxu0 %v10834_v9  ;;  %v12862_v25 = vadd.f32 %v2015_v7, %v1836_v51 }
 0x8a4   :  { %11204 = vrot.lane.b32.xlu0 %v11193_v15, %s11904_s28  ;;  %10018 = vmatprep.subr.mxu0 %v11900_v0 }
 0x8a5   :  { %10008 = vmatprep.mubr.msk.f32.mxu1 %vm11902_vm1, %v11900_v0 }
 0x8a6   :  { %2616 = vrot.lane.b32.xlu1 %v1935_v59, %s11896_s6 }
 0x8a7   :  { %10009 = vmatmul.mubr.msk.f32.gmra.mrb[44].mxu1 %vm216_vm0, %v2021_v6  ;;  %10019 = vmatpush3.msk.msra.mxu0 %vm581_vm6, %v12862_v25 }
 0x8a8   :  { %2608 = vrot.lane.b32.xlu0 %v2021_v6, %s11896_s6  ;;  %10011 = vmatprep.mubr.msk.f32.mxu1 %vm11902_vm1, %v11900_v0 }
 0x8a9   :  { %10840 = vmatprep.subr.bf16.mxu0 %v11901_v16 }
 0x8aa   :  { %2606 = vrot.lane.b32.xlu1 %v2020_v52, %s11896_s6 }
 0x8ab   :  { %10012 = vmatmul.mubr.msk.f32.gmra.mrb[46].mxu1 %vm216_vm0, %v2022_v58 }
 0x8ac   :  { %2906 = vrot.lane.b32.xlu0 %v1935_v59, %s11904_s28  ;;  %10035 = vmatprep.mubr.msk.f32.mxu1 %vm11902_vm1, %v11900_v0 }
 0x8ae   :  { %2610 = vrot.lane.b32.xlu1 %v2022_v58, %s11896_s6 }
 0x8b0   :  { %2898 = vrot.lane.b32.xlu0 %v2021_v6, %s11904_s28 }
 0x8b2   :  { %2896 = vrot.lane.b32.xlu1 %v2020_v52, %s11904_s28 }
 0x8b4   :  { %2293 = vrot.lane.b32.xlu0 %v2031_v56, %s11903_s3 }
 0x8b6   :  { %2900 = vrot.lane.b32.xlu1 %v2022_v58, %s11904_s28 }
 0x8b8   :  { %2297 = vrot.lane.b32.xlu0 %v2033_v53, %s11903_s3 }
 0x8ba   :  { %2295 = vrot.lane.b32.xlu1 %v2032_v48, %s11903_s3 }
 0x8bc   :  { %2587 = vrot.lane.b32.xlu0 %v2032_v48, %s11896_s6 }
 0x8be   :  { %2585 = vrot.lane.b32.xlu1 %v2031_v56, %s11896_s6 }
 0x8c0   :  { %2875 = vrot.lane.b32.xlu0 %v2031_v56, %s11904_s28 }
 0x8c2   :  { %2589 = vrot.lane.b32.xlu1 %v2033_v53, %s11896_s6 }
 0x8c4   :  { %2879 = vrot.lane.b32.xlu0 %v2033_v53, %s11904_s28 }
 0x8c6   :  { %2877 = vrot.lane.b32.xlu1 %v2032_v48, %s11904_s28  ;;  %v12954_v48 = vld [vmem:[%s15590_s27] sm:$0xff] }
 0x8e3   :  { %2038 = vadd.xlane.f32.xlu0 %v2037_v63 }
 0x8e7   :  { %2041 = vadd.xlane.f32.xlu0 %v2040_v27  ;;  %v12960_v27 = vld [vmem:[%s15590_s27 + $0x8] sm:$0xff] }
 0x8ea   :  { %2035 = vadd.xlane.f32.xlu1 %v2034_v45 }
 0x90a   :  { %v11195_v8 = vpop.permute.xlu0 %11194 }
 0x90b   :  { %v11197_v10 = vunpack.i.h.bf16 %v11195_v8  ;;  %v11196_v13 = vunpack.i.l.bf16 %v11195_v8 }
 0x90c   :  { %v2325_v22 = vpop.permute.xlu1 %2324 }
 0x90d   :  { %v10837_v24 = vpack.c.bf16 %v11197_v10, %v11196_v13 }
 0x90e   :  { %v2315_v29 = vpop.permute.xlu0 %2314 }
 0x90f   :  { %10839 = vmatpush3.bf16.xpose.msk.msra.mxu1 %vm12203_vm2, %v10837_v24 }
 0x910   :  { %v11200_v30 = vpop.permute.xlu1 %11199  ;;  %10033 = vmatprep.subr.mxu1 %v11900_v0 }
 0x911   :  { %v11202_v3 = vunpack.i.h.bf16 %v11200_v30  ;;  %v11201_v43 = vunpack.i.l.bf16 %v11200_v30 }
 0x912   :  { %v2319_v32 = vpop.permute.xlu0 %2318 }
 0x913   :  { %v10844_v38 = vpack.c.bf16 %v11202_v3, %v11201_v43  ;;  %v12974_v3 = vld [vmem:[#allocation2 + $0x8] sm:$0xff] }
 0x914   :  { %v2317_v1 = vpop.permute.xlu1 %2316 }
 0x916   :  { %v11205_v33 = vpop.permute.xlu0 %11204 }
 0x917   :  { %10034 = vmatpush3.xpose.msk.msra.mxu1 %vm216_vm0, %v2325_v22  ;;  %v11207_v37 = vunpack.i.h.bf16 %v11205_v33  ;;  %v11206_v2 = vunpack.i.l.bf16 %v11205_v33 }
 0x918   :  { %v2617_v35 = vpop.permute.xlu1 %2616  ;;  %10843 = vmatprep.subr.bf16.mxu1 %v11901_v16 }
 0x919   :  { %v10851_v26 = vpack.c.bf16 %v11207_v37, %v11206_v2 }
 0x91a   :  { %v2609_v20 = vpop.permute.xlu0 %2608  ;;  %10036 = vmatmul.mubr.msk.f32.vlgmr.msra.gmra.mrb[48].mxu1 %vm216_vm0, %v2315_v29  ;;  %v12963_v29 = vld [vmem:[#allocation2] sm:$0xff] }
 0x91b   :  { %10846 = vmatpush3.bf16.xpose.msk.msra.mxu1 %vm12203_vm2, %v10844_v38  ;;  %10038 = vmatprep.mubr.msk.f32.mxu1 %vm11902_vm1, %v11900_v0 }
 0x91c   :  { %v2607_v39 = vpop.permute.xlu1 %2606  ;;  %10063 = vmatprep.subr.mxu1 %v11900_v0 }
 0x91e   :  { %v2907_v40 = vpop.permute.xlu0 %2906  ;;  %10039 = vmatmul.mubr.msk.f32.gmra.mrb[50].mxu1 %vm216_vm0, %v2317_v1 }
 0x91f   :  { %10041 = vmatprep.mubr.msk.f32.mxu1 %vm11902_vm1, %v11900_v0 }
 0x920   :  { %v2611_v41 = vpop.permute.xlu1 %2610 }
 0x922   :  { %v2899_v57 = vpop.permute.xlu0 %2898  ;;  %10042 = vmatmul.mubr.msk.f32.gmra.mrb[52].mxu1 %vm216_vm0, %v2319_v32  ;;  %v12971_v32 = vld [vmem:[%s15590_s27 + $0x10] sm:$0xf] }
 0x923   :  { %10064 = vmatpush3.xpose.msk.msra.mxu1 %vm216_vm0, %v2617_v35  ;;  %10065 = vmatprep.mubr.msk.f32.mxu1 %vm11902_vm1, %v11900_v0 }
 0x924   :  { %v2897_v42 = vpop.permute.xlu1 %2896  ;;  %10850 = vmatprep.subr.bf16.mxu1 %v11901_v16 }
 0x926   :  { %10066 = vmatmul.mubr.msk.f32.vlgmr.msra.gmra.mrb[54].mxu1 %vm216_vm0, %v2607_v39  ;;  %v2294_v49 = vpop.permute.xlu0 %2293 }
 0x927   :  { %10853 = vmatpush3.bf16.xpose.msk.msra.mxu1 %vm12203_vm2, %v10851_v26  ;;  %v2302_v54 = vsel %vm216_vm0, %v2294_v49, 0.0  ;;  %10068 = vmatprep.mubr.msk.f32.mxu1 %vm11902_vm1, %v11900_v0 }
 0x928   :  { %v2901_v50 = vpop.permute.xlu1 %2900  ;;  %2303 = vadd.xlane.f32.xlu1 %v2302_v54  ;;  %10093 = vmatprep.subr.mxu1 %v11900_v0 }
 0x92a   :  { %10069 = vmatmul.mubr.msk.f32.gmra.mrb[56].mxu1 %vm216_vm0, %v2609_v20  ;;  %v2298_v4 = vpop.permute.xlu0 %2297 }
 0x92b   :  { %v2308_v31 = vsel %vm411_vm3, %v2298_v4, 0.0  ;;  %10071 = vmatprep.mubr.msk.f32.mxu1 %vm11902_vm1, %v11900_v0 }
 0x92c   :  { %v2296_v46 = vpop.permute.xlu1 %2295  ;;  %2309 = vadd.xlane.f32.xlu1 %v2308_v31 }
 0x92d   :  { %v2305_v15 = vsel %vm216_vm0, %v2296_v46, 0.0 }
 0x92e   :  { %10072 = vmatmul.mubr.msk.f32.gmra.mrb[58].mxu1 %vm216_vm0, %v2611_v41  ;;  %2306 = vadd.xlane.f32.xlu0 %v2305_v15  ;;  %v2588_v61 = vpop.permute.xlu0 %2587 }
 0x92f   :  { %10094 = vmatpush3.xpose.msk.msra.mxu1 %vm216_vm0, %v2907_v40  ;;  %v2597_v59 = vsel %vm216_vm0, %v2588_v61, 0.0  ;;  %10095 = vmatprep.mubr.msk.f32.mxu1 %vm11902_vm1, %v11900_v0  ;;  %v12983_v40 = vld [vmem:[#allocation2 + $0x10] sm:$0xf] }
 0x930   :  { %v2586_v52 = vpop.permute.xlu1 %2585  ;;  %2598 = vadd.xlane.f32.xlu1 %v2597_v59  ;;  %10857 = vmatprep.subr.bf16.mxu1 %v11901_v16 }
 0x931   :  { %v2594_v17 = vsel %vm216_vm0, %v2586_v52, 0.0 }
 0x932   :  { %10096 = vmatmul.mubr.msk.f32.vlgmr.msra.gmra.mrb[60].mxu1 %vm216_vm0, %v2897_v42  ;;  %2595 = vadd.xlane.f32.xlu0 %v2594_v17  ;;  %v2876_v12 = vpop.permute.xlu0 %2875 }
 0x933   :  { %v2884_v51 = vsel %vm216_vm0, %v2876_v12, 0.0  ;;  %10098 = vmatprep.mubr.msk.f32.mxu1 %vm11902_vm1, %v11900_v0 }
 0x934   :  { %v2590_v23 = vpop.permute.xlu1 %2589  ;;  %2885 = vadd.xlane.f32.xlu1 %v2884_v51 }
 0x935   :  { %v2600_v58 = vsel %vm411_vm3, %v2590_v23, 0.0 }
 0x936   :  { %10099 = vmatmul.mubr.msk.f32.gmra.mrb[62].mxu1 %vm216_vm0, %v2899_v57  ;;  %2601 = vadd.xlane.f32.xlu0 %v2600_v58  ;;  %v2880_v60 = vpop.permute.xlu0 %2879 }
 0x937   :  { %v2890_v62 = vsel %vm411_vm3, %v2880_v60, 0.0  ;;  %10101 = vmatprep.mubr.msk.f32.mxu1 %vm11902_vm1, %v11900_v0 }
 0x938   :  { %v2878_v36 = vpop.permute.xlu1 %2877  ;;  %2891 = vadd.xlane.f32.xlu1 %v2890_v62 }
 0x939   :  { %v2887_v6 = vsel %vm216_vm0, %v2878_v36, 0.0 }
 0x93a   :  { %10102 = vmatmul.mubr.msk.f32.gmra.mrb[64].mxu1 %vm216_vm0, %v2901_v50  ;;  %2888 = vadd.xlane.f32.xlu0 %v2887_v6 }
 0x93b   :  { %10151 = vmatprep.mubr.msk.f32.mxu1 %vm11902_vm1, %v11900_v0 }
 0x970   :  { %v2039_v9 = vpop.xlane.xlu0 %2038 }
 0x971   :  { %v2044_v45 = vmul.f32 %v12960_v27, %v2039_v9 }
 0x974   :  { %v2042_v8 = vpop.xlane.xlu0 %2041 }
 0x975   :  { %v2045_v1 = vmul.f32 %v12971_v32, %v2042_v8 }
 0x976   :  { %v2130_v7 = vpop.f32.mrb[42].mxu1 }
 0x977   :  { %v10007_v56 = vpop.f32.mrb[43].mxu1  ;;  %v2036_v53 = vpop.xlane.xlu1 %2035 }
 0x978   :  { %v2043_v63 = vmul.f32 %v12954_v48, %v2036_v53 }
 0x97a   :  { %v2131_v10 = vadd.f32 %v2130_v7, %v2043_v63  ;;  %v2135_v13 = vpop.f32.mrb[44].mxu1 }
 0x97b   :  { %v2136_v22 = vadd.f32 %v2135_v13, %v2044_v45  ;;  %v10010_v24 = vpop.f32.mrb[45].mxu1 }
 0x97c   :  { %v12966_v30 = vadd.f32 %v12963_v29, %v2131_v10 }
 0x97d   :  { %v12977_v43 = vadd.f32 %v12974_v3, %v2136_v22 }
 0x97e   :  { %v2140_v33 = vpop.f32.mrb[46].mxu1  ;;  %v2147_v35 = vsel %vm519_vm4, %v12966_v30, -inf }
 0x97f   :  { %v2141_v38 = vadd.f32 %v2140_v33, %v2045_v1  ;;  %v10013_v20 = vpop.f32.mrb[47].mxu1  ;;  %2148 = vmax.xlane.f32.xlu0 %v2147_v35  ;;  %v2150_v39 = vsel %vm519_vm4, %v12977_v43, -inf }
 0x980   :  { %2151 = vmax.xlane.f32.xlu1 %v2150_v39 }
 0x981   :  { %v12986_v41 = vadd.f32 %v12983_v40, %v2141_v38 }
 0x983   :  { %v2153_v37 = vsel %vm526_vm5, %v12986_v41, -inf }
 0x984   :  { %2154 = vmax.xlane.f32.xlu0 %v2153_v37 }
 0x9b5   :  { %v2304_v2 = vpop.xlane.xlu1 %2303 }
 0x9b6   :  { %v2311_v57 = vmul.f32 %v12954_v48, %v2304_v2 }
 0x9b9   :  { %v2310_v31 = vpop.xlane.xlu1 %2309 }
 0x9ba   :  { %v2313_v52 = vmul.f32 %v12971_v32, %v2310_v31 }
 0x9bb   :  { %v2307_v42 = vpop.xlane.xlu0 %2306 }
 0x9bc   :  { %v2312_v50 = vmul.f32 %v12960_v27, %v2307_v42 }
 0x9bd   :  { %v2599_v6 = vpop.xlane.xlu1 %2598 }
 0x9be   :  { %v2604_v63 = vmul.f32 %v12960_v27, %v2599_v6 }
 0x9bf   :  { %v2596_v12 = vpop.xlane.xlu0 %2595 }
 0x9c0   :  { %v2603_v62 = vmul.f32 %v12954_v48, %v2596_v12 }
 0x9c1   :  { %v2886_v35 = vpop.xlane.xlu1 %2885 }
 0x9c2   :  { %v2893_v2 = vmul.f32 %v12954_v48, %v2886_v35 }
 0x9c3   :  { %v2602_v8 = vpop.xlane.xlu0 %2601 }
 0x9c4   :  { %v2605_v1 = vmul.f32 %v12971_v32, %v2602_v8 }
 0x9c7   :  { %v2889_v42 = vpop.xlane.xlu0 %2888 }
 0x9c8   :  { %v2894_v31 = vmul.f32 %v12960_v27, %v2889_v42 }
 0x9ed   :  { %v2404_v26 = vpop.f32.mrb[48].mxu1 }
 0x9ee   :  { %v2405_v49 = vadd.f32 %v2404_v26, %v2311_v57  ;;  %v10037_v54 = vpop.f32.mrb[49].mxu1 }
 0x9f0   :  { %v12993_v4 = vadd.f32 %v12963_v29, %v2405_v49 }
 0x9f1   :  { %v2409_v46 = vpop.f32.mrb[50].mxu1 }
 0x9f2   :  { %v2410_v15 = vadd.f32 %v2409_v46, %v2312_v50  ;;  %v10040_v61 = vpop.f32.mrb[51].mxu1  ;;  %v2421_v59 = vsel %vm519_vm4, %v12993_v4, -inf }
 0x9f3   :  { %2422 = vmax.xlane.f32.xlu1 %v2421_v59 }
 0x9f4   :  { %v12999_v17 = vadd.f32 %v12974_v3, %v2410_v15 }
 0x9f5   :  { %v2414_v51 = vpop.f32.mrb[52].mxu1 }
 0x9f6   :  { %v2415_v23 = vadd.f32 %v2414_v51, %v2313_v52  ;;  %v10043_v58 = vpop.f32.mrb[53].mxu1  ;;  %v2424_v60 = vsel %vm519_vm4, %v12999_v17, -inf }
 0x9f7   :  { %2425 = vmax.xlane.f32.xlu0 %v2424_v60 }
 0x9f8   :  { %v13005_v36 = vadd.f32 %v12983_v40, %v2415_v23 }
 0x9f9   :  { %v2696_v9 = vpop.f32.mrb[54].mxu1 }
 0x9fa   :  { %v2697_v7 = vadd.f32 %v2696_v9, %v2603_v62  ;;  %v10067_v56 = vpop.f32.mrb[55].mxu1  ;;  %v2427_v53 = vsel %vm526_vm5, %v13005_v36, -inf  ;;  %v2892_v9 = vpop.xlane.xlu1 %2891 }
 0x9fb   :  { %2428 = vmax.xlane.f32.xlu1 %v2427_v53  ;;  %v2895_v53 = vmul.f32 %v12971_v32, %v2892_v9 }
 0x9fc   :  { %v13011_v45 = vadd.f32 %v12963_v29, %v2697_v7 }
 0x9fd   :  { %v2701_v10 = vpop.f32.mrb[56].mxu1 }
 0x9fe   :  { %v2702_v13 = vadd.f32 %v2701_v10, %v2604_v63  ;;  %v10070_v22 = vpop.f32.mrb[57].mxu1  ;;  %v2713_v24 = vsel %vm519_vm4, %v13011_v45, -inf }
 0x9ff   :  { %2714 = vmax.xlane.f32.xlu0 %v2713_v24 }
 0xa00   :  { %v13017_v33 = vadd.f32 %v12974_v3, %v2702_v13 }
 0xa01   :  { %v2706_v38 = vpop.f32.mrb[58].mxu1 }
 0xa02   :  { %v2707_v20 = vadd.f32 %v2706_v38, %v2605_v1  ;;  %v10073_v39 = vpop.f32.mrb[59].mxu1  ;;  %v2716_v37 = vsel %vm519_vm4, %v13017_v33, -inf }
 0xa03   :  { %2717 = vmax.xlane.f32.xlu1 %v2716_v37 }
 0xa04   :  { %v13023_v57 = vadd.f32 %v12983_v40, %v2707_v20 }
 0xa05   :  { %v2986_v26 = vpop.f32.mrb[60].mxu1 }
 0xa06   :  { %v2987_v49 = vadd.f32 %v2986_v26, %v2893_v2  ;;  %v10097_v54 = vpop.f32.mrb[61].mxu1  ;;  %v2719_v50 = vsel %vm526_vm5, %v13023_v57, -inf }
 0xa07   :  { %2720 = vmax.xlane.f32.xlu0 %v2719_v50 }
 0xa08   :  { %v13029_v46 = vadd.f32 %v12963_v29, %v2987_v49 }
 0xa09   :  { %v2991_v15 = vpop.f32.mrb[62].mxu1 }
 0xa0a   :  { %v2992_v61 = vadd.f32 %v2991_v15, %v2894_v31  ;;  %v10100_v59 = vpop.f32.mrb[63].mxu1  ;;  %v3003_v52 = vsel %vm519_vm4, %v13029_v46, -inf }
 0xa0b   :  { %3004 = vmax.xlane.f32.xlu1 %v3003_v52 }
 0xa0c   :  { %v13034_v12 = vadd.f32 %v12974_v3, %v2992_v61  ;;  %v2149_v29 = vpop.xlane.xlu0 %2148 }
 0xa0d   :  { %v2996_v51 = vpop.f32.mrb[64].mxu1  ;;  %v2156_v60 = vsub.f32 %v12966_v30, %v2149_v29 }
 0xa0e   :  { %v10103_v23 = vpop.f32.mrb[65].mxu1  ;;  %v3006_v58 = vsel %vm519_vm4, %v13034_v12, -inf  ;;  %v2997_v8 = vadd.f32 %v2996_v51, %v2895_v53 }
 0xa0f   :  { %3007 = vmax.xlane.f32.xlu0 %v3006_v58  ;;  %v2159_v6 = vmax.f32 %v2156_v60, -60.0 }
 0xa10   :  { %v13046_v10 = vadd.f32 %v12983_v40, %v2997_v8  ;;  %v2152_v40 = vpop.xlane.xlu1 %2151 }
 0xa11   :  { %v2155_v62 = vpop.xlane.xlu0 %2154  ;;  %v2162_v7 = vmul.f32 1.442695, %v2159_v6  ;;  %v2157_v1 = vsub.f32 %v12977_v43, %v2152_v40 }
 0xa12   :  { %v2158_v3 = vsub.f32 %v12986_v41, %v2155_v62  ;;  %v3009_v13 = vsel %vm526_vm5, %v13046_v10, -inf }
 0xa13   :  { %11377 = vpow2.f32 %v2162_v7  ;;  %v2160_v35 = vmax.f32 %v2157_v1, -60.0 }
 0xa14   :  { %v2161_v56 = vmax.f32 %v2158_v3, -60.0 }
 0xa15   :  { %v2164_v38 = vmul.f32 1.442695, %v2160_v35 }
 0xa16   :  { %v2166_v63 = vmul.f32 1.442695, %v2161_v56 }
 0xa18   :  { %11379 = vpow2.f32 %v2166_v63 }
 0xa19   :  { %11381 = vpow2.f32 %v2164_v38 }
 0xa1c   :  { %2478 = vrot.lane.b32.xlu1 %v12862_v25, %s11903_s3 }
 0xa1d   :  { %v13050_v30 = vpop.eup %11377 }
 0xa1e   :  { %v2168_v41 = vsel %vm519_vm4, %v13050_v30, 0.0 }
 0xa22   :  { %v13054_v22 = vpop.eup %11379 }
 0xa23   :  { %v2174_v24 = vsel %vm526_vm5, %v13054_v22, 0.0  ;;  %v13061_v20 = vpop.eup %11381 }
 0xa24   :  { %v2171_v39 = vsel %vm519_vm4, %v13061_v20, 0.0 }
 0xa25   :  { %11209 = vrot.lane.b32.xlu0 %v12854_v47, %s11903_s3 }
 0xa40   :  { %3010 = vmax.xlane.f32.xlu1 %v3009_v13 }
 0xa44   :  { %2169 = vadd.xlane.f32.xlu0 %v2168_v41 }
 0xa48   :  { %2175 = vadd.xlane.f32.xlu0 %v2174_v24 }
 0xa51   :  { %11214 = vrot.lane.b32.xlu1 %v12854_v47, %s11896_s6 }
 0xa75   :  { %2172 = vadd.xlane.f32.xlu1 %v2171_v39 }
 0xa80   :  { %v2423_v37 = vpop.xlane.xlu1 %2422 }
 0xa81   :  { %v2430_v2 = vsub.f32 %v12993_v4, %v2423_v37 }
 0xa83   :  { %v2433_v42 = vmax.f32 %v2430_v2, -60.0 }
 0xa84   :  { %v2426_v26 = vpop.xlane.xlu0 %2425 }
 0xa85   :  { %v2436_v49 = vmul.f32 1.442695, %v2433_v42  ;;  %v2431_v54 = vsub.f32 %v12999_v17, %v2426_v26 }
 0xa87   :  { %11383 = vpow2.f32 %v2436_v49  ;;  %v2434_v50 = vmax.f32 %v2431_v54, -60.0 }
 0xa88   :  { %v2429_v43 = vpop.xlane.xlu1 %2428 }
 0xa89   :  { %v2438_v31 = vmul.f32 1.442695, %v2434_v50  ;;  %v2432_v15 = vsub.f32 %v13005_v36, %v2429_v43 }
 0xa8b   :  { %11385 = vpow2.f32 %v2438_v31  ;;  %v2435_v61 = vmax.f32 %v2432_v15, -60.0 }
 0xa8c   :  { %v2715_v59 = vpop.xlane.xlu0 %2714 }
 0xa8d   :  { %v2440_v52 = vmul.f32 1.442695, %v2435_v61  ;;  %v2722_v51 = vsub.f32 %v13011_v45, %v2715_v59 }
 0xa8f   :  { %11387 = vpow2.f32 %v2440_v52  ;;  %v2725_v23 = vmax.f32 %v2722_v51, -60.0 }
 0xa90   :  { %v2718_v4 = vpop.xlane.xlu1 %2717 }
 0xa91   :  { %v13069_v58 = vpop.eup %11383  ;;  %v2728_v29 = vmul.f32 1.442695, %v2725_v23  ;;  %v2723_v17 = vsub.f32 %v13017_v33, %v2718_v4 }
 0xa92   :  { %v2442_v60 = vsel %vm519_vm4, %v13069_v58, 0.0 }
 0xa93   :  { %11389 = vpow2.f32 %v2728_v29  ;;  %v2726_v62 = vmax.f32 %v2723_v17, -60.0  ;;  %2443 = vadd.xlane.f32.xlu1 %v2442_v60 }
 0xa94   :  { %v2721_v36 = vpop.xlane.xlu0 %2720 }
 0xa95   :  { %v13074_v6 = vpop.eup %11385  ;;  %v2730_v3 = vmul.f32 1.442695, %v2726_v62  ;;  %v2724_v45 = vsub.f32 %v13023_v57, %v2721_v36 }
 0xa96   :  { %v2445_v9 = vsel %vm519_vm4, %v13074_v6, 0.0 }
 0xa97   :  { %11391 = vpow2.f32 %v2730_v3  ;;  %v2727_v7 = vmax.f32 %v2724_v45, -60.0  ;;  %2446 = vadd.xlane.f32.xlu0 %v2445_v9 }
 0xa98   :  { %v3005_v56 = vpop.xlane.xlu1 %3004 }
 0xa99   :  { %v13079_v33 = vpop.eup %11387  ;;  %v2732_v53 = vmul.f32 1.442695, %v2727_v7  ;;  %v3012_v63 = vsub.f32 %v13029_v46, %v3005_v56 }
 0xa9a   :  { %v2448_v8 = vsel %vm526_vm5, %v13079_v33, 0.0 }
 0xa9b   :  { %11393 = vpow2.f32 %v2732_v53  ;;  %v3015_v13 = vmax.f32 %v3012_v63, -60.0  ;;  %2449 = vadd.xlane.f32.xlu1 %v2448_v8 }
 0xa9c   :  { %v3008_v37 = vpop.xlane.xlu0 %3007  ;;  %v2479_v49 = vpop.permute.xlu1 %2478 }
 0xa9d   :  { %v13084_v41 = vpop.eup %11389  ;;  %v3018_v57 = vmul.f32 1.442695, %v3015_v13  ;;  %v3013_v2 = vsub.f32 %v13034_v12, %v3008_v37 }
 0xa9e   :  { %v2734_v24 = vsel %vm519_vm4, %v13084_v41, 0.0 }
 0xa9f   :  { %11395 = vpow2.f32 %v3018_v57  ;;  %2735 = vadd.xlane.f32.xlu0 %v2734_v24  ;;  %v3016_v42 = vmax.f32 %v3013_v2, -60.0 }
 0xaa0   :  { %v11210_v54 = vpop.permute.xlu0 %11209 }
 0xaa1   :  { %v13088_v40 = vpop.eup %11391  ;;  %v3020_v26 = vmul.f32 1.442695, %v3016_v42  ;;  %v11212_v12 = vunpack.i.h.bf16 %v11210_v54  ;;  %v11211_v51 = vunpack.i.l.bf16 %v11210_v54 }
 0xaa2   :  { %v2737_v1 = vsel %vm519_vm4, %v13088_v40, 0.0 }
 0xaa3   :  { %2738 = vadd.xlane.f32.xlu1 %v2737_v1  ;;  %11397 = vpow2.f32 %v3020_v26 }
 0xaa5   :  { %v13092_v46 = vpop.eup %11393 }
 0xaa6   :  { %v2740_v35 = vsel %vm526_vm5, %v13092_v46, 0.0 }
 0xaa7   :  { %2741 = vadd.xlane.f32.xlu1 %v2740_v35 }
 0xaa9   :  { %v13096_v38 = vpop.eup %11395 }
 0xaaa   :  { %v3024_v39 = vsel %vm519_vm4, %v13096_v38, 0.0 }
 0xaab   :  { %3025 = vadd.xlane.f32.xlu1 %v3024_v39 }
 0xaad   :  { %v13104_v31 = vpop.eup %11397 }
 0xaae   :  { %v3027_v52 = vsel %vm519_vm4, %v13104_v31, 0.0 }
 0xab5   :  { %2768 = vrot.lane.b32.xlu0 %v12862_v25, %s11896_s6 }
 0xacd   :  { %v3011_v50 = vpop.xlane.xlu1 %3010 }
 0xace   :  { %v3014_v43 = vsub.f32 %v13046_v10, %v3011_v50  ;;  %v10841_v10 = vpack.c.bf16 %v11212_v12, %v11211_v51 }
 0xad0   :  { %v3017_v15 = vmax.f32 %v3014_v43, -60.0 }
 0xad1   :  { %v2170_v61 = vpop.xlane.xlu0 %2169 }
 0xad2   :  { %v3022_v59 = vmul.f32 1.442695, %v3017_v15  ;;  %11399 = vrcp.f32 %v2170_v61 }
 0xad4   :  { %11401 = vpow2.f32 %v3022_v59  ;;  %3028 = vadd.xlane.f32.xlu0 %v3027_v52 }
 0xad5   :  { %v2176_v60 = vpop.xlane.xlu0 %2175 }
 0xadc   :  { %v11400_v23 = vpop.eup %11399 }
 0xadd   :  { %v13109_v4 = vmul.f32 %v11400_v23, %v13050_v30  ;;  %v11215_v30 = vpop.permute.xlu1 %11214 }
 0xade   :  { %v13111_v29 = vpop.eup %11401  ;;  %v11217_v7 = vunpack.i.h.bf16 %v11215_v30  ;;  %v11216_v56 = vunpack.i.l.bf16 %v11215_v30 }
 0xadf   :  { %10021 = vmatmul.mubr.msk.f32.vlgmr.msra.gmra.mrb[36].mxu0 %vm519_vm4, %v13109_v4  ;;  %v3030_v17 = vsel %vm526_vm5, %v13111_v29, 0.0 }
 0xae0   :  { %10842 = vmatpush3.bf16.msra.mxu0 %v10841_v10  ;;  %3031 = vadd.xlane.f32.xlu1 %v3030_v17 }
 0xae1   :  { %10048 = vmatprep.subr.mxu0 %v11900_v0  ;;  %10023 = vmatprep.mubr.msk.f32.mxu0 %vm11902_vm1, %v11900_v0 }
 0xae4   :  { %10049 = vmatpush3.msk.msra.mxu0 %vm581_vm6, %v2479_v49 }
 0xae5   :  { %10847 = vmatprep.subr.bf16.mxu0 %v11901_v16 }
 0xaea   :  { %3058 = vrot.lane.b32.xlu0 %v12862_v25, %s11904_s28 }
 0xaf1   :  { %11219 = vrot.lane.b32.xlu1 %v12854_v47, %s11904_s28 }
 0xb02   :  { %v2173_v62 = vpop.xlane.xlu1 %2172 }
 0xb03   :  { %11403 = vrcp.f32 %v2173_v62 }
 0xb04   :  { %11405 = vrcp.f32 %v2176_v60 }
 0xb0d   :  { %v11404_v36 = vpop.eup %11403 }
 0xb0e   :  { %v13127_v3 = vmul.f32 %v11404_v36, %v13061_v20  ;;  %v11406_v45 = vpop.eup %11405 }
 0xb0f   :  { %v13134_v25 = vmul.f32 %v11406_v45, %v13054_v22  ;;  %v10848_v22 = vpack.c.bf16 %v11217_v7, %v11216_v56 }
 0xb10   :  { %10024 = vmatmul.mubr.msk.f32.gmra.mrb[38].mxu0 %vm519_vm4, %v13127_v3 }
 0xb11   :  { %10026 = vmatprep.mubr.msk.f32.mxu0 %vm11902_vm1, %v11900_v0 }
 0xb14   :  { %10027 = vmatmul.mubr.msk.f32.gmra.mrb[40].mxu0 %vm519_vm4, %v13134_v25 }
 0xb15   :  { %10050 = vmatprep.mubr.msk.f32.mxu0 %vm11902_vm1, %v11900_v0 }
 0xb20   :  { %v2444_v47 = vpop.xlane.xlu1 %2443 }
 0xb21   :  { %11407 = vrcp.f32 %v2444_v47 }
 0xb24   :  { %v2447_v20 = vpop.xlane.xlu0 %2446 }
 0xb25   :  { %11409 = vrcp.f32 %v2447_v20 }
 0xb28   :  { %v2450_v9 = vpop.xlane.xlu1 %2449 }
 0xb29   :  { %11411 = vrcp.f32 %v2450_v9 }
 0xb2b   :  { %v11408_v53 = vpop.eup %11407 }
 0xb2c   :  { %v2454_v63 = vmul.f32 %v11408_v53, %v13069_v58  ;;  %v2736_v8 = vpop.xlane.xlu0 %2735 }
 0xb2d   :  { %11413 = vrcp.f32 %v2736_v8 }
 0xb2e   :  { %10051 = vmatmul.mubr.msk.f32.vlgmr.msra.gmra.mrb[42].mxu0 %vm519_vm4, %v2454_v63  ;;  %v2457_v13 = vmul.f32 %v12954_v48, %v2454_v63 }
 0xb2f   :  { %v11410_v57 = vpop.eup %11409  ;;  %10849 = vmatpush3.bf16.msra.mxu0 %v10848_v22  ;;  %10053 = vmatprep.mubr.msk.f32.mxu0 %vm11902_vm1, %v11900_v0 }
 0xb30   :  { %v2769_v24 = vpop.permute.xlu0 %2768  ;;  %v2739_v1 = vpop.xlane.xlu1 %2738  ;;  %v2460_v35 = vsel %vm519_vm4, %v2457_v13, 0.0  ;;  %10078 = vmatprep.subr.mxu0 %v11900_v0  ;;  %v2455_v58 = vmul.f32 %v11410_v57, %v13074_v6 }
 0xb31   :  { %11415 = vrcp.f32 %v2739_v1  ;;  %2461 = vadd.xlane.f32.xlu0 %v2460_v35 }
 0xb32   :  { %10054 = vmatmul.mubr.msk.f32.gmra.mrb[44].mxu0 %vm519_vm4, %v2455_v58  ;;  %v2458_v39 = vmul.f32 %v12960_v27, %v2455_v58 }
 0xb33   :  { %v11412_v37 = vpop.eup %11411  ;;  %10079 = vmatpush3.msk.msra.mxu0 %vm581_vm6, %v2769_v24  ;;  %10056 = vmatprep.mubr.msk.f32.mxu0 %vm11902_vm1, %v11900_v0 }
 0xb34   :  { %v2742_v2 = vpop.xlane.xlu1 %2741  ;;  %v2463_v42 = vsel %vm519_vm4, %v2458_v39, 0.0  ;;  %v2456_v26 = vmul.f32 %v11412_v37, %v13079_v33  ;;  %10854 = vmatprep.subr.bf16.mxu0 %v11901_v16 }
 0xb35   :  { %11417 = vrcp.f32 %v2742_v2  ;;  %2464 = vadd.xlane.f32.xlu0 %v2463_v42 }
 0xb36   :  { %10057 = vmatmul.mubr.msk.f32.gmra.mrb[46].mxu0 %vm519_vm4, %v2456_v26  ;;  %v2459_v6 = vmul.f32 %v12971_v32, %v2456_v26 }
 0xb37   :  { %v11414_v49 = vpop.eup %11413  ;;  %10080 = vmatprep.mubr.msk.f32.mxu0 %vm11902_vm1, %v11900_v0 }
 0xb38   :  { %v2746_v54 = vmul.f32 %v11414_v49, %v13084_v41  ;;  %v3026_v50 = vpop.xlane.xlu1 %3025  ;;  %v2466_v43 = vsel %vm526_vm5, %v2459_v6, 0.0 }
 0xb39   :  { %11419 = vrcp.f32 %v3026_v50  ;;  %2467 = vadd.xlane.f32.xlu0 %v2466_v43  ;;  %v2184_v43 = vmul.f32 %v12960_v27, %v13127_v3 }
 0xb3a   :  { %10081 = vmatmul.mubr.msk.f32.vlgmr.msra.gmra.mrb[48].mxu0 %vm519_vm4, %v2746_v54  ;;  %v2749_v33 = vmul.f32 %v12954_v48, %v2746_v54 }
 0xb3b   :  { %v11416_v15 = vpop.eup %11415  ;;  %10083 = vmatprep.mubr.msk.f32.mxu0 %vm11902_vm1, %v11900_v0 }
 0xb3c   :  { %v2752_v61 = vsel %vm519_vm4, %v2749_v33, 0.0  ;;  %v2747_v59 = vmul.f32 %v11416_v15, %v13088_v40  ;;  %v2189_v33 = vsel %vm519_vm4, %v2184_v43, 0.0 }
 0xb3d   :  { %2753 = vadd.xlane.f32.xlu1 %v2752_v61 }
 0xb3e   :  { %10084 = vmatmul.mubr.msk.f32.gmra.mrb[50].mxu0 %vm519_vm4, %v2747_v59  ;;  %v2750_v41 = vmul.f32 %v12960_v27, %v2747_v59 }
 0xb3f   :  { %v11418_v52 = vpop.eup %11417  ;;  %10086 = vmatprep.mubr.msk.f32.mxu0 %vm11902_vm1, %v11900_v0 }
 0xb40   :  { %v2755_v12 = vsel %vm519_vm4, %v2750_v41, 0.0  ;;  %v2748_v51 = vmul.f32 %v11418_v52, %v13092_v46 }
 0xb41   :  { %2756 = vadd.xlane.f32.xlu0 %v2755_v12 }
 0xb42   :  { %10087 = vmatmul.mubr.msk.f32.gmra.mrb[52].mxu0 %vm519_vm4, %v2748_v51  ;;  %v2751_v20 = vmul.f32 %v12971_v32, %v2748_v51 }
 0xb43   :  { %v11420_v23 = vpop.eup %11419  ;;  %10110 = vmatprep.mubr.msk.f32.mxu0 %vm11902_vm1, %v11900_v0 }
 0xb44   :  { %v3036_v40 = vmul.f32 %v11420_v23, %v13096_v38  ;;  %v2758_v56 = vsel %vm526_vm5, %v2751_v20, 0.0  ;;  %v2185_v20 = vmul.f32 %v12971_v32, %v13134_v25 }
 0xb46   :  { %v3039_v10 = vmul.f32 %v12954_v48, %v3036_v40 }
 0xb48   :  { %v3042_v17 = vsel %vm519_vm4, %v3039_v10, 0.0 }
 0xb49   :  { %3043 = vadd.xlane.f32.xlu0 %v3042_v17 }
 0xb61   :  { %v3029_v30 = vpop.xlane.xlu0 %3028 }
 0xb62   :  { %11421 = vrcp.f32 %v3029_v30 }
 0xb6c   :  { %v11422_v60 = vpop.eup %11421 }
 0xb6d   :  { %v3032_v62 = vpop.xlane.xlu1 %3031  ;;  %v3037_v46 = vmul.f32 %v11422_v60, %v13104_v31  ;;  %v3059_v31 = vpop.permute.xlu0 %3058 }
 0xb6e   :  { %11423 = vrcp.f32 %v3032_v62 }
 0xb6f   :  { %v3040_v36 = vmul.f32 %v12960_v27, %v3037_v46 }
 0xb71   :  { %v11220_v45 = vpop.permute.xlu1 %11219  ;;  %v3045_v47 = vsel %vm519_vm4, %v3040_v36, 0.0 }
 0xb72   :  { %v11222_v38 = vunpack.i.h.bf16 %v11220_v45  ;;  %v11221_v9 = vunpack.i.l.bf16 %v11220_v45  ;;  %3046 = vadd.xlane.f32.xlu1 %v3045_v47 }
 0xb74   :  { %v10855_v7 = vpack.c.bf16 %v11222_v38, %v11221_v9  ;;  %v2192_v38 = vsel %vm526_vm5, %v2185_v20, 0.0  ;;  %v2183_v9 = vmul.f32 %v12954_v48, %v13109_v4 }
 0xb76   :  { %2759 = vadd.xlane.f32.xlu1 %v2758_v56  ;;  %10856 = vmatpush3.bf16.msra.mxu0 %v10855_v7 }
 0xb77   :  { %10108 = vmatprep.subr.mxu0 %v11900_v0 }
 0xb78   :  { %v11424_v53 = vpop.eup %11423 }
 0xb79   :  { %v3038_v63 = vmul.f32 %v11424_v53, %v13111_v29 }
 0xb7a   :  { %10109 = vmatpush3.msk.msra.mxu0 %vm581_vm6, %v3059_v31 }
 0xb7b   :  { %10111 = vmatmul.mubr.msk.f32.vlgmr.msra.gmra.mrb[54].mxu0 %vm519_vm4, %v3036_v40  ;;  %v3041_v8 = vmul.f32 %v12971_v32, %v3038_v63 }
 0xb7c   :  { %10113 = vmatprep.mubr.msk.f32.mxu0 %vm11902_vm1, %v11900_v0 }
 0xb7d   :  { %v3048_v22 = vsel %vm526_vm5, %v3041_v8, 0.0 }
 0xb7e   :  { %3049 = vadd.xlane.f32.xlu0 %v3048_v22 }
 0xb7f   :  { %10114 = vmatmul.mubr.msk.f32.gmra.mrb[56].mxu0 %vm519_vm4, %v3037_v46 }
 0xb80   :  { %10116 = vmatprep.mubr.msk.f32.mxu0 %vm11902_vm1, %v11900_v0 }
 0xb83   :  { %10117 = vmatmul.mubr.msk.f32.gmra.mrb[58].mxu0 %vm519_vm4, %v3038_v63 }
 0xb84   :  { %3545 = vmatprep.mubr.f32.mxu0 %v11900_v0 }
 0xbb2   :  { %v13198_v29 = vpop.f32.mrb[36].mxu0 }
 0xbb3   :  { %v10022_v13 = vpop.f32.mrb[37].mxu0 }
 0xbbe   :  { %v2462_v57 = vpop.xlane.xlu0 %2461 }
 0xbbf   :  { %v2469_v24 = vmul.f32 %v12880_v5, %v2462_v57 }
 0xbc1   :  { %2485 = vrot.lane.b32.xlu1 %v2469_v24, %s11903_s3 }
 0xbc2   :  { %v2465_v1 = vpop.xlane.xlu0 %2464 }
 0xbc3   :  { %v2470_v35 = vmul.f32 %v12880_v5, %v2465_v1 }
 0xbc5   :  { %2487 = vrot.lane.b32.xlu1 %v2470_v35, %s11903_s3 }
 0xbc6   :  { %v2468_v58 = vpop.xlane.xlu0 %2467 }
 0xbc7   :  { %v2471_v39 = vmul.f32 %v12880_v5, %v2468_v58 }
 0xbc9   :  { %2489 = vrot.lane.b32.xlu0 %v2471_v39, %s11903_s3 }
 0xbca   :  { %v2754_v37 = vpop.xlane.xlu1 %2753 }
 0xbcb   :  { %v2761_v2 = vmul.f32 %v12880_v5, %v2754_v37 }
 0xbcd   :  { %2775 = vrot.lane.b32.xlu0 %v2761_v2, %s11896_s6 }
 0xbce   :  { %v2757_v42 = vpop.xlane.xlu0 %2756 }
 0xbcf   :  { %v2762_v26 = vmul.f32 %v12880_v5, %v2757_v42 }
 0xbd1   :  { %2777 = vrot.lane.b32.xlu0 %v2762_v26, %s11896_s6 }
 0xbd6   :  { %v3044_v12 = vpop.xlane.xlu0 %3043 }
 0xbd7   :  { %v3051_v40 = vmul.f32 %v12880_v5, %v3044_v12 }
 0xbe3   :  { %v13210_v6 = vpop.f32.mrb[38].mxu0 }
 0xbe4   :  { %v10025_v49 = vpop.f32.mrb[39].mxu0 }
 0xbe7   :  { %v13212_v54 = vpop.f32.mrb[40].mxu0 }
 0xbe8   :  { %v10028_v50 = vpop.f32.mrb[41].mxu0 }
 0xbf0   :  { %2190 = vadd.xlane.f32.xlu0 %v2189_v33 }
 0xbff   :  { %v3047_v15 = vpop.xlane.xlu1 %3046 }
 0xc00   :  { %v3052_v3 = vmul.f32 %v12880_v5, %v3047_v15 }
 0xc01   :  { %v2571_v61 = vpop.f32.mrb[42].mxu0 }
 0xc02   :  { %v10052_v59 = vpop.f32.mrb[43].mxu0 }
 0xc03   :  { %v2760_v41 = vpop.xlane.xlu1 %2759  ;;  %v11651_v59 = vld [vmem:[#allocation5 + $0x1] ss:$0 sm:$0xff] }
 0xc04   :  { %v2763_v52 = vmul.f32 %v12880_v5, %v2760_v41 }
 0xc05   :  { %v2576_v51 = vpop.f32.mrb[44].mxu0 }
 0xc06   :  { %v10055_v23 = vpop.f32.mrb[45].mxu0  ;;  %2779 = vrot.lane.b32.xlu1 %v2763_v52, %s11896_s6 }
 0xc09   :  { %v2581_v10 = vpop.f32.mrb[46].mxu0 }
 0xc0a   :  { %v10058_v17 = vpop.f32.mrb[47].mxu0  ;;  %3065 = vrot.lane.b32.xlu1 %v3051_v40, %s11904_s28 }
 0xc0b   :  { %v3050_v27 = vpop.xlane.xlu0 %3049 }
 0xc0c   :  { %v3053_v30 = vmul.f32 %v12880_v5, %v3050_v27  ;;  %v2186_v5 = vsel %vm519_vm4, %v2183_v9, 0.0 }
 0xc0d   :  { %v2861_v60 = vpop.f32.mrb[48].mxu0 }
 0xc0e   :  { %3069 = vrot.lane.b32.xlu0 %v3053_v30, %s11904_s28  ;;  %3067 = vrot.lane.b32.xlu1 %v3052_v3, %s11904_s28  ;;  %v10082_v62 = vpop.f32.mrb[49].mxu0 }
 0xc11   :  { %v2866_v46 = vpop.f32.mrb[50].mxu0 }
 0xc12   :  { %v10085_v36 = vpop.f32.mrb[51].mxu0 }
 0xc15   :  { %v2871_v45 = vpop.f32.mrb[52].mxu0 }
 0xc16   :  { %v10088_v47 = vpop.f32.mrb[53].mxu0 }
 0xc2d   :  { %2193 = vadd.xlane.f32.xlu0 %v2192_v38 }
 0xc32   :  { %2187 = vadd.xlane.f32.xlu1 %v2186_v5 }
 0xc33   :  { %v2486_v56 = vpop.permute.xlu1 %2485 }
 0xc34   :  { %v2572_v31 = vadd.f32 %v2571_v61, %v2486_v56  ;;  %v3211_v61 = vld [vmem:[#allocation7 + $0x4] sm:$0x7] }
 0xc35   :  { %v3216_v52 = vrot.slane %v3211_v61, 1 }
 0xc37   :  { %v2488_v8 = vpop.permute.xlu1 %2487  ;;  %v3218_v27 = vsub.f32 %v3211_v61, %v3216_v52  ;;  %v9186_v52 = vld [vmem:[%s15591_s14 + $0xc0] sm:$0xff] }
 0xc38   :  { %v2577_v32 = vadd.f32 %v2576_v51, %v2488_v8  ;;  %v3213_v51 = vrot.slane %v3211_v61, 2 }
 0xc3a   :  { %v3215_v3 = vadd.f32 %v3213_v51, %v3211_v61  ;;  %v9184_v61 = vld [vmem:[%s15591_s14 + $0xb0] sm:$0xff] }
 0xc3b   :  { %v2490_v7 = vpop.permute.xlu0 %2489 }
 0xc3c   :  { %v2582_v63 = vadd.f32 %v2581_v10, %v2490_v7  ;;  %v11652_v10 = vld [vmem:[%s15587_s29 + $0x4] sm:$0xf] }
 0xc3d   :  { %v1840_v17 = vrot.slane %v11652_v10, %v12650_v55 }
 0xc3f   :  { %v2776_v53 = vpop.permute.xlu0 %2775  ;;  %v13247_v36 = vadd.f32 %v12845_v28, %v1840_v17  ;;  %v13259_v28 = vadd.f32 %v12849_v44, %v1840_v17  ;;  %v13270_v44 = vadd.f32 %v12857_v14, %v1840_v17  ;;  %v9178_v14 = vld [vmem:[%s15591_s14 + $0x80] sm:$0xff] }
 0xc40   :  { %v2862_v25 = vadd.f32 %v2861_v60, %v2776_v53  ;;  %v9190_v17 = vld [vmem:[%s15591_s14 + $0xe0] sm:$0xff] }
 0xc43   :  { %3172 = vrot.lane.b32.xlu0 %v2582_v63, %s11904_s28  ;;  %3168 = vrot.lane.b32.xlu1 %v2572_v31, %s11904_s28  ;;  %v2778_v22 = vpop.permute.xlu0 %2777 }
 0xc44   :  { %v2867_v48 = vadd.f32 %v2866_v46, %v2778_v22 }
 0xc47   :  { %3170 = vrot.lane.b32.xlu1 %v2577_v32, %s11904_s28  ;;  %3180 = vrot.lane.b32.xlu0 %v2862_v25, %s11896_s6 }
 0xc4b   :  { %3182 = vrot.lane.b32.xlu0 %v2867_v48, %s11896_s6 }
 0xc4e   :  { %v3151_v4 = vpop.f32.mrb[54].mxu0 }
 0xc4f   :  { %v10112_v13 = vpop.f32.mrb[55].mxu0 }
 0xc52   :  { %v3156_v57 = vpop.f32.mrb[56].mxu0 }
 0xc53   :  { %v10115_v24 = vpop.f32.mrb[57].mxu0 }
 0xc56   :  { %v3161_v1 = vpop.f32.mrb[58].mxu0 }
 0xc57   :  { %v10118_v35 = vpop.f32.mrb[59].mxu0 }
 0xc78   :  { %v2780_v58 = vpop.permute.xlu1 %2779 }
 0xc79   :  { %v2872_v43 = vadd.f32 %v2871_v45, %v2780_v58  ;;  %v3229_v45 = vrot.slane %v3218_v27, %v12187_v19  ;;  %v9191_v27 = vld [vmem:[%s15591_s14 + $0xe8] sm:$0xff] }
 0xc7b   :  { %v3230_v56 = vmul.f32 %v3229_v45, %v13247_v36  ;;  %v3231_v22 = vmul.f32 %v3229_v45, %v13259_v28  ;;  %v3232_v35 = vmul.f32 %v3229_v45, %v13270_v44 }
 0xc7c   :  { %v3066_v39 = vpop.permute.xlu1 %3065 }
 0xc7d   :  { %v3152_v37 = vadd.f32 %v3151_v4, %v3066_v39  ;;  %v2191_v2 = vpop.xlane.xlu0 %2190 }
 0xc7e   :  { %v2196_v30 = vmul.f32 %v11651_v59, %v2191_v2  ;;  %v9179_v2 = vld [vmem:[%s15591_s14 + $0x88] sm:$0xff] }
 0xc7f   :  { %3192 = vrot.lane.b32.xlu1 %v3152_v37, %s11903_s3 }
 0xc80   :  { %v3068_v42 = vpop.permute.xlu1 %3067  ;;  %v2282_v47 = vadd.f32 %v13210_v6, %v2196_v30  ;;  %v9192_v30 = vld [vmem:[%s15591_s14 + $0xf0] sm:$0xff] }
 0xc81   :  { %v3157_v26 = vadd.f32 %v3156_v57, %v3068_v42  ;;  %v3070_v49 = vpop.permute.xlu0 %3069  ;;  %v10858_v42 = vpack.c.bf16 %v9179_v2, %v9178_v14  ;;  %v9206_v2 = vld [vmem:[%s15585_s30 + $0x148] sm:$0xff] }
 0xc82   :  { %v3162_v50 = vadd.f32 %v3161_v1, %v3070_v49  ;;  %v9181_v49 = vld [vmem:[%s15591_s14 + $0x98] sm:$0xff] }
 0xc83   :  { %3194 = vrot.lane.b32.xlu1 %v3157_v26, %s11903_s3  ;;  %10859 = vmatpush3.bf16.msra.mxu1 %v10858_v42  ;;  %v9180_v26 = vld [vmem:[%s15591_s14 + $0x90] sm:$0xff]  ;;  %v9210_v42 = vld [vmem:[%s15585_s30 + $0x168] sm:$0xff] }
 0xc84   :  { %3196 = vrot.lane.b32.xlu0 %v3162_v50, %s11903_s3  ;;  %10860 = vmatprep.subr.bf16.mxu1 %v11901_v16  ;;  %v10861_v50 = vpack.c.bf16 %v9181_v49, %v9180_v26  ;;  %v10885_v26 = vpack.c.bf16 %v9210_v42, %v9206_v2  ;;  %v9205_v49 = vld [vmem:[%s15585_s30 + $0x140] sm:$0xff] }
 0xc87   :  { %3184 = vrot.lane.b32.xlu1 %v2872_v43, %s11896_s6  ;;  %10862 = vmatpush3.bf16.msra.mxu1 %v10861_v50  ;;  %v9182_v43 = vld [vmem:[%s15591_s14 + $0xa0] sm:$0xff] }
 0xc88   :  { %10863 = vmatprep.subr.bf16.mxu1 %v11901_v16  ;;  %v9209_v50 = vld [vmem:[%s15585_s30 + $0x160] sm:$0xff] }
 0xcba   :  { %v2194_v15 = vpop.xlane.xlu0 %2193 }
 0xcbb   :  { %v2197_v20 = vmul.f32 %v11651_v59, %v2194_v15 }
 0xcbd   :  { %v2287_v63 = vadd.f32 %v13212_v54, %v2197_v20 }
 0xcbe   :  { %v3173_v23 = vpop.permute.xlu0 %3172 }
 0xcbf   :  { %v2188_v33 = vpop.xlane.xlu1 %2187  ;;  %v3203_v4 = vsel %vm216_vm0, %v2287_v63, %v3173_v23  ;;  %v9188_v23 = vld [vmem:[%s15591_s14 + $0xd0] sm:$0xff] }
 0xcc0   :  { %v2195_v41 = vmul.f32 %v11651_v59, %v2188_v33  ;;  %v9183_v33 = vld [vmem:[%s15591_s14 + $0xa8] sm:$0xff]  ;;  %v9185_v59 = vld [vmem:[%s15591_s14 + $0xb8] sm:$0xff] }
 0xcc1   :  { %v10864_v15 = vpack.c.bf16 %v9183_v33, %v9182_v43  ;;  %v10887_v43 = vpack.c.bf16 %v9209_v50, %v9205_v49  ;;  %v9200_v33 = vld [vmem:[%s15585_s30 + $0x118] sm:$0xff]  ;;  %v9203_v49 = vld [vmem:[%s15585_s30 + $0x130] sm:$0xff] }
 0xcc2   :  { %v2277_v40 = vadd.f32 %v13198_v29, %v2195_v41  ;;  %v3181_v62 = vpop.permute.xlu0 %3180  ;;  %v3222_v29 = vrot.slane %v3215_v3, %v12195_v21  ;;  %v10867_v41 = vpack.c.bf16 %v9185_v59, %v9184_v61  ;;  %v10876_v3 = vpack.c.bf16 %v9191_v27, %v9190_v17  ;;  %v9194_v59 = vld [vmem:[#allocation8 + $0x1] ss:$0 sm:$0xff]  ;;  %v9196_v50 = vld [vmem:[#allocation11 + $0x1] ss:$0 sm:$0xff] }
 0xcc3   :  { %v3169_v12 = vpop.permute.xlu1 %3168  ;;  %10865 = vmatpush3.bf16.msra.mxu1 %v10864_v15  ;;  %v9204_v15 = vld [vmem:[%s15585_s30 + $0x138] sm:$0xff] }
 0xcc4   :  { %v3201_v46 = vsel %vm216_vm0, %v2277_v40, %v3169_v12  ;;  %10866 = vmatprep.subr.bf16.mxu1 %v11901_v16  ;;  %v9187_v12 = vld [vmem:[%s15591_s14 + $0xc8] sm:$0xff]  ;;  %v9189_v40 = vld [vmem:[%s15591_s14 + $0xd8] sm:$0xff]  ;;  %v10889_v61 = vpack.c.bf16 %v9204_v15, %v9200_v33 }
 0xcc5   :  { %v3204_v38 = vsel %vm1579_vm7, %v3201_v46, %v3181_v62  ;;  %v10870_v51 = vpack.c.bf16 %v9187_v12, %v9186_v52  ;;  %v10873_v10 = vpack.c.bf16 %v9189_v40, %v9188_v23  ;;  %v9212_v33 = vld [vmem:[%s15585_s30 + $0x178] sm:$0xff] }
 0xcc6   :  { %v3183_v31 = vpop.permute.xlu0 %3182 }
 0xcc7   :  { %v3171_v60 = vpop.permute.xlu1 %3170  ;;  %10868 = vmatpush3.bf16.msra.mxu1 %v10867_v41 }
 0xcc8   :  { %v3202_v5 = vsel %vm216_vm0, %v2282_v47, %v3171_v60  ;;  %10869 = vmatprep.subr.bf16.mxu1 %v11901_v16  ;;  %v9193_v60 = vld [vmem:[%s15591_s14 + $0xf8] sm:$0xff] }
 0xcc9   :  { %v3205_v6 = vsel %vm1579_vm7, %v3202_v5, %v3183_v31  ;;  %v10879_v62 = vpack.c.bf16 %v9193_v60, %v9192_v30 }
 0xccb   :  { %10871 = vmatpush3.bf16.msra.mxu1 %v10870_v51 }
 0xccc   :  { %10872 = vmatprep.subr.bf16.mxu1 %v11901_v16 }
 0xccf   :  { %10874 = vmatpush3.bf16.msra.mxu1 %v10873_v10 }
 0xcd0   :  { %10875 = vmatprep.subr.bf16.mxu1 %v11901_v16 }
 0xcd3   :  { %10877 = vmatpush3.bf16.msra.mxu1 %v10876_v3 }
 0xcd4   :  { %10878 = vmatprep.subr.bf16.mxu1 %v11901_v16 }
 0xcd7   :  { %10880 = vmatpush3.bf16.msra.mxu1 %v10879_v62 }
 0xcd8   :  { %10901 = vmatprep.subr.bf16.mxu1 %v11901_v16 }
 0xcf1   :  { %v3193_v9 = vpop.permute.xlu1 %3192 }
 0xcf2   :  { %v13255_v7 = vsel %vm1583_vm8, %v3204_v38, %v3193_v9 }
 0xcf3   :  { %v3223_v53 = vmul.f32 %v3222_v29, %v13255_v7 }
 0xcf5   :  { %v3195_v8 = vpop.permute.xlu1 %3194  ;;  %v3233_v32 = vadd.f32 %v3230_v56, %v3223_v53 }
 0xcf6   :  { %v13265_v25 = vsel %vm1583_vm8, %v3205_v6, %v3195_v8  ;;  %v3197_v54 = vpop.permute.xlu0 %3196 }
 0xcf7   :  { %v3224_v48 = vmul.f32 %v3222_v29, %v13265_v25  ;;  %3236 = vadd.xlane.f32.xlu1 %v3233_v32 }
 0xcf9   :  { %v3185_v13 = vpop.permute.xlu1 %3184  ;;  %v3234_v57 = vadd.f32 %v3231_v22, %v3224_v48  ;;  %v3258_v22 = vsub.f32 %v13247_v36, %v13255_v7 }
 0xcfa   :  { %v3206_v24 = vsel %vm1579_vm7, %v3203_v4, %v3185_v13  ;;  %v3259_v13 = vsub.f32 %v13259_v28, %v13265_v25 }
 0xcfb   :  { %v13275_v1 = vsel %vm1583_vm8, %v3206_v24, %v3197_v54  ;;  %3238 = vadd.xlane.f32.xlu0 %v3234_v57 }
 0xcfc   :  { %v3225_v58 = vmul.f32 %v3222_v29, %v13275_v1 }
 0xcfe   :  { %v3235_v39 = vadd.f32 %v3232_v35, %v3225_v58  ;;  %v3260_v58 = vsub.f32 %v13270_v44, %v13275_v1 }
 0xd00   :  { %v3240_v37 = vsel %vm581_vm6, %v3235_v39, 0.0 }
 0xd01   :  { %3241 = vadd.xlane.f32.xlu0 %v3240_v37  ;;  %v9197_v37 = vld [vmem:[%s15585_s30 + $0x100] sm:$0xff] }
 0xd84   :  { %v3237_v46 = vpop.xlane.xlu1 %3236 }
 0xd85   :  { %v3243_v45 = vsub.f32 0.0, %v3237_v46 }
 0xd87   :  { %v3246_v29 = vmul.f32 1.442695, %v3243_v45 }
 0xd88   :  { %v3239_v47 = vpop.xlane.xlu0 %3238 }
 0xd89   :  { %11425 = vpow2.f32 %v3246_v29  ;;  %v3244_v20 = vsub.f32 0.0, %v3239_v47 }
 0xd8b   :  { %v3248_v38 = vmul.f32 1.442695, %v3244_v20 }
 0xd8d   :  { %11427 = vpow2.f32 %v3248_v38 }
 0xd8e   :  { %v3242_v9 = vpop.xlane.xlu0 %3241 }
 0xd8f   :  { %v3245_v5 = vsub.f32 0.0, %v3242_v9 }
 0xd91   :  { %v3250_v56 = vmul.f32 1.442695, %v3245_v5 }
 0xd93   :  { %v11426_v53 = vpop.eup %11425  ;;  %11429 = vpow2.f32 %v3250_v56 }
 0xd94   :  { %v3252_v31 = vadd.f32 1.0, %v11426_v53 }
 0xd96   :  { %11431 = vrcp.f32 %v3252_v31 }
 0xd97   :  { %v11428_v63 = vpop.eup %11427 }
 0xd98   :  { %v3253_v6 = vadd.f32 1.0, %v11428_v63 }
 0xd9a   :  { %11433 = vrcp.f32 %v3253_v6 }
 0xd9d   :  { %v11430_v8 = vpop.eup %11429 }
 0xd9e   :  { %v3254_v32 = vadd.f32 1.0, %v11430_v8 }
 0xda0   :  { %v11432_v48 = vpop.eup %11431  ;;  %11435 = vrcp.f32 %v3254_v32 }
 0xda1   :  { %v3261_v4 = vmul.f32 %v11432_v48, %v3258_v22 }
 0xda3   :  { %v3264_v57 = vadd.f32 %v3261_v4, %v13255_v7  ;;  %v9198_v7 = vld [vmem:[%s15585_s30 + $0x108] sm:$0xff] }
 0xda4   :  { %v11434_v54 = vpop.eup %11433 }
 0xda5   :  { %10152 = vmatmul.mubr.f32.vlgmr.msra.gmra.mrb[66].mxu1 %v3264_v57  ;;  %v3262_v24 = vmul.f32 %v11434_v54, %v3259_v13 }
 0xda6   :  { %10154 = vmatprep.mubr.msk.f32.mxu1 %vm11902_vm1, %v11900_v0 }
 0xda7   :  { %v3265_v35 = vadd.f32 %v3262_v24, %v13265_v25  ;;  %v9202_v25 = vld [vmem:[%s15585_s30 + $0x128] sm:$0xff] }
 0xda8   :  { %v10881_v44 = vpack.c.bf16 %v9202_v25, %v9198_v7 }
 0xda9   :  { %10155 = vmatmul.mubr.f32.gmra.mrb[68].mxu1 %v3265_v35 }
 0xdaa   :  { %v11436_v36 = vpop.eup %11435  ;;  %10157 = vmatprep.mubr.msk.f32.mxu1 %vm11902_vm1, %v11900_v0  ;;  %10882 = vmatprep.subr.bf16.mxu0 %v10881_v44 }
 0xdab   :  { %v3263_v39 = vmul.f32 %v11436_v36, %v3260_v58 }
 0xdad   :  { %v3266_v28 = vadd.f32 %v3263_v39, %v13275_v1  ;;  %v9201_v1 = vld [vmem:[%s15585_s30 + $0x120] sm:$0xff] }
 0xdae   :  { %v10883_v14 = vpack.c.bf16 %v9201_v1, %v9197_v37  ;;  %v9195_v1 = vld [vmem:[#allocation10 + $0x1] ss:$0 sm:$0xff] }
 0xdaf   :  { %10158 = vmatmul.mubr.f32.gmra.mrb[70].mxu1 %v3266_v28 }
 0xdb0   :  { %10181 = vmatprep.mubr.msk.f32.mxu1 %vm11902_vm1, %v11900_v0  ;;  %10884 = vmatpush1.bf16.msra.mxu0 %v10883_v14 }
 0xdb1   :  { %10886 = vmatprep.subr.bf16.mxu0 %v10885_v26  ;;  %v9199_v26 = vld [vmem:[%s15585_s30 + $0x110] sm:$0xff] }
 0xdb4   :  { %10888 = vmatpush1.bf16.msra.mxu0 %v10887_v43  ;;  %v9208_v43 = vld [vmem:[%s15585_s30 + $0x158] sm:$0xff] }
 0xdb5   :  { %10890 = vmatprep.subr.bf16.mxu0 %v10889_v61  ;;  %v10891_v61 = vpack.c.bf16 %v9203_v49, %v9199_v26 }
 0xe78   :  { %v3358_v41 = vpop.f32.mrb[66].mxu1 }
 0xe79   :  { %v3359_v52 = vadd.f32 %v9194_v59, %v3358_v41  ;;  %v10153_v12 = vpop.f32.mrb[67].mxu1 }
 0xe7a   :  { %v9207_v12 = vld [vmem:[%s15585_s30 + $0x150] sm:$0xff] }
 0xe7b   :  { %v3372_v23 = vmax.f32 %v3359_v52, 0.0  ;;  %v10893_v52 = vpack.c.bf16 %v9212_v33, %v9208_v43 }
 0xe7c   :  { %v3363_v51 = vpop.f32.mrb[68].mxu1 }
 0xe7d   :  { %v3364_v40 = vadd.f32 %v9194_v59, %v3363_v51  ;;  %v10156_v10 = vpop.f32.mrb[69].mxu1  ;;  %v3375_v27 = vsel %vm216_vm0, %v3372_v23, 0.0  ;;  %v9211_v51 = vld [vmem:[%s15585_s30 + $0x170] sm:$0xff] }
 0xe7f   :  { %v3373_v17 = vmax.f32 %v3364_v40, 0.0 }
 0xe81   :  { %v3376_v3 = vsel %vm216_vm0, %v3373_v17, 0.0 }
 0xe82   :  { %v3377_v30 = vadd.f32 %v3376_v3, %v3375_v27  ;;  %v3368_v60 = vpop.f32.mrb[70].mxu1  ;;  %v9213_v27 = vld [vmem:[%s15587_s29 + $0x8] sm:$0xf] }
 0xe83   :  { %v3369_v62 = vadd.f32 %v9194_v59, %v3368_v60  ;;  %v10159_v46 = vpop.f32.mrb[71].mxu1  ;;  %v3459_v60 = vrot.slane %v9213_v27, %v12187_v19 }
 0xe85   :  { %v3374_v45 = vmax.f32 %v3369_v62, 0.0 }
 0xe87   :  { %v3378_v29 = vsel %vm411_vm3, %v3374_v45, 0.0 }
 0xe88   :  { %v3379_v47 = vadd.f32 %v3378_v29, %v3377_v30 }
 0xe8a   :  { %v3380_v20 = vrot.slane %v3379_v47, 4 }
 0xe8c   :  { %v3381_v38 = vadd.f32 %v3380_v20, %v3379_v47  ;;  %v3455_v47 = vrot.slane %v9213_v27, %v12195_v21 }
 0xe8e   :  { %v3382_v9 = vrot.slane %v3381_v38, 2 }
 0xe90   :  { %v3383_v5 = vadd.f32 %v3382_v9, %v3381_v38 }
 0xe92   :  { %v3384_v56 = vrot.slane %v3383_v5, 1 }
 0xe94   :  { %v3385_v53 = vadd.f32 %v3384_v56, %v3383_v5 }
 0xe96   :  { %v3386_v31 = vmul.f32 0.05, %v3385_v53 }
 0xe98   :  { %v3387_v63 = vsub.f32 %v3372_v23, %v3386_v31  ;;  %v3388_v6 = vsub.f32 %v3373_v17, %v3386_v31  ;;  %v3389_v8 = vsub.f32 %v3374_v45, %v3386_v31  ;;  %v10895_v23 = vpack.c.bf16 %v9211_v51, %v9207_v12 }
 0xe9a   :  { %v3390_v32 = vmul.f32 %v3387_v63, %v3387_v63  ;;  %v3391_v22 = vmul.f32 %v3388_v6, %v3388_v6  ;;  %v3392_v48 = vmul.f32 %v3389_v8, %v3389_v8 }
 0xe9c   :  { %v3393_v4 = vsel %vm216_vm0, %v3390_v32, 0.0  ;;  %v3394_v13 = vsel %vm216_vm0, %v3391_v22, 0.0  ;;  %v3396_v54 = vsel %vm411_vm3, %v3392_v48, 0.0 }
 0xe9d   :  { %v3395_v57 = vadd.f32 %v3394_v13, %v3393_v4 }
 0xe9f   :  { %v3397_v24 = vadd.f32 %v3396_v54, %v3395_v57 }
 0xea1   :  { %v3398_v35 = vrot.slane %v3397_v24, 4 }
 0xea3   :  { %v3399_v58 = vadd.f32 %v3398_v35, %v3397_v24 }
 0xea5   :  { %v3400_v36 = vrot.slane %v3399_v58, 2 }
 0xea7   :  { %v3401_v39 = vadd.f32 %v3400_v36, %v3399_v58 }
 0xea9   :  { %v3402_v28 = vrot.slane %v3401_v39, 1 }
 0xeab   :  { %v3403_v7 = vadd.f32 %v3402_v28, %v3401_v39 }
 0xead   :  { %v3404_v25 = vmul.f32 0.05, %v3403_v7  ;;  %v13467_v7 = vld [vmem:[#allocation5 + $0x2] ss:$0 sm:$0xff] }
 0xeaf   :  { %v3405_v44 = vadd.f32 1e-05, %v3404_v25 }
 0xeb1   :  { %11437 = vrsqrt.f32 %v3405_v44 }
 0xebb   :  { %v11438_v37 = vpop.eup %11437 }
 0xebc   :  { %v3407_v14 = vmul.f32 %v11438_v37, %v3387_v63  ;;  %v3409_v2 = vmul.f32 %v11438_v37, %v3389_v8  ;;  %v3408_v42 = vmul.f32 %v11438_v37, %v3388_v6  ;;  %v3463_v6 = vrot.slane %v9213_v27, %v12379_v11 }
 0xebe   :  { %v3418_v15 = vmul.f32 %v9195_v1, %v3407_v14  ;;  %v3419_v41 = vmul.f32 %v9195_v1, %v3408_v42  ;;  %v3420_v40 = vmul.f32 %v9195_v1, %v3409_v2 }
 0xec0   :  { %v3429_v59 = vadd.f32 %v9196_v50, %v3418_v15  ;;  %v3430_v10 = vadd.f32 %v9196_v50, %v3419_v41  ;;  %v3431_v17 = vadd.f32 %v9196_v50, %v3420_v40 }
 0xec2   :  { %9214 = vmatmul.mubr.msk.f32.vlgmr.msra.gmra.mrb[60].mxu0 %vm216_vm0, %v3429_v59 }
 0xec3   :  { %3551 = vmatprep.mubr.f32.mxu0 %v11900_v0  ;;  %10892 = vmatpush1.bf16.msra.mxu0 %v10891_v61 }
 0xec4   :  { %10894 = vmatprep.subr.bf16.mxu0 %v10893_v52 }
 0xec6   :  { %9215 = vmatmul.mubr.msk.f32.gmra.mrb[62].mxu0 %vm216_vm0, %v3430_v10 }
 0xec7   :  { %3557 = vmatprep.mubr.f32.mxu0 %v11900_v0  ;;  %10896 = vmatpush1.bf16.msra.mxu0 %v10895_v23 }
 0xec8   :  { %10897 = vmatprep.subr.bf16.mxu0 %v11901_v16 }
 0xeca   :  { %9216 = vmatmul.mubr.msk.f32.gmra.mrb[64].mxu0 %vm216_vm0, %v3431_v17 }
 0xecb   :  { %3628 = vmatprep.mubr.f32.mxu0 %v11900_v0 }
 0xece   :  { %9217 = vmatmul.mubr.msk.f32.vlgmr.msra.gmra.mrb[66].mxu0 %vm216_vm0, %v3429_v59 }
 0xecf   :  { %3634 = vmatprep.mubr.f32.mxu0 %v11900_v0 }
 0xed2   :  { %9218 = vmatmul.mubr.msk.f32.gmra.mrb[68].mxu0 %vm216_vm0, %v3430_v10 }
 0xed3   :  { %3640 = vmatprep.mubr.f32.mxu0 %v11900_v0 }
 0xed6   :  { %9219 = vmatmul.mubr.msk.f32.gmra.mrb[70].mxu0 %vm216_vm0, %v3431_v17 }
 0xed7   :  { %10166 = vmatprep.mubr.msk.f32.mxu0 %vm11902_vm1, %v11900_v0 }
 0xf95   :  { %v3547_v3 = vpop.f32.mrb[60].mxu0 }
 0xf96   :  { %v3549_v30 = vpop.f32.mrb[61].mxu0  ;;  %v3548_v31 = vadd.f32 %v3547_v3, %v3455_v47 }
 0xf97   :  { %v3550_v45 = vadd.f32 %v3549_v30, %v3459_v60 }
 0xf98   :  { %v3647_v22 = vmul.f32 0.17677669, %v3548_v31 }
 0xf99   :  { %v3553_v62 = vpop.f32.mrb[62].mxu0 }
 0xf9a   :  { %v3555_v46 = vpop.f32.mrb[63].mxu0  ;;  %v3554_v56 = vadd.f32 %v3553_v62, %v3455_v47  ;;  %v3658_v44 = vmul.f32 %v13467_v7, %v3647_v22 }
 0xf9b   :  { %v3556_v29 = vadd.f32 %v3555_v46, %v3459_v60 }
 0xf9c   :  { %v3648_v32 = vmul.f32 0.17677669, %v3554_v56  ;;  %v3661_v1 = vsel %vm216_vm0, %v3658_v44, 0.0 }
 0xf9d   :  { %v10898_v20 = vpack.c.bf16 %v3556_v29, %v3550_v45  ;;  %v3559_v38 = vpop.f32.mrb[64].mxu0  ;;  %v11223_v9 = vpack.i.bf16 %v3556_v29, %v3550_v45 }
 0xf9e   :  { %v3561_v5 = vpop.f32.mrb[65].mxu0  ;;  %v3560_v48 = vadd.f32 %v3559_v38, %v3455_v47  ;;  %v3659_v25 = vmul.f32 %v13467_v7, %v3648_v32 }
 0xf9f   :  { %v3562_v53 = vadd.f32 %v3561_v5, %v3459_v60  ;;  %11224 = vrot.lane.b32.xlu1 %v11223_v9, %s11903_s3  ;;  %10900 = vmatpush3.bf16.xpose.msk.msra.mxu0 %vm12203_vm2, %v10898_v20 }
 0xfa0   :  { %10164 = vmatprep.subr.mxu0 %v11900_v0  ;;  %v3649_v58 = vmul.f32 0.17677669, %v3560_v48  ;;  %v3664_v2 = vsel %vm216_vm0, %v3659_v25, 0.0 }
 0xfa1   :  { %v3630_v63 = vpop.f32.mrb[66].mxu0  ;;  %3951 = vrot.lane.b32.xlu0 %v3562_v53, %s11903_s3 }
 0xfa2   :  { %v13430_v8 = vpop.f32.mrb[67].mxu0  ;;  %v3631_v13 = vadd.f32 %v3630_v63, %v3463_v6  ;;  %v3660_v37 = vmul.f32 %v13467_v7, %v3649_v58 }
 0xfa3   :  { %11229 = vrot.lane.b32.xlu1 %v11223_v9, %s11896_s6 }
 0xfa4   :  { %v3667_v14 = vsel %vm411_vm3, %v3660_v37, 0.0 }
 0xfa5   :  { %v3636_v4 = vpop.f32.mrb[68].mxu0  ;;  %3943 = vrot.lane.b32.xlu0 %v3648_v32, %s11903_s3 }
 0xfa6   :  { %v3637_v57 = vadd.f32 %v3636_v4, %v3463_v6  ;;  %v13434_v54 = vpop.f32.mrb[69].mxu0 }
 0xfa7   :  { %10165 = vmatpush3.xpose.msk.msra.mxu0 %vm216_vm0, %v3562_v53  ;;  %3941 = vrot.lane.b32.xlu1 %v3647_v22, %s11903_s3 }
 0xfa8   :  { %v10902_v24 = vpack.c.bf16 %v3637_v57, %v3631_v13  ;;  %10904 = vmatprep.subr.bf16.mxu0 %v11901_v16  ;;  %v13439_v35 = vpack.i.bf16 %v3637_v57, %v3631_v13 }
 0xfa9   :  { %v3642_v36 = vpop.f32.mrb[70].mxu0  ;;  %4243 = vrot.lane.b32.xlu0 %v3562_v53, %s11896_s6 }
 0xfaa   :  { %v13442_v39 = vpop.f32.mrb[71].mxu0  ;;  %10167 = vmatmul.mubr.msk.f32.vlgmr.msra.gmra.mrb[72].mxu0 %vm216_vm0, %v3647_v22  ;;  %10903 = vmatpush3.bf16.msra.mxu1 %v10902_v24  ;;  %v13447_v28 = vadd.f32 %v3642_v36, %v3463_v6  ;;  %v13539_v36 = vld [vmem:[%s15590_s27] sm:$0xff] }
 0xfab   :  { %3945 = vrot.lane.b32.xlu1 %v3649_v58, %s11903_s3  ;;  %10179 = vmatprep.subr.mxu1 %v11900_v0 }
 0xfac   :  { %10169 = vmatprep.mubr.msk.f32.mxu0 %vm11902_vm1, %v11900_v0 }
 0xfad   :  { %4233 = vrot.lane.b32.xlu0 %v3647_v22, %s11896_s6 }
 0xfae   :  { %10170 = vmatmul.mubr.msk.f32.gmra.mrb[74].mxu0 %vm216_vm0, %v3648_v32  ;;  %10180 = vmatpush3.msk.msra.mxu1 %vm581_vm6, %v13447_v28 }
 0xfaf   :  { %11234 = vrot.lane.b32.xlu1 %v11223_v9, %s11904_s28  ;;  %10172 = vmatprep.mubr.msk.f32.mxu0 %vm11902_vm1, %v11900_v0 }
 0xfb0   :  { %10908 = vmatprep.subr.bf16.mxu1 %v11901_v16 }
 0xfb1   :  { %4237 = vrot.lane.b32.xlu0 %v3649_v58, %s11896_s6 }
 0xfb2   :  { %10173 = vmatmul.mubr.msk.f32.gmra.mrb[76].mxu0 %vm216_vm0, %v3649_v58 }
 0xfb3   :  { %4235 = vrot.lane.b32.xlu1 %v3648_v32, %s11896_s6  ;;  %10196 = vmatprep.mubr.msk.f32.mxu0 %vm11902_vm1, %v11900_v0 }
 0xfb5   :  { %4523 = vrot.lane.b32.xlu0 %v3647_v22, %s11904_s28 }
 0xfb7   :  { %4533 = vrot.lane.b32.xlu1 %v3562_v53, %s11904_s28 }
 0xfb9   :  { %4527 = vrot.lane.b32.xlu0 %v3649_v58, %s11904_s28 }
 0xfbb   :  { %4525 = vrot.lane.b32.xlu1 %v3648_v32, %s11904_s28 }
 0xfbd   :  { %3922 = vrot.lane.b32.xlu0 %v3659_v25, %s11903_s3 }
 0xfbf   :  { %3920 = vrot.lane.b32.xlu1 %v3658_v44, %s11903_s3 }
 0xfc1   :  { %4212 = vrot.lane.b32.xlu0 %v3658_v44, %s11896_s6 }
 0xfc3   :  { %3924 = vrot.lane.b32.xlu1 %v3660_v37, %s11903_s3 }
 0xfc5   :  { %4216 = vrot.lane.b32.xlu0 %v3660_v37, %s11896_s6 }
 0xfc7   :  { %4214 = vrot.lane.b32.xlu1 %v3659_v25, %s11896_s6 }
 0xfc9   :  { %4504 = vrot.lane.b32.xlu0 %v3659_v25, %s11904_s28 }
 0xfcb   :  { %4502 = vrot.lane.b32.xlu1 %v3658_v44, %s11904_s28 }
 0xfcf   :  { %4506 = vrot.lane.b32.xlu1 %v3660_v37, %s11904_s28 }
 0xfe8   :  { %3662 = vadd.xlane.f32.xlu0 %v3661_v1 }
 0xfec   :  { %3668 = vadd.xlane.f32.xlu0 %v3667_v14  ;;  %v13542_v14 = vld [vmem:[#allocation2] sm:$0xff] }
 0xff3   :  { %3665 = vadd.xlane.f32.xlu1 %v3664_v2 }
0x1011   :  { %v11225_v42 = vpop.permute.xlu1 %11224 }
0x1012   :  { %v11227_v26 = vunpack.i.h.bf16 %v11225_v42  ;;  %v11226_v49 = vunpack.i.l.bf16 %v11225_v42 }
0x1013   :  { %v3952_v50 = vpop.permute.xlu0 %3951 }
0x1014   :  { %v10905_v43 = vpack.c.bf16 %v11227_v26, %v11226_v49  ;;  %v13550_v49 = vld [vmem:[%s15590_s27 + $0x8] sm:$0xff] }
0x1015   :  { %v11230_v33 = vpop.permute.xlu1 %11229 }
0x1016   :  { %10907 = vmatpush3.bf16.xpose.msk.msra.mxu0 %vm12203_vm2, %v10905_v43  ;;  %v11232_v41 = vunpack.i.h.bf16 %v11230_v33  ;;  %v11231_v52 = vunpack.i.l.bf16 %v11230_v33 }
0x1017   :  { %v3944_v15 = vpop.permute.xlu0 %3943  ;;  %10194 = vmatprep.subr.mxu0 %v11900_v0 }
0x1018   :  { %v10912_v23 = vpack.c.bf16 %v11232_v41, %v11231_v52  ;;  %v13561_v52 = vld [vmem:[#allocation2 + $0x8] sm:$0xff] }
0x1019   :  { %v3942_v61 = vpop.permute.xlu1 %3941 }
0x101b   :  { %v4244_v59 = vpop.permute.xlu0 %4243 }
0x101d   :  { %v3946_v12 = vpop.permute.xlu1 %3945 }
0x101e   :  { %10195 = vmatpush3.xpose.msk.msra.mxu0 %vm216_vm0, %v3952_v50 }
0x101f   :  { %v4234_v51 = vpop.permute.xlu0 %4233  ;;  %10911 = vmatprep.subr.bf16.mxu0 %v11901_v16 }
0x1021   :  { %v11235_v40 = vpop.permute.xlu1 %11234  ;;  %10197 = vmatmul.mubr.msk.f32.vlgmr.msra.gmra.mrb[78].mxu0 %vm216_vm0, %v3942_v61 }
0x1022   :  { %10914 = vmatpush3.bf16.xpose.msk.msra.mxu0 %vm12203_vm2, %v10912_v23  ;;  %10199 = vmatprep.mubr.msk.f32.mxu0 %vm11902_vm1, %v11900_v0  ;;  %v11237_v3 = vunpack.i.h.bf16 %v11235_v40  ;;  %v11236_v30 = vunpack.i.l.bf16 %v11235_v40 }
0x1023   :  { %v4238_v10 = vpop.permute.xlu0 %4237  ;;  %10224 = vmatprep.subr.mxu0 %v11900_v0 }
0x1024   :  { %v10919_v46 = vpack.c.bf16 %v11237_v3, %v11236_v30 }
0x1025   :  { %v4236_v17 = vpop.permute.xlu1 %4235  ;;  %10200 = vmatmul.mubr.msk.f32.gmra.mrb[80].mxu0 %vm216_vm0, %v3944_v15 }
0x1026   :  { %10202 = vmatprep.mubr.msk.f32.mxu0 %vm11902_vm1, %v11900_v0 }
0x1027   :  { %v4524_v27 = vpop.permute.xlu0 %4523 }
0x1029   :  { %v4534_v60 = vpop.permute.xlu1 %4533  ;;  %10203 = vmatmul.mubr.msk.f32.gmra.mrb[82].mxu0 %vm216_vm0, %v3946_v12 }
0x102a   :  { %10225 = vmatpush3.xpose.msk.msra.mxu0 %vm216_vm0, %v4244_v59  ;;  %10226 = vmatprep.mubr.msk.f32.mxu0 %vm11902_vm1, %v11900_v0  ;;  %v13558_v59 = vld [vmem:[%s15590_s27 + $0x10] sm:$0xf] }
0x102b   :  { %v4528_v62 = vpop.permute.xlu0 %4527  ;;  %10918 = vmatprep.subr.bf16.mxu0 %v11901_v16 }
0x102d   :  { %v4526_v45 = vpop.permute.xlu1 %4525  ;;  %10227 = vmatmul.mubr.msk.f32.vlgmr.msra.gmra.mrb[84].mxu0 %vm216_vm0, %v4234_v51 }
0x102e   :  { %10921 = vmatpush3.bf16.xpose.msk.msra.mxu0 %vm12203_vm2, %v10919_v46  ;;  %10229 = vmatprep.mubr.msk.f32.mxu0 %vm11902_vm1, %v11900_v0 }
0x102f   :  { %v3923_v29 = vpop.permute.xlu0 %3922  ;;  %10254 = vmatprep.subr.mxu0 %v11900_v0 }
0x1030   :  { %v3932_v47 = vsel %vm216_vm0, %v3923_v29, 0.0 }
0x1031   :  { %10230 = vmatmul.mubr.msk.f32.gmra.mrb[86].mxu0 %vm216_vm0, %v4236_v17  ;;  %3933 = vadd.xlane.f32.xlu1 %v3932_v47  ;;  %v3921_v20 = vpop.permute.xlu1 %3920  ;;  %v13568_v17 = vld [vmem:[#allocation2 + $0x10] sm:$0xf] }
0x1032   :  { %v3929_v38 = vsel %vm216_vm0, %v3921_v20, 0.0  ;;  %10232 = vmatprep.mubr.msk.f32.mxu0 %vm11902_vm1, %v11900_v0 }
0x1033   :  { %v4213_v9 = vpop.permute.xlu0 %4212  ;;  %3930 = vadd.xlane.f32.xlu0 %v3929_v38 }
0x1034   :  { %v4221_v5 = vsel %vm216_vm0, %v4213_v9, 0.0 }
0x1035   :  { %10233 = vmatmul.mubr.msk.f32.gmra.mrb[88].mxu0 %vm216_vm0, %v4238_v10  ;;  %4222 = vadd.xlane.f32.xlu1 %v4221_v5  ;;  %v3925_v56 = vpop.permute.xlu1 %3924 }
0x1036   :  { %10255 = vmatpush3.xpose.msk.msra.mxu0 %vm216_vm0, %v4534_v60  ;;  %v3935_v53 = vsel %vm411_vm3, %v3925_v56, 0.0  ;;  %10256 = vmatprep.mubr.msk.f32.mxu0 %vm11902_vm1, %v11900_v0 }
0x1037   :  { %v4217_v31 = vpop.permute.xlu0 %4216  ;;  %3936 = vadd.xlane.f32.xlu0 %v3935_v53  ;;  %10925 = vmatprep.subr.bf16.mxu0 %v11901_v16 }
0x1038   :  { %v4227_v63 = vsel %vm411_vm3, %v4217_v31, 0.0 }
0x1039   :  { %10257 = vmatmul.mubr.msk.f32.vlgmr.msra.gmra.mrb[90].mxu0 %vm216_vm0, %v4524_v27  ;;  %4228 = vadd.xlane.f32.xlu1 %v4227_v63  ;;  %v4215_v6 = vpop.permute.xlu1 %4214 }
0x103a   :  { %v4224_v32 = vsel %vm216_vm0, %v4215_v6, 0.0  ;;  %10259 = vmatprep.mubr.msk.f32.mxu0 %vm11902_vm1, %v11900_v0 }
0x103b   :  { %v4505_v22 = vpop.permute.xlu0 %4504  ;;  %4225 = vadd.xlane.f32.xlu0 %v4224_v32 }
0x103c   :  { %v4514_v48 = vsel %vm216_vm0, %v4505_v22, 0.0 }
0x103d   :  { %10260 = vmatmul.mubr.msk.f32.gmra.mrb[92].mxu0 %vm216_vm0, %v4526_v45  ;;  %4515 = vadd.xlane.f32.xlu1 %v4514_v48  ;;  %v4503_v4 = vpop.permute.xlu1 %4502 }
0x103e   :  { %v4511_v13 = vsel %vm216_vm0, %v4503_v4, 0.0  ;;  %10262 = vmatprep.mubr.msk.f32.mxu0 %vm11902_vm1, %v11900_v0 }
0x103f   :  { %4512 = vadd.xlane.f32.xlu0 %v4511_v13 }
0x1041   :  { %10263 = vmatmul.mubr.msk.f32.gmra.mrb[94].mxu0 %vm216_vm0, %v4528_v62  ;;  %v4507_v57 = vpop.permute.xlu1 %4506 }
0x1042   :  { %v4517_v24 = vsel %vm411_vm3, %v4507_v57, 0.0  ;;  %10312 = vmatprep.mubr.msk.f32.mxu0 %vm11902_vm1, %v11900_v0 }
0x1043   :  { %4518 = vadd.xlane.f32.xlu0 %v4517_v24 }
0x1075   :  { %v3663_v58 = vpop.xlane.xlu0 %3662 }
0x1076   :  { %v3670_v25 = vmul.f32 %v13539_v36, %v3663_v58 }
0x1079   :  { %v3669_v26 = vpop.xlane.xlu0 %3668 }
0x107a   :  { %v3672_v41 = vmul.f32 %v13558_v59, %v3669_v26 }
0x107d   :  { %v3757_v44 = vpop.f32.mrb[72].mxu0 }
0x107e   :  { %v3758_v37 = vadd.f32 %v3757_v44, %v3670_v25  ;;  %v10168_v1 = vpop.f32.mrb[73].mxu0 }
0x1080   :  { %v13545_v2 = vadd.f32 %v13542_v14, %v3758_v37  ;;  %v3666_v42 = vpop.xlane.xlu1 %3665 }
0x1081   :  { %v3671_v50 = vmul.f32 %v13550_v49, %v3666_v42  ;;  %v3762_v43 = vpop.f32.mrb[74].mxu0 }
0x1082   :  { %v10171_v33 = vpop.f32.mrb[75].mxu0  ;;  %v3774_v15 = vsel %vm519_vm4, %v13545_v2, -inf }
0x1083   :  { %v3763_v61 = vadd.f32 %v3762_v43, %v3671_v50  ;;  %3775 = vmax.xlane.f32.xlu1 %v3774_v15 }
0x1085   :  { %v13564_v12 = vadd.f32 %v13561_v52, %v3763_v61  ;;  %v3767_v51 = vpop.f32.mrb[76].mxu0 }
0x1086   :  { %v3768_v23 = vadd.f32 %v3767_v51, %v3672_v41  ;;  %v10174_v40 = vpop.f32.mrb[77].mxu0 }
0x1087   :  { %v3777_v10 = vsel %vm519_vm4, %v13564_v12, -inf }
0x1088   :  { %v13571_v27 = vadd.f32 %v13568_v17, %v3768_v23  ;;  %3778 = vmax.xlane.f32.xlu0 %v3777_v10 }
0x108a   :  { %v3780_v3 = vsel %vm526_vm5, %v13571_v27, -inf }
0x108b   :  { %3781 = vmax.xlane.f32.xlu1 %v3780_v3 }
0x10be   :  { %v3934_v62 = vpop.xlane.xlu1 %3933 }
0x10bf   :  { %v3939_v47 = vmul.f32 %v13550_v49, %v3934_v62 }
0x10c0   :  { %v3931_v30 = vpop.xlane.xlu0 %3930 }
0x10c1   :  { %v3938_v60 = vmul.f32 %v13539_v36, %v3931_v30 }
0x10c2   :  { %v4223_v6 = vpop.xlane.xlu1 %4222 }
0x10c3   :  { %v4230_v13 = vmul.f32 %v13539_v36, %v4223_v6 }
0x10c4   :  { %v3937_v38 = vpop.xlane.xlu0 %3936 }
0x10c5   :  { %v3940_v31 = vmul.f32 %v13558_v59, %v3937_v38 }
0x10c6   :  { %v4229_v26 = vpop.xlane.xlu1 %4228 }
0x10c7   :  { %v4232_v61 = vmul.f32 %v13558_v59, %v4229_v26 }
0x10c8   :  { %v4226_v24 = vpop.xlane.xlu0 %4225 }
0x10c9   :  { %v4231_v1 = vmul.f32 %v13550_v49, %v4226_v24 }
0x10ca   :  { %v4516_v62 = vpop.xlane.xlu1 %4515 }
0x10cb   :  { %v4521_v38 = vmul.f32 %v13550_v49, %v4516_v62 }
0x10cc   :  { %v4513_v51 = vpop.xlane.xlu0 %4512 }
0x10cd   :  { %v4520_v30 = vmul.f32 %v13539_v36, %v4513_v51 }
0x10f4   :  { %v4031_v46 = vpop.f32.mrb[78].mxu0 }
0x10f5   :  { %v4032_v45 = vadd.f32 %v4031_v46, %v3938_v60  ;;  %v10198_v29 = vpop.f32.mrb[79].mxu0 }
0x10f7   :  { %v13578_v20 = vadd.f32 %v13542_v14, %v4032_v45 }
0x10f8   :  { %v4036_v9 = vpop.f32.mrb[80].mxu0 }
0x10f9   :  { %v4037_v5 = vadd.f32 %v4036_v9, %v3939_v47  ;;  %v10201_v56 = vpop.f32.mrb[81].mxu0  ;;  %v4048_v53 = vsel %vm519_vm4, %v13578_v20, -inf }
0x10fa   :  { %4049 = vmax.xlane.f32.xlu0 %v4048_v53 }
0x10fb   :  { %v13584_v63 = vadd.f32 %v13561_v52, %v4037_v5 }
0x10fc   :  { %v4041_v32 = vpop.f32.mrb[82].mxu0 }
0x10fd   :  { %v4042_v22 = vadd.f32 %v4041_v32, %v3940_v31  ;;  %v10204_v48 = vpop.f32.mrb[83].mxu0  ;;  %v4051_v4 = vsel %vm519_vm4, %v13584_v63, -inf }
0x10fe   :  { %4052 = vmax.xlane.f32.xlu1 %v4051_v4 }
0x10ff   :  { %v13590_v57 = vadd.f32 %v13568_v17, %v4042_v22 }
0x1100   :  { %v4323_v58 = vpop.f32.mrb[84].mxu0 }
0x1101   :  { %v4324_v25 = vadd.f32 %v4323_v58, %v4230_v13  ;;  %v10228_v44 = vpop.f32.mrb[85].mxu0  ;;  %v4054_v37 = vsel %vm526_vm5, %v13590_v57, -inf  ;;  %v4519_v58 = vpop.xlane.xlu0 %4518 }
0x1102   :  { %4055 = vmax.xlane.f32.xlu0 %v4054_v37  ;;  %v4522_v37 = vmul.f32 %v13558_v59, %v4519_v58 }
0x1103   :  { %v13596_v42 = vadd.f32 %v13542_v14, %v4324_v25 }
0x1104   :  { %v4328_v50 = vpop.f32.mrb[86].mxu0 }
0x1105   :  { %v4329_v43 = vadd.f32 %v4328_v50, %v4231_v1  ;;  %v10231_v33 = vpop.f32.mrb[87].mxu0  ;;  %v4340_v15 = vsel %vm519_vm4, %v13596_v42, -inf }
0x1106   :  { %4341 = vmax.xlane.f32.xlu1 %v4340_v15 }
0x1107   :  { %v13602_v41 = vadd.f32 %v13561_v52, %v4329_v43 }
0x1108   :  { %v4333_v23 = vpop.f32.mrb[88].mxu0 }
0x1109   :  { %v4334_v40 = vadd.f32 %v4333_v23, %v4232_v61  ;;  %v10234_v10 = vpop.f32.mrb[89].mxu0  ;;  %v4343_v3 = vsel %vm519_vm4, %v13602_v41, -inf }
0x110a   :  { %4344 = vmax.xlane.f32.xlu0 %v4343_v3 }
0x110b   :  { %v13608_v60 = vadd.f32 %v13568_v17, %v4334_v40 }
0x110c   :  { %v4613_v46 = vpop.f32.mrb[90].mxu0 }
0x110d   :  { %v4614_v45 = vadd.f32 %v4613_v46, %v4520_v30  ;;  %v10258_v29 = vpop.f32.mrb[91].mxu0  ;;  %v4346_v47 = vsel %vm526_vm5, %v13608_v60, -inf }
0x110e   :  { %4347 = vmax.xlane.f32.xlu1 %v4346_v47 }
0x110f   :  { %v13614_v9 = vadd.f32 %v13542_v14, %v4614_v45 }
0x1110   :  { %v4618_v5 = vpop.f32.mrb[92].mxu0  ;;  %v3776_v14 = vpop.xlane.xlu1 %3775 }
0x1111   :  { %v4619_v56 = vadd.f32 %v4618_v5, %v4521_v38  ;;  %v10261_v53 = vpop.f32.mrb[93].mxu0  ;;  %v4630_v31 = vsel %vm519_vm4, %v13614_v9, -inf  ;;  %v3783_v4 = vsub.f32 %v13545_v2, %v3776_v14 }
0x1112   :  { %4631 = vmax.xlane.f32.xlu0 %v4630_v31 }
0x1113   :  { %v13619_v6 = vadd.f32 %v13561_v52, %v4619_v56  ;;  %v3786_v24 = vmax.f32 %v3783_v4, -60.0 }
0x1114   :  { %v4623_v32 = vpop.f32.mrb[94].mxu0 }
0x1115   :  { %v10264_v22 = vpop.f32.mrb[95].mxu0  ;;  %v4633_v48 = vsel %vm519_vm4, %v13619_v6, -inf  ;;  %v3789_v25 = vmul.f32 1.442695, %v3786_v24  ;;  %v4624_v26 = vadd.f32 %v4623_v32, %v4522_v37 }
0x1116   :  { %4634 = vmax.xlane.f32.xlu1 %v4633_v48 }
0x1117   :  { %11439 = vpow2.f32 %v3789_v25  ;;  %v13631_v50 = vadd.f32 %v13568_v17, %v4624_v26  ;;  %v3779_v17 = vpop.xlane.xlu0 %3778 }
0x1118   :  { %v3782_v13 = vpop.xlane.xlu1 %3781  ;;  %v3784_v61 = vsub.f32 %v13564_v12, %v3779_v17 }
0x1119   :  { %v3785_v52 = vsub.f32 %v13571_v27, %v3782_v13  ;;  %v4636_v43 = vsel %vm526_vm5, %v13631_v50, -inf }
0x111a   :  { %v3787_v51 = vmax.f32 %v3784_v61, -60.0 }
0x111b   :  { %v3788_v44 = vmax.f32 %v3785_v52, -60.0 }
0x111c   :  { %v3791_v23 = vmul.f32 1.442695, %v3787_v51 }
0x111d   :  { %v3793_v1 = vmul.f32 1.442695, %v3788_v44 }
0x111f   :  { %11441 = vpow2.f32 %v3793_v1 }
0x1120   :  { %11443 = vpow2.f32 %v3791_v23 }
0x1121   :  { %v13635_v2 = vpop.eup %11439 }
0x1122   :  { %v3795_v27 = vsel %vm519_vm4, %v13635_v2, 0.0 }
0x1127   :  { %11239 = vrot.lane.b32.xlu1 %v13439_v35, %s11903_s3 }
0x1128   :  { %4105 = vrot.lane.b32.xlu0 %v13447_v28, %s11903_s3 }
0x1129   :  { %v13639_v33 = vpop.eup %11441 }
0x112a   :  { %v3801_v15 = vsel %vm526_vm5, %v13639_v33, 0.0  ;;  %v13646_v40 = vpop.eup %11443 }
0x112b   :  { %v3798_v10 = vsel %vm519_vm4, %v13646_v40, 0.0 }
0x1147   :  { %4637 = vmax.xlane.f32.xlu0 %v4636_v43 }
0x114b   :  { %3796 = vadd.xlane.f32.xlu1 %v3795_v27 }
0x114f   :  { %3802 = vadd.xlane.f32.xlu1 %v3801_v15 }
0x115d   :  { %11244 = vrot.lane.b32.xlu0 %v13439_v35, %s11896_s6 }
0x117c   :  { %3799 = vadd.xlane.f32.xlu0 %v3798_v10 }
0x1187   :  { %v4050_v3 = vpop.xlane.xlu0 %4049 }
0x1188   :  { %v4057_v30 = vsub.f32 %v13578_v20, %v4050_v3 }
0x118a   :  { %v4060_v62 = vmax.f32 %v4057_v30, -60.0 }
0x118b   :  { %v4053_v46 = vpop.xlane.xlu1 %4052 }
0x118c   :  { %v4063_v45 = vmul.f32 1.442695, %v4060_v62  ;;  %v4058_v29 = vsub.f32 %v13584_v63, %v4053_v46 }
0x118e   :  { %11445 = vpow2.f32 %v4063_v45  ;;  %v4061_v47 = vmax.f32 %v4058_v29, -60.0 }
0x118f   :  { %v4056_v12 = vpop.xlane.xlu0 %4055 }
0x1190   :  { %v4065_v38 = vmul.f32 1.442695, %v4061_v47  ;;  %v4059_v5 = vsub.f32 %v13590_v57, %v4056_v12 }
0x1192   :  { %11447 = vpow2.f32 %v4065_v38  ;;  %v4062_v56 = vmax.f32 %v4059_v5, -60.0 }
0x1193   :  { %v4342_v31 = vpop.xlane.xlu1 %4341 }
0x1194   :  { %v4067_v53 = vmul.f32 1.442695, %v4062_v56  ;;  %v4349_v61 = vsub.f32 %v13596_v42, %v4342_v31 }
0x1196   :  { %11449 = vpow2.f32 %v4067_v53  ;;  %v4352_v23 = vmax.f32 %v4349_v61, -60.0 }
0x1197   :  { %v4345_v32 = vpop.xlane.xlu0 %4344 }
0x1198   :  { %v13653_v22 = vpop.eup %11445  ;;  %v4350_v20 = vsub.f32 %v13602_v41, %v4345_v32  ;;  %v4355_v3 = vmul.f32 1.442695, %v4352_v23 }
0x1199   :  { %v4069_v48 = vsel %vm519_vm4, %v13653_v22, 0.0 }
0x119a   :  { %v4353_v63 = vmax.f32 %v4350_v20, -60.0  ;;  %4070 = vadd.xlane.f32.xlu0 %v4069_v48 }
0x119b   :  { %v4348_v14 = vpop.xlane.xlu1 %4347 }
0x119c   :  { %v13658_v4 = vpop.eup %11447  ;;  %v4357_v13 = vmul.f32 1.442695, %v4353_v63  ;;  %v4351_v57 = vsub.f32 %v13608_v60, %v4348_v14 }
0x119d   :  { %v4072_v24 = vsel %vm519_vm4, %v13658_v4, 0.0 }
0x119e   :  { %11451 = vpow2.f32 %v4357_v13  ;;  %v4354_v52 = vmax.f32 %v4351_v57, -60.0  ;;  %4073 = vadd.xlane.f32.xlu1 %v4072_v24 }
0x119f   :  { %v4632_v58 = vpop.xlane.xlu0 %4631 }
0x11a0   :  { %v13663_v25 = vpop.eup %11449  ;;  %v4359_v41 = vmul.f32 1.442695, %v4354_v52  ;;  %v4639_v44 = vsub.f32 %v13614_v9, %v4632_v58 }
0x11a1   :  { %v4075_v37 = vsel %vm526_vm5, %v13663_v25, 0.0 }
0x11a2   :  { %11453 = vpow2.f32 %v4359_v41  ;;  %v4642_v1 = vmax.f32 %v4639_v44, -60.0  ;;  %4076 = vadd.xlane.f32.xlu0 %v4075_v37 }
0x11a3   :  { %v4635_v51 = vpop.xlane.xlu1 %4634  ;;  %v4106_v45 = vpop.permute.xlu0 %4105 }
0x11a4   :  { %v4645_v26 = vmul.f32 1.442695, %v4642_v1  ;;  %v4640_v10 = vsub.f32 %v13619_v6, %v4635_v51 }
0x11a6   :  { %11455 = vpow2.f32 %v4645_v26  ;;  %v4643_v30 = vmax.f32 %v4640_v10, -60.0 }
0x11a7   :  { %11457 = vpow2.f32 %v4355_v3  ;;  %v11240_v12 = vpop.permute.xlu1 %11239 }
0x11a8   :  { %v13668_v60 = vpop.eup %11451  ;;  %v4647_v62 = vmul.f32 1.442695, %v4643_v30  ;;  %v11242_v31 = vunpack.i.h.bf16 %v11240_v12  ;;  %v11241_v32 = vunpack.i.l.bf16 %v11240_v12 }
0x11a9   :  { %v4364_v43 = vsel %vm519_vm4, %v13668_v60, 0.0 }
0x11aa   :  { %4365 = vadd.xlane.f32.xlu0 %v4364_v43  ;;  %11459 = vpow2.f32 %v4647_v62  ;;  %v10909_v14 = vpack.c.bf16 %v11242_v31, %v11241_v32 }
0x11ac   :  { %v13672_v27 = vpop.eup %11453 }
0x11ad   :  { %v4367_v15 = vsel %vm526_vm5, %v13672_v27, 0.0 }
0x11ae   :  { %4368 = vadd.xlane.f32.xlu0 %v4367_v15 }
0x11af   :  { %4395 = vrot.lane.b32.xlu1 %v13447_v28, %s11896_s6 }
0x11b0   :  { %v13678_v9 = vpop.eup %11455 }
0x11b1   :  { %v4651_v17 = vsel %vm519_vm4, %v13678_v9, 0.0  ;;  %v13684_v46 = vpop.eup %11457 }
0x11b2   :  { %4652 = vadd.xlane.f32.xlu0 %v4651_v17  ;;  %v4361_v29 = vsel %vm519_vm4, %v13684_v46, 0.0 }
0x11b4   :  { %v13688_v47 = vpop.eup %11459 }
0x11b5   :  { %v4654_v6 = vsel %vm519_vm4, %v13688_v47, 0.0 }
0x11d3   :  { %4362 = vadd.xlane.f32.xlu1 %v4361_v29 }
0x11d4   :  { %v4638_v42 = vpop.xlane.xlu0 %4637 }
0x11d5   :  { %v4641_v38 = vsub.f32 %v13631_v50, %v4638_v42 }
0x11d7   :  { %v4644_v5 = vmax.f32 %v4641_v38, -60.0  ;;  %4655 = vadd.xlane.f32.xlu1 %v4654_v6 }
0x11d8   :  { %v3797_v56 = vpop.xlane.xlu1 %3796 }
0x11d9   :  { %v4649_v53 = vmul.f32 1.442695, %v4644_v5  ;;  %11461 = vrcp.f32 %v3797_v56 }
0x11db   :  { %11463 = vpow2.f32 %v4649_v53 }
0x11dc   :  { %v3803_v13 = vpop.xlane.xlu1 %3802 }
0x11e3   :  { %v11462_v20 = vpop.eup %11461 }
0x11e4   :  { %v13694_v48 = vmul.f32 %v11462_v20, %v13635_v2  ;;  %v11245_v2 = vpop.permute.xlu0 %11244 }
0x11e5   :  { %v13696_v63 = vpop.eup %11463  ;;  %v11247_v44 = vunpack.i.h.bf16 %v11245_v2  ;;  %v11246_v37 = vunpack.i.l.bf16 %v11245_v2 }
0x11e6   :  { %10182 = vmatmul.mubr.msk.f32.vlgmr.msra.gmra.mrb[72].mxu1 %vm519_vm4, %v13694_v48  ;;  %v4657_v50 = vsel %vm526_vm5, %v13696_v63, 0.0 }
0x11e7   :  { %10910 = vmatpush3.bf16.msra.mxu1 %v10909_v14  ;;  %4658 = vadd.xlane.f32.xlu0 %v4657_v50  ;;  %v10916_v43 = vpack.c.bf16 %v11247_v44, %v11246_v37 }
0x11e8   :  { %4685 = vrot.lane.b32.xlu1 %v13447_v28, %s11904_s28  ;;  %10209 = vmatprep.subr.mxu1 %v11900_v0 }
0x11e9   :  { %10184 = vmatprep.mubr.msk.f32.mxu1 %vm11902_vm1, %v11900_v0 }
0x11eb   :  { %10210 = vmatpush3.msk.msra.mxu1 %vm581_vm6, %v4106_v45 }
0x11ec   :  { %10915 = vmatprep.subr.bf16.mxu1 %v11901_v16 }
0x11fd   :  { %11249 = vrot.lane.b32.xlu0 %v13439_v35, %s11904_s28 }
0x1209   :  { %v3800_v57 = vpop.xlane.xlu0 %3799 }
0x120a   :  { %11465 = vrcp.f32 %v3800_v57 }
0x120b   :  { %11467 = vrcp.f32 %v3803_v13 }
0x1214   :  { %v11466_v24 = vpop.eup %11465 }
0x1215   :  { %v13712_v28 = vmul.f32 %v11466_v24, %v13646_v40  ;;  %v11468_v52 = vpop.eup %11467 }
0x1216   :  { %v13719_v58 = vmul.f32 %v11468_v52, %v13639_v33 }
0x1217   :  { %10185 = vmatmul.mubr.msk.f32.gmra.mrb[74].mxu1 %vm519_vm4, %v13712_v28 }
0x1218   :  { %10187 = vmatprep.mubr.msk.f32.mxu1 %vm11902_vm1, %v11900_v0 }
0x121b   :  { %10188 = vmatmul.mubr.msk.f32.gmra.mrb[76].mxu1 %vm519_vm4, %v13719_v58 }
0x121c   :  { %10211 = vmatprep.mubr.msk.f32.mxu1 %vm11902_vm1, %v11900_v0 }
0x1227   :  { %v4071_v35 = vpop.xlane.xlu0 %4070 }
0x1228   :  { %11469 = vrcp.f32 %v4071_v35 }
0x122b   :  { %v4074_v40 = vpop.xlane.xlu1 %4073 }
0x122c   :  { %11471 = vrcp.f32 %v4074_v40  ;;  %v3810_v40 = vmul.f32 %v13539_v36, %v13694_v48 }
0x122f   :  { %v4077_v41 = vpop.xlane.xlu0 %4076 }
0x1230   :  { %11473 = vrcp.f32 %v4077_v41 }
0x1232   :  { %v11470_v1 = vpop.eup %11469 }
0x1233   :  { %v4081_v26 = vmul.f32 %v11470_v1, %v13653_v22  ;;  %v4396_v22 = vpop.permute.xlu1 %4395  ;;  %v3813_v1 = vsel %vm519_vm4, %v3810_v40, 0.0 }
0x1235   :  { %10212 = vmatmul.mubr.msk.f32.vlgmr.msra.gmra.mrb[78].mxu1 %vm519_vm4, %v4081_v26  ;;  %v4084_v33 = vmul.f32 %v13539_v36, %v4081_v26 }
0x1236   :  { %v11472_v15 = vpop.eup %11471  ;;  %10917 = vmatpush3.bf16.msra.mxu1 %v10916_v43  ;;  %10214 = vmatprep.mubr.msk.f32.mxu1 %vm11902_vm1, %v11900_v0 }
0x1237   :  { %v4366_v17 = vpop.xlane.xlu0 %4365  ;;  %v4087_v61 = vsel %vm519_vm4, %v4084_v33, 0.0  ;;  %10239 = vmatprep.subr.mxu1 %v11900_v0  ;;  %v4082_v51 = vmul.f32 %v11472_v15, %v13658_v4 }
0x1238   :  { %11475 = vrcp.f32 %v4366_v17  ;;  %4088 = vadd.xlane.f32.xlu1 %v4087_v61 }
0x1239   :  { %10215 = vmatmul.mubr.msk.f32.gmra.mrb[80].mxu1 %vm519_vm4, %v4082_v51  ;;  %v4085_v23 = vmul.f32 %v13550_v49, %v4082_v51 }
0x123a   :  { %v11474_v10 = vpop.eup %11473  ;;  %10240 = vmatpush3.msk.msra.mxu1 %vm581_vm6, %v4396_v22  ;;  %10217 = vmatprep.mubr.msk.f32.mxu1 %vm11902_vm1, %v11900_v0 }
0x123b   :  { %v4369_v3 = vpop.xlane.xlu0 %4368  ;;  %v4090_v30 = vsel %vm519_vm4, %v4085_v23, 0.0  ;;  %v4083_v62 = vmul.f32 %v11474_v10, %v13663_v25  ;;  %10922 = vmatprep.subr.bf16.mxu1 %v11901_v16 }
0x123c   :  { %4091 = vadd.xlane.f32.xlu1 %v4090_v30 }
0x123d   :  { %10218 = vmatmul.mubr.msk.f32.gmra.mrb[82].mxu1 %vm519_vm4, %v4083_v62  ;;  %v4086_v56 = vmul.f32 %v13558_v59, %v4083_v62 }
0x123e   :  { %10241 = vmatprep.mubr.msk.f32.mxu1 %vm11902_vm1, %v11900_v0 }
0x123f   :  { %v4653_v4 = vpop.xlane.xlu0 %4652  ;;  %v4093_v53 = vsel %vm526_vm5, %v4086_v56, 0.0 }
0x1240   :  { %11477 = vrcp.f32 %v4653_v4 }
0x1242   :  { %v11476_v45 = vpop.eup %11475 }
0x1243   :  { %v4374_v29 = vmul.f32 %v11476_v45, %v13668_v60 }
0x1245   :  { %v4377_v12 = vmul.f32 %v13550_v49, %v4374_v29 }
0x1247   :  { %v4382_v42 = vsel %vm519_vm4, %v4377_v12, 0.0 }
0x1248   :  { %4383 = vadd.xlane.f32.xlu1 %v4382_v42 }
0x124a   :  { %v11478_v38 = vpop.eup %11477 }
0x124b   :  { %v4663_v25 = vmul.f32 %v11478_v38, %v13678_v9 }
0x124d   :  { %v4666_v6 = vmul.f32 %v13539_v36, %v4663_v25 }
0x124f   :  { %v4669_v5 = vsel %vm519_vm4, %v4666_v6, 0.0 }
0x1250   :  { %4670 = vadd.xlane.f32.xlu1 %v4669_v5 }
0x1254   :  { %4094 = vadd.xlane.f32.xlu1 %v4093_v53 }
0x1260   :  { %v4363_v31 = vpop.xlane.xlu1 %4362 }
0x1261   :  { %11479 = vrcp.f32 %v4363_v31 }
0x1262   :  { %11481 = vrcp.f32 %v4369_v3 }
0x1264   :  { %v4656_v60 = vpop.xlane.xlu1 %4655 }
0x1265   :  { %11483 = vrcp.f32 %v4656_v60 }
0x1268   :  { %v4686_v43 = vpop.permute.xlu1 %4685 }
0x126b   :  { %v11480_v32 = vpop.eup %11479 }
0x126c   :  { %v4373_v20 = vmul.f32 %v11480_v32, %v13684_v46  ;;  %v11482_v14 = vpop.eup %11481 }
0x126d   :  { %v4375_v57 = vmul.f32 %v11482_v14, %v13672_v27 }
0x126e   :  { %10242 = vmatmul.mubr.msk.f32.vlgmr.msra.gmra.mrb[84].mxu1 %vm519_vm4, %v4373_v20  ;;  %v4376_v9 = vmul.f32 %v13539_v36, %v4373_v20 }
0x126f   :  { %v11484_v50 = vpop.eup %11483  ;;  %10244 = vmatprep.mubr.msk.f32.mxu1 %vm11902_vm1, %v11900_v0  ;;  %v4378_v35 = vmul.f32 %v13558_v59, %v4375_v57 }
0x1270   :  { %v4379_v2 = vsel %vm519_vm4, %v4376_v9, 0.0  ;;  %v4664_v13 = vmul.f32 %v11484_v50, %v13688_v47 }
0x1271   :  { %4380 = vadd.xlane.f32.xlu0 %v4379_v2  ;;  %v4385_v47 = vsel %vm526_vm5, %v4378_v35, 0.0 }
0x1272   :  { %10245 = vmatmul.mubr.msk.f32.gmra.mrb[86].mxu1 %vm519_vm4, %v4374_v29  ;;  %v4667_v46 = vmul.f32 %v13550_v49, %v4664_v13 }
0x1273   :  { %10247 = vmatprep.mubr.msk.f32.mxu1 %vm11902_vm1, %v11900_v0 }
0x1274   :  { %v4659_v24 = vpop.xlane.xlu0 %4658  ;;  %v4672_v52 = vsel %vm519_vm4, %v4667_v46, 0.0  ;;  %v3811_v46 = vmul.f32 %v13550_v49, %v13712_v28 }
0x1275   :  { %11485 = vrcp.f32 %v4659_v24  ;;  %4673 = vadd.xlane.f32.xlu0 %v4672_v52 }
0x1276   :  { %10248 = vmatmul.mubr.msk.f32.gmra.mrb[88].mxu1 %vm519_vm4, %v4375_v57  ;;  %v3816_v52 = vsel %vm519_vm4, %v3811_v46, 0.0 }
0x1277   :  { %10271 = vmatprep.mubr.msk.f32.mxu1 %vm11902_vm1, %v11900_v0 }
0x1278   :  { %v11250_v27 = vpop.permute.xlu0 %11249 }
0x1279   :  { %v11252_v41 = vunpack.i.h.bf16 %v11250_v27  ;;  %v11251_v44 = vunpack.i.l.bf16 %v11250_v27  ;;  %4386 = vadd.xlane.f32.xlu0 %v4385_v47 }
0x127b   :  { %v10923_v37 = vpack.c.bf16 %v11252_v41, %v11251_v44 }
0x127d   :  { %3814 = vadd.xlane.f32.xlu0 %v3813_v1  ;;  %10924 = vmatpush3.bf16.msra.mxu1 %v10923_v37 }
0x127e   :  { %10269 = vmatprep.subr.mxu1 %v11900_v0 }
0x127f   :  { %v11486_v26 = vpop.eup %11485 }
0x1280   :  { %v4665_v33 = vmul.f32 %v11486_v26, %v13696_v63 }
0x1281   :  { %10270 = vmatpush3.msk.msra.mxu1 %vm581_vm6, %v4686_v43 }
0x1282   :  { %10272 = vmatmul.mubr.msk.f32.vlgmr.msra.gmra.mrb[90].mxu1 %vm519_vm4, %v4663_v25  ;;  %v4668_v36 = vmul.f32 %v13558_v59, %v4665_v33 }
0x1283   :  { %10274 = vmatprep.mubr.msk.f32.mxu1 %vm11902_vm1, %v11900_v0 }
0x1284   :  { %v4675_v48 = vsel %vm526_vm5, %v4668_v36, 0.0 }
0x1285   :  { %4676 = vadd.xlane.f32.xlu1 %v4675_v48 }
0x1286   :  { %10275 = vmatmul.mubr.msk.f32.gmra.mrb[92].mxu1 %vm519_vm4, %v4664_v13  ;;  %v3812_v13 = vmul.f32 %v13558_v59, %v13719_v58 }
0x1287   :  { %10277 = vmatprep.mubr.msk.f32.mxu1 %vm11902_vm1, %v11900_v0 }
0x1288   :  { %v3819_v57 = vsel %vm526_vm5, %v3812_v13, 0.0 }
0x128a   :  { %10278 = vmatmul.mubr.msk.f32.gmra.mrb[94].mxu1 %vm519_vm4, %v4665_v33 }
0x128b   :  { %5172 = vmatprep.mubr.f32.mxu1 %v11900_v0 }
0x12b9   :  { %v13786_v63 = vpop.f32.mrb[72].mxu1 }
0x12ba   :  { %v10183_v15 = vpop.f32.mrb[73].mxu1 }
0x12c5   :  { %v4089_v17 = vpop.xlane.xlu1 %4088 }
0x12c6   :  { %v4096_v61 = vmul.f32 %v13467_v7, %v4089_v17 }
0x12c8   :  { %4112 = vrot.lane.b32.xlu0 %v4096_v61, %s11903_s3 }
0x12c9   :  { %v4092_v51 = vpop.xlane.xlu1 %4091 }
0x12ca   :  { %v4097_v22 = vmul.f32 %v13467_v7, %v4092_v51 }
0x12cc   :  { %4114 = vrot.lane.b32.xlu0 %v4097_v22, %s11903_s3 }
0x12d5   :  { %v4384_v23 = vpop.xlane.xlu1 %4383 }
0x12d6   :  { %v4389_v25 = vmul.f32 %v13467_v7, %v4384_v23 }
0x12dd   :  { %v4671_v10 = vpop.xlane.xlu1 %4670 }
0x12de   :  { %v4678_v5 = vmul.f32 %v13467_v7, %v4671_v10 }
0x12e1   :  { %v4095_v3 = vpop.xlane.xlu1 %4094 }
0x12e2   :  { %v4098_v30 = vmul.f32 %v13467_v7, %v4095_v3 }
0x12e4   :  { %4116 = vrot.lane.b32.xlu1 %v4098_v30, %s11903_s3 }
0x12ea   :  { %v13794_v62 = vpop.f32.mrb[74].mxu1 }
0x12eb   :  { %v10186_v4 = vpop.f32.mrb[75].mxu1 }
0x12ee   :  { %v13796_v45 = vpop.f32.mrb[76].mxu1 }
0x12ef   :  { %v10189_v29 = vpop.f32.mrb[77].mxu1 }
0x12fe   :  { %v4381_v12 = vpop.xlane.xlu0 %4380 }
0x12ff   :  { %v4388_v42 = vmul.f32 %v13467_v7, %v4381_v12 }
0x1301   :  { %4402 = vrot.lane.b32.xlu1 %v4388_v42, %s11896_s6  ;;  %v4838_v42 = vld [vmem:[#allocation7 + $0x8] sm:$0x7] }
0x1302   :  { %v4674_v38 = vpop.xlane.xlu0 %4673 }
0x1303   :  { %v4679_v60 = vmul.f32 %v13467_v7, %v4674_v38 }
0x1305   :  { %4404 = vrot.lane.b32.xlu1 %v4389_v25, %s11896_s6 }
0x1306   :  { %v4387_v6 = vpop.xlane.xlu0 %4386 }
0x1307   :  { %v4390_v56 = vmul.f32 %v13467_v7, %v4387_v6  ;;  %v4843_v6 = vrot.slane %v4838_v42, 1 }
0x1308   :  { %v4198_v53 = vpop.f32.mrb[78].mxu1 }
0x1309   :  { %v10213_v31 = vpop.f32.mrb[79].mxu1  ;;  %4692 = vrot.lane.b32.xlu1 %v4678_v5, %s11904_s28  ;;  %4406 = vrot.lane.b32.xlu0 %v4390_v56, %s11896_s6  ;;  %v4840_v5 = vrot.slane %v4838_v42, 2 }
0x130a   :  { %v3815_v24 = vpop.xlane.xlu0 %3814 }
0x130c   :  { %v4203_v32 = vpop.f32.mrb[80].mxu1 }
0x130d   :  { %v10216_v20 = vpop.f32.mrb[81].mxu1  ;;  %4694 = vrot.lane.b32.xlu0 %v4679_v60, %s11904_s28  ;;  %v11660_v60 = vld [vmem:[%s15587_s29 + $0x8] sm:$0xf] }
0x130e   :  { %v4845_v20 = vsub.f32 %v4838_v42, %v4843_v6  ;;  %v9268_v6 = vld [vmem:[%s15591_s14 + $0x138] sm:$0xff] }
0x1310   :  { %v4208_v14 = vpop.f32.mrb[82].mxu1  ;;  %v4856_v46 = vrot.slane %v4845_v20, %v12187_v19 }
0x1311   :  { %v10219_v9 = vpop.f32.mrb[83].mxu1 }
0x1312   :  { %v4677_v50 = vpop.xlane.xlu1 %4676  ;;  %v4842_v9 = vadd.f32 %v4840_v5, %v4838_v42  ;;  %v9266_v42 = vld [vmem:[%s15591_s14 + $0x128] sm:$0xff] }
0x1313   :  { %v4680_v2 = vmul.f32 %v13467_v7, %v4677_v50 }
0x1315   :  { %4696 = vrot.lane.b32.xlu1 %v4680_v2, %s11904_s28 }
0x132c   :  { %3820 = vadd.xlane.f32.xlu0 %v3819_v57 }
0x1339   :  { %3817 = vadd.xlane.f32.xlu1 %v3816_v52 }
0x133a   :  { %v4113_v35 = vpop.permute.xlu0 %4112 }
0x133b   :  { %v4199_v27 = vadd.f32 %v4198_v53, %v4113_v35  ;;  %v11659_v53 = vld [vmem:[#allocation5 + $0x2] ss:$0 sm:$0xff] }
0x133c   :  { %v3822_v31 = vmul.f32 %v11659_v53, %v3815_v24  ;;  %v4849_v24 = vrot.slane %v4842_v9, %v12195_v21  ;;  %v9274_v9 = vld [vmem:[%s15591_s14 + $0x168] sm:$0xff] }
0x133e   :  { %v4115_v47 = vpop.permute.xlu0 %4114  ;;  %v3904_v13 = vadd.f32 %v13786_v63, %v3822_v31 }
0x133f   :  { %v4204_v41 = vadd.f32 %v4203_v32, %v4115_v47  ;;  %v3467_v32 = vrot.slane %v11660_v60, %v12650_v55  ;;  %v9271_v60 = vld [vmem:[%s15591_s14 + $0x150] sm:$0xff] }
0x1341   :  { %v4488_v40 = vpop.f32.mrb[84].mxu1  ;;  %v13831_v57 = vadd.f32 %v13430_v8, %v3467_v32  ;;  %v13843_v8 = vadd.f32 %v13434_v54, %v3467_v32 }
0x1342   :  { %4795 = vrot.lane.b32.xlu0 %v4199_v27, %s11904_s28  ;;  %v10243_v7 = vpop.f32.mrb[85].mxu1 }
0x1343   :  { %v4857_v63 = vmul.f32 %v4856_v46, %v13831_v57 }
0x1345   :  { %v4493_v44 = vpop.f32.mrb[86].mxu1 }
0x1346   :  { %4797 = vrot.lane.b32.xlu0 %v4204_v41, %s11904_s28  ;;  %v10246_v59 = vpop.f32.mrb[87].mxu1 }
0x1349   :  { %v4498_v58 = vpop.f32.mrb[88].mxu1 }
0x134a   :  { %v10249_v37 = vpop.f32.mrb[89].mxu1 }
0x1355   :  { %v4778_v1 = vpop.f32.mrb[90].mxu1 }
0x1356   :  { %v10273_v49 = vpop.f32.mrb[91].mxu1  ;;  %v4117_v36 = vpop.permute.xlu1 %4116 }
0x1357   :  { %v4209_v3 = vadd.f32 %v4208_v14, %v4117_v36  ;;  %v4858_v49 = vmul.f32 %v4856_v46, %v13843_v8  ;;  %v13855_v36 = vadd.f32 %v13442_v39, %v3467_v32  ;;  %v9261_v39 = vld [vmem:[%s15591_s14 + $0x100] sm:$0xff]  ;;  %v9272_v32 = vld [vmem:[%s15591_s14 + $0x158] sm:$0xff] }
0x1358   :  { %v10941_v20 = vpack.c.bf16 %v9272_v32, %v9271_v60 }
0x1359   :  { %v4783_v28 = vpop.f32.mrb[92].mxu1 }
0x135a   :  { %v10276_v26 = vpop.f32.mrb[93].mxu1 }
0x135d   :  { %v4788_v43 = vpop.f32.mrb[94].mxu1 }
0x135e   :  { %v10279_v33 = vpop.f32.mrb[95].mxu1 }
0x1373   :  { %v4403_v48 = vpop.permute.xlu1 %4402 }
0x1374   :  { %v4489_v15 = vadd.f32 %v4488_v40, %v4403_v48 }
0x1376   :  { %4807 = vrot.lane.b32.xlu1 %v4489_v15, %s11896_s6 }
0x1377   :  { %v4405_v17 = vpop.permute.xlu1 %4404 }
0x1378   :  { %v4494_v61 = vadd.f32 %v4493_v44, %v4405_v17 }
0x137a   :  { %4809 = vrot.lane.b32.xlu1 %v4494_v61, %s11896_s6 }
0x137b   :  { %v4693_v51 = vpop.permute.xlu1 %4692  ;;  %v4407_v22 = vpop.permute.xlu0 %4406 }
0x137c   :  { %v4779_v23 = vadd.f32 %v4778_v1, %v4693_v51  ;;  %v4499_v4 = vadd.f32 %v4498_v58, %v4407_v22  ;;  %v4859_v51 = vmul.f32 %v4856_v46, %v13855_v36 }
0x137e   :  { %4819 = vrot.lane.b32.xlu1 %v4779_v23, %s11903_s3 }
0x137f   :  { %v4695_v10 = vpop.permute.xlu0 %4694 }
0x1380   :  { %v4784_v30 = vadd.f32 %v4783_v28, %v4695_v10  ;;  %v9262_v10 = vld [vmem:[%s15591_s14 + $0x108] sm:$0xff] }
0x1382   :  { %4799 = vrot.lane.b32.xlu1 %v4209_v3, %s11904_s28  ;;  %4821 = vrot.lane.b32.xlu0 %v4784_v30, %s11903_s3  ;;  %v10926_v3 = vpack.c.bf16 %v9262_v10, %v9261_v39  ;;  %v9263_v30 = vld [vmem:[%s15591_s14 + $0x110] sm:$0xff]  ;;  %v9289_v10 = vld [vmem:[%s15585_s30 + $0x1c8] sm:$0xff] }
0x1384   :  { %10927 = vmatpush3.bf16.msra.mxu0 %v10926_v3  ;;  %v9293_v3 = vld [vmem:[%s15585_s30 + $0x1e8] sm:$0xff] }
0x1385   :  { %10928 = vmatprep.subr.bf16.mxu0 %v11901_v16 }
0x1386   :  { %4811 = vrot.lane.b32.xlu0 %v4499_v4, %s11896_s6  ;;  %v9264_v4 = vld [vmem:[%s15591_s14 + $0x118] sm:$0xff] }
0x1387   :  { %v4697_v29 = vpop.permute.xlu1 %4696 }
0x1388   :  { %v4789_v12 = vadd.f32 %v4788_v43, %v4697_v29  ;;  %v10929_v29 = vpack.c.bf16 %v9264_v4, %v9263_v30  ;;  %v10953_v30 = vpack.c.bf16 %v9293_v3, %v9289_v10  ;;  %v9288_v4 = vld [vmem:[%s15585_s30 + $0x1c0] sm:$0xff] }
0x138a   :  { %4823 = vrot.lane.b32.xlu1 %v4789_v12, %s11903_s3  ;;  %10930 = vmatpush3.bf16.msra.mxu0 %v10929_v29  ;;  %v9265_v12 = vld [vmem:[%s15591_s14 + $0x120] sm:$0xff] }
0x138b   :  { %10931 = vmatprep.subr.bf16.mxu0 %v11901_v16  ;;  %v9292_v29 = vld [vmem:[%s15585_s30 + $0x1e0] sm:$0xff] }
0x13b9   :  { %v3821_v38 = vpop.xlane.xlu0 %3820 }
0x13ba   :  { %v3824_v37 = vmul.f32 %v11659_v53, %v3821_v38  ;;  %v10932_v38 = vpack.c.bf16 %v9266_v42, %v9265_v12  ;;  %v10955_v12 = vpack.c.bf16 %v9292_v29, %v9288_v4  ;;  %v9283_v42 = vld [vmem:[%s15585_s30 + $0x198] sm:$0xff]  ;;  %v9286_v4 = vld [vmem:[%s15585_s30 + $0x1b0] sm:$0xff]  ;;  %v9279_v29 = vld [vmem:[#allocation11 + $0x2] ss:$0 sm:$0xff] }
0x13bc   :  { %v3914_v43 = vadd.f32 %v13796_v45, %v3824_v37  ;;  %10933 = vmatpush3.bf16.msra.mxu0 %v10932_v38  ;;  %v9287_v38 = vld [vmem:[%s15585_s30 + $0x1b8] sm:$0xff] }
0x13bd   :  { %v4796_v14 = vpop.permute.xlu0 %4795  ;;  %10934 = vmatprep.subr.bf16.mxu0 %v11901_v16 }
0x13be   :  { %v4828_v52 = vsel %vm216_vm0, %v3904_v13, %v4796_v14  ;;  %v9273_v14 = vld [vmem:[%s15591_s14 + $0x160] sm:$0xff]  ;;  %v9276_v13 = vld [vmem:[%s15591_s14 + $0x178] sm:$0xff] }
0x13c1   :  { %v4798_v27 = vpop.permute.xlu0 %4797 }
0x13c6   :  { %v3818_v25 = vpop.xlane.xlu1 %3817 }
0x13c7   :  { %v3823_v50 = vmul.f32 %v11659_v53, %v3818_v25  ;;  %v9267_v25 = vld [vmem:[%s15591_s14 + $0x130] sm:$0xff]  ;;  %v9270_v53 = vld [vmem:[%s15591_s14 + $0x148] sm:$0xff] }
0x13c8   :  { %v10935_v5 = vpack.c.bf16 %v9268_v6, %v9267_v25  ;;  %v10957_v25 = vpack.c.bf16 %v9287_v38, %v9283_v42  ;;  %v9277_v6 = vld [vmem:[#allocation8 + $0x2] ss:$0 sm:$0xff]  ;;  %v9295_v42 = vld [vmem:[%s15585_s30 + $0x1f8] sm:$0xff] }
0x13c9   :  { %v3909_v35 = vadd.f32 %v13794_v62, %v3823_v50  ;;  %v10944_v50 = vpack.c.bf16 %v9274_v9, %v9273_v14 }
0x13ca   :  { %10936 = vmatpush3.bf16.msra.mxu0 %v10935_v5 }
0x13cb   :  { %v4829_v44 = vsel %vm216_vm0, %v3909_v35, %v4798_v27  ;;  %10937 = vmatprep.subr.bf16.mxu0 %v11901_v16 }
0x13e8   :  { %v4808_v56 = vpop.permute.xlu1 %4807 }
0x13e9   :  { %v4831_v47 = vsel %vm1579_vm7, %v4828_v52, %v4808_v56  ;;  %v9269_v56 = vld [vmem:[%s15591_s14 + $0x140] sm:$0xff] }
0x13ea   :  { %v10938_v31 = vpack.c.bf16 %v9270_v53, %v9269_v56 }
0x13ec   :  { %v4810_v2 = vpop.permute.xlu1 %4809  ;;  %10939 = vmatpush3.bf16.msra.mxu0 %v10938_v31 }
0x13ed   :  { %v4832_v59 = vsel %vm1579_vm7, %v4829_v44, %v4810_v2  ;;  %10940 = vmatprep.subr.bf16.mxu0 %v11901_v16  ;;  %v9275_v2 = vld [vmem:[%s15591_s14 + $0x170] sm:$0xff] }
0x13ee   :  { %v10947_v46 = vpack.c.bf16 %v9276_v13, %v9275_v2 }
0x13f0   :  { %v4820_v40 = vpop.permute.xlu1 %4819  ;;  %10942 = vmatpush3.bf16.msra.mxu0 %v10941_v20 }
0x13f1   :  { %v13839_v7 = vsel %vm1583_vm8, %v4831_v47, %v4820_v40  ;;  %10943 = vmatprep.subr.bf16.mxu0 %v11901_v16 }
0x13f2   :  { %v4850_v41 = vmul.f32 %v4849_v24, %v13839_v7 }
0x13f4   :  { %v4822_v58 = vpop.permute.xlu0 %4821  ;;  %v4860_v62 = vadd.f32 %v4857_v63, %v4850_v41  ;;  %v4800_v26 = vpop.permute.xlu1 %4799  ;;  %10945 = vmatpush3.bf16.msra.mxu0 %v10944_v50 }
0x13f5   :  { %v13849_v1 = vsel %vm1583_vm8, %v4832_v59, %v4822_v58  ;;  %v4830_v48 = vsel %vm216_vm0, %v3914_v43, %v4800_v26  ;;  %10946 = vmatprep.subr.bf16.mxu0 %v11901_v16 }
0x13f6   :  { %v4851_v28 = vmul.f32 %v4849_v24, %v13849_v1  ;;  %4863 = vadd.xlane.f32.xlu0 %v4860_v62 }
0x13f8   :  { %v4861_v54 = vadd.f32 %v4858_v49, %v4851_v28  ;;  %v4812_v33 = vpop.permute.xlu0 %4811  ;;  %10948 = vmatpush3.bf16.msra.mxu0 %v10947_v46  ;;  %v4885_v49 = vsub.f32 %v13831_v57, %v13839_v7 }
0x13f9   :  { %v4833_v15 = vsel %vm1579_vm7, %v4830_v48, %v4812_v33  ;;  %10969 = vmatprep.subr.bf16.mxu0 %v11901_v16  ;;  %v4886_v33 = vsub.f32 %v13843_v8, %v13849_v1 }
0x13fa   :  { %4865 = vadd.xlane.f32.xlu1 %v4861_v54 }
0x13fc   :  { %v4824_v17 = vpop.permute.xlu1 %4823 }
0x13fd   :  { %v13860_v61 = vsel %vm1583_vm8, %v4833_v15, %v4824_v17 }
0x13fe   :  { %v4852_v22 = vmul.f32 %v4849_v24, %v13860_v61  ;;  %v4887_v57 = vsub.f32 %v13855_v36, %v13860_v61  ;;  %v9280_v36 = vld [vmem:[%s15585_s30 + $0x180] sm:$0xff] }
0x1400   :  { %v4862_v23 = vadd.f32 %v4859_v51, %v4852_v22 }
0x1402   :  { %v4867_v45 = vsel %vm581_vm6, %v4862_v23, 0.0  ;;  %v9281_v23 = vld [vmem:[%s15585_s30 + $0x188] sm:$0xff] }
0x1403   :  { %4868 = vadd.xlane.f32.xlu0 %v4867_v45 }
0x1483   :  { %v4864_v24 = vpop.xlane.xlu0 %4863 }
0x1484   :  { %v4870_v52 = vsub.f32 0.0, %v4864_v24 }
0x1486   :  { %v4873_v35 = vmul.f32 1.442695, %v4870_v52 }
0x1487   :  { %v4866_v27 = vpop.xlane.xlu1 %4865 }
0x1488   :  { %11487 = vpow2.f32 %v4873_v35  ;;  %v4871_v47 = vsub.f32 0.0, %v4866_v27 }
0x148a   :  { %v4875_v40 = vmul.f32 1.442695, %v4871_v47 }
0x148c   :  { %11489 = vpow2.f32 %v4875_v40 }
0x1490   :  { %v4869_v63 = vpop.xlane.xlu0 %4868 }
0x1491   :  { %v4872_v41 = vsub.f32 0.0, %v4869_v63 }
0x1492   :  { %v11488_v44 = vpop.eup %11487 }
0x1493   :  { %v4879_v59 = vadd.f32 1.0, %v11488_v44  ;;  %v4877_v58 = vmul.f32 1.442695, %v4872_v41 }
0x1495   :  { %11491 = vrcp.f32 %v4879_v59 }
0x1496   :  { %v11490_v62 = vpop.eup %11489  ;;  %11493 = vpow2.f32 %v4877_v58 }
0x1497   :  { %v4880_v37 = vadd.f32 1.0, %v11490_v62 }
0x1499   :  { %11495 = vrcp.f32 %v4880_v37 }
0x149f   :  { %v11492_v28 = vpop.eup %11491 }
0x14a0   :  { %v11494_v26 = vpop.eup %11493  ;;  %v4888_v54 = vmul.f32 %v11492_v28, %v4885_v49 }
0x14a1   :  { %v4881_v43 = vadd.f32 1.0, %v11494_v26 }
0x14a2   :  { %v4891_v48 = vadd.f32 %v4888_v54, %v13839_v7 }
0x14a3   :  { %v11496_v15 = vpop.eup %11495  ;;  %11497 = vrcp.f32 %v4881_v43 }
0x14a4   :  { %10313 = vmatmul.mubr.f32.vlgmr.msra.gmra.mrb[96].mxu0 %v4891_v48  ;;  %v4889_v17 = vmul.f32 %v11496_v15, %v4886_v33 }
0x14a5   :  { %10315 = vmatprep.mubr.msk.f32.mxu0 %vm11902_vm1, %v11900_v0 }
0x14a6   :  { %v4892_v51 = vadd.f32 %v4889_v17, %v13849_v1  ;;  %v9285_v1 = vld [vmem:[%s15585_s30 + $0x1a8] sm:$0xff] }
0x14a7   :  { %v10949_v45 = vpack.c.bf16 %v9285_v1, %v9281_v23 }
0x14a8   :  { %10316 = vmatmul.mubr.f32.gmra.mrb[98].mxu0 %v4892_v51 }
0x14a9   :  { %10318 = vmatprep.mubr.msk.f32.mxu0 %vm11902_vm1, %v11900_v0  ;;  %10950 = vmatprep.subr.bf16.mxu1 %v10949_v45 }
0x14ad   :  { %v11498_v22 = vpop.eup %11497 }
0x14ae   :  { %v4890_v8 = vmul.f32 %v11498_v22, %v4887_v57 }
0x14b0   :  { %v4893_v7 = vadd.f32 %v4890_v8, %v13860_v61  ;;  %v9284_v61 = vld [vmem:[%s15585_s30 + $0x1a0] sm:$0xff] }
0x14b1   :  { %v10951_v39 = vpack.c.bf16 %v9284_v61, %v9280_v36  ;;  %v9278_v61 = vld [vmem:[#allocation10 + $0x2] ss:$0 sm:$0xff] }
0x14b2   :  { %10319 = vmatmul.mubr.f32.gmra.mrb[100].mxu0 %v4893_v7 }
0x14b3   :  { %10342 = vmatprep.mubr.msk.f32.mxu0 %vm11902_vm1, %v11900_v0  ;;  %10952 = vmatpush1.bf16.msra.mxu1 %v10951_v39 }
0x14b4   :  { %10954 = vmatprep.subr.bf16.mxu1 %v10953_v30  ;;  %v9282_v30 = vld [vmem:[%s15585_s30 + $0x190] sm:$0xff] }
0x14b7   :  { %10956 = vmatpush1.bf16.msra.mxu1 %v10955_v12  ;;  %v9291_v12 = vld [vmem:[%s15585_s30 + $0x1d8] sm:$0xff] }
0x14b8   :  { %10958 = vmatprep.subr.bf16.mxu1 %v10957_v25  ;;  %v10959_v25 = vpack.c.bf16 %v9286_v4, %v9282_v30 }
0x1577   :  { %v4985_v5 = vpop.f32.mrb[96].mxu0 }
0x1578   :  { %v4986_v56 = vadd.f32 %v9277_v6, %v4985_v5  ;;  %v10314_v53 = vpop.f32.mrb[97].mxu0 }
0x1579   :  { %v9290_v53 = vld [vmem:[%s15585_s30 + $0x1d0] sm:$0xff] }
0x157a   :  { %v4999_v60 = vmax.f32 %v4986_v56, 0.0  ;;  %v10961_v56 = vpack.c.bf16 %v9295_v42, %v9291_v12 }
0x157b   :  { %v4990_v31 = vpop.f32.mrb[98].mxu0 }
0x157c   :  { %v4991_v32 = vadd.f32 %v9277_v6, %v4990_v31  ;;  %v10317_v20 = vpop.f32.mrb[99].mxu0  ;;  %v5002_v9 = vsel %vm216_vm0, %v4999_v60, 0.0  ;;  %v9294_v31 = vld [vmem:[%s15585_s30 + $0x1f0] sm:$0xff] }
0x157e   :  { %v5000_v14 = vmax.f32 %v4991_v32, 0.0 }
0x1580   :  { %v5003_v50 = vsel %vm216_vm0, %v5000_v14, 0.0 }
0x1581   :  { %v5004_v2 = vadd.f32 %v5003_v50, %v5002_v9  ;;  %v9296_v9 = vld [vmem:[%s15587_s29 + $0xc] sm:$0xf] }
0x1585   :  { %v4995_v13 = vpop.f32.mrb[100].mxu0 }
0x1586   :  { %v4996_v46 = vadd.f32 %v9277_v6, %v4995_v13  ;;  %v10320_v24 = vpop.f32.mrb[101].mxu0  ;;  %v5086_v13 = vrot.slane %v9296_v9, %v12187_v19 }
0x1588   :  { %v5001_v52 = vmax.f32 %v4996_v46, 0.0  ;;  %v5082_v46 = vrot.slane %v9296_v9, %v12195_v21 }
0x158a   :  { %v5005_v35 = vsel %vm411_vm3, %v5001_v52, 0.0 }
0x158b   :  { %v5006_v27 = vadd.f32 %v5005_v35, %v5004_v2 }
0x158d   :  { %v5007_v47 = vrot.slane %v5006_v27, 4 }
0x158f   :  { %v5008_v40 = vadd.f32 %v5007_v47, %v5006_v27 }
0x1591   :  { %v5009_v63 = vrot.slane %v5008_v40, 2 }
0x1593   :  { %v5010_v41 = vadd.f32 %v5009_v63, %v5008_v40 }
0x1595   :  { %v5011_v44 = vrot.slane %v5010_v41, 1 }
0x1597   :  { %v5012_v59 = vadd.f32 %v5011_v44, %v5010_v41 }
0x1599   :  { %v5013_v58 = vmul.f32 0.05, %v5012_v59 }
0x159b   :  { %v5014_v62 = vsub.f32 %v4999_v60, %v5013_v58  ;;  %v5015_v37 = vsub.f32 %v5000_v14, %v5013_v58  ;;  %v5016_v49 = vsub.f32 %v5001_v52, %v5013_v58  ;;  %v10963_v60 = vpack.c.bf16 %v9294_v31, %v9290_v53 }
0x159d   :  { %v5017_v28 = vmul.f32 %v5014_v62, %v5014_v62  ;;  %v5018_v26 = vmul.f32 %v5015_v37, %v5015_v37  ;;  %v5019_v54 = vmul.f32 %v5016_v49, %v5016_v49 }
0x159f   :  { %v5020_v43 = vsel %vm216_vm0, %v5017_v28, 0.0  ;;  %v5021_v33 = vsel %vm216_vm0, %v5018_v26, 0.0  ;;  %v5023_v15 = vsel %vm411_vm3, %v5019_v54, 0.0 }
0x15a0   :  { %v5022_v48 = vadd.f32 %v5021_v33, %v5020_v43 }
0x15a2   :  { %v5024_v17 = vadd.f32 %v5023_v15, %v5022_v48 }
0x15a4   :  { %v5025_v51 = vrot.slane %v5024_v17, 4 }
0x15a6   :  { %v5026_v57 = vadd.f32 %v5025_v51, %v5024_v17 }
0x15a8   :  { %v5027_v22 = vrot.slane %v5026_v57, 2 }
0x15aa   :  { %v5028_v8 = vadd.f32 %v5027_v22, %v5026_v57 }
0x15ac   :  { %v5029_v7 = vrot.slane %v5028_v8, 1 }
0x15ae   :  { %v5030_v23 = vadd.f32 %v5029_v7, %v5028_v8 }
0x15b0   :  { %v5031_v1 = vmul.f32 0.05, %v5030_v23  ;;  %v14050_v23 = vld [vmem:[#allocation5 + $0x3] ss:$0 sm:$0xff] }
0x15b2   :  { %v5032_v45 = vadd.f32 1e-05, %v5031_v1 }
0x15b4   :  { %11499 = vrsqrt.f32 %v5032_v45 }
0x15be   :  { %v11500_v36 = vpop.eup %11499 }
0x15bf   :  { %v5034_v39 = vmul.f32 %v11500_v36, %v5014_v62  ;;  %v5036_v10 = vmul.f32 %v11500_v36, %v5016_v49  ;;  %v5035_v3 = vmul.f32 %v11500_v36, %v5015_v37  ;;  %v5090_v49 = vrot.slane %v9296_v9, %v12379_v11 }
0x15c1   :  { %v5045_v38 = vmul.f32 %v9278_v61, %v5034_v39  ;;  %v5046_v5 = vmul.f32 %v9278_v61, %v5035_v3  ;;  %v5047_v32 = vmul.f32 %v9278_v61, %v5036_v10 }
0x15c3   :  { %v5056_v6 = vadd.f32 %v9279_v29, %v5045_v38  ;;  %v5057_v20 = vadd.f32 %v9279_v29, %v5046_v5  ;;  %v5058_v14 = vadd.f32 %v9279_v29, %v5047_v32 }
0x15c5   :  { %9297 = vmatmul.mubr.msk.f32.vlgmr.msra.gmra.mrb[96].mxu1 %vm216_vm0, %v5056_v6 }
0x15c6   :  { %5178 = vmatprep.mubr.f32.mxu1 %v11900_v0  ;;  %10960 = vmatpush1.bf16.msra.mxu1 %v10959_v25 }
0x15c7   :  { %10962 = vmatprep.subr.bf16.mxu1 %v10961_v56 }
0x15c9   :  { %9298 = vmatmul.mubr.msk.f32.gmra.mrb[98].mxu1 %vm216_vm0, %v5057_v20 }
0x15ca   :  { %5184 = vmatprep.mubr.f32.mxu1 %v11900_v0  ;;  %10964 = vmatpush1.bf16.msra.mxu1 %v10963_v60 }
0x15cb   :  { %10965 = vmatprep.subr.bf16.mxu1 %v11901_v16 }
0x15cd   :  { %9299 = vmatmul.mubr.msk.f32.gmra.mrb[100].mxu1 %vm216_vm0, %v5058_v14 }
0x15ce   :  { %5255 = vmatprep.mubr.f32.mxu1 %v11900_v0 }
0x15d1   :  { %9300 = vmatmul.mubr.msk.f32.vlgmr.msra.gmra.mrb[102].mxu1 %vm216_vm0, %v5056_v6 }
0x15d2   :  { %5261 = vmatprep.mubr.f32.mxu1 %v11900_v0 }
0x15d5   :  { %9301 = vmatmul.mubr.msk.f32.gmra.mrb[104].mxu1 %vm216_vm0, %v5057_v20 }
0x15d6   :  { %5267 = vmatprep.mubr.f32.mxu1 %v11900_v0 }
0x15d9   :  { %9302 = vmatmul.mubr.msk.f32.gmra.mrb[106].mxu1 %vm216_vm0, %v5058_v14 }
0x15da   :  { %10327 = vmatprep.mubr.msk.f32.mxu1 %vm11902_vm1, %v11900_v0 }
0x1698   :  { %v5174_v50 = vpop.f32.mrb[96].mxu1 }
0x1699   :  { %v5176_v2 = vpop.f32.mrb[97].mxu1  ;;  %v5175_v47 = vadd.f32 %v5174_v50, %v5082_v46 }
0x169a   :  { %v5177_v35 = vadd.f32 %v5176_v2, %v5086_v13 }
0x169b   :  { %v5274_v58 = vmul.f32 0.17677669, %v5175_v47 }
0x169c   :  { %v5180_v24 = vpop.f32.mrb[98].mxu1 }
0x169d   :  { %v5182_v52 = vpop.f32.mrb[99].mxu1  ;;  %v5181_v26 = vadd.f32 %v5180_v24, %v5082_v46  ;;  %v5285_v1 = vmul.f32 %v14050_v23, %v5274_v58 }
0x169e   :  { %v5183_v27 = vadd.f32 %v5182_v52, %v5086_v13 }
0x169f   :  { %v5275_v17 = vmul.f32 0.17677669, %v5181_v26  ;;  %v5288_v10 = vsel %vm216_vm0, %v5285_v1, 0.0 }
0x16a0   :  { %v10966_v40 = vpack.c.bf16 %v5183_v27, %v5177_v35  ;;  %v5186_v63 = vpop.f32.mrb[100].mxu1  ;;  %v11253_v41 = vpack.i.bf16 %v5183_v27, %v5177_v35 }
0x16a1   :  { %v5188_v44 = vpop.f32.mrb[101].mxu1  ;;  %v5187_v62 = vadd.f32 %v5186_v63, %v5082_v46  ;;  %v5286_v36 = vmul.f32 %v14050_v23, %v5275_v17 }
0x16a2   :  { %v5189_v59 = vadd.f32 %v5188_v44, %v5086_v13  ;;  %11254 = vrot.lane.b32.xlu0 %v11253_v41, %s11903_s3  ;;  %10968 = vmatpush3.bf16.xpose.msk.msra.mxu1 %vm12203_vm2, %v10966_v40 }
0x16a3   :  { %10325 = vmatprep.subr.mxu1 %v11900_v0  ;;  %v5276_v54 = vmul.f32 0.17677669, %v5187_v62  ;;  %v5291_v61 = vsel %vm216_vm0, %v5286_v36, 0.0 }
0x16a4   :  { %v5257_v37 = vpop.f32.mrb[102].mxu1  ;;  %5578 = vrot.lane.b32.xlu1 %v5189_v59, %s11903_s3 }
0x16a5   :  { %v14015_v28 = vpop.f32.mrb[103].mxu1  ;;  %v5258_v33 = vadd.f32 %v5257_v37, %v5090_v49  ;;  %v5287_v45 = vmul.f32 %v14050_v23, %v5276_v54 }
0x16a6   :  { %5568 = vrot.lane.b32.xlu0 %v5274_v58, %s11903_s3 }
0x16a7   :  { %v5294_v39 = vsel %vm411_vm3, %v5287_v45, 0.0 }
0x16a8   :  { %v5263_v43 = vpop.f32.mrb[104].mxu1  ;;  %11259 = vrot.lane.b32.xlu1 %v11253_v41, %s11896_s6 }
0x16a9   :  { %v5264_v48 = vadd.f32 %v5263_v43, %v5090_v49  ;;  %v14019_v15 = vpop.f32.mrb[105].mxu1 }
0x16aa   :  { %10326 = vmatpush3.xpose.msk.msra.mxu1 %vm216_vm0, %v5189_v59  ;;  %5572 = vrot.lane.b32.xlu0 %v5276_v54, %s11903_s3 }
0x16ab   :  { %v10970_v51 = vpack.c.bf16 %v5264_v48, %v5258_v33  ;;  %10972 = vmatprep.subr.bf16.mxu1 %v11901_v16  ;;  %v14024_v57 = vpack.i.bf16 %v5264_v48, %v5258_v33 }
0x16ac   :  { %v5269_v22 = vpop.f32.mrb[106].mxu1  ;;  %5570 = vrot.lane.b32.xlu1 %v5275_v17, %s11903_s3 }
0x16ad   :  { %v14027_v8 = vpop.f32.mrb[107].mxu1  ;;  %10328 = vmatmul.mubr.msk.f32.vlgmr.msra.gmra.mrb[108].mxu1 %vm216_vm0, %v5274_v58  ;;  %10971 = vmatpush3.bf16.msra.mxu0 %v10970_v51  ;;  %v14032_v7 = vadd.f32 %v5269_v22, %v5090_v49 }
0x16ae   :  { %11264 = vrot.lane.b32.xlu0 %v11253_v41, %s11904_s28  ;;  %10340 = vmatprep.subr.mxu0 %v11900_v0 }
0x16af   :  { %10330 = vmatprep.mubr.msk.f32.mxu1 %vm11902_vm1, %v11900_v0 }
0x16b0   :  { %5870 = vrot.lane.b32.xlu1 %v5189_v59, %s11896_s6 }
0x16b1   :  { %10331 = vmatmul.mubr.msk.f32.gmra.mrb[110].mxu1 %vm216_vm0, %v5275_v17  ;;  %10341 = vmatpush3.msk.msra.mxu0 %vm581_vm6, %v14032_v7 }
0x16b2   :  { %5862 = vrot.lane.b32.xlu0 %v5275_v17, %s11896_s6  ;;  %10333 = vmatprep.mubr.msk.f32.mxu1 %vm11902_vm1, %v11900_v0 }
0x16b3   :  { %10976 = vmatprep.subr.bf16.mxu0 %v11901_v16 }
0x16b4   :  { %5860 = vrot.lane.b32.xlu1 %v5274_v58, %s11896_s6 }
0x16b5   :  { %10334 = vmatmul.mubr.msk.f32.gmra.mrb[112].mxu1 %vm216_vm0, %v5276_v54 }
0x16b6   :  { %6160 = vrot.lane.b32.xlu0 %v5189_v59, %s11904_s28  ;;  %10357 = vmatprep.mubr.msk.f32.mxu1 %vm11902_vm1, %v11900_v0 }
0x16b8   :  { %5864 = vrot.lane.b32.xlu1 %v5276_v54, %s11896_s6 }
0x16ba   :  { %6152 = vrot.lane.b32.xlu0 %v5275_v17, %s11904_s28 }
0x16bc   :  { %6150 = vrot.lane.b32.xlu1 %v5274_v58, %s11904_s28 }
0x16be   :  { %5547 = vrot.lane.b32.xlu0 %v5285_v1, %s11903_s3 }
0x16c0   :  { %6154 = vrot.lane.b32.xlu1 %v5276_v54, %s11904_s28 }
0x16c2   :  { %5551 = vrot.lane.b32.xlu0 %v5287_v45, %s11903_s3 }
0x16c4   :  { %5549 = vrot.lane.b32.xlu1 %v5286_v36, %s11903_s3 }
0x16c6   :  { %5841 = vrot.lane.b32.xlu0 %v5286_v36, %s11896_s6 }
0x16c8   :  { %5839 = vrot.lane.b32.xlu1 %v5285_v1, %s11896_s6 }
0x16ca   :  { %6129 = vrot.lane.b32.xlu0 %v5285_v1, %s11904_s28 }
0x16cc   :  { %5843 = vrot.lane.b32.xlu1 %v5287_v45, %s11896_s6 }
0x16ce   :  { %6133 = vrot.lane.b32.xlu0 %v5287_v45, %s11904_s28 }
0x16d0   :  { %6131 = vrot.lane.b32.xlu1 %v5286_v36, %s11904_s28  ;;  %v14124_v36 = vld [vmem:[%s15590_s27] sm:$0xff] }
0x16ed   :  { %5292 = vadd.xlane.f32.xlu0 %v5291_v61 }
0x16f1   :  { %5295 = vadd.xlane.f32.xlu0 %v5294_v39  ;;  %v14130_v39 = vld [vmem:[%s15590_s27 + $0x8] sm:$0xff] }
0x16f4   :  { %5289 = vadd.xlane.f32.xlu1 %v5288_v10 }
0x1714   :  { %v11255_v3 = vpop.permute.xlu0 %11254 }
0x1715   :  { %v11257_v30 = vunpack.i.h.bf16 %v11255_v3  ;;  %v11256_v4 = vunpack.i.l.bf16 %v11255_v3 }
0x1716   :  { %v5579_v29 = vpop.permute.xlu1 %5578 }
0x1717   :  { %v10973_v12 = vpack.c.bf16 %v11257_v30, %v11256_v4 }
0x1718   :  { %v5569_v42 = vpop.permute.xlu0 %5568 }
0x1719   :  { %10975 = vmatpush3.bf16.xpose.msk.msra.mxu1 %vm12203_vm2, %v10973_v12 }
0x171a   :  { %v11260_v38 = vpop.permute.xlu1 %11259  ;;  %10355 = vmatprep.subr.mxu1 %v11900_v0 }
0x171b   :  { %v11262_v5 = vunpack.i.h.bf16 %v11260_v38  ;;  %v11261_v56 = vunpack.i.l.bf16 %v11260_v38 }
0x171c   :  { %v5573_v25 = vpop.permute.xlu0 %5572 }
0x171d   :  { %v10980_v60 = vpack.c.bf16 %v11262_v5, %v11261_v56  ;;  %v14144_v5 = vld [vmem:[#allocation2 + $0x8] sm:$0xff] }
0x171e   :  { %v5571_v6 = vpop.permute.xlu1 %5570 }
0x1720   :  { %v11265_v53 = vpop.permute.xlu0 %11264 }
0x1721   :  { %10356 = vmatpush3.xpose.msk.msra.mxu1 %vm216_vm0, %v5579_v29  ;;  %v11267_v50 = vunpack.i.h.bf16 %v11265_v53  ;;  %v11266_v2 = vunpack.i.l.bf16 %v11265_v53 }
0x1722   :  { %v5871_v31 = vpop.permute.xlu1 %5870  ;;  %10979 = vmatprep.subr.bf16.mxu1 %v11901_v16 }
0x1723   :  { %v10987_v24 = vpack.c.bf16 %v11267_v50, %v11266_v2 }
0x1724   :  { %v5863_v32 = vpop.permute.xlu0 %5862  ;;  %10358 = vmatmul.mubr.msk.f32.vlgmr.msra.gmra.mrb[114].mxu1 %vm216_vm0, %v5569_v42  ;;  %v14133_v42 = vld [vmem:[#allocation2] sm:$0xff] }
0x1725   :  { %10982 = vmatpush3.bf16.xpose.msk.msra.mxu1 %vm12203_vm2, %v10980_v60  ;;  %10360 = vmatprep.mubr.msk.f32.mxu1 %vm11902_vm1, %v11900_v0 }
0x1726   :  { %v5861_v20 = vpop.permute.xlu1 %5860  ;;  %10385 = vmatprep.subr.mxu1 %v11900_v0 }
0x1728   :  { %v6161_v14 = vpop.permute.xlu0 %6160  ;;  %10361 = vmatmul.mubr.msk.f32.gmra.mrb[116].mxu1 %vm216_vm0, %v5571_v6 }
0x1729   :  { %10363 = vmatprep.mubr.msk.f32.mxu1 %vm11902_vm1, %v11900_v0 }
0x172a   :  { %v5865_v9 = vpop.permute.xlu1 %5864 }
0x172c   :  { %v6153_v13 = vpop.permute.xlu0 %6152  ;;  %10364 = vmatmul.mubr.msk.f32.gmra.mrb[118].mxu1 %vm216_vm0, %v5573_v25  ;;  %v14141_v25 = vld [vmem:[%s15590_s27 + $0x10] sm:$0xf] }
0x172d   :  { %10386 = vmatpush3.xpose.msk.msra.mxu1 %vm216_vm0, %v5871_v31  ;;  %10387 = vmatprep.mubr.msk.f32.mxu1 %vm11902_vm1, %v11900_v0 }
0x172e   :  { %v6151_v46 = vpop.permute.xlu1 %6150  ;;  %10986 = vmatprep.subr.bf16.mxu1 %v11901_v16 }
0x1730   :  { %10388 = vmatmul.mubr.msk.f32.vlgmr.msra.gmra.mrb[120].mxu1 %vm216_vm0, %v5861_v20  ;;  %v5548_v52 = vpop.permute.xlu0 %5547 }
0x1731   :  { %10989 = vmatpush3.bf16.xpose.msk.msra.mxu1 %vm12203_vm2, %v10987_v24  ;;  %v5556_v35 = vsel %vm216_vm0, %v5548_v52, 0.0  ;;  %10390 = vmatprep.mubr.msk.f32.mxu1 %vm11902_vm1, %v11900_v0 }
0x1732   :  { %v6155_v27 = vpop.permute.xlu1 %6154  ;;  %5557 = vadd.xlane.f32.xlu1 %v5556_v35  ;;  %10415 = vmatprep.subr.mxu1 %v11900_v0 }
0x1734   :  { %10391 = vmatmul.mubr.msk.f32.gmra.mrb[122].mxu1 %vm216_vm0, %v5863_v32  ;;  %v5552_v47 = vpop.permute.xlu0 %5551 }
0x1735   :  { %v5562_v40 = vsel %vm411_vm3, %v5552_v47, 0.0  ;;  %10393 = vmatprep.mubr.msk.f32.mxu1 %vm11902_vm1, %v11900_v0 }
0x1736   :  { %v5550_v63 = vpop.permute.xlu1 %5549  ;;  %5563 = vadd.xlane.f32.xlu1 %v5562_v40 }
0x1737   :  { %v5559_v41 = vsel %vm216_vm0, %v5550_v63, 0.0 }
0x1738   :  { %10394 = vmatmul.mubr.msk.f32.gmra.mrb[124].mxu1 %vm216_vm0, %v5865_v9  ;;  %5560 = vadd.xlane.f32.xlu0 %v5559_v41  ;;  %v5842_v44 = vpop.permute.xlu0 %5841 }
0x1739   :  { %10416 = vmatpush3.xpose.msk.msra.mxu1 %vm216_vm0, %v6161_v14  ;;  %v5851_v59 = vsel %vm216_vm0, %v5842_v44, 0.0  ;;  %10417 = vmatprep.mubr.msk.f32.mxu1 %vm11902_vm1, %v11900_v0  ;;  %v14153_v14 = vld [vmem:[#allocation2 + $0x10] sm:$0xf] }
0x173a   :  { %v5840_v58 = vpop.permute.xlu1 %5839  ;;  %5852 = vadd.xlane.f32.xlu1 %v5851_v59  ;;  %10993 = vmatprep.subr.bf16.mxu1 %v11901_v16 }
0x173b   :  { %v5848_v62 = vsel %vm216_vm0, %v5840_v58, 0.0 }
0x173c   :  { %10418 = vmatmul.mubr.msk.f32.vlgmr.msra.gmra.mrb[126].mxu1 %vm216_vm0, %v6151_v46  ;;  %5849 = vadd.xlane.f32.xlu0 %v5848_v62  ;;  %v6130_v37 = vpop.permute.xlu0 %6129 }
0x173d   :  { %v6138_v49 = vsel %vm216_vm0, %v6130_v37, 0.0  ;;  %10420 = vmatprep.mubr.msk.f32.mxu1 %vm11902_vm1, %v11900_v0 }
0x173e   :  { %v5844_v26 = vpop.permute.xlu1 %5843  ;;  %6139 = vadd.xlane.f32.xlu1 %v6138_v49 }
0x173f   :  { %v5854_v54 = vsel %vm411_vm3, %v5844_v26, 0.0 }
0x1740   :  { %10421 = vmatmul.mubr.msk.f32.gmra.mrb[128].mxu1 %vm216_vm0, %v6153_v13  ;;  %5855 = vadd.xlane.f32.xlu0 %v5854_v54  ;;  %v6134_v43 = vpop.permute.xlu0 %6133 }
0x1741   :  { %v6144_v33 = vsel %vm411_vm3, %v6134_v43, 0.0  ;;  %10423 = vmatprep.mubr.msk.f32.mxu1 %vm11902_vm1, %v11900_v0 }
0x1742   :  { %v6132_v48 = vpop.permute.xlu1 %6131  ;;  %6145 = vadd.xlane.f32.xlu1 %v6144_v33 }
0x1743   :  { %v6141_v17 = vsel %vm216_vm0, %v6132_v48, 0.0 }
0x1744   :  { %10424 = vmatmul.mubr.msk.f32.gmra.mrb[130].mxu1 %vm216_vm0, %v6155_v27  ;;  %6142 = vadd.xlane.f32.xlu0 %v6141_v17 }
0x1745   :  { %10473 = vmatprep.mubr.msk.f32.mxu1 %vm11902_vm1, %v11900_v0 }
0x177a   :  { %v5293_v51 = vpop.xlane.xlu0 %5292 }
0x177b   :  { %v5298_v10 = vmul.f32 %v14130_v39, %v5293_v51 }
0x177e   :  { %v5296_v3 = vpop.xlane.xlu0 %5295 }
0x177f   :  { %v5299_v6 = vmul.f32 %v14141_v25, %v5296_v3 }
0x1780   :  { %v5384_v22 = vpop.f32.mrb[108].mxu1 }
0x1781   :  { %v10329_v1 = vpop.f32.mrb[109].mxu1  ;;  %v5290_v45 = vpop.xlane.xlu1 %5289 }
0x1782   :  { %v5297_v61 = vmul.f32 %v14124_v36, %v5290_v45 }
0x1784   :  { %v5385_v30 = vadd.f32 %v5384_v22, %v5297_v61  ;;  %v5389_v4 = vpop.f32.mrb[110].mxu1 }
0x1785   :  { %v5390_v29 = vadd.f32 %v5389_v4, %v5298_v10  ;;  %v10332_v12 = vpop.f32.mrb[111].mxu1 }
0x1786   :  { %v14136_v38 = vadd.f32 %v14133_v42, %v5385_v30 }
0x1787   :  { %v14147_v56 = vadd.f32 %v14144_v5, %v5390_v29 }
0x1788   :  { %v5394_v53 = vpop.f32.mrb[112].mxu1  ;;  %v5401_v31 = vsel %vm519_vm4, %v14136_v38, -inf }
0x1789   :  { %v5395_v60 = vadd.f32 %v5394_v53, %v5299_v6  ;;  %v10335_v32 = vpop.f32.mrb[113].mxu1  ;;  %5402 = vmax.xlane.f32.xlu0 %v5401_v31  ;;  %v5404_v20 = vsel %vm519_vm4, %v14147_v56, -inf }
0x178a   :  { %5405 = vmax.xlane.f32.xlu1 %v5404_v20 }
0x178b   :  { %v14156_v9 = vadd.f32 %v14153_v14, %v5395_v60 }
0x178d   :  { %v5407_v50 = vsel %vm526_vm5, %v14156_v9, -inf }
0x178e   :  { %5408 = vmax.xlane.f32.xlu0 %v5407_v50 }
0x17bf   :  { %v5558_v2 = vpop.xlane.xlu1 %5557 }
0x17c0   :  { %v5565_v13 = vmul.f32 %v14124_v36, %v5558_v2 }
0x17c3   :  { %v5564_v40 = vpop.xlane.xlu1 %5563 }
0x17c4   :  { %v5567_v58 = vmul.f32 %v14141_v25, %v5564_v40 }
0x17c5   :  { %v5561_v46 = vpop.xlane.xlu0 %5560 }
0x17c6   :  { %v5566_v27 = vmul.f32 %v14130_v39, %v5561_v46 }
0x17c7   :  { %v5853_v17 = vpop.xlane.xlu1 %5852 }
0x17c8   :  { %v5858_v61 = vmul.f32 %v14130_v39, %v5853_v17 }
0x17c9   :  { %v5850_v37 = vpop.xlane.xlu0 %5849 }
0x17ca   :  { %v5857_v33 = vmul.f32 %v14124_v36, %v5850_v37 }
0x17cb   :  { %v6140_v31 = vpop.xlane.xlu1 %6139 }
0x17cc   :  { %v6147_v2 = vmul.f32 %v14124_v36, %v6140_v31 }
0x17cd   :  { %v5856_v3 = vpop.xlane.xlu0 %5855 }
0x17ce   :  { %v5859_v6 = vmul.f32 %v14141_v25, %v5856_v3 }
0x17d1   :  { %v6143_v46 = vpop.xlane.xlu0 %6142 }
0x17d2   :  { %v6148_v40 = vmul.f32 %v14130_v39, %v6143_v46 }
0x17f7   :  { %v5658_v24 = vpop.f32.mrb[114].mxu1 }
0x17f8   :  { %v5659_v52 = vadd.f32 %v5658_v24, %v5565_v13  ;;  %v10359_v35 = vpop.f32.mrb[115].mxu1 }
0x17fa   :  { %v14163_v47 = vadd.f32 %v14133_v42, %v5659_v52 }
0x17fb   :  { %v5663_v63 = vpop.f32.mrb[116].mxu1 }
0x17fc   :  { %v5664_v41 = vadd.f32 %v5663_v63, %v5566_v27  ;;  %v10362_v44 = vpop.f32.mrb[117].mxu1  ;;  %v5675_v59 = vsel %vm519_vm4, %v14163_v47, -inf }
0x17fd   :  { %5676 = vmax.xlane.f32.xlu1 %v5675_v59 }
0x17fe   :  { %v14169_v62 = vadd.f32 %v14144_v5, %v5664_v41 }
0x17ff   :  { %v5668_v49 = vpop.f32.mrb[118].mxu1 }
0x1800   :  { %v5669_v26 = vadd.f32 %v5668_v49, %v5567_v58  ;;  %v10365_v54 = vpop.f32.mrb[119].mxu1  ;;  %v5678_v43 = vsel %vm519_vm4, %v14169_v62, -inf }
0x1801   :  { %5679 = vmax.xlane.f32.xlu0 %v5678_v43 }
0x1802   :  { %v14175_v48 = vadd.f32 %v14153_v14, %v5669_v26 }
0x1803   :  { %v5950_v51 = vpop.f32.mrb[120].mxu1 }
0x1804   :  { %v5951_v22 = vadd.f32 %v5950_v51, %v5857_v33  ;;  %v10389_v1 = vpop.f32.mrb[121].mxu1  ;;  %v5681_v45 = vsel %vm526_vm5, %v14175_v48, -inf  ;;  %v6146_v51 = vpop.xlane.xlu1 %6145 }
0x1805   :  { %5682 = vmax.xlane.f32.xlu1 %v5681_v45  ;;  %v6149_v45 = vmul.f32 %v14141_v25, %v6146_v51 }
0x1806   :  { %v14181_v10 = vadd.f32 %v14133_v42, %v5951_v22 }
0x1807   :  { %v5955_v30 = vpop.f32.mrb[122].mxu1 }
0x1808   :  { %v5956_v4 = vadd.f32 %v5955_v30, %v5858_v61  ;;  %v10392_v29 = vpop.f32.mrb[123].mxu1  ;;  %v5967_v12 = vsel %vm519_vm4, %v14181_v10, -inf }
0x1809   :  { %5968 = vmax.xlane.f32.xlu0 %v5967_v12 }
0x180a   :  { %v14187_v53 = vadd.f32 %v14144_v5, %v5956_v4 }
0x180b   :  { %v5960_v60 = vpop.f32.mrb[124].mxu1 }
0x180c   :  { %v5961_v32 = vadd.f32 %v5960_v60, %v5859_v6  ;;  %v10395_v20 = vpop.f32.mrb[125].mxu1  ;;  %v5970_v50 = vsel %vm519_vm4, %v14187_v53, -inf }
0x180d   :  { %5971 = vmax.xlane.f32.xlu1 %v5970_v50 }
0x180e   :  { %v14193_v13 = vadd.f32 %v14153_v14, %v5961_v32 }
0x180f   :  { %v6240_v24 = vpop.f32.mrb[126].mxu1 }
0x1810   :  { %v6241_v52 = vadd.f32 %v6240_v24, %v6147_v2  ;;  %v10419_v35 = vpop.f32.mrb[127].mxu1  ;;  %v5973_v27 = vsel %vm526_vm5, %v14193_v13, -inf }
0x1811   :  { %5974 = vmax.xlane.f32.xlu0 %v5973_v27 }
0x1812   :  { %v14199_v63 = vadd.f32 %v14133_v42, %v6241_v52 }
0x1813   :  { %v6245_v41 = vpop.f32.mrb[128].mxu1 }
0x1814   :  { %v6246_v44 = vadd.f32 %v6245_v41, %v6148_v40  ;;  %v10422_v59 = vpop.f32.mrb[129].mxu1  ;;  %v6257_v58 = vsel %vm519_vm4, %v14199_v63, -inf }
0x1815   :  { %6258 = vmax.xlane.f32.xlu1 %v6257_v58 }
0x1816   :  { %v14204_v37 = vadd.f32 %v14144_v5, %v6246_v44  ;;  %v5403_v42 = vpop.xlane.xlu0 %5402 }
0x1817   :  { %v6250_v49 = vpop.f32.mrb[130].mxu1  ;;  %v5410_v43 = vsub.f32 %v14136_v38, %v5403_v42 }
0x1818   :  { %v10425_v26 = vpop.f32.mrb[131].mxu1  ;;  %v6260_v54 = vsel %vm519_vm4, %v14204_v37, -inf  ;;  %v6251_v3 = vadd.f32 %v6250_v49, %v6149_v45 }
0x1819   :  { %6261 = vmax.xlane.f32.xlu0 %v6260_v54  ;;  %v5413_v17 = vmax.f32 %v5410_v43, -60.0 }
0x181a   :  { %v14216_v30 = vadd.f32 %v14153_v14, %v6251_v3  ;;  %v5406_v14 = vpop.xlane.xlu1 %5405 }
0x181b   :  { %v5409_v33 = vpop.xlane.xlu0 %5408  ;;  %v5416_v22 = vmul.f32 1.442695, %v5413_v17  ;;  %v5411_v6 = vsub.f32 %v14147_v56, %v5406_v14 }
0x181c   :  { %v5412_v5 = vsub.f32 %v14156_v9, %v5409_v33  ;;  %v6263_v4 = vsel %vm526_vm5, %v14216_v30, -inf }
0x181d   :  { %11501 = vpow2.f32 %v5416_v22  ;;  %v5414_v31 = vmax.f32 %v5411_v6, -60.0 }
0x181e   :  { %v5415_v1 = vmax.f32 %v5412_v5, -60.0 }
0x181f   :  { %v5418_v60 = vmul.f32 1.442695, %v5414_v31 }
0x1820   :  { %v5420_v61 = vmul.f32 1.442695, %v5415_v1 }
0x1822   :  { %11503 = vpow2.f32 %v5420_v61 }
0x1823   :  { %11505 = vpow2.f32 %v5418_v60 }
0x1826   :  { %5732 = vrot.lane.b32.xlu1 %v14032_v7, %s11903_s3 }
0x1827   :  { %v14220_v38 = vpop.eup %11501 }
0x1828   :  { %v5422_v9 = vsel %vm519_vm4, %v14220_v38, 0.0 }
0x182c   :  { %v14224_v29 = vpop.eup %11503 }
0x182d   :  { %v5428_v12 = vsel %vm526_vm5, %v14224_v29, 0.0  ;;  %v14231_v32 = vpop.eup %11505 }
0x182e   :  { %v5425_v20 = vsel %vm519_vm4, %v14231_v32, 0.0 }
0x182f   :  { %11269 = vrot.lane.b32.xlu0 %v14024_v57, %s11903_s3 }
0x184a   :  { %6264 = vmax.xlane.f32.xlu1 %v6263_v4 }
0x184e   :  { %5423 = vadd.xlane.f32.xlu0 %v5422_v9 }
0x1852   :  { %5429 = vadd.xlane.f32.xlu0 %v5428_v12 }
0x185b   :  { %11274 = vrot.lane.b32.xlu1 %v14024_v57, %s11896_s6 }
0x187f   :  { %5426 = vadd.xlane.f32.xlu1 %v5425_v20 }
0x188a   :  { %v5677_v50 = vpop.xlane.xlu1 %5676 }
0x188b   :  { %v5684_v2 = vsub.f32 %v14163_v47, %v5677_v50 }
0x188d   :  { %v5687_v46 = vmax.f32 %v5684_v2, -60.0 }
0x188e   :  { %v5680_v24 = vpop.xlane.xlu0 %5679 }
0x188f   :  { %v5690_v52 = vmul.f32 1.442695, %v5687_v46  ;;  %v5685_v35 = vsub.f32 %v14169_v62, %v5680_v24 }
0x1891   :  { %11507 = vpow2.f32 %v5690_v52  ;;  %v5688_v27 = vmax.f32 %v5685_v35, -60.0 }
0x1892   :  { %v5683_v56 = vpop.xlane.xlu1 %5682 }
0x1893   :  { %v5692_v40 = vmul.f32 1.442695, %v5688_v27  ;;  %v5686_v41 = vsub.f32 %v14175_v48, %v5683_v56 }
0x1895   :  { %11509 = vpow2.f32 %v5692_v40  ;;  %v5689_v44 = vmax.f32 %v5686_v41, -60.0 }
0x1896   :  { %v5969_v59 = vpop.xlane.xlu0 %5968 }
0x1897   :  { %v5694_v58 = vmul.f32 1.442695, %v5689_v44  ;;  %v5976_v49 = vsub.f32 %v14181_v10, %v5969_v59 }
0x1899   :  { %11511 = vpow2.f32 %v5694_v58  ;;  %v5979_v26 = vmax.f32 %v5976_v49, -60.0 }
0x189a   :  { %v5972_v47 = vpop.xlane.xlu1 %5971 }
0x189b   :  { %v14239_v54 = vpop.eup %11507  ;;  %v5982_v42 = vmul.f32 1.442695, %v5979_v26  ;;  %v5977_v62 = vsub.f32 %v14187_v53, %v5972_v47 }
0x189c   :  { %v5696_v43 = vsel %vm519_vm4, %v14239_v54, 0.0 }
0x189d   :  { %11513 = vpow2.f32 %v5982_v42  ;;  %v5980_v33 = vmax.f32 %v5977_v62, -60.0  ;;  %5697 = vadd.xlane.f32.xlu1 %v5696_v43 }
0x189e   :  { %v5975_v48 = vpop.xlane.xlu0 %5974 }
0x189f   :  { %v14244_v17 = vpop.eup %11509  ;;  %v5984_v5 = vmul.f32 1.442695, %v5980_v33  ;;  %v5978_v10 = vsub.f32 %v14193_v13, %v5975_v48 }
0x18a0   :  { %v5699_v51 = vsel %vm519_vm4, %v14244_v17, 0.0 }
0x18a1   :  { %11515 = vpow2.f32 %v5984_v5  ;;  %v5981_v22 = vmax.f32 %v5978_v10, -60.0  ;;  %5700 = vadd.xlane.f32.xlu0 %v5699_v51 }
0x18a2   :  { %v6259_v1 = vpop.xlane.xlu1 %6258 }
0x18a3   :  { %v14249_v53 = vpop.eup %11511  ;;  %v5986_v45 = vmul.f32 1.442695, %v5981_v22  ;;  %v6266_v61 = vsub.f32 %v14199_v63, %v6259_v1 }
0x18a4   :  { %v5702_v3 = vsel %vm526_vm5, %v14249_v53, 0.0 }
0x18a5   :  { %11517 = vpow2.f32 %v5986_v45  ;;  %v6269_v4 = vmax.f32 %v6266_v61, -60.0  ;;  %5703 = vadd.xlane.f32.xlu1 %v5702_v3 }
0x18a6   :  { %v6262_v50 = vpop.xlane.xlu0 %6261  ;;  %v5733_v52 = vpop.permute.xlu1 %5732 }
0x18a7   :  { %v14254_v9 = vpop.eup %11513  ;;  %v6272_v13 = vmul.f32 1.442695, %v6269_v4  ;;  %v6267_v2 = vsub.f32 %v14204_v37, %v6262_v50 }
0x18a8   :  { %v5988_v12 = vsel %vm519_vm4, %v14254_v9, 0.0 }
0x18a9   :  { %11519 = vpow2.f32 %v6272_v13  ;;  %5989 = vadd.xlane.f32.xlu0 %v5988_v12  ;;  %v6270_v46 = vmax.f32 %v6267_v2, -60.0 }
0x18aa   :  { %v11270_v35 = vpop.permute.xlu0 %11269 }
0x18ab   :  { %v14258_v14 = vpop.eup %11515  ;;  %v6274_v24 = vmul.f32 1.442695, %v6270_v46  ;;  %v11272_v37 = vunpack.i.h.bf16 %v11270_v35  ;;  %v11271_v49 = vunpack.i.l.bf16 %v11270_v35 }
0x18ac   :  { %v5991_v6 = vsel %vm519_vm4, %v14258_v14, 0.0 }
0x18ad   :  { %5992 = vadd.xlane.f32.xlu1 %v5991_v6  ;;  %11521 = vpow2.f32 %v6274_v24 }
0x18af   :  { %v14262_v63 = vpop.eup %11517 }
0x18b0   :  { %v5994_v31 = vsel %vm526_vm5, %v14262_v63, 0.0 }
0x18b1   :  { %5995 = vadd.xlane.f32.xlu1 %v5994_v31 }
0x18b3   :  { %v14266_v60 = vpop.eup %11519 }
0x18b4   :  { %v6278_v20 = vsel %vm519_vm4, %v14266_v60, 0.0 }
0x18b5   :  { %6279 = vadd.xlane.f32.xlu1 %v6278_v20 }
0x18b7   :  { %v14274_v40 = vpop.eup %11521 }
0x18b8   :  { %v6281_v58 = vsel %vm519_vm4, %v14274_v40, 0.0 }
0x18bf   :  { %6022 = vrot.lane.b32.xlu0 %v14032_v7, %s11896_s6 }
0x18d7   :  { %v6265_v27 = vpop.xlane.xlu1 %6264 }
0x18d8   :  { %v6268_v56 = vsub.f32 %v14216_v30, %v6265_v27  ;;  %v10977_v30 = vpack.c.bf16 %v11272_v37, %v11271_v49 }
0x18da   :  { %v6271_v41 = vmax.f32 %v6268_v56, -60.0 }
0x18db   :  { %v5424_v44 = vpop.xlane.xlu0 %5423 }
0x18dc   :  { %v6276_v59 = vmul.f32 1.442695, %v6271_v41  ;;  %11523 = vrcp.f32 %v5424_v44 }
0x18de   :  { %11525 = vpow2.f32 %v6276_v59  ;;  %6282 = vadd.xlane.f32.xlu0 %v6281_v58 }
0x18df   :  { %v5430_v43 = vpop.xlane.xlu0 %5429 }
0x18e6   :  { %v11524_v26 = vpop.eup %11523 }
0x18e7   :  { %v14279_v47 = vmul.f32 %v11524_v26, %v14220_v38  ;;  %v11275_v38 = vpop.permute.xlu1 %11274 }
0x18e8   :  { %v14281_v42 = vpop.eup %11525  ;;  %v11277_v22 = vunpack.i.h.bf16 %v11275_v38  ;;  %v11276_v1 = vunpack.i.l.bf16 %v11275_v38 }
0x18e9   :  { %10343 = vmatmul.mubr.msk.f32.vlgmr.msra.gmra.mrb[102].mxu0 %vm519_vm4, %v14279_v47  ;;  %v6284_v62 = vsel %vm526_vm5, %v14281_v42, 0.0 }
0x18ea   :  { %10978 = vmatpush3.bf16.msra.mxu0 %v10977_v30  ;;  %6285 = vadd.xlane.f32.xlu1 %v6284_v62 }
0x18eb   :  { %10370 = vmatprep.subr.mxu0 %v11900_v0  ;;  %10345 = vmatprep.mubr.msk.f32.mxu0 %vm11902_vm1, %v11900_v0 }
0x18ee   :  { %10371 = vmatpush3.msk.msra.mxu0 %vm581_vm6, %v5733_v52 }
0x18ef   :  { %10983 = vmatprep.subr.bf16.mxu0 %v11901_v16 }
0x18f4   :  { %6312 = vrot.lane.b32.xlu0 %v14032_v7, %s11904_s28 }
0x18fb   :  { %11279 = vrot.lane.b32.xlu1 %v14024_v57, %s11904_s28 }
0x190c   :  { %v5427_v33 = vpop.xlane.xlu1 %5426 }
0x190d   :  { %11527 = vrcp.f32 %v5427_v33 }
0x190e   :  { %11529 = vrcp.f32 %v5430_v43 }
0x1917   :  { %v11528_v48 = vpop.eup %11527 }
0x1918   :  { %v14297_v5 = vmul.f32 %v11528_v48, %v14231_v32  ;;  %v11530_v10 = vpop.eup %11529 }
0x1919   :  { %v14304_v7 = vmul.f32 %v11530_v10, %v14224_v29  ;;  %v10984_v29 = vpack.c.bf16 %v11277_v22, %v11276_v1 }
0x191a   :  { %10346 = vmatmul.mubr.msk.f32.gmra.mrb[104].mxu0 %vm519_vm4, %v14297_v5 }
0x191b   :  { %10348 = vmatprep.mubr.msk.f32.mxu0 %vm11902_vm1, %v11900_v0 }
0x191e   :  { %10349 = vmatmul.mubr.msk.f32.gmra.mrb[106].mxu0 %vm519_vm4, %v14304_v7 }
0x191f   :  { %10372 = vmatprep.mubr.msk.f32.mxu0 %vm11902_vm1, %v11900_v0 }
0x192a   :  { %v5698_v57 = vpop.xlane.xlu1 %5697 }
0x192b   :  { %11531 = vrcp.f32 %v5698_v57 }
0x192e   :  { %v5701_v32 = vpop.xlane.xlu0 %5700 }
0x192f   :  { %11533 = vrcp.f32 %v5701_v32 }
0x1932   :  { %v5704_v51 = vpop.xlane.xlu1 %5703 }
0x1933   :  { %11535 = vrcp.f32 %v5704_v51 }
0x1935   :  { %v11532_v45 = vpop.eup %11531 }
0x1936   :  { %v5708_v61 = vmul.f32 %v11532_v45, %v14239_v54  ;;  %v5990_v3 = vpop.xlane.xlu0 %5989 }
0x1937   :  { %11537 = vrcp.f32 %v5990_v3 }
0x1938   :  { %10373 = vmatmul.mubr.msk.f32.vlgmr.msra.gmra.mrb[108].mxu0 %vm519_vm4, %v5708_v61  ;;  %v5711_v4 = vmul.f32 %v14124_v36, %v5708_v61 }
0x1939   :  { %v11534_v13 = vpop.eup %11533  ;;  %10985 = vmatpush3.bf16.msra.mxu0 %v10984_v29  ;;  %10375 = vmatprep.mubr.msk.f32.mxu0 %vm11902_vm1, %v11900_v0 }
0x193a   :  { %v6023_v12 = vpop.permute.xlu0 %6022  ;;  %v5993_v6 = vpop.xlane.xlu1 %5992  ;;  %v5714_v31 = vsel %vm519_vm4, %v5711_v4, 0.0  ;;  %10400 = vmatprep.subr.mxu0 %v11900_v0  ;;  %v5709_v54 = vmul.f32 %v11534_v13, %v14244_v17 }
0x193b   :  { %11539 = vrcp.f32 %v5993_v6  ;;  %5715 = vadd.xlane.f32.xlu0 %v5714_v31 }
0x193c   :  { %10376 = vmatmul.mubr.msk.f32.gmra.mrb[110].mxu0 %vm519_vm4, %v5709_v54  ;;  %v5712_v20 = vmul.f32 %v14130_v39, %v5709_v54 }
0x193d   :  { %v11536_v50 = vpop.eup %11535  ;;  %10401 = vmatpush3.msk.msra.mxu0 %vm581_vm6, %v6023_v12  ;;  %10378 = vmatprep.mubr.msk.f32.mxu0 %vm11902_vm1, %v11900_v0 }
0x193e   :  { %v5996_v2 = vpop.xlane.xlu1 %5995  ;;  %v5717_v46 = vsel %vm519_vm4, %v5712_v20, 0.0  ;;  %v5710_v24 = vmul.f32 %v11536_v50, %v14249_v53  ;;  %10990 = vmatprep.subr.bf16.mxu0 %v11901_v16 }
0x193f   :  { %11541 = vrcp.f32 %v5996_v2  ;;  %5718 = vadd.xlane.f32.xlu0 %v5717_v46 }
0x1940   :  { %10379 = vmatmul.mubr.msk.f32.gmra.mrb[112].mxu0 %vm519_vm4, %v5710_v24  ;;  %v5713_v17 = vmul.f32 %v14141_v25, %v5710_v24 }
0x1941   :  { %v11538_v52 = vpop.eup %11537  ;;  %10402 = vmatprep.mubr.msk.f32.mxu0 %vm11902_vm1, %v11900_v0 }
0x1942   :  { %v6000_v35 = vmul.f32 %v11538_v52, %v14254_v9  ;;  %v6280_v27 = vpop.xlane.xlu1 %6279  ;;  %v5720_v56 = vsel %vm526_vm5, %v5713_v17, 0.0 }
0x1943   :  { %11543 = vrcp.f32 %v6280_v27  ;;  %5721 = vadd.xlane.f32.xlu0 %v5720_v56  ;;  %v5438_v56 = vmul.f32 %v14130_v39, %v14297_v5 }
0x1944   :  { %10403 = vmatmul.mubr.msk.f32.vlgmr.msra.gmra.mrb[114].mxu0 %vm519_vm4, %v6000_v35  ;;  %v6003_v53 = vmul.f32 %v14124_v36, %v6000_v35 }
0x1945   :  { %v11540_v41 = vpop.eup %11539  ;;  %10405 = vmatprep.mubr.msk.f32.mxu0 %vm11902_vm1, %v11900_v0 }
0x1946   :  { %v6006_v44 = vsel %vm519_vm4, %v6003_v53, 0.0  ;;  %v6001_v59 = vmul.f32 %v11540_v41, %v14258_v14  ;;  %v5443_v53 = vsel %vm519_vm4, %v5438_v56, 0.0 }
0x1947   :  { %6007 = vadd.xlane.f32.xlu1 %v6006_v44 }
0x1948   :  { %10406 = vmatmul.mubr.msk.f32.gmra.mrb[116].mxu0 %vm519_vm4, %v6001_v59  ;;  %v6004_v9 = vmul.f32 %v14130_v39, %v6001_v59 }
0x1949   :  { %v11542_v58 = vpop.eup %11541  ;;  %10408 = vmatprep.mubr.msk.f32.mxu0 %vm11902_vm1, %v11900_v0 }
0x194a   :  { %v6009_v37 = vsel %vm519_vm4, %v6004_v9, 0.0  ;;  %v6002_v49 = vmul.f32 %v11542_v58, %v14262_v63 }
0x194b   :  { %6010 = vadd.xlane.f32.xlu0 %v6009_v37 }
0x194c   :  { %10409 = vmatmul.mubr.msk.f32.gmra.mrb[118].mxu0 %vm519_vm4, %v6002_v49  ;;  %v6005_v32 = vmul.f32 %v14141_v25, %v6002_v49 }
0x194d   :  { %v11544_v26 = vpop.eup %11543  ;;  %10432 = vmatprep.mubr.msk.f32.mxu0 %vm11902_vm1, %v11900_v0 }
0x194e   :  { %v6290_v14 = vmul.f32 %v11544_v26, %v14266_v60  ;;  %v6012_v1 = vsel %vm526_vm5, %v6005_v32, 0.0  ;;  %v5439_v32 = vmul.f32 %v14141_v25, %v14304_v7 }
0x1950   :  { %v6293_v30 = vmul.f32 %v14124_v36, %v6290_v14 }
0x1952   :  { %v6296_v62 = vsel %vm519_vm4, %v6293_v30, 0.0 }
0x1953   :  { %6297 = vadd.xlane.f32.xlu0 %v6296_v62 }
0x196b   :  { %v6283_v38 = vpop.xlane.xlu0 %6282 }
0x196c   :  { %11545 = vrcp.f32 %v6283_v38 }
0x1976   :  { %v11546_v43 = vpop.eup %11545 }
0x1977   :  { %v6286_v33 = vpop.xlane.xlu1 %6285  ;;  %v6291_v63 = vmul.f32 %v11546_v43, %v14274_v40  ;;  %v6313_v40 = vpop.permute.xlu0 %6312 }
0x1978   :  { %11547 = vrcp.f32 %v6286_v33 }
0x1979   :  { %v6294_v48 = vmul.f32 %v14130_v39, %v6291_v63 }
0x197b   :  { %v11280_v10 = vpop.permute.xlu1 %11279  ;;  %v6299_v57 = vsel %vm519_vm4, %v6294_v48, 0.0 }
0x197c   :  { %v11282_v60 = vunpack.i.h.bf16 %v11280_v10  ;;  %v11281_v51 = vunpack.i.l.bf16 %v11280_v10  ;;  %6300 = vadd.xlane.f32.xlu1 %v6299_v57 }
0x197e   :  { %v10991_v22 = vpack.c.bf16 %v11282_v60, %v11281_v51  ;;  %v5446_v60 = vsel %vm526_vm5, %v5439_v32, 0.0  ;;  %v5437_v51 = vmul.f32 %v14124_v36, %v14279_v47 }
0x1980   :  { %6013 = vadd.xlane.f32.xlu1 %v6012_v1  ;;  %10992 = vmatpush3.bf16.msra.mxu0 %v10991_v22 }
0x1981   :  { %10430 = vmatprep.subr.mxu0 %v11900_v0 }
0x1982   :  { %v11548_v45 = vpop.eup %11547 }
0x1983   :  { %v6292_v61 = vmul.f32 %v11548_v45, %v14281_v42 }
0x1984   :  { %10431 = vmatpush3.msk.msra.mxu0 %vm581_vm6, %v6313_v40 }
0x1985   :  { %10433 = vmatmul.mubr.msk.f32.vlgmr.msra.gmra.mrb[120].mxu0 %vm519_vm4, %v6290_v14  ;;  %v6295_v3 = vmul.f32 %v14141_v25, %v6292_v61 }
0x1986   :  { %10435 = vmatprep.mubr.msk.f32.mxu0 %vm11902_vm1, %v11900_v0 }
0x1987   :  { %v6302_v29 = vsel %vm526_vm5, %v6295_v3, 0.0 }
0x1988   :  { %6303 = vadd.xlane.f32.xlu0 %v6302_v29 }
0x1989   :  { %10436 = vmatmul.mubr.msk.f32.gmra.mrb[122].mxu0 %vm519_vm4, %v6291_v63 }
0x198a   :  { %10438 = vmatprep.mubr.msk.f32.mxu0 %vm11902_vm1, %v11900_v0 }
0x198d   :  { %10439 = vmatmul.mubr.msk.f32.gmra.mrb[124].mxu0 %vm519_vm4, %v6292_v61 }
0x198e   :  { %6799 = vmatprep.mubr.f32.mxu0 %v11900_v0 }
0x19bc   :  { %v14368_v42 = vpop.f32.mrb[102].mxu0 }
0x19bd   :  { %v10344_v4 = vpop.f32.mrb[103].mxu0 }
0x19c8   :  { %v5716_v13 = vpop.xlane.xlu0 %5715 }
0x19c9   :  { %v5723_v12 = vmul.f32 %v14050_v23, %v5716_v13 }
0x19cb   :  { %5739 = vrot.lane.b32.xlu1 %v5723_v12, %s11903_s3 }
0x19cc   :  { %v5719_v6 = vpop.xlane.xlu0 %5718 }
0x19cd   :  { %v5724_v31 = vmul.f32 %v14050_v23, %v5719_v6 }
0x19cf   :  { %5741 = vrot.lane.b32.xlu1 %v5724_v31, %s11903_s3 }
0x19d0   :  { %v5722_v54 = vpop.xlane.xlu0 %5721 }
0x19d1   :  { %v5725_v20 = vmul.f32 %v14050_v23, %v5722_v54 }
0x19d3   :  { %5743 = vrot.lane.b32.xlu0 %v5725_v20, %s11903_s3 }
0x19d4   :  { %v6008_v50 = vpop.xlane.xlu1 %6007 }
0x19d5   :  { %v6015_v2 = vmul.f32 %v14050_v23, %v6008_v50 }
0x19d7   :  { %6029 = vrot.lane.b32.xlu0 %v6015_v2, %s11896_s6 }
0x19d8   :  { %v6011_v46 = vpop.xlane.xlu0 %6010 }
0x19d9   :  { %v6016_v24 = vmul.f32 %v14050_v23, %v6011_v46 }
0x19db   :  { %6031 = vrot.lane.b32.xlu0 %v6016_v24, %s11896_s6 }
0x19e0   :  { %v6298_v37 = vpop.xlane.xlu0 %6297 }
0x19e1   :  { %v6305_v14 = vmul.f32 %v14050_v23, %v6298_v37 }
0x19ed   :  { %v14380_v17 = vpop.f32.mrb[104].mxu0 }
0x19ee   :  { %v10347_v52 = vpop.f32.mrb[105].mxu0 }
0x19f1   :  { %v14382_v35 = vpop.f32.mrb[106].mxu0 }
0x19f2   :  { %v10350_v27 = vpop.f32.mrb[107].mxu0 }
0x19fa   :  { %5444 = vadd.xlane.f32.xlu0 %v5443_v53 }
0x1a09   :  { %v6301_v41 = vpop.xlane.xlu1 %6300 }
0x1a0a   :  { %v6306_v5 = vmul.f32 %v14050_v23, %v6301_v41 }
0x1a0b   :  { %v5825_v44 = vpop.f32.mrb[108].mxu0 }
0x1a0c   :  { %v10374_v59 = vpop.f32.mrb[109].mxu0 }
0x1a0d   :  { %v6014_v9 = vpop.xlane.xlu1 %6013  ;;  %v11667_v59 = vld [vmem:[#allocation5 + $0x3] ss:$0 sm:$0xff] }
0x1a0e   :  { %v6017_v58 = vmul.f32 %v14050_v23, %v6014_v9 }
0x1a0f   :  { %v5830_v49 = vpop.f32.mrb[110].mxu0 }
0x1a10   :  { %v10377_v26 = vpop.f32.mrb[111].mxu0  ;;  %6033 = vrot.lane.b32.xlu1 %v6017_v58, %s11896_s6 }
0x1a13   :  { %v5835_v30 = vpop.f32.mrb[112].mxu0 }
0x1a14   :  { %v10380_v62 = vpop.f32.mrb[113].mxu0  ;;  %6319 = vrot.lane.b32.xlu1 %v6305_v14, %s11904_s28 }
0x1a15   :  { %v6304_v39 = vpop.xlane.xlu0 %6303 }
0x1a16   :  { %v6307_v38 = vmul.f32 %v14050_v23, %v6304_v39  ;;  %v5440_v23 = vsel %vm519_vm4, %v5437_v51, 0.0 }
0x1a17   :  { %v6115_v43 = vpop.f32.mrb[114].mxu0 }
0x1a18   :  { %6323 = vrot.lane.b32.xlu0 %v6307_v38, %s11904_s28  ;;  %6321 = vrot.lane.b32.xlu1 %v6306_v5, %s11904_s28  ;;  %v10404_v33 = vpop.f32.mrb[115].mxu0 }
0x1a1b   :  { %v6120_v63 = vpop.f32.mrb[116].mxu0 }
0x1a1c   :  { %v10407_v48 = vpop.f32.mrb[117].mxu0 }
0x1a1f   :  { %v6125_v10 = vpop.f32.mrb[118].mxu0 }
0x1a20   :  { %v10410_v57 = vpop.f32.mrb[119].mxu0 }
0x1a37   :  { %5447 = vadd.xlane.f32.xlu0 %v5446_v60 }
0x1a3c   :  { %5441 = vadd.xlane.f32.xlu1 %v5440_v23 }
0x1a3d   :  { %v5740_v1 = vpop.permute.xlu1 %5739 }
0x1a3e   :  { %v5826_v40 = vadd.f32 %v5825_v44, %v5740_v1  ;;  %v6465_v44 = vld [vmem:[#allocation7 + $0xc] sm:$0x7] }
0x1a3f   :  { %v6470_v58 = vrot.slane %v6465_v44, 1 }
0x1a41   :  { %v5742_v3 = vpop.permute.xlu1 %5741  ;;  %v6472_v39 = vsub.f32 %v6465_v44, %v6470_v58  ;;  %v9352_v58 = vld [vmem:[%s15591_s14 + $0x1c0] sm:$0xff] }
0x1a42   :  { %v5831_v25 = vadd.f32 %v5830_v49, %v5742_v3  ;;  %v6467_v49 = vrot.slane %v6465_v44, 2 }
0x1a44   :  { %v6469_v5 = vadd.f32 %v6467_v49, %v6465_v44  ;;  %v9350_v44 = vld [vmem:[%s15591_s14 + $0x1b0] sm:$0xff] }
0x1a45   :  { %v5744_v22 = vpop.permute.xlu0 %5743 }
0x1a46   :  { %v5836_v61 = vadd.f32 %v5835_v30, %v5744_v22  ;;  %v11668_v30 = vld [vmem:[%s15587_s29 + $0xc] sm:$0xf] }
0x1a47   :  { %v5094_v62 = vrot.slane %v11668_v30, %v12650_v55 }
0x1a49   :  { %v6030_v45 = vpop.permute.xlu0 %6029  ;;  %v14417_v48 = vadd.f32 %v14015_v28, %v5094_v62  ;;  %v14429_v28 = vadd.f32 %v14019_v15, %v5094_v62  ;;  %v14440_v15 = vadd.f32 %v14027_v8, %v5094_v62  ;;  %v9344_v8 = vld [vmem:[%s15591_s14 + $0x180] sm:$0xff] }
0x1a4a   :  { %v6116_v7 = vadd.f32 %v6115_v43, %v6030_v45  ;;  %v9356_v62 = vld [vmem:[%s15591_s14 + $0x1e0] sm:$0xff] }
0x1a4d   :  { %6426 = vrot.lane.b32.xlu0 %v5836_v61, %s11904_s28  ;;  %6422 = vrot.lane.b32.xlu1 %v5826_v40, %s11904_s28  ;;  %v6032_v29 = vpop.permute.xlu0 %6031 }
0x1a4e   :  { %v6121_v36 = vadd.f32 %v6120_v63, %v6032_v29 }
0x1a51   :  { %6424 = vrot.lane.b32.xlu1 %v5831_v25, %s11904_s28  ;;  %6434 = vrot.lane.b32.xlu0 %v6116_v7, %s11896_s6 }
0x1a55   :  { %6436 = vrot.lane.b32.xlu0 %v6121_v36, %s11896_s6 }
0x1a58   :  { %v6405_v47 = vpop.f32.mrb[120].mxu0 }
0x1a59   :  { %v10434_v4 = vpop.f32.mrb[121].mxu0 }
0x1a5c   :  { %v6410_v13 = vpop.f32.mrb[122].mxu0 }
0x1a5d   :  { %v10437_v12 = vpop.f32.mrb[123].mxu0 }
0x1a60   :  { %v6415_v6 = vpop.f32.mrb[124].mxu0 }
0x1a61   :  { %v10440_v31 = vpop.f32.mrb[125].mxu0 }
0x1a82   :  { %v6034_v54 = vpop.permute.xlu1 %6033 }
0x1a83   :  { %v6126_v56 = vadd.f32 %v6125_v10, %v6034_v54  ;;  %v6483_v10 = vrot.slane %v6472_v39, %v12187_v19  ;;  %v9357_v39 = vld [vmem:[%s15591_s14 + $0x1e8] sm:$0xff] }
0x1a85   :  { %v6484_v1 = vmul.f32 %v6483_v10, %v14417_v48  ;;  %v6485_v29 = vmul.f32 %v6483_v10, %v14429_v28  ;;  %v6486_v31 = vmul.f32 %v6483_v10, %v14440_v15 }
0x1a86   :  { %v6320_v20 = vpop.permute.xlu1 %6319 }
0x1a87   :  { %v6406_v50 = vadd.f32 %v6405_v47, %v6320_v20  ;;  %v5445_v2 = vpop.xlane.xlu0 %5444 }
0x1a88   :  { %v5450_v38 = vmul.f32 %v11667_v59, %v5445_v2  ;;  %v9345_v2 = vld [vmem:[%s15591_s14 + $0x188] sm:$0xff] }
0x1a89   :  { %6446 = vrot.lane.b32.xlu1 %v6406_v50, %s11903_s3 }
0x1a8a   :  { %v6322_v46 = vpop.permute.xlu1 %6321  ;;  %v5536_v57 = vadd.f32 %v14380_v17, %v5450_v38  ;;  %v9358_v38 = vld [vmem:[%s15591_s14 + $0x1f0] sm:$0xff] }
0x1a8b   :  { %v6411_v24 = vadd.f32 %v6410_v13, %v6322_v46  ;;  %v6324_v52 = vpop.permute.xlu0 %6323  ;;  %v10994_v46 = vpack.c.bf16 %v9345_v2, %v9344_v8  ;;  %v9372_v2 = vld [vmem:[%s15585_s30 + $0x248] sm:$0xff] }
0x1a8c   :  { %v6416_v27 = vadd.f32 %v6415_v6, %v6324_v52  ;;  %v9347_v52 = vld [vmem:[%s15591_s14 + $0x198] sm:$0xff] }
0x1a8d   :  { %6448 = vrot.lane.b32.xlu1 %v6411_v24, %s11903_s3  ;;  %10995 = vmatpush3.bf16.msra.mxu1 %v10994_v46  ;;  %v9346_v24 = vld [vmem:[%s15591_s14 + $0x190] sm:$0xff]  ;;  %v9376_v46 = vld [vmem:[%s15585_s30 + $0x268] sm:$0xff] }
0x1a8e   :  { %6450 = vrot.lane.b32.xlu0 %v6416_v27, %s11903_s3  ;;  %10996 = vmatprep.subr.bf16.mxu1 %v11901_v16  ;;  %v10997_v27 = vpack.c.bf16 %v9347_v52, %v9346_v24  ;;  %v11021_v24 = vpack.c.bf16 %v9376_v46, %v9372_v2  ;;  %v9371_v52 = vld [vmem:[%s15585_s30 + $0x240] sm:$0xff] }
0x1a91   :  { %6438 = vrot.lane.b32.xlu1 %v6126_v56, %s11896_s6  ;;  %10998 = vmatpush3.bf16.msra.mxu1 %v10997_v27  ;;  %v9348_v56 = vld [vmem:[%s15591_s14 + $0x1a0] sm:$0xff] }
0x1a92   :  { %10999 = vmatprep.subr.bf16.mxu1 %v11901_v16  ;;  %v9375_v27 = vld [vmem:[%s15585_s30 + $0x260] sm:$0xff] }
0x1ac4   :  { %v5448_v41 = vpop.xlane.xlu0 %5447 }
0x1ac5   :  { %v5451_v32 = vmul.f32 %v11667_v59, %v5448_v41 }
0x1ac7   :  { %v5541_v61 = vadd.f32 %v14382_v35, %v5451_v32 }
0x1ac8   :  { %v6427_v26 = vpop.permute.xlu0 %6426 }
0x1ac9   :  { %v5442_v53 = vpop.xlane.xlu1 %5441  ;;  %v6457_v47 = vsel %vm216_vm0, %v5541_v61, %v6427_v26  ;;  %v9354_v26 = vld [vmem:[%s15591_s14 + $0x1d0] sm:$0xff] }
0x1aca   :  { %v5449_v9 = vmul.f32 %v11667_v59, %v5442_v53  ;;  %v9349_v53 = vld [vmem:[%s15591_s14 + $0x1a8] sm:$0xff]  ;;  %v9351_v59 = vld [vmem:[%s15591_s14 + $0x1b8] sm:$0xff] }
0x1acb   :  { %v11000_v41 = vpack.c.bf16 %v9349_v53, %v9348_v56  ;;  %v11023_v56 = vpack.c.bf16 %v9375_v27, %v9371_v52  ;;  %v9366_v53 = vld [vmem:[%s15585_s30 + $0x218] sm:$0xff]  ;;  %v9369_v52 = vld [vmem:[%s15585_s30 + $0x230] sm:$0xff]  ;;  %v9362_v27 = vld [vmem:[#allocation11 + $0x3] ss:$0 sm:$0xff] }
0x1acc   :  { %v5531_v14 = vadd.f32 %v14368_v42, %v5449_v9  ;;  %v6435_v33 = vpop.permute.xlu0 %6434  ;;  %v6476_v42 = vrot.slane %v6469_v5, %v12195_v21  ;;  %v11003_v9 = vpack.c.bf16 %v9351_v59, %v9350_v44  ;;  %v11012_v5 = vpack.c.bf16 %v9357_v39, %v9356_v62  ;;  %v9360_v59 = vld [vmem:[#allocation8 + $0x3] ss:$0 sm:$0xff] }
0x1acd   :  { %v6423_v37 = vpop.permute.xlu1 %6422  ;;  %11001 = vmatpush3.bf16.msra.mxu1 %v11000_v41  ;;  %v9370_v41 = vld [vmem:[%s15585_s30 + $0x238] sm:$0xff] }
0x1ace   :  { %v6455_v63 = vsel %vm216_vm0, %v5531_v14, %v6423_v37  ;;  %11002 = vmatprep.subr.bf16.mxu1 %v11901_v16  ;;  %v9353_v37 = vld [vmem:[%s15591_s14 + $0x1c8] sm:$0xff]  ;;  %v9355_v14 = vld [vmem:[%s15591_s14 + $0x1d8] sm:$0xff]  ;;  %v11025_v44 = vpack.c.bf16 %v9370_v41, %v9366_v53 }
0x1acf   :  { %v6458_v60 = vsel %vm1579_vm7, %v6455_v63, %v6435_v33  ;;  %v11006_v49 = vpack.c.bf16 %v9353_v37, %v9352_v58  ;;  %v11009_v30 = vpack.c.bf16 %v9355_v14, %v9354_v26  ;;  %v9378_v53 = vld [vmem:[%s15585_s30 + $0x278] sm:$0xff] }
0x1ad0   :  { %v6437_v40 = vpop.permute.xlu0 %6436 }
0x1ad1   :  { %v6425_v43 = vpop.permute.xlu1 %6424  ;;  %11004 = vmatpush3.bf16.msra.mxu1 %v11003_v9 }
0x1ad2   :  { %v6456_v23 = vsel %vm216_vm0, %v5536_v57, %v6425_v43  ;;  %11005 = vmatprep.subr.bf16.mxu1 %v11901_v16  ;;  %v9359_v43 = vld [vmem:[%s15591_s14 + $0x1f8] sm:$0xff] }
0x1ad3   :  { %v6459_v17 = vsel %vm1579_vm7, %v6456_v23, %v6437_v40  ;;  %v11015_v33 = vpack.c.bf16 %v9359_v43, %v9358_v38 }
0x1ad5   :  { %11007 = vmatpush3.bf16.msra.mxu1 %v11006_v49 }
0x1ad6   :  { %11008 = vmatprep.subr.bf16.mxu1 %v11901_v16 }
0x1ad9   :  { %11010 = vmatpush3.bf16.msra.mxu1 %v11009_v30 }
0x1ada   :  { %11011 = vmatprep.subr.bf16.mxu1 %v11901_v16 }
0x1add   :  { %11013 = vmatpush3.bf16.msra.mxu1 %v11012_v5 }
0x1ade   :  { %11014 = vmatprep.subr.bf16.mxu1 %v11901_v16 }
0x1ae1   :  { %11016 = vmatpush3.bf16.msra.mxu1 %v11015_v33 }
0x1ae2   :  { %11037 = vmatprep.subr.bf16.mxu1 %v11901_v16 }
0x1afb   :  { %v6447_v51 = vpop.permute.xlu1 %6446 }
0x1afc   :  { %v14425_v22 = vsel %vm1583_vm8, %v6458_v60, %v6447_v51 }
0x1afd   :  { %v6477_v45 = vmul.f32 %v6476_v42, %v14425_v22 }
0x1aff   :  { %v6449_v3 = vpop.permute.xlu1 %6448  ;;  %v6487_v25 = vadd.f32 %v6484_v1, %v6477_v45 }
0x1b00   :  { %v14435_v7 = vsel %vm1583_vm8, %v6459_v17, %v6449_v3  ;;  %v6451_v35 = vpop.permute.xlu0 %6450 }
0x1b01   :  { %v6478_v36 = vmul.f32 %v6476_v42, %v14435_v7  ;;  %6490 = vadd.xlane.f32.xlu1 %v6487_v25 }
0x1b03   :  { %v6439_v4 = vpop.permute.xlu1 %6438  ;;  %v6488_v13 = vadd.f32 %v6485_v29, %v6478_v36  ;;  %v6512_v29 = vsub.f32 %v14417_v48, %v14425_v22 }
0x1b04   :  { %v6460_v12 = vsel %vm1579_vm7, %v6457_v47, %v6439_v4  ;;  %v6513_v4 = vsub.f32 %v14429_v28, %v14435_v7 }
0x1b05   :  { %v14445_v6 = vsel %vm1583_vm8, %v6460_v12, %v6451_v35  ;;  %6492 = vadd.xlane.f32.xlu0 %v6488_v13 }
0x1b06   :  { %v6479_v54 = vmul.f32 %v6476_v42, %v14445_v6 }
0x1b08   :  { %v6489_v20 = vadd.f32 %v6486_v31, %v6479_v54  ;;  %v6514_v54 = vsub.f32 %v14440_v15, %v14445_v6 }
0x1b0a   :  { %v6494_v50 = vsel %vm581_vm6, %v6489_v20, 0.0 }
0x1b0b   :  { %6495 = vadd.xlane.f32.xlu0 %v6494_v50  ;;  %v9363_v50 = vld [vmem:[%s15585_s30 + $0x200] sm:$0xff] }
0x1b8e   :  { %v6491_v63 = vpop.xlane.xlu1 %6490 }
0x1b8f   :  { %v6497_v10 = vsub.f32 0.0, %v6491_v63 }
0x1b91   :  { %v6500_v42 = vmul.f32 1.442695, %v6497_v10 }
0x1b92   :  { %v6493_v57 = vpop.xlane.xlu0 %6492 }
0x1b93   :  { %11549 = vpow2.f32 %v6500_v42  ;;  %v6498_v32 = vsub.f32 0.0, %v6493_v57 }
0x1b95   :  { %v6502_v60 = vmul.f32 1.442695, %v6498_v32 }
0x1b97   :  { %11551 = vpow2.f32 %v6502_v60 }
0x1b98   :  { %v6496_v51 = vpop.xlane.xlu0 %6495 }
0x1b99   :  { %v6499_v23 = vsub.f32 0.0, %v6496_v51 }
0x1b9b   :  { %v6504_v1 = vmul.f32 1.442695, %v6499_v23 }
0x1b9d   :  { %v11550_v45 = vpop.eup %11549  ;;  %11553 = vpow2.f32 %v6504_v1 }
0x1b9e   :  { %v6506_v40 = vadd.f32 1.0, %v11550_v45 }
0x1ba0   :  { %11555 = vrcp.f32 %v6506_v40 }
0x1ba1   :  { %v11552_v61 = vpop.eup %11551 }
0x1ba2   :  { %v6507_v17 = vadd.f32 1.0, %v11552_v61 }
0x1ba4   :  { %11557 = vrcp.f32 %v6507_v17 }
0x1ba7   :  { %v11554_v3 = vpop.eup %11553 }
0x1ba8   :  { %v6508_v25 = vadd.f32 1.0, %v11554_v3 }
0x1baa   :  { %v11556_v36 = vpop.eup %11555  ;;  %11559 = vrcp.f32 %v6508_v25 }
0x1bab   :  { %v6515_v47 = vmul.f32 %v11556_v36, %v6512_v29 }
0x1bad   :  { %v6518_v13 = vadd.f32 %v6515_v47, %v14425_v22  ;;  %v9364_v22 = vld [vmem:[%s15585_s30 + $0x208] sm:$0xff] }
0x1bae   :  { %v11558_v35 = vpop.eup %11557 }
0x1baf   :  { %10474 = vmatmul.mubr.f32.vlgmr.msra.gmra.mrb[132].mxu1 %v6518_v13  ;;  %v6516_v12 = vmul.f32 %v11558_v35, %v6513_v4 }
0x1bb0   :  { %10476 = vmatprep.mubr.msk.f32.mxu1 %vm11902_vm1, %v11900_v0 }
0x1bb1   :  { %v6519_v31 = vadd.f32 %v6516_v12, %v14435_v7  ;;  %v9368_v7 = vld [vmem:[%s15585_s30 + $0x228] sm:$0xff] }
0x1bb2   :  { %v11017_v15 = vpack.c.bf16 %v9368_v7, %v9364_v22 }
0x1bb3   :  { %10477 = vmatmul.mubr.f32.gmra.mrb[134].mxu1 %v6519_v31 }
0x1bb4   :  { %v11560_v48 = vpop.eup %11559  ;;  %10479 = vmatprep.mubr.msk.f32.mxu1 %vm11902_vm1, %v11900_v0  ;;  %11018 = vmatprep.subr.bf16.mxu0 %v11017_v15 }
0x1bb5   :  { %v6517_v20 = vmul.f32 %v11560_v48, %v6514_v54 }
0x1bb7   :  { %v6520_v28 = vadd.f32 %v6517_v20, %v14445_v6  ;;  %v9367_v6 = vld [vmem:[%s15585_s30 + $0x220] sm:$0xff] }
0x1bb8   :  { %v11019_v8 = vpack.c.bf16 %v9367_v6, %v9363_v50  ;;  %v9361_v6 = vld [vmem:[#allocation10 + $0x3] ss:$0 sm:$0xff] }
0x1bb9   :  { %10480 = vmatmul.mubr.f32.gmra.mrb[136].mxu1 %v6520_v28 }
0x1bba   :  { %10503 = vmatprep.mubr.msk.f32.mxu1 %vm11902_vm1, %v11900_v0  ;;  %11020 = vmatpush1.bf16.msra.mxu0 %v11019_v8 }
0x1bbb   :  { %11022 = vmatprep.subr.bf16.mxu0 %v11021_v24  ;;  %v9365_v24 = vld [vmem:[%s15585_s30 + $0x210] sm:$0xff] }
0x1bbe   :  { %11024 = vmatpush1.bf16.msra.mxu0 %v11023_v56  ;;  %v9374_v56 = vld [vmem:[%s15585_s30 + $0x258] sm:$0xff] }
0x1bbf   :  { %11026 = vmatprep.subr.bf16.mxu0 %v11025_v44  ;;  %v11027_v44 = vpack.c.bf16 %v9369_v52, %v9365_v24 }
0x1c82   :  { %v6612_v9 = vpop.f32.mrb[132].mxu1 }
0x1c83   :  { %v6613_v58 = vadd.f32 %v9360_v59, %v6612_v9  ;;  %v10475_v37 = vpop.f32.mrb[133].mxu1 }
0x1c84   :  { %v9373_v37 = vld [vmem:[%s15585_s30 + $0x250] sm:$0xff] }
0x1c85   :  { %v6626_v26 = vmax.f32 %v6613_v58, 0.0  ;;  %v11029_v58 = vpack.c.bf16 %v9378_v53, %v9374_v56 }
0x1c86   :  { %v6617_v49 = vpop.f32.mrb[134].mxu1 }
0x1c87   :  { %v6618_v14 = vadd.f32 %v9360_v59, %v6617_v49  ;;  %v10478_v30 = vpop.f32.mrb[135].mxu1  ;;  %v6629_v39 = vsel %vm216_vm0, %v6626_v26, 0.0  ;;  %v9377_v49 = vld [vmem:[%s15585_s30 + $0x270] sm:$0xff] }
0x1c89   :  { %v6627_v62 = vmax.f32 %v6618_v14, 0.0 }
0x1c8b   :  { %v6630_v5 = vsel %vm216_vm0, %v6627_v62, 0.0 }
0x1c8c   :  { %v6631_v38 = vadd.f32 %v6630_v5, %v6629_v39  ;;  %v6622_v43 = vpop.f32.mrb[136].mxu1  ;;  %v9379_v39 = vld [vmem:[%s15587_s29 + $0x10] sm:$0xf] }
0x1c8d   :  { %v6623_v33 = vadd.f32 %v9360_v59, %v6622_v43  ;;  %v10481_v63 = vpop.f32.mrb[137].mxu1  ;;  %v6713_v43 = vrot.slane %v9379_v39, %v12187_v19 }
0x1c8f   :  { %v6628_v10 = vmax.f32 %v6623_v33, 0.0 }
0x1c91   :  { %v6632_v42 = vsel %vm411_vm3, %v6628_v10, 0.0 }
0x1c92   :  { %v6633_v57 = vadd.f32 %v6632_v42, %v6631_v38 }
0x1c94   :  { %v6634_v32 = vrot.slane %v6633_v57, 4 }
0x1c96   :  { %v6635_v60 = vadd.f32 %v6634_v32, %v6633_v57  ;;  %v6709_v57 = vrot.slane %v9379_v39, %v12195_v21 }
0x1c98   :  { %v6636_v51 = vrot.slane %v6635_v60, 2 }
0x1c9a   :  { %v6637_v23 = vadd.f32 %v6636_v51, %v6635_v60 }
0x1c9c   :  { %v6638_v1 = vrot.slane %v6637_v23, 1 }
0x1c9e   :  { %v6639_v45 = vadd.f32 %v6638_v1, %v6637_v23 }
0x1ca0   :  { %v6640_v40 = vmul.f32 0.05, %v6639_v45 }
0x1ca2   :  { %v6641_v61 = vsub.f32 %v6626_v26, %v6640_v40  ;;  %v6642_v17 = vsub.f32 %v6627_v62, %v6640_v40  ;;  %v6643_v3 = vsub.f32 %v6628_v10, %v6640_v40  ;;  %v11031_v26 = vpack.c.bf16 %v9377_v49, %v9373_v37 }
0x1ca4   :  { %v6644_v25 = vmul.f32 %v6641_v61, %v6641_v61  ;;  %v6645_v29 = vmul.f32 %v6642_v17, %v6642_v17  ;;  %v6646_v36 = vmul.f32 %v6643_v3, %v6643_v3 }
0x1ca6   :  { %v6647_v47 = vsel %vm216_vm0, %v6644_v25, 0.0  ;;  %v6648_v4 = vsel %vm216_vm0, %v6645_v29, 0.0  ;;  %v6650_v35 = vsel %vm411_vm3, %v6646_v36, 0.0 }
0x1ca7   :  { %v6649_v13 = vadd.f32 %v6648_v4, %v6647_v47 }
0x1ca9   :  { %v6651_v12 = vadd.f32 %v6650_v35, %v6649_v13 }
0x1cab   :  { %v6652_v31 = vrot.slane %v6651_v12, 4 }
0x1cad   :  { %v6653_v54 = vadd.f32 %v6652_v31, %v6651_v12 }
0x1caf   :  { %v6654_v48 = vrot.slane %v6653_v54, 2 }
0x1cb1   :  { %v6655_v20 = vadd.f32 %v6654_v48, %v6653_v54 }
0x1cb3   :  { %v6656_v28 = vrot.slane %v6655_v20, 1 }
0x1cb5   :  { %v6657_v22 = vadd.f32 %v6656_v28, %v6655_v20  ;;  %v14637_v28 = vld [vmem:[#allocation5 + $0x4] ss:$0 sm:$0xff] }
0x1cb7   :  { %v6658_v7 = vmul.f32 0.05, %v6657_v22 }
0x1cb9   :  { %v6659_v15 = vadd.f32 1e-05, %v6658_v7 }
0x1cbb   :  { %11561 = vrsqrt.f32 %v6659_v15 }
0x1cc5   :  { %v11562_v50 = vpop.eup %11561 }
0x1cc6   :  { %v6661_v8 = vmul.f32 %v11562_v50, %v6641_v61  ;;  %v6663_v2 = vmul.f32 %v11562_v50, %v6643_v3  ;;  %v6662_v46 = vmul.f32 %v11562_v50, %v6642_v17  ;;  %v6717_v17 = vrot.slane %v9379_v39, %v12379_v11 }
0x1cc8   :  { %v6672_v41 = vmul.f32 %v9361_v6, %v6661_v8  ;;  %v6673_v9 = vmul.f32 %v9361_v6, %v6662_v46  ;;  %v6674_v14 = vmul.f32 %v9361_v6, %v6663_v2 }
0x1cca   :  { %v6683_v59 = vadd.f32 %v9362_v27, %v6672_v41  ;;  %v6684_v30 = vadd.f32 %v9362_v27, %v6673_v9  ;;  %v6685_v62 = vadd.f32 %v9362_v27, %v6674_v14 }
0x1ccc   :  { %9380 = vmatmul.mubr.msk.f32.vlgmr.msra.gmra.mrb[126].mxu0 %vm216_vm0, %v6683_v59 }
0x1ccd   :  { %6805 = vmatprep.mubr.f32.mxu0 %v11900_v0  ;;  %11028 = vmatpush1.bf16.msra.mxu0 %v11027_v44 }
0x1cce   :  { %11030 = vmatprep.subr.bf16.mxu0 %v11029_v58 }
0x1cd0   :  { %9381 = vmatmul.mubr.msk.f32.gmra.mrb[128].mxu0 %vm216_vm0, %v6684_v30 }
0x1cd1   :  { %6811 = vmatprep.mubr.f32.mxu0 %v11900_v0  ;;  %11032 = vmatpush1.bf16.msra.mxu0 %v11031_v26 }
0x1cd2   :  { %11033 = vmatprep.subr.bf16.mxu0 %v11901_v16 }
0x1cd4   :  { %9382 = vmatmul.mubr.msk.f32.gmra.mrb[130].mxu0 %vm216_vm0, %v6685_v62 }
0x1cd5   :  { %6882 = vmatprep.mubr.f32.mxu0 %v11900_v0 }
0x1cd8   :  { %9383 = vmatmul.mubr.msk.f32.vlgmr.msra.gmra.mrb[132].mxu0 %vm216_vm0, %v6683_v59 }
0x1cd9   :  { %6888 = vmatprep.mubr.f32.mxu0 %v11900_v0 }
0x1cdc   :  { %9384 = vmatmul.mubr.msk.f32.gmra.mrb[134].mxu0 %vm216_vm0, %v6684_v30 }
0x1cdd   :  { %6894 = vmatprep.mubr.f32.mxu0 %v11900_v0 }
0x1ce0   :  { %9385 = vmatmul.mubr.msk.f32.gmra.mrb[136].mxu0 %vm216_vm0, %v6685_v62 }
0x1ce1   :  { %10488 = vmatprep.mubr.msk.f32.mxu0 %vm11902_vm1, %v11900_v0 }
0x1d9f   :  { %v6801_v5 = vpop.f32.mrb[126].mxu0 }
0x1da0   :  { %v6803_v38 = vpop.f32.mrb[127].mxu0  ;;  %v6802_v40 = vadd.f32 %v6801_v5, %v6709_v57 }
0x1da1   :  { %v6804_v10 = vadd.f32 %v6803_v38, %v6713_v43 }
0x1da2   :  { %v6901_v29 = vmul.f32 0.17677669, %v6802_v40 }
0x1da3   :  { %v6807_v33 = vpop.f32.mrb[128].mxu0 }
0x1da4   :  { %v6809_v63 = vpop.f32.mrb[129].mxu0  ;;  %v6808_v1 = vadd.f32 %v6807_v33, %v6709_v57  ;;  %v6912_v7 = vmul.f32 %v14637_v28, %v6901_v29 }
0x1da5   :  { %v6810_v42 = vadd.f32 %v6809_v63, %v6713_v43 }
0x1da6   :  { %v6902_v25 = vmul.f32 0.17677669, %v6808_v1  ;;  %v6915_v50 = vsel %vm216_vm0, %v6912_v7, 0.0 }
0x1da7   :  { %v11034_v32 = vpack.c.bf16 %v6810_v42, %v6804_v10  ;;  %v6813_v60 = vpop.f32.mrb[130].mxu0  ;;  %v11283_v51 = vpack.i.bf16 %v6810_v42, %v6804_v10 }
0x1da8   :  { %v6815_v23 = vpop.f32.mrb[131].mxu0  ;;  %v6814_v36 = vadd.f32 %v6813_v60, %v6709_v57  ;;  %v6913_v22 = vmul.f32 %v14637_v28, %v6902_v25 }
0x1da9   :  { %v6816_v45 = vadd.f32 %v6815_v23, %v6713_v43  ;;  %11284 = vrot.lane.b32.xlu1 %v11283_v51, %s11903_s3  ;;  %11036 = vmatpush3.bf16.xpose.msk.msra.mxu0 %vm12203_vm2, %v11034_v32 }
0x1daa   :  { %10486 = vmatprep.subr.mxu0 %v11900_v0  ;;  %v6903_v31 = vmul.f32 0.17677669, %v6814_v36  ;;  %v6918_v8 = vsel %vm216_vm0, %v6913_v22, 0.0 }
0x1dab   :  { %v6884_v61 = vpop.f32.mrb[132].mxu0  ;;  %7205 = vrot.lane.b32.xlu0 %v6816_v45, %s11903_s3 }
0x1dac   :  { %v14600_v3 = vpop.f32.mrb[133].mxu0  ;;  %v6885_v4 = vadd.f32 %v6884_v61, %v6717_v17  ;;  %v6914_v15 = vmul.f32 %v14637_v28, %v6903_v31 }
0x1dad   :  { %11289 = vrot.lane.b32.xlu1 %v11283_v51, %s11896_s6 }
0x1dae   :  { %v6921_v6 = vsel %vm411_vm3, %v6914_v15, 0.0 }
0x1daf   :  { %v6890_v47 = vpop.f32.mrb[134].mxu0  ;;  %7197 = vrot.lane.b32.xlu0 %v6902_v25, %s11903_s3 }
0x1db0   :  { %v6891_v13 = vadd.f32 %v6890_v47, %v6717_v17  ;;  %v14604_v35 = vpop.f32.mrb[135].mxu0 }
0x1db1   :  { %10487 = vmatpush3.xpose.msk.msra.mxu0 %vm216_vm0, %v6816_v45  ;;  %7195 = vrot.lane.b32.xlu1 %v6901_v29, %s11903_s3 }
0x1db2   :  { %v11038_v12 = vpack.c.bf16 %v6891_v13, %v6885_v4  ;;  %11040 = vmatprep.subr.bf16.mxu0 %v11901_v16  ;;  %v14609_v11 = vpack.i.bf16 %v6891_v13, %v6885_v4 }
0x1db3   :  { %v6896_v54 = vpop.f32.mrb[136].mxu0  ;;  %7497 = vrot.lane.b32.xlu0 %v6816_v45, %s11896_s6 }
0x1db4   :  { %v14612_v48 = vpop.f32.mrb[137].mxu0  ;;  %10489 = vmatmul.mubr.msk.f32.vlgmr.msra.gmra.mrb[138].mxu0 %vm216_vm0, %v6901_v29  ;;  %11039 = vmatpush3.bf16.msra.mxu1 %v11038_v12  ;;  %v14617_v20 = vadd.f32 %v6896_v54, %v6717_v17  ;;  %v14709_v12 = vld [vmem:[%s15590_s27] sm:$0xff] }
0x1db5   :  { %7199 = vrot.lane.b32.xlu1 %v6903_v31, %s11903_s3  ;;  %10501 = vmatprep.subr.mxu1 %v11900_v0 }
0x1db6   :  { %10491 = vmatprep.mubr.msk.f32.mxu0 %vm11902_vm1, %v11900_v0 }
0x1db7   :  { %7487 = vrot.lane.b32.xlu0 %v6901_v29, %s11896_s6 }
0x1db8   :  { %10492 = vmatmul.mubr.msk.f32.gmra.mrb[140].mxu0 %vm216_vm0, %v6902_v25  ;;  %10502 = vmatpush3.msk.msra.mxu1 %vm581_vm6, %v14617_v20 }
0x1db9   :  { %11294 = vrot.lane.b32.xlu1 %v11283_v51, %s11904_s28  ;;  %10494 = vmatprep.mubr.msk.f32.mxu0 %vm11902_vm1, %v11900_v0 }
0x1dba   :  { %11044 = vmatprep.subr.bf16.mxu1 %v11901_v16 }
0x1dbb   :  { %7491 = vrot.lane.b32.xlu0 %v6903_v31, %s11896_s6 }
0x1dbc   :  { %10495 = vmatmul.mubr.msk.f32.gmra.mrb[142].mxu0 %vm216_vm0, %v6903_v31 }
0x1dbd   :  { %7489 = vrot.lane.b32.xlu1 %v6902_v25, %s11896_s6  ;;  %10518 = vmatprep.mubr.msk.f32.mxu0 %vm11902_vm1, %v11900_v0 }
0x1dbf   :  { %7777 = vrot.lane.b32.xlu0 %v6901_v29, %s11904_s28 }
0x1dc1   :  { %7787 = vrot.lane.b32.xlu1 %v6816_v45, %s11904_s28 }
0x1dc3   :  { %7781 = vrot.lane.b32.xlu0 %v6903_v31, %s11904_s28 }
0x1dc5   :  { %7779 = vrot.lane.b32.xlu1 %v6902_v25, %s11904_s28 }
0x1dc7   :  { %7176 = vrot.lane.b32.xlu0 %v6913_v22, %s11903_s3 }
0x1dc9   :  { %7174 = vrot.lane.b32.xlu1 %v6912_v7, %s11903_s3 }
0x1dcb   :  { %7466 = vrot.lane.b32.xlu0 %v6912_v7, %s11896_s6 }
0x1dcd   :  { %7178 = vrot.lane.b32.xlu1 %v6914_v15, %s11903_s3 }
0x1dcf   :  { %7470 = vrot.lane.b32.xlu0 %v6914_v15, %s11896_s6 }
0x1dd1   :  { %7468 = vrot.lane.b32.xlu1 %v6913_v22, %s11896_s6 }
0x1dd3   :  { %7758 = vrot.lane.b32.xlu0 %v6913_v22, %s11904_s28 }
0x1dd5   :  { %7756 = vrot.lane.b32.xlu1 %v6912_v7, %s11904_s28 }
0x1dd9   :  { %7760 = vrot.lane.b32.xlu1 %v6914_v15, %s11904_s28  ;;  %v14712_v15 = vld [vmem:[#allocation2] sm:$0xff] }
0x1df2   :  { %6916 = vadd.xlane.f32.xlu0 %v6915_v50 }
0x1df6   :  { %6922 = vadd.xlane.f32.xlu0 %v6921_v6 }
0x1dfd   :  { %6919 = vadd.xlane.f32.xlu1 %v6918_v8 }
0x1e1b   :  { %v11285_v2 = vpop.permute.xlu1 %11284 }
0x1e1c   :  { %v11287_v46 = vunpack.i.h.bf16 %v11285_v2  ;;  %v11286_v24 = vunpack.i.l.bf16 %v11285_v2  ;;  %v14720_v2 = vld [vmem:[%s15590_s27 + $0x8] sm:$0xff] }
0x1e1d   :  { %v7206_v52 = vpop.permute.xlu0 %7205 }
0x1e1e   :  { %v11041_v27 = vpack.c.bf16 %v11287_v46, %v11286_v24 }
0x1e1f   :  { %v11290_v56 = vpop.permute.xlu1 %11289 }
0x1e20   :  { %11043 = vmatpush3.bf16.xpose.msk.msra.mxu0 %vm12203_vm2, %v11041_v27  ;;  %v11292_v59 = vunpack.i.h.bf16 %v11290_v56  ;;  %v11291_v9 = vunpack.i.l.bf16 %v11290_v56 }
0x1e21   :  { %v7198_v53 = vpop.permute.xlu0 %7197  ;;  %10516 = vmatprep.subr.mxu0 %v11900_v0 }
0x1e22   :  { %v11048_v49 = vpack.c.bf16 %v11292_v59, %v11291_v9 }
0x1e23   :  { %v7196_v41 = vpop.permute.xlu1 %7195 }
0x1e25   :  { %v7498_v44 = vpop.permute.xlu0 %7497 }
0x1e27   :  { %v7200_v58 = vpop.permute.xlu1 %7199 }
0x1e28   :  { %10517 = vmatpush3.xpose.msk.msra.mxu0 %vm216_vm0, %v7206_v52 }
0x1e29   :  { %v7488_v37 = vpop.permute.xlu0 %7487  ;;  %11047 = vmatprep.subr.bf16.mxu0 %v11901_v16 }
0x1e2b   :  { %v11295_v26 = vpop.permute.xlu1 %11294  ;;  %10519 = vmatmul.mubr.msk.f32.vlgmr.msra.gmra.mrb[144].mxu0 %vm216_vm0, %v7196_v41 }
0x1e2c   :  { %11050 = vmatpush3.bf16.xpose.msk.msra.mxu0 %vm12203_vm2, %v11048_v49  ;;  %10521 = vmatprep.mubr.msk.f32.mxu0 %vm11902_vm1, %v11900_v0  ;;  %v11297_v39 = vunpack.i.h.bf16 %v11295_v26  ;;  %v11296_v5 = vunpack.i.l.bf16 %v11295_v26  ;;  %v14738_v26 = vld [vmem:[#allocation2 + $0x10] sm:$0xf] }
0x1e2d   :  { %v7492_v14 = vpop.permute.xlu0 %7491  ;;  %10546 = vmatprep.subr.mxu0 %v11900_v0 }
0x1e2e   :  { %v11055_v33 = vpack.c.bf16 %v11297_v39, %v11296_v5 }
0x1e2f   :  { %v7490_v30 = vpop.permute.xlu1 %7489  ;;  %10522 = vmatmul.mubr.msk.f32.gmra.mrb[146].mxu0 %vm216_vm0, %v7198_v53  ;;  %v14728_v53 = vld [vmem:[%s15590_s27 + $0x10] sm:$0xf] }
0x1e30   :  { %10524 = vmatprep.mubr.msk.f32.mxu0 %vm11902_vm1, %v11900_v0 }
0x1e31   :  { %v7778_v62 = vpop.permute.xlu0 %7777 }
0x1e33   :  { %v7788_v38 = vpop.permute.xlu1 %7787  ;;  %10525 = vmatmul.mubr.msk.f32.gmra.mrb[148].mxu0 %vm216_vm0, %v7200_v58 }
0x1e34   :  { %10547 = vmatpush3.xpose.msk.msra.mxu0 %vm216_vm0, %v7498_v44  ;;  %10548 = vmatprep.mubr.msk.f32.mxu0 %vm11902_vm1, %v11900_v0  ;;  %v14731_v44 = vld [vmem:[#allocation2 + $0x8] sm:$0xff] }
0x1e35   :  { %v7782_v43 = vpop.permute.xlu0 %7781  ;;  %11054 = vmatprep.subr.bf16.mxu0 %v11901_v16 }
0x1e37   :  { %v7780_v63 = vpop.permute.xlu1 %7779  ;;  %10549 = vmatmul.mubr.msk.f32.vlgmr.msra.gmra.mrb[150].mxu0 %vm216_vm0, %v7488_v37 }
0x1e38   :  { %11057 = vmatpush3.bf16.xpose.msk.msra.mxu0 %vm12203_vm2, %v11055_v33  ;;  %10551 = vmatprep.mubr.msk.f32.mxu0 %vm11902_vm1, %v11900_v0 }
0x1e39   :  { %v7177_v10 = vpop.permute.xlu0 %7176  ;;  %10576 = vmatprep.subr.mxu0 %v11900_v0 }
0x1e3a   :  { %v7186_v42 = vsel %vm216_vm0, %v7177_v10, 0.0 }
0x1e3b   :  { %10552 = vmatmul.mubr.msk.f32.gmra.mrb[152].mxu0 %vm216_vm0, %v7490_v30  ;;  %7187 = vadd.xlane.f32.xlu1 %v7186_v42  ;;  %v7175_v57 = vpop.permute.xlu1 %7174 }
0x1e3c   :  { %v7183_v32 = vsel %vm216_vm0, %v7175_v57, 0.0  ;;  %10554 = vmatprep.mubr.msk.f32.mxu0 %vm11902_vm1, %v11900_v0 }
0x1e3d   :  { %v7467_v60 = vpop.permute.xlu0 %7466  ;;  %7184 = vadd.xlane.f32.xlu0 %v7183_v32 }
0x1e3e   :  { %v7475_v34 = vsel %vm216_vm0, %v7467_v60, 0.0 }
0x1e3f   :  { %10555 = vmatmul.mubr.msk.f32.gmra.mrb[154].mxu0 %vm216_vm0, %v7492_v14  ;;  %7476 = vadd.xlane.f32.xlu1 %v7475_v34  ;;  %v7179_v51 = vpop.permute.xlu1 %7178 }
0x1e40   :  { %10577 = vmatpush3.xpose.msk.msra.mxu0 %vm216_vm0, %v7788_v38  ;;  %v7189_v23 = vsel %vm411_vm3, %v7179_v51, 0.0  ;;  %10578 = vmatprep.mubr.msk.f32.mxu0 %vm11902_vm1, %v11900_v0 }
0x1e41   :  { %v7471_v1 = vpop.permute.xlu0 %7470  ;;  %7190 = vadd.xlane.f32.xlu0 %v7189_v23  ;;  %11061 = vmatprep.subr.bf16.mxu0 %v11901_v16 }
0x1e42   :  { %v7481_v45 = vsel %vm411_vm3, %v7471_v1, 0.0 }
0x1e43   :  { %10579 = vmatmul.mubr.msk.f32.vlgmr.msra.gmra.mrb[156].mxu0 %vm216_vm0, %v7778_v62  ;;  %7482 = vadd.xlane.f32.xlu1 %v7481_v45  ;;  %v7469_v40 = vpop.permute.xlu1 %7468 }
0x1e44   :  { %v7478_v61 = vsel %vm216_vm0, %v7469_v40, 0.0  ;;  %10581 = vmatprep.mubr.msk.f32.mxu0 %vm11902_vm1, %v11900_v0 }
0x1e45   :  { %v7759_v17 = vpop.permute.xlu0 %7758  ;;  %7479 = vadd.xlane.f32.xlu0 %v7478_v61 }
0x1e46   :  { %v7768_v25 = vsel %vm216_vm0, %v7759_v17, 0.0 }
0x1e47   :  { %10582 = vmatmul.mubr.msk.f32.gmra.mrb[158].mxu0 %vm216_vm0, %v7780_v63  ;;  %7769 = vadd.xlane.f32.xlu1 %v7768_v25  ;;  %v7757_v29 = vpop.permute.xlu1 %7756 }
0x1e48   :  { %v7765_v36 = vsel %vm216_vm0, %v7757_v29, 0.0  ;;  %10584 = vmatprep.mubr.msk.f32.mxu0 %vm11902_vm1, %v11900_v0 }
0x1e49   :  { %7766 = vadd.xlane.f32.xlu0 %v7765_v36 }
0x1e4b   :  { %10585 = vmatmul.mubr.msk.f32.gmra.mrb[160].mxu0 %vm216_vm0, %v7782_v43  ;;  %v7761_v47 = vpop.permute.xlu1 %7760 }
0x1e4c   :  { %v7771_v4 = vsel %vm411_vm3, %v7761_v47, 0.0  ;;  %10634 = vmatprep.mubr.msk.f32.mxu0 %vm11902_vm1, %v11900_v0 }
0x1e4d   :  { %7772 = vadd.xlane.f32.xlu0 %v7771_v4 }
0x1e7f   :  { %v6917_v13 = vpop.xlane.xlu0 %6916 }
0x1e80   :  { %v6924_v31 = vmul.f32 %v14709_v12, %v6917_v13 }
0x1e83   :  { %v6923_v8 = vpop.xlane.xlu0 %6922 }
0x1e84   :  { %v6926_v41 = vmul.f32 %v14728_v53, %v6923_v8 }
0x1e87   :  { %v7011_v54 = vpop.f32.mrb[138].mxu0 }
0x1e88   :  { %v7012_v22 = vadd.f32 %v7011_v54, %v6924_v31  ;;  %v10490_v7 = vpop.f32.mrb[139].mxu0 }
0x1e8a   :  { %v14715_v50 = vadd.f32 %v14712_v15, %v7012_v22  ;;  %v6920_v6 = vpop.xlane.xlu1 %6919 }
0x1e8b   :  { %v6925_v46 = vmul.f32 %v14720_v2, %v6920_v6  ;;  %v7016_v24 = vpop.f32.mrb[140].mxu0 }
0x1e8c   :  { %v10493_v52 = vpop.f32.mrb[141].mxu0  ;;  %v7028_v27 = vsel %vm519_vm4, %v14715_v50, -inf }
0x1e8d   :  { %v7017_v56 = vadd.f32 %v7016_v24, %v6925_v46  ;;  %7029 = vmax.xlane.f32.xlu1 %v7028_v27 }
0x1e8f   :  { %v14734_v59 = vadd.f32 %v14731_v44, %v7017_v56  ;;  %v7021_v9 = vpop.f32.mrb[142].mxu0 }
0x1e90   :  { %v7022_v58 = vadd.f32 %v7021_v9, %v6926_v41  ;;  %v10496_v37 = vpop.f32.mrb[143].mxu0 }
0x1e91   :  { %v7031_v49 = vsel %vm519_vm4, %v14734_v59, -inf }
0x1e92   :  { %v14741_v14 = vadd.f32 %v14738_v26, %v7022_v58  ;;  %7032 = vmax.xlane.f32.xlu0 %v7031_v49 }
0x1e94   :  { %v7034_v30 = vsel %vm526_vm5, %v14741_v14, -inf }
0x1e95   :  { %7035 = vmax.xlane.f32.xlu1 %v7034_v30 }
0x1ec8   :  { %v7188_v5 = vpop.xlane.xlu1 %7187 }
0x1ec9   :  { %v7193_v63 = vmul.f32 %v14720_v2, %v7188_v5 }
0x1eca   :  { %v7185_v62 = vpop.xlane.xlu0 %7184 }
0x1ecb   :  { %v7192_v39 = vmul.f32 %v14709_v12, %v7185_v62 }
0x1ecc   :  { %v7477_v1 = vpop.xlane.xlu1 %7476 }
0x1ecd   :  { %v7484_v25 = vmul.f32 %v14709_v12, %v7477_v1 }
0x1ece   :  { %v7191_v42 = vpop.xlane.xlu0 %7190 }
0x1ecf   :  { %v7194_v51 = vmul.f32 %v14728_v53, %v7191_v42 }
0x1ed0   :  { %v7483_v7 = vpop.xlane.xlu1 %7482 }
0x1ed1   :  { %v7486_v52 = vmul.f32 %v14728_v53, %v7483_v7 }
0x1ed2   :  { %v7480_v36 = vpop.xlane.xlu0 %7479 }
0x1ed3   :  { %v7485_v54 = vmul.f32 %v14720_v2, %v7480_v36 }
0x1ed4   :  { %v7770_v62 = vpop.xlane.xlu1 %7769 }
0x1ed6   :  { %v7767_v56 = vpop.xlane.xlu0 %7766 }
0x1ed7   :  { %v7774_v49 = vmul.f32 %v14709_v12, %v7767_v56 }
0x1efe   :  { %v7285_v38 = vpop.f32.mrb[144].mxu0 }
0x1eff   :  { %v7286_v43 = vadd.f32 %v7285_v38, %v7192_v39  ;;  %v10520_v33 = vpop.f32.mrb[145].mxu0 }
0x1f00   :  { %v7775_v33 = vmul.f32 %v14720_v2, %v7770_v62 }
0x1f01   :  { %v14748_v10 = vadd.f32 %v14712_v15, %v7286_v43 }
0x1f02   :  { %v7290_v57 = vpop.f32.mrb[146].mxu0 }
0x1f03   :  { %v7291_v32 = vadd.f32 %v7290_v57, %v7193_v63  ;;  %v10523_v60 = vpop.f32.mrb[147].mxu0  ;;  %v7302_v34 = vsel %vm519_vm4, %v14748_v10, -inf }
0x1f04   :  { %7303 = vmax.xlane.f32.xlu0 %v7302_v34 }
0x1f05   :  { %v14754_v23 = vadd.f32 %v14731_v44, %v7291_v32 }
0x1f06   :  { %v7295_v45 = vpop.f32.mrb[148].mxu0 }
0x1f07   :  { %v7296_v40 = vadd.f32 %v7295_v45, %v7194_v51  ;;  %v10526_v61 = vpop.f32.mrb[149].mxu0  ;;  %v7305_v17 = vsel %vm519_vm4, %v14754_v23, -inf }
0x1f08   :  { %7306 = vmax.xlane.f32.xlu1 %v7305_v17 }
0x1f09   :  { %v14760_v29 = vadd.f32 %v14738_v26, %v7296_v40 }
0x1f0a   :  { %v7577_v47 = vpop.f32.mrb[150].mxu0 }
0x1f0b   :  { %v7578_v4 = vadd.f32 %v7577_v47, %v7484_v25  ;;  %v10550_v13 = vpop.f32.mrb[151].mxu0  ;;  %v7308_v31 = vsel %vm526_vm5, %v14760_v29, -inf  ;;  %v7773_v25 = vpop.xlane.xlu0 %7772 }
0x1f0c   :  { %7309 = vmax.xlane.f32.xlu0 %v7308_v31 }
0x1f0d   :  { %v14766_v22 = vadd.f32 %v14712_v15, %v7578_v4  ;;  %v7776_v4 = vmul.f32 %v14728_v53, %v7773_v25 }
0x1f0e   :  { %v7582_v6 = vpop.f32.mrb[152].mxu0 }
0x1f0f   :  { %v7583_v8 = vadd.f32 %v7582_v6, %v7485_v54  ;;  %v10553_v46 = vpop.f32.mrb[153].mxu0  ;;  %v7594_v24 = vsel %vm519_vm4, %v14766_v22, -inf }
0x1f10   :  { %7595 = vmax.xlane.f32.xlu1 %v7594_v24 }
0x1f11   :  { %v14772_v27 = vadd.f32 %v14731_v44, %v7583_v8 }
0x1f12   :  { %v7587_v41 = vpop.f32.mrb[154].mxu0 }
0x1f13   :  { %v7588_v9 = vadd.f32 %v7587_v41, %v7486_v52  ;;  %v10556_v58 = vpop.f32.mrb[155].mxu0  ;;  %v7597_v37 = vsel %vm519_vm4, %v14772_v27, -inf }
0x1f14   :  { %7598 = vmax.xlane.f32.xlu0 %v7597_v37 }
0x1f15   :  { %v14778_v30 = vadd.f32 %v14738_v26, %v7588_v9 }
0x1f16   :  { %v7867_v39 = vpop.f32.mrb[156].mxu0 }
0x1f17   :  { %v7868_v5 = vadd.f32 %v7867_v39, %v7774_v49  ;;  %v10580_v38 = vpop.f32.mrb[157].mxu0  ;;  %v7600_v43 = vsel %vm526_vm5, %v14778_v30, -inf }
0x1f18   :  { %7601 = vmax.xlane.f32.xlu1 %v7600_v43 }
0x1f19   :  { %v14784_v63 = vadd.f32 %v14712_v15, %v7868_v5 }
0x1f1a   :  { %v7872_v42 = vpop.f32.mrb[158].mxu0  ;;  %v7030_v15 = vpop.xlane.xlu1 %7029 }
0x1f1b   :  { %v7873_v57 = vadd.f32 %v7872_v42, %v7775_v33  ;;  %v10583_v32 = vpop.f32.mrb[159].mxu0  ;;  %v7884_v60 = vsel %vm519_vm4, %v14784_v63, -inf  ;;  %v7037_v40 = vsub.f32 %v14715_v50, %v7030_v15 }
0x1f1c   :  { %7885 = vmax.xlane.f32.xlu0 %v7884_v60 }
0x1f1d   :  { %v14789_v34 = vadd.f32 %v14731_v44, %v7873_v57  ;;  %v7040_v17 = vmax.f32 %v7037_v40, -60.0 }
0x1f1e   :  { %v7877_v51 = vpop.f32.mrb[160].mxu0 }
0x1f1f   :  { %v10586_v1 = vpop.f32.mrb[161].mxu0  ;;  %v7887_v45 = vsel %vm519_vm4, %v14789_v34, -inf  ;;  %v7043_v36 = vmul.f32 1.442695, %v7040_v17  ;;  %v7878_v31 = vadd.f32 %v7877_v51, %v7776_v4 }
0x1f20   :  { %7888 = vmax.xlane.f32.xlu1 %v7887_v45 }
0x1f21   :  { %11563 = vpow2.f32 %v7043_v36  ;;  %v14801_v54 = vadd.f32 %v14738_v26, %v7878_v31  ;;  %v7033_v26 = vpop.xlane.xlu0 %7032 }
0x1f22   :  { %v7036_v61 = vpop.xlane.xlu1 %7035  ;;  %v7038_v46 = vsub.f32 %v14734_v59, %v7033_v26 }
0x1f23   :  { %v7039_v44 = vsub.f32 %v14741_v14, %v7036_v61  ;;  %v7890_v7 = vsel %vm526_vm5, %v14801_v54, -inf }
0x1f24   :  { %v7041_v24 = vmax.f32 %v7038_v46, -60.0 }
0x1f25   :  { %v7042_v47 = vmax.f32 %v7039_v44, -60.0 }
0x1f26   :  { %v7045_v52 = vmul.f32 1.442695, %v7041_v24 }
0x1f27   :  { %v7047_v13 = vmul.f32 1.442695, %v7042_v47 }
0x1f29   :  { %11565 = vpow2.f32 %v7047_v13 }
0x1f2a   :  { %11567 = vpow2.f32 %v7045_v52 }
0x1f2b   :  { %v14805_v50 = vpop.eup %11563 }
0x1f2c   :  { %v7049_v14 = vsel %vm519_vm4, %v14805_v50, 0.0 }
0x1f31   :  { %11299 = vrot.lane.b32.xlu1 %v14609_v11, %s11903_s3 }
0x1f32   :  { %7359 = vrot.lane.b32.xlu0 %v14617_v20, %s11903_s3 }
0x1f33   :  { %v14809_v6 = vpop.eup %11565 }
0x1f34   :  { %v7055_v8 = vsel %vm526_vm5, %v14809_v6, 0.0  ;;  %v14816_v56 = vpop.eup %11567 }
0x1f35   :  { %v7052_v41 = vsel %vm519_vm4, %v14816_v56, 0.0 }
0x1f51   :  { %7891 = vmax.xlane.f32.xlu0 %v7890_v7 }
0x1f55   :  { %7050 = vadd.xlane.f32.xlu1 %v7049_v14 }
0x1f59   :  { %7056 = vadd.xlane.f32.xlu1 %v7055_v8 }
0x1f67   :  { %11304 = vrot.lane.b32.xlu0 %v14609_v11, %s11896_s6 }
0x1f86   :  { %7053 = vadd.xlane.f32.xlu0 %v7052_v41 }
0x1f91   :  { %v7304_v9 = vpop.xlane.xlu0 %7303 }
0x1f92   :  { %v7311_v58 = vsub.f32 %v14748_v10, %v7304_v9 }
0x1f94   :  { %v7314_v37 = vmax.f32 %v7311_v58, -60.0 }
0x1f95   :  { %v7307_v49 = vpop.xlane.xlu1 %7306 }
0x1f96   :  { %v7317_v62 = vmul.f32 1.442695, %v7314_v37  ;;  %v7312_v39 = vsub.f32 %v14754_v23, %v7307_v49 }
0x1f98   :  { %11569 = vpow2.f32 %v7317_v62  ;;  %v7315_v5 = vmax.f32 %v7312_v39, -60.0 }
0x1f99   :  { %v7310_v59 = vpop.xlane.xlu0 %7309 }
0x1f9a   :  { %v7319_v38 = vmul.f32 1.442695, %v7315_v5  ;;  %v7313_v43 = vsub.f32 %v14760_v29, %v7310_v59 }
0x1f9c   :  { %11571 = vpow2.f32 %v7319_v38  ;;  %v7316_v33 = vmax.f32 %v7313_v43, -60.0 }
0x1f9d   :  { %v7596_v57 = vpop.xlane.xlu1 %7595 }
0x1f9e   :  { %v7321_v42 = vmul.f32 1.442695, %v7316_v33  ;;  %v7603_v8 = vsub.f32 %v14766_v22, %v7596_v57 }
0x1fa0   :  { %11573 = vpow2.f32 %v7321_v42  ;;  %v7606_v46 = vmax.f32 %v7603_v8, -60.0 }
0x1fa1   :  { %v7599_v32 = vpop.xlane.xlu0 %7598 }
0x1fa2   :  { %v14823_v60 = vpop.eup %11569  ;;  %v7604_v10 = vsub.f32 %v14772_v27, %v7599_v32  ;;  %v7609_v52 = vmul.f32 1.442695, %v7606_v46 }
0x1fa3   :  { %v7323_v51 = vsel %vm519_vm4, %v14823_v60, 0.0 }
0x1fa4   :  { %v7607_v23 = vmax.f32 %v7604_v10, -60.0  ;;  %7324 = vadd.xlane.f32.xlu0 %v7323_v51 }
0x1fa5   :  { %v7602_v1 = vpop.xlane.xlu1 %7601 }
0x1fa6   :  { %v14828_v45 = vpop.eup %11571  ;;  %v7611_v15 = vmul.f32 1.442695, %v7607_v23  ;;  %v7605_v29 = vsub.f32 %v14778_v30, %v7602_v1 }
0x1fa7   :  { %v7326_v40 = vsel %vm519_vm4, %v14828_v45, 0.0 }
0x1fa8   :  { %11575 = vpow2.f32 %v7611_v15  ;;  %v7608_v61 = vmax.f32 %v7605_v29, -60.0  ;;  %7327 = vadd.xlane.f32.xlu1 %v7326_v40 }
0x1fa9   :  { %v7886_v17 = vpop.xlane.xlu0 %7885 }
0x1faa   :  { %v14833_v44 = vpop.eup %11573  ;;  %v7613_v27 = vmul.f32 1.442695, %v7608_v61  ;;  %v7893_v25 = vsub.f32 %v14784_v63, %v7886_v17 }
0x1fab   :  { %v7329_v36 = vsel %vm526_vm5, %v14833_v44, 0.0 }
0x1fac   :  { %11577 = vpow2.f32 %v7613_v27  ;;  %v7896_v47 = vmax.f32 %v7893_v25, -60.0  ;;  %7330 = vadd.xlane.f32.xlu0 %v7329_v36 }
0x1fad   :  { %v7889_v26 = vpop.xlane.xlu1 %7888  ;;  %v7360_v37 = vpop.permute.xlu0 %7359 }
0x1fae   :  { %v7899_v4 = vmul.f32 1.442695, %v7896_v47  ;;  %v7894_v24 = vsub.f32 %v14789_v34, %v7889_v26 }
0x1fb0   :  { %11579 = vpow2.f32 %v7899_v4  ;;  %v7897_v41 = vmax.f32 %v7894_v24, -60.0 }
0x1fb1   :  { %11581 = vpow2.f32 %v7609_v52  ;;  %v11300_v39 = vpop.permute.xlu1 %11299 }
0x1fb2   :  { %v14838_v30 = vpop.eup %11575  ;;  %v7901_v9 = vmul.f32 1.442695, %v7897_v41  ;;  %v11302_v33 = vunpack.i.h.bf16 %v11300_v39  ;;  %v11301_v42 = vunpack.i.l.bf16 %v11300_v39 }
0x1fb3   :  { %v7618_v13 = vsel %vm519_vm4, %v14838_v30, 0.0 }
0x1fb4   :  { %7619 = vadd.xlane.f32.xlu0 %v7618_v13  ;;  %11583 = vpow2.f32 %v7901_v9  ;;  %v11045_v51 = vpack.c.bf16 %v11302_v33, %v11301_v42 }
0x1fb6   :  { %v14842_v31 = vpop.eup %11577 }
0x1fb7   :  { %v7621_v7 = vsel %vm526_vm5, %v14842_v31, 0.0 }
0x1fb8   :  { %7622 = vadd.xlane.f32.xlu0 %v7621_v7 }
0x1fb9   :  { %7649 = vrot.lane.b32.xlu1 %v14617_v20, %s11896_s6 }
0x1fba   :  { %v14848_v63 = vpop.eup %11579 }
0x1fbb   :  { %v7905_v14 = vsel %vm519_vm4, %v14848_v63, 0.0  ;;  %v14854_v58 = vpop.eup %11581 }
0x1fbc   :  { %7906 = vadd.xlane.f32.xlu0 %v7905_v14  ;;  %v7615_v49 = vsel %vm519_vm4, %v14854_v58, 0.0 }
0x1fbe   :  { %v14858_v62 = vpop.eup %11583 }
0x1fbf   :  { %v7908_v34 = vsel %vm519_vm4, %v14858_v62, 0.0 }
0x1fdd   :  { %7616 = vadd.xlane.f32.xlu1 %v7615_v49 }
0x1fde   :  { %v7892_v22 = vpop.xlane.xlu0 %7891 }
0x1fdf   :  { %v7895_v5 = vsub.f32 %v14801_v54, %v7892_v22 }
0x1fe1   :  { %v7898_v59 = vmax.f32 %v7895_v5, -60.0  ;;  %7909 = vadd.xlane.f32.xlu1 %v7908_v34 }
0x1fe2   :  { %v7051_v38 = vpop.xlane.xlu1 %7050 }
0x1fe3   :  { %v7903_v43 = vmul.f32 1.442695, %v7898_v59  ;;  %11585 = vrcp.f32 %v7051_v38 }
0x1fe5   :  { %11587 = vpow2.f32 %v7903_v43 }
0x1fe6   :  { %v7057_v23 = vpop.xlane.xlu1 %7056 }
0x1fed   :  { %v11586_v57 = vpop.eup %11585 }
0x1fee   :  { %v14864_v32 = vmul.f32 %v11586_v57, %v14805_v50  ;;  %v11305_v50 = vpop.permute.xlu0 %11304 }
0x1fef   :  { %v14866_v10 = vpop.eup %11587  ;;  %v11307_v17 = vunpack.i.h.bf16 %v11305_v50  ;;  %v11306_v27 = vunpack.i.l.bf16 %v11305_v50 }
0x1ff0   :  { %10504 = vmatmul.mubr.msk.f32.vlgmr.msra.gmra.mrb[138].mxu1 %vm519_vm4, %v14864_v32  ;;  %v7911_v54 = vsel %vm526_vm5, %v14866_v10, 0.0 }
0x1ff1   :  { %11046 = vmatpush3.bf16.msra.mxu1 %v11045_v51  ;;  %7912 = vadd.xlane.f32.xlu0 %v7911_v54  ;;  %v11052_v47 = vpack.c.bf16 %v11307_v17, %v11306_v27 }
0x1ff2   :  { %7939 = vrot.lane.b32.xlu1 %v14617_v20, %s11904_s28  ;;  %10531 = vmatprep.subr.mxu1 %v11900_v0 }
0x1ff3   :  { %10506 = vmatprep.mubr.msk.f32.mxu1 %vm11902_vm1, %v11900_v0 }
0x1ff5   :  { %10532 = vmatpush3.msk.msra.mxu1 %vm581_vm6, %v7360_v37 }
0x1ff6   :  { %11051 = vmatprep.subr.bf16.mxu1 %v11901_v16 }
0x2007   :  { %11309 = vrot.lane.b32.xlu0 %v14609_v11, %s11904_s28 }
0x2013   :  { %v7054_v1 = vpop.xlane.xlu0 %7053 }
0x2014   :  { %11589 = vrcp.f32 %v7054_v1 }
0x2015   :  { %11591 = vrcp.f32 %v7057_v23 }
0x201e   :  { %v11590_v15 = vpop.eup %11589 }
0x201f   :  { %v14882_v20 = vmul.f32 %v11590_v15, %v14816_v56  ;;  %v11592_v29 = vpop.eup %11591 }
0x2020   :  { %v14889_v40 = vmul.f32 %v11592_v29, %v14809_v6  ;;  %v7064_v29 = vmul.f32 %v14709_v12, %v14864_v32 }
0x2021   :  { %10507 = vmatmul.mubr.msk.f32.gmra.mrb[140].mxu1 %vm519_vm4, %v14882_v20 }
0x2022   :  { %10509 = vmatprep.mubr.msk.f32.mxu1 %vm11902_vm1, %v11900_v0  ;;  %v7067_v17 = vsel %vm519_vm4, %v7064_v29, 0.0 }
0x2025   :  { %10510 = vmatmul.mubr.msk.f32.gmra.mrb[142].mxu1 %vm519_vm4, %v14889_v40 }
0x2026   :  { %10533 = vmatprep.mubr.msk.f32.mxu1 %vm11902_vm1, %v11900_v0 }
0x2031   :  { %v7325_v11 = vpop.xlane.xlu0 %7324 }
0x2032   :  { %11593 = vrcp.f32 %v7325_v11 }
0x2035   :  { %v7328_v56 = vpop.xlane.xlu1 %7327 }
0x2036   :  { %11595 = vrcp.f32 %v7328_v56 }
0x2039   :  { %v7331_v61 = vpop.xlane.xlu0 %7330 }
0x203a   :  { %11597 = vrcp.f32 %v7331_v61 }
0x203c   :  { %v11594_v25 = vpop.eup %11593 }
0x203d   :  { %v7335_v36 = vmul.f32 %v11594_v25, %v14823_v60  ;;  %v7650_v60 = vpop.permute.xlu1 %7649 }
0x203f   :  { %10534 = vmatmul.mubr.msk.f32.vlgmr.msra.gmra.mrb[144].mxu1 %vm519_vm4, %v7335_v36  ;;  %v7338_v6 = vmul.f32 %v14709_v12, %v7335_v36 }
0x2040   :  { %v11596_v4 = vpop.eup %11595  ;;  %11053 = vmatpush3.bf16.msra.mxu1 %v11052_v47  ;;  %10536 = vmatprep.mubr.msk.f32.mxu1 %vm11902_vm1, %v11900_v0 }
0x2041   :  { %v7620_v13 = vpop.xlane.xlu0 %7619  ;;  %v7341_v7 = vsel %vm519_vm4, %v7338_v6, 0.0  ;;  %10561 = vmatprep.subr.mxu1 %v11900_v0  ;;  %v7336_v14 = vmul.f32 %v11596_v4, %v14828_v45 }
0x2042   :  { %11599 = vrcp.f32 %v7620_v13  ;;  %7342 = vadd.xlane.f32.xlu1 %v7341_v7 }
0x2043   :  { %10537 = vmatmul.mubr.msk.f32.gmra.mrb[146].mxu1 %vm519_vm4, %v7336_v14  ;;  %v7339_v8 = vmul.f32 %v14720_v2, %v7336_v14 }
0x2044   :  { %v11598_v26 = vpop.eup %11597  ;;  %10562 = vmatpush3.msk.msra.mxu1 %vm581_vm6, %v7650_v60  ;;  %10539 = vmatprep.mubr.msk.f32.mxu1 %vm11902_vm1, %v11900_v0 }
0x2045   :  { %v7623_v46 = vpop.xlane.xlu0 %7622  ;;  %v7344_v24 = vsel %vm519_vm4, %v7339_v8, 0.0  ;;  %v7337_v52 = vmul.f32 %v11598_v26, %v14833_v44  ;;  %11058 = vmatprep.subr.bf16.mxu1 %v11901_v16 }
0x2046   :  { %7345 = vadd.xlane.f32.xlu1 %v7344_v24 }
0x2047   :  { %10540 = vmatmul.mubr.msk.f32.gmra.mrb[148].mxu1 %vm519_vm4, %v7337_v52  ;;  %v7340_v34 = vmul.f32 %v14728_v53, %v7337_v52 }
0x2048   :  { %10563 = vmatprep.mubr.msk.f32.mxu1 %vm11902_vm1, %v11900_v0 }
0x2049   :  { %v7907_v45 = vpop.xlane.xlu0 %7906  ;;  %v7347_v59 = vsel %vm526_vm5, %v7340_v34, 0.0 }
0x204a   :  { %11601 = vrcp.f32 %v7907_v45 }
0x204c   :  { %v11600_v41 = vpop.eup %11599 }
0x204d   :  { %v7628_v9 = vmul.f32 %v11600_v41, %v14838_v30 }
0x204f   :  { %v7631_v37 = vmul.f32 %v14720_v2, %v7628_v9 }
0x2051   :  { %v7636_v49 = vsel %vm519_vm4, %v7631_v37, 0.0 }
0x2052   :  { %7637 = vadd.xlane.f32.xlu1 %v7636_v49 }
0x2054   :  { %v11602_v39 = vpop.eup %11601 }
0x2055   :  { %v7917_v44 = vmul.f32 %v11602_v39, %v14848_v63 }
0x2057   :  { %v7920_v22 = vmul.f32 %v14709_v12, %v7917_v44 }
0x2059   :  { %v7923_v5 = vsel %vm519_vm4, %v7920_v22, 0.0 }
0x205a   :  { %7924 = vadd.xlane.f32.xlu1 %v7923_v5 }
0x205e   :  { %7348 = vadd.xlane.f32.xlu1 %v7347_v59 }
0x206a   :  { %v7617_v38 = vpop.xlane.xlu1 %7616 }
0x206b   :  { %11603 = vrcp.f32 %v7617_v38 }
0x206c   :  { %11605 = vrcp.f32 %v7623_v46 }
0x206e   :  { %v7910_v30 = vpop.xlane.xlu1 %7909 }
0x206f   :  { %11607 = vrcp.f32 %v7910_v30 }
0x2072   :  { %v7940_v25 = vpop.permute.xlu1 %7939 }
0x2075   :  { %v11604_v43 = vpop.eup %11603 }
0x2076   :  { %v7627_v33 = vmul.f32 %v11604_v43, %v14854_v58  ;;  %v11606_v42 = vpop.eup %11605 }
0x2077   :  { %v7629_v50 = vmul.f32 %v11606_v42, %v14842_v31 }
0x2078   :  { %10564 = vmatmul.mubr.msk.f32.vlgmr.msra.gmra.mrb[150].mxu1 %vm519_vm4, %v7627_v33  ;;  %v7630_v63 = vmul.f32 %v14709_v12, %v7627_v33 }
0x2079   :  { %v11608_v57 = vpop.eup %11607  ;;  %10566 = vmatprep.mubr.msk.f32.mxu1 %vm11902_vm1, %v11900_v0  ;;  %v7632_v15 = vmul.f32 %v14728_v53, %v7629_v50 }
0x207a   :  { %v7633_v51 = vsel %vm519_vm4, %v7630_v63, 0.0  ;;  %v7918_v54 = vmul.f32 %v11608_v57, %v14858_v62 }
0x207b   :  { %7634 = vadd.xlane.f32.xlu0 %v7633_v51  ;;  %v7639_v62 = vsel %vm526_vm5, %v7632_v15, 0.0 }
0x207c   :  { %10567 = vmatmul.mubr.msk.f32.gmra.mrb[152].mxu1 %vm519_vm4, %v7628_v9  ;;  %v7921_v58 = vmul.f32 %v14720_v2, %v7918_v54 }
0x207d   :  { %10569 = vmatprep.mubr.msk.f32.mxu1 %vm11902_vm1, %v11900_v0 }
0x207e   :  { %v7913_v23 = vpop.xlane.xlu0 %7912  ;;  %v7926_v1 = vsel %vm519_vm4, %v7921_v58, 0.0 }
0x207f   :  { %11609 = vrcp.f32 %v7913_v23  ;;  %7927 = vadd.xlane.f32.xlu0 %v7926_v1  ;;  %v7065_v23 = vmul.f32 %v14720_v2, %v14882_v20 }
0x2080   :  { %10570 = vmatmul.mubr.msk.f32.gmra.mrb[154].mxu1 %vm519_vm4, %v7629_v50  ;;  %v7066_v50 = vmul.f32 %v14728_v53, %v14889_v40 }
0x2081   :  { %10593 = vmatprep.mubr.msk.f32.mxu1 %vm11902_vm1, %v11900_v0  ;;  %v7070_v1 = vsel %vm519_vm4, %v7065_v23, 0.0 }
0x2082   :  { %v11310_v31 = vpop.permute.xlu0 %11309  ;;  %v7073_v58 = vsel %vm526_vm5, %v7066_v50, 0.0 }
0x2083   :  { %v11312_v11 = vunpack.i.h.bf16 %v11310_v31  ;;  %v11311_v56 = vunpack.i.l.bf16 %v11310_v31  ;;  %7640 = vadd.xlane.f32.xlu0 %v7639_v62 }
0x2085   :  { %v11059_v61 = vpack.c.bf16 %v11312_v11, %v11311_v56 }
0x2087   :  { %7068 = vadd.xlane.f32.xlu0 %v7067_v17  ;;  %11060 = vmatpush3.bf16.msra.mxu1 %v11059_v61 }
0x2088   :  { %10591 = vmatprep.subr.mxu1 %v11900_v0 }
0x2089   :  { %v11610_v27 = vpop.eup %11609 }
0x208a   :  { %v7919_v36 = vmul.f32 %v11610_v27, %v14866_v10 }
0x208b   :  { %10592 = vmatpush3.msk.msra.mxu1 %vm581_vm6, %v7940_v25 }
0x208c   :  { %10594 = vmatmul.mubr.msk.f32.vlgmr.msra.gmra.mrb[156].mxu1 %vm519_vm4, %v7917_v44  ;;  %v7922_v12 = vmul.f32 %v14728_v53, %v7919_v36  ;;  %11085 = vmatprep.subr.bf16.mxu1 %v11901_v16 }
0x208d   :  { %10596 = vmatprep.mubr.msk.f32.mxu1 %vm11902_vm1, %v11900_v0 }
0x208e   :  { %v7929_v32 = vsel %vm526_vm5, %v7922_v12, 0.0 }
0x208f   :  { %7930 = vadd.xlane.f32.xlu1 %v7929_v32 }
0x2090   :  { %10597 = vmatmul.mubr.msk.f32.gmra.mrb[158].mxu1 %vm519_vm4, %v7918_v54 }
0x2091   :  { %10599 = vmatprep.mubr.msk.f32.mxu1 %vm11902_vm1, %v11900_v0 }
0x2094   :  { %10600 = vmatmul.mubr.msk.f32.gmra.mrb[160].mxu1 %vm519_vm4, %v7919_v36 }
0x2095   :  { %10651 = vmatprep.mubr.msk.f32.mxu1 %vm11902_vm1, %v11900_v0 }
0x20c3   :  { %v7157_v10 = vpop.f32.mrb[138].mxu1 }
0x20c4   :  { %v10505_v47 = vpop.f32.mrb[139].mxu1 }
0x20cf   :  { %v7343_v6 = vpop.xlane.xlu1 %7342 }
0x20d0   :  { %v7350_v4 = vmul.f32 %v14637_v28, %v7343_v6 }
0x20d2   :  { %7366 = vrot.lane.b32.xlu0 %v7350_v4, %s11903_s3 }
0x20d3   :  { %v7346_v13 = vpop.xlane.xlu1 %7345 }
0x20d4   :  { %v7351_v7 = vmul.f32 %v14637_v28, %v7346_v13 }
0x20d6   :  { %7368 = vrot.lane.b32.xlu0 %v7351_v7, %s11903_s3 }
0x20df   :  { %v7638_v14 = vpop.xlane.xlu1 %7637 }
0x20e0   :  { %v7643_v49 = vmul.f32 %v14637_v28, %v7638_v14 }
0x20e7   :  { %v7925_v60 = vpop.xlane.xlu1 %7924 }
0x20e8   :  { %v7932_v44 = vmul.f32 %v14637_v28, %v7925_v60 }
0x20eb   :  { %v7349_v8 = vpop.xlane.xlu1 %7348 }
0x20ec   :  { %v7352_v26 = vmul.f32 %v14637_v28, %v7349_v8 }
0x20ee   :  { %7370 = vrot.lane.b32.xlu1 %v7352_v26, %s11903_s3 }
0x20f4   :  { %v14964_v46 = vpop.f32.mrb[140].mxu1 }
0x20f5   :  { %v10508_v24 = vpop.f32.mrb[141].mxu1 }
0x20f8   :  { %v14966_v52 = vpop.f32.mrb[142].mxu1 }
0x20f9   :  { %v10511_v45 = vpop.f32.mrb[143].mxu1 }
0x2108   :  { %v7635_v41 = vpop.xlane.xlu0 %7634 }
0x2109   :  { %v7642_v9 = vmul.f32 %v14637_v28, %v7635_v41  ;;  %v8092_v41 = vld [vmem:[#allocation7 + $0x10] sm:$0x7] }
0x210b   :  { %7656 = vrot.lane.b32.xlu1 %v7642_v9, %s11896_s6 }
0x210c   :  { %v7928_v37 = vpop.xlane.xlu0 %7927 }
0x210d   :  { %v7933_v38 = vmul.f32 %v14637_v28, %v7928_v37 }
0x210f   :  { %7658 = vrot.lane.b32.xlu1 %v7643_v49, %s11896_s6  ;;  %v8097_v49 = vrot.slane %v8092_v41, 1 }
0x2110   :  { %v7641_v39 = vpop.xlane.xlu0 %7640 }
0x2111   :  { %v7644_v22 = vmul.f32 %v14637_v28, %v7641_v39  ;;  %v8094_v39 = vrot.slane %v8092_v41, 2 }
0x2112   :  { %v7452_v5 = vpop.f32.mrb[144].mxu1 }
0x2113   :  { %v10535_v34 = vpop.f32.mrb[145].mxu1  ;;  %7946 = vrot.lane.b32.xlu1 %v7932_v44, %s11904_s28  ;;  %7660 = vrot.lane.b32.xlu0 %v7644_v22, %s11896_s6  ;;  %v11675_v22 = vld [vmem:[%s15587_s29 + $0x10] sm:$0xf] }
0x2114   :  { %v7069_v59 = vpop.xlane.xlu0 %7068  ;;  %v8099_v34 = vsub.f32 %v8092_v41, %v8097_v49  ;;  %v9438_v49 = vld [vmem:[%s15591_s14 + $0x258] sm:$0xff] }
0x2115   :  { %v7076_v30 = vmul.f32 %v14637_v28, %v7069_v59 }
0x2116   :  { %v7457_v43 = vpop.f32.mrb[146].mxu1 }
0x2117   :  { %v14978_v33 = vadd.f32 %v7157_v10, %v7076_v30  ;;  %v10538_v42 = vpop.f32.mrb[147].mxu1  ;;  %7948 = vrot.lane.b32.xlu0 %v7933_v38, %s11904_s28  ;;  %v8096_v38 = vadd.f32 %v8094_v39, %v8092_v41  ;;  %v11676_v30 = vld [vmem:[#allocation5 + $0x4] ss:$0 sm:$0xff]  ;;  %v9436_v41 = vld [vmem:[%s15591_s14 + $0x248] sm:$0xff] }
0x211a   :  { %v7462_v63 = vpop.f32.mrb[148].mxu1 }
0x211b   :  { %v10541_v57 = vpop.f32.mrb[149].mxu1 }
0x211c   :  { %v7931_v51 = vpop.xlane.xlu1 %7930  ;;  %v8110_v57 = vrot.slane %v8099_v34, %v12187_v19  ;;  %v9441_v34 = vld [vmem:[%s15591_s14 + $0x270] sm:$0xff] }
0x211d   :  { %v7934_v54 = vmul.f32 %v14637_v28, %v7931_v51  ;;  %v8103_v51 = vrot.slane %v8096_v38, %v12195_v21 }
0x211f   :  { %7950 = vrot.lane.b32.xlu1 %v7934_v54, %s11904_s28 }
0x2136   :  { %7074 = vadd.xlane.f32.xlu0 %v7073_v58 }
0x2143   :  { %7071 = vadd.xlane.f32.xlu1 %v7070_v1 }
0x2144   :  { %v7367_v15 = vpop.permute.xlu0 %7366 }
0x2145   :  { %v7453_v31 = vadd.f32 %v7452_v5, %v7367_v15  ;;  %v6721_v5 = vrot.slane %v11675_v22, %v12650_v55  ;;  %v9440_v22 = vld [vmem:[%s15591_s14 + $0x268] sm:$0xff] }
0x2148   :  { %v7369_v62 = vpop.permute.xlu0 %7368 }
0x2149   :  { %v7458_v11 = vadd.f32 %v7457_v43, %v7369_v62 }
0x214b   :  { %v7742_v29 = vpop.f32.mrb[150].mxu1 }
0x214c   :  { %8049 = vrot.lane.b32.xlu0 %v7453_v31, %s11904_s28  ;;  %v10565_v28 = vpop.f32.mrb[151].mxu1 }
0x214f   :  { %v7747_v56 = vpop.f32.mrb[152].mxu1 }
0x2150   :  { %8051 = vrot.lane.b32.xlu0 %v7458_v11, %s11904_s28  ;;  %v10568_v53 = vpop.f32.mrb[153].mxu1 }
0x2153   :  { %v7752_v40 = vpop.f32.mrb[154].mxu1 }
0x2154   :  { %v10571_v61 = vpop.f32.mrb[155].mxu1 }
0x215f   :  { %v8032_v17 = vpop.f32.mrb[156].mxu1 }
0x2160   :  { %v10595_v27 = vpop.f32.mrb[157].mxu1  ;;  %v7371_v12 = vpop.permute.xlu1 %7370 }
0x2161   :  { %v7463_v60 = vadd.f32 %v7462_v63, %v7371_v12  ;;  %v15003_v63 = vadd.f32 %v14600_v3, %v6721_v5  ;;  %v15016_v3 = vadd.f32 %v14604_v35, %v6721_v5 }
0x2163   :  { %v8037_v2 = vpop.f32.mrb[158].mxu1  ;;  %v8111_v15 = vmul.f32 %v8110_v57, %v15003_v63  ;;  %v8112_v11 = vmul.f32 %v8110_v57, %v15016_v3 }
0x2164   :  { %v10598_v20 = vpop.f32.mrb[159].mxu1 }
0x2167   :  { %v8042_v25 = vpop.f32.mrb[160].mxu1 }
0x2168   :  { %v10601_v36 = vpop.f32.mrb[161].mxu1 }
0x217d   :  { %v7657_v32 = vpop.permute.xlu1 %7656 }
0x217e   :  { %v7743_v10 = vadd.f32 %v7742_v29, %v7657_v32 }
0x2180   :  { %8061 = vrot.lane.b32.xlu1 %v7743_v10, %s11896_s6  ;;  %v9428_v10 = vld [vmem:[%s15591_s14 + $0x208] sm:$0xff] }
0x2181   :  { %v7659_v47 = vpop.permute.xlu1 %7658 }
0x2182   :  { %v7748_v6 = vadd.f32 %v7747_v56, %v7659_v47 }
0x2184   :  { %8063 = vrot.lane.b32.xlu1 %v7748_v6, %s11896_s6  ;;  %v9429_v6 = vld [vmem:[%s15591_s14 + $0x210] sm:$0xff] }
0x2185   :  { %v7947_v4 = vpop.permute.xlu1 %7946  ;;  %v7661_v13 = vpop.permute.xlu0 %7660 }
0x2186   :  { %v8033_v7 = vadd.f32 %v8032_v17, %v7947_v4  ;;  %v7753_v26 = vadd.f32 %v7752_v40, %v7661_v13  ;;  %v15028_v17 = vadd.f32 %v14612_v48, %v6721_v5  ;;  %v9427_v48 = vld [vmem:[%s15591_s14 + $0x200] sm:$0xff]  ;;  %v9430_v4 = vld [vmem:[%s15591_s14 + $0x218] sm:$0xff] }
0x2187   :  { %v11062_v47 = vpack.c.bf16 %v9428_v10, %v9427_v48  ;;  %v11065_v13 = vpack.c.bf16 %v9430_v4, %v9429_v6 }
0x2188   :  { %8073 = vrot.lane.b32.xlu1 %v8033_v7, %s11903_s3  ;;  %v8113_v36 = vmul.f32 %v8110_v57, %v15028_v17  ;;  %v9431_v7 = vld [vmem:[%s15591_s14 + $0x220] sm:$0xff] }
0x2189   :  { %v7949_v14 = vpop.permute.xlu0 %7948  ;;  %11063 = vmatpush3.bf16.msra.mxu0 %v11062_v47 }
0x218a   :  { %v8038_v8 = vadd.f32 %v8037_v2, %v7949_v14  ;;  %11064 = vmatprep.subr.bf16.mxu0 %v11901_v16  ;;  %v9432_v14 = vld [vmem:[%s15591_s14 + $0x228] sm:$0xff] }
0x218c   :  { %8053 = vrot.lane.b32.xlu1 %v7463_v60, %s11904_s28  ;;  %8075 = vrot.lane.b32.xlu0 %v8038_v8, %s11903_s3  ;;  %v11068_v60 = vpack.c.bf16 %v9432_v14, %v9431_v7  ;;  %v9433_v8 = vld [vmem:[%s15591_s14 + $0x230] sm:$0xff] }
0x218d   :  { %11066 = vmatpush3.bf16.msra.mxu0 %v11065_v13 }
0x218e   :  { %11067 = vmatprep.subr.bf16.mxu0 %v11901_v16 }
0x2190   :  { %8065 = vrot.lane.b32.xlu0 %v7753_v26, %s11896_s6  ;;  %v9434_v26 = vld [vmem:[%s15591_s14 + $0x238] sm:$0xff]  ;;  %s11906_s6 = smov 127  }
0x2191   :  { %v7951_v24 = vpop.permute.xlu1 %7950  ;;  %11069 = vmatpush3.bf16.msra.mxu0 %v11068_v60 }
0x2192   :  { %v8043_v45 = vadd.f32 %v8042_v25, %v7951_v24  ;;  %11070 = vmatprep.subr.bf16.mxu0 %v11901_v16  ;;  %v11071_v24 = vpack.c.bf16 %v9434_v26, %v9433_v8 }
0x2194   :  { %8077 = vrot.lane.b32.xlu1 %v8043_v45, %s11903_s3  ;;  %v9435_v45 = vld [vmem:[%s15591_s14 + $0x240] sm:$0xff] }
0x2195   :  { %11072 = vmatpush3.bf16.msra.mxu0 %v11071_v24 }
0x2196   :  { %11073 = vmatprep.subr.bf16.mxu0 %v11901_v16 }
0x21c3   :  { %v7075_v9 = vpop.xlane.xlu0 %7074 }
0x21c4   :  { %v7078_v29 = vmul.f32 %v11676_v30, %v7075_v9  ;;  %v11074_v9 = vpack.c.bf16 %v9436_v41, %v9435_v45 }
0x21c6   :  { %v7168_v40 = vadd.f32 %v14966_v52, %v7078_v29  ;;  %11075 = vmatpush3.bf16.msra.mxu0 %v11074_v9 }
0x21c7   :  { %v8050_v59 = vpop.permute.xlu0 %8049  ;;  %11076 = vmatprep.subr.bf16.mxu0 %v11901_v16 }
0x21c8   :  { %v8082_v54 = vsel %vm216_vm0, %v14978_v33, %v8050_v59  ;;  %v9442_v59 = vld [vmem:[%s15591_s14 + $0x278] sm:$0xff] }
0x21c9   :  { %v11083_v38 = vpack.c.bf16 %v9442_v59, %v9441_v34 }
0x21cb   :  { %v8052_v58 = vpop.permute.xlu0 %8051 }
0x21d0   :  { %v7072_v37 = vpop.xlane.xlu1 %7071 }
0x21d1   :  { %v7077_v43 = vmul.f32 %v11676_v30, %v7072_v37  ;;  %v9437_v37 = vld [vmem:[%s15591_s14 + $0x250] sm:$0xff] }
0x21d2   :  { %v11077_v39 = vpack.c.bf16 %v9438_v49, %v9437_v37 }
0x21d3   :  { %v7163_v50 = vadd.f32 %v14964_v46, %v7077_v43 }
0x21d4   :  { %11078 = vmatpush3.bf16.msra.mxu0 %v11077_v39 }
0x21d5   :  { %v8083_v31 = vsel %vm216_vm0, %v7163_v50, %v8052_v58  ;;  %11079 = vmatprep.subr.bf16.mxu0 %v11901_v16 }
0x21f2   :  { %v8062_v44 = vpop.permute.xlu1 %8061 }
0x21f3   :  { %v8085_v55 = vsel %vm1579_vm7, %v8082_v54, %v8062_v44  ;;  %v9439_v44 = vld [vmem:[%s15591_s14 + $0x260] sm:$0xff]  ;;  %s9036_s14 = sshll.u32 %s11907_s26, 4  ;;  %s9037_s14 = int_to_ptr.vmem [resolvable:$true] %s9036_s14 }
0x21f4   :  { %v11080_v5 = vpack.c.bf16 %v9440_v22, %v9439_v44  ;;  %s11831_s10 = scalar_lea.vmem %s9037_s14, 16  ;;  %s11835_s1 = scalar_lea.vmem %s9037_s14, 32 }
0x21f5   :  { %p11832_p0 = scmp.ne.s32.totalorder %s9037_s14, %s11831_s10  ;;  %p11836_p1 = scmp.lt.s32.totalorder %s9037_s14, %s9037_s14 }
0x21f6   :  { %v8064_v42 = vpop.permute.xlu1 %8063  ;;  %11081 = vmatpush3.bf16.msra.mxu0 %v11080_v5  ;;  %p11837_p2 = scmp.lt.s32.totalorder %s11835_s1, %s11831_s10 }
0x21f7   :  { %v8086_v33 = vsel %vm1579_vm7, %v8083_v31, %v8064_v42  ;;  %11082 = vmatprep.subr.bf16.mxu0 %v11901_v16 }
0x21f8   :  { %p11838_p3 = por %p11837_p2, %p11836_p1 }
0x21fa   :  { %v8074_v23 = vpop.permute.xlu1 %8073  ;;  %11084 = vmatpush3.bf16.msra.mxu0 %v11083_v38  ;;  %p11839_p4 = pnand %p11838_p3, %p11832_p0 }
0x21fb   :  { %v15012_v1 = vsel %vm1583_vm8, %v8085_v55, %v8074_v23  ;;  %11115 = vmatprep.subr.bf16.mxu0 %v11901_v16 }
0x21fc   :  { %v8104_v19 = vmul.f32 %v8103_v51, %v15012_v1 }
0x21fe   :  { %v8076_v62 = vpop.permute.xlu0 %8075  ;;  %v8114_v46 = vadd.f32 %v8111_v15, %v8104_v19  ;;  %v8054_v53 = vpop.permute.xlu1 %8053 }
0x21ff   :  { %v15022_v28 = vsel %vm1583_vm8, %v8086_v33, %v8076_v62  ;;  %v8084_v27 = vsel %vm216_vm0, %v7168_v40, %v8054_v53  ;;  %v8139_v33 = vsub.f32 %v15003_v63, %v15012_v1 }
0x2200   :  { %v8105_v56 = vmul.f32 %v8103_v51, %v15022_v28  ;;  %8117 = vadd.xlane.f32.xlu0 %v8114_v46 }
0x2202   :  { %v8115_v35 = vadd.f32 %v8112_v11, %v8105_v56  ;;  %v8066_v61 = vpop.permute.xlu0 %8065  ;;  %v8140_v56 = vsub.f32 %v15016_v3, %v15022_v28 }
0x2203   :  { %v8087_v2 = vsel %vm1579_vm7, %v8084_v27, %v8066_v61 }
0x2204   :  { %8119 = vadd.xlane.f32.xlu1 %v8115_v35 }
0x2206   :  { %v8078_v20 = vpop.permute.xlu1 %8077 }
0x2207   :  { %v15033_v25 = vsel %vm1583_vm8, %v8087_v2, %v8078_v20  ;;  %v8313_v2 = vld [vmem:[%s15543_s11] sm:$0xff] }
0x2208   :  { %v8106_v12 = vmul.f32 %v8103_v51, %v15033_v25  ;;  %v8141_v63 = vsub.f32 %v15028_v17, %v15033_v25  ;;  %v8315_v17 = vld [vmem:[%s15543_s11 + $0x10] sm:$0xff] }
0x220a   :  { %v8116_v32 = vadd.f32 %v8113_v36, %v8106_v12  ;;  %v9443_v12 = vld [vmem:[#allocation8 + $0x4] ss:$0 sm:$0xff] }
0x220c   :  { %v8121_v52 = vsel %vm581_vm6, %v8116_v32, 0.0 }
0x220d   :  { %8122 = vadd.xlane.f32.xlu0 %v8121_v52 }
0x228d   :  { %v8118_v30 = vpop.xlane.xlu0 %8117 }
0x228e   :  { %v8124_v43 = vsub.f32 0.0, %v8118_v30 }
0x2290   :  { %v8127_v42 = vmul.f32 1.442695, %v8124_v43 }
0x2291   :  { %v8120_v57 = vpop.xlane.xlu1 %8119 }
0x2292   :  { %11611 = vpow2.f32 %v8127_v42  ;;  %v8125_v51 = vsub.f32 0.0, %v8120_v57 }
0x2294   :  { %v8129_v54 = vmul.f32 1.442695, %v8125_v51 }
0x2296   :  { %11613 = vpow2.f32 %v8129_v54 }
0x229a   :  { %v8123_v50 = vpop.xlane.xlu0 %8122 }
0x229b   :  { %v8126_v58 = vsub.f32 0.0, %v8123_v50 }
0x229c   :  { %v11612_v55 = vpop.eup %11611 }
0x229d   :  { %v8133_v23 = vadd.f32 1.0, %v11612_v55  ;;  %v8131_v15 = vmul.f32 1.442695, %v8126_v58 }
0x229f   :  { %11615 = vrcp.f32 %v8133_v23 }
0x22a0   :  { %v11614_v19 = vpop.eup %11613  ;;  %11617 = vpow2.f32 %v8131_v15 }
0x22a1   :  { %v8134_v31 = vadd.f32 1.0, %v11614_v19 }
0x22a3   :  { %11619 = vrcp.f32 %v8134_v31 }
0x22a9   :  { %v11616_v62 = vpop.eup %11615 }
0x22aa   :  { %v11618_v46 = vpop.eup %11617  ;;  %v8142_v29 = vmul.f32 %v11616_v62, %v8139_v33 }
0x22ab   :  { %v8135_v11 = vadd.f32 1.0, %v11618_v46 }
0x22ac   :  { %v8145_v53 = vadd.f32 %v8142_v29, %v15012_v1 }
0x22ad   :  { %v11620_v35 = vpop.eup %11619  ;;  %11621 = vrcp.f32 %v8135_v11 }
0x22ae   :  { %10635 = vmatmul.mubr.f32.vlgmr.msra.gmra.mrb[162].mxu0 %v8145_v53  ;;  %v8143_v40 = vmul.f32 %v11620_v35, %v8140_v56  ;;  %v9444_v56 = vld [vmem:[#allocation10 + $0x4] ss:$0 sm:$0xff] }
0x22af   :  { %10637 = vmatprep.mubr.msk.f32.mxu0 %vm11902_vm1, %v11900_v0 }
0x22b0   :  { %v8146_v61 = vadd.f32 %v8143_v40, %v15022_v28  ;;  %v8314_v28 = vld [vmem:[%s15543_s11 + $0x8] sm:$0xff] }
0x22b1   :  { %v11086_v20 = vpack.c.bf16 %v8314_v28, %v8313_v2 }
0x22b2   :  { %10638 = vmatmul.mubr.f32.gmra.mrb[164].mxu0 %v8146_v61  ;;  %v8416_v61 = vld [vmem:[%s15545_s13] sm:$0xff] }
0x22b3   :  { %10640 = vmatprep.mubr.msk.f32.mxu0 %vm11902_vm1, %v11900_v0  ;;  %11087 = vmatpush3.bf16.msra.mxu1 %v11086_v20  ;;  %v8418_v20 = vld [vmem:[%s15545_s13 + $0x10] sm:$0xff] }
0x22b4   :  { %11088 = vmatprep.subr.bf16.mxu1 %v11901_v16 }
0x22b7   :  { %v11622_v27 = vpop.eup %11621 }
0x22b8   :  { %v8144_v3 = vmul.f32 %v11622_v27, %v8141_v63  ;;  %v8417_v63 = vld [vmem:[%s15545_s13 + $0x8] sm:$0xff]  ;;  %v9445_v27 = vld [vmem:[#allocation11 + $0x4] ss:$0 sm:$0xff] }
0x22ba   :  { %v8147_v1 = vadd.f32 %v8144_v3, %v15033_v25  ;;  %v8316_v25 = vld [vmem:[%s15543_s11 + $0x18] sm:$0xff] }
0x22bb   :  { %v11089_v36 = vpack.c.bf16 %v8316_v25, %v8315_v17  ;;  %v8419_v17 = vld [vmem:[%s15545_s13 + $0x18] sm:$0xff] }
0x22bc   :  { %10641 = vmatmul.mubr.f32.gmra.mrb[166].mxu0 %v8147_v1  ;;  %v11092_v1 = vpack.c.bf16 %v8417_v63, %v8416_v61  ;;  %v11095_v25 = vpack.c.bf16 %v8419_v17, %v8418_v20 }
0x22bd   :  { %10717 = vmatprep.mubr.msk.f32.mxu0 %vm11902_vm1, %v11900_v0  ;;  %11090 = vmatpush3.bf16.msra.mxu1 %v11089_v36 }
0x22be   :  { %11091 = vmatprep.subr.bf16.mxu1 %v11901_v16 }
0x2381   :  { %v8239_v32 = vpop.f32.mrb[162].mxu0 }
0x2382   :  { %v8240_v52 = vadd.f32 %v9443_v12, %v8239_v32  ;;  %v10636_v48 = vpop.f32.mrb[163].mxu0  ;;  %v8420_v32 = vld [vmem:[%s15545_s13 + $0x20] sm:$0xff] }
0x2384   :  { %v8253_v47 = vmax.f32 %v8240_v52, 0.0  ;;  %v8421_v52 = vld [vmem:[%s15545_s13 + $0x28] sm:$0xff] }
0x2385   :  { %v8244_v10 = vpop.f32.mrb[164].mxu0  ;;  %v11098_v48 = vpack.c.bf16 %v8421_v52, %v8420_v32 }
0x2386   :  { %v8245_v6 = vadd.f32 %v9443_v12, %v8244_v10  ;;  %v10639_v4 = vpop.f32.mrb[165].mxu0  ;;  %v8256_v7 = vsel %vm216_vm0, %v8253_v47, 0.0 }
0x2388   :  { %v8254_v13 = vmax.f32 %v8245_v6, 0.0  ;;  %v8423_v6 = vld [vmem:[%s15545_s13 + $0x38] sm:$0xff] }
0x238a   :  { %v8257_v14 = vsel %vm216_vm0, %v8254_v13, 0.0 }
0x238b   :  { %v8258_v60 = vadd.f32 %v8257_v14, %v8256_v7  ;;  %v8425_v7 = vld [vmem:[%s15545_s13 + $0x48] sm:$0xff] }
0x238f   :  { %v8249_v8 = vpop.f32.mrb[166].mxu0 }
0x2390   :  { %v8250_v26 = vadd.f32 %v9443_v12, %v8249_v8  ;;  %v10642_v24 = vpop.f32.mrb[167].mxu0  ;;  %v8427_v8 = vld [vmem:[%s15545_s13 + $0x58] sm:$0xff] }
0x2391   :  { %v8428_v24 = vld [vmem:[%s15545_s13 + $0x60] sm:$0xff] }
0x2392   :  { %v8255_v45 = vmax.f32 %v8250_v26, 0.0 }
0x2394   :  { %v8259_v41 = vsel %vm411_vm3, %v8255_v45, 0.0 }
0x2395   :  { %v8260_v9 = vadd.f32 %v8259_v41, %v8258_v60  ;;  %v8426_v60 = vld [vmem:[%s15545_s13 + $0x50] sm:$0xff] }
0x2396   :  { %v11107_v26 = vpack.c.bf16 %v8427_v8, %v8426_v60 }
0x2397   :  { %v8261_v37 = vrot.slane %v8260_v9, 4 }
0x2399   :  { %v8262_v49 = vadd.f32 %v8261_v37, %v8260_v9  ;;  %v8430_v9 = vld [vmem:[%s15545_s13 + $0x70] sm:$0xff]  ;;  %v8431_v37 = vld [vmem:[%s15545_s13 + $0x78] sm:$0xff] }
0x239b   :  { %v8263_v39 = vrot.slane %v8262_v49, 2 }
0x239d   :  { %v8264_v44 = vadd.f32 %v8263_v39, %v8262_v49  ;;  %v11113_v49 = vpack.c.bf16 %v8431_v37, %v8430_v9  ;;  %v8522_v39 = vld [vmem:[%s15547_s15] sm:$0xff]  ;;  %v15263_v9 = vld [vmem:[%s15552_s20 + $0x8] sm:$0xff] }
0x239f   :  { %v8265_v22 = vrot.slane %v8264_v44, 1 }
0x23a1   :  { %v8266_v5 = vadd.f32 %v8265_v22, %v8264_v44  ;;  %v8523_v44 = vld [vmem:[%s15547_s15 + $0x8] sm:$0xff]  ;;  %v8524_v22 = vld [vmem:[%s15547_s15 + $0x10] sm:$0xff] }
0x23a3   :  { %v8267_v34 = vmul.f32 0.05, %v8266_v5  ;;  %v11116_v5 = vpack.c.bf16 %v8523_v44, %v8522_v39  ;;  %v15276_v39 = vld [vmem:[%s15553_s21 + $0x8] sm:$0xff] }
0x23a5   :  { %v8268_v59 = vsub.f32 %v8253_v47, %v8267_v34  ;;  %v8269_v38 = vsub.f32 %v8254_v13, %v8267_v34  ;;  %v8270_v30 = vsub.f32 %v8255_v45, %v8267_v34  ;;  %v8422_v47 = vld [vmem:[%s15545_s13 + $0x30] sm:$0xff]  ;;  %v8424_v13 = vld [vmem:[%s15545_s13 + $0x40] sm:$0xff]  ;;  %v8429_v45 = vld [vmem:[%s15545_s13 + $0x68] sm:$0xff]  ;;  %11117 = vmatpush3.bf16.msra.mxu0 %v11116_v5 }
0x23a6   :  { %v11101_v4 = vpack.c.bf16 %v8423_v6, %v8422_v47  ;;  %v11104_v14 = vpack.c.bf16 %v8425_v7, %v8424_v13  ;;  %v11110_v41 = vpack.c.bf16 %v8429_v45, %v8428_v24  ;;  %v8525_v34 = vld [vmem:[%s15547_s15 + $0x18] sm:$0xff]  ;;  %11118 = vmatprep.subr.bf16.mxu0 %v11901_v16  ;;  %v11905_v24 = vmov 0   ;;  %v15258_v45 = vld [vmem:[%s15552_s20] sm:$0xff]  ;;  %v15284_v5 = vld [vmem:[%s15552_s20 + $0x10] sm:$0xf] }
0x23a7   :  { %v8271_v43 = vmul.f32 %v8268_v59, %v8268_v59  ;;  %v8272_v42 = vmul.f32 %v8269_v38, %v8269_v38  ;;  %v8273_v57 = vmul.f32 %v8270_v30, %v8270_v30  ;;  %11314 = vset.pattern.permute.xlu0 %v11905_v24  ;;  %11313 = vset.pattern.permute.xlu1 %v11905_v24 }
0x23a9   :  { %v8274_v51 = vsel %vm216_vm0, %v8271_v43, 0.0  ;;  %v8275_v54 = vsel %vm216_vm0, %v8272_v42, 0.0  ;;  %v8277_v58 = vsel %vm411_vm3, %v8273_v57, 0.0  ;;  %v9446_v42 = vld [vmem:[%s15544_s12] ss:$0 sm:$0xff] }
0x23aa   :  { %v8276_v50 = vadd.f32 %v8275_v54, %v8274_v51 }
0x23ac   :  { %v8278_v55 = vadd.f32 %v8277_v58, %v8276_v50 }
0x23ae   :  { %v8279_v23 = vrot.slane %v8278_v55, 4 }
0x23b0   :  { %v8280_v15 = vadd.f32 %v8279_v23, %v8278_v55 }
0x23b2   :  { %v8281_v19 = vrot.slane %v8280_v15, 2 }
0x23b4   :  { %v8282_v31 = vadd.f32 %v8281_v19, %v8280_v15 }
0x23b6   :  { %v8283_v33 = vrot.slane %v8282_v31, 1 }
0x23b8   :  { %v8284_v62 = vadd.f32 %v8283_v33, %v8282_v31 }
0x23ba   :  { %v8285_v46 = vmul.f32 0.05, %v8284_v62 }
0x23bc   :  { %v8286_v29 = vadd.f32 1e-05, %v8285_v46  ;;  %v8528_v46 = vld [vmem:[%s15547_s15 + $0x30] sm:$0xff] }
0x23be   :  { %11623 = vrsqrt.f32 %v8286_v29  ;;  %v8529_v29 = vld [vmem:[%s15547_s15 + $0x38] sm:$0xff] }
0x23c8   :  { %v11624_v11 = vpop.eup %11623 }
0x23c9   :  { %v8288_v53 = vmul.f32 %v11624_v11, %v8268_v59  ;;  %v8290_v35 = vmul.f32 %v11624_v11, %v8270_v30  ;;  %v8289_v40 = vmul.f32 %v11624_v11, %v8269_v38  ;;  %v11119_v59 = vpack.c.bf16 %v8525_v34, %v8524_v22  ;;  %v8526_v38 = vld [vmem:[%s15547_s15 + $0x20] sm:$0xff]  ;;  %v8527_v30 = vld [vmem:[%s15547_s15 + $0x28] sm:$0xff] }
0x23ca   :  { %v11122_v43 = vpack.c.bf16 %v8527_v30, %v8526_v38  ;;  %v11125_v11 = vpack.c.bf16 %v8529_v29, %v8528_v46  ;;  %v15293_v38 = vld [vmem:[%s15553_s21 + $0x10] sm:$0xf]  ;;  %v15306_v46 = vcvt.s32.f32 %v12184_v18 }
0x23cb   :  { %v8299_v3 = vmul.f32 %v9444_v56, %v8288_v53  ;;  %v8300_v28 = vmul.f32 %v9444_v56, %v8289_v40  ;;  %v8301_v36 = vmul.f32 %v9444_v56, %v8290_v35  ;;  %11120 = vmatpush3.bf16.msra.mxu0 %v11119_v59  ;;  %v9450_v56 = vld [vmem:[#allocation13] ss:$0 sm:$0xff] }
0x23cc   :  { %11121 = vmatprep.subr.bf16.mxu0 %v11901_v16 }
0x23cd   :  { %v8310_v2 = vadd.f32 %v9445_v27, %v8299_v3  ;;  %v8311_v12 = vadd.f32 %v9445_v27, %v8300_v28  ;;  %v8312_v10 = vadd.f32 %v9445_v27, %v8301_v36 }
0x23cf   :  { %10652 = vmatmul.mubr.msk.f32.vlgmr.msra.gmra.mrb[162].mxu1 %vm216_vm0, %v8310_v2  ;;  %11123 = vmatpush3.bf16.msra.mxu0 %v11122_v43 }
0x23d0   :  { %10654 = vmatprep.mubr.msk.f32.mxu1 %vm11902_vm1, %v11900_v0  ;;  %11093 = vmatpush3.bf16.msra.mxu1 %v11092_v1 }
0x23d1   :  { %11094 = vmatprep.subr.bf16.mxu1 %v11901_v16  ;;  %11124 = vmatprep.subr.bf16.mxu0 %v11901_v16 }
0x23d3   :  { %10655 = vmatmul.mubr.msk.f32.gmra.mrb[164].mxu1 %vm216_vm0, %v8311_v12  ;;  %11126 = vmatpush3.bf16.msra.mxu0 %v11125_v11  ;;  %v9455_v12 = vld [vmem:[%s15549_s17] ss:$0 sm:$0xff] }
0x23d4   :  { %10657 = vmatprep.mubr.msk.f32.mxu1 %vm11902_vm1, %v11900_v0  ;;  %11096 = vmatpush3.bf16.msra.mxu1 %v11095_v25  ;;  %v9451_v25 = vld [vmem:[%s15548_s16] ss:$0 sm:$0xff] }
0x23d5   :  { %11097 = vmatprep.subr.bf16.mxu1 %v11901_v16 }
0x23d7   :  { %10658 = vmatmul.mubr.msk.f32.gmra.mrb[166].mxu1 %vm216_vm0, %v8312_v10 }
0x23d8   :  { %11099 = vmatpush3.bf16.msra.mxu1 %v11098_v48  ;;  %10692 = vmatprep.mubr.msk.f32.mxu1 %vm11902_vm1, %v11900_v0 }
0x23d9   :  { %11100 = vmatprep.subr.bf16.mxu1 %v11901_v16 }
0x23dc   :  { %11102 = vmatpush3.bf16.msra.mxu1 %v11101_v4 }
0x23dd   :  { %11103 = vmatprep.subr.bf16.mxu1 %v11901_v16 }
0x23e0   :  { %11105 = vmatpush3.bf16.msra.mxu1 %v11104_v14 }
0x23e1   :  { %11106 = vmatprep.subr.bf16.mxu1 %v11901_v16 }
0x23e4   :  { %11108 = vmatpush3.bf16.msra.mxu1 %v11107_v26 }
0x23e5   :  { %11109 = vmatprep.subr.bf16.mxu1 %v11901_v16 }
0x23e8   :  { %11111 = vmatpush3.bf16.msra.mxu1 %v11110_v41 }
0x23e9   :  { %11112 = vmatprep.subr.bf16.mxu1 %v11901_v16 }
0x23ec   :  { %11114 = vmatpush3.bf16.msra.mxu1 %v11113_v49  ;;  %v15271_v49 = vld [vmem:[%s15553_s21] sm:$0xff] }
0x23ed   :  { %11127 = vmatprep.subr.bf16.mxu1 %v11901_v16 }
0x24a2   :  { %v8399_v57 = vpop.f32.mrb[162].mxu1 }
0x24a3   :  { %v8400_v51 = vadd.f32 %v9446_v42, %v8399_v57  ;;  %v10653_v54 = vpop.f32.mrb[163].mxu1 }
0x24a5   :  { %v8413_v50 = vmax.f32 %v8400_v51, 0.0 }
0x24a6   :  { %v8404_v58 = vpop.f32.mrb[164].mxu1 }
0x24a7   :  { %v8405_v55 = vadd.f32 %v9446_v42, %v8404_v58  ;;  %v10656_v23 = vpop.f32.mrb[165].mxu1  ;;  %10693 = vmatmul.mubr.f32.vlgmr.msra.gmra.mrb[168].mxu1 %v8413_v50 }
0x24a8   :  { %10695 = vmatprep.mubr.msk.f32.mxu1 %vm11902_vm1, %v11900_v0 }
0x24a9   :  { %v8414_v15 = vmax.f32 %v8405_v55, 0.0 }
0x24aa   :  { %v8409_v19 = vpop.f32.mrb[166].mxu1 }
0x24ab   :  { %v8410_v31 = vadd.f32 %v9446_v42, %v8409_v19  ;;  %v10659_v33 = vpop.f32.mrb[167].mxu1  ;;  %10696 = vmatmul.mubr.f32.gmra.mrb[170].mxu1 %v8414_v15  ;;  %v8635_v19 = vadd.s32 16, %v12184_v18 }
0x24ac   :  { %10698 = vmatprep.mubr.msk.f32.mxu1 %vm11902_vm1, %v11900_v0  ;;  %v8634_v33 = vadd.s32 8, %v12184_v18 }
0x24ad   :  { %v8415_v62 = vmax.f32 %v8410_v31, 0.0  ;;  %v15308_v29 = vcvt.s32.f32 %v8635_v19 }
0x24af   :  { %10699 = vmatmul.mubr.f32.gmra.mrb[172].mxu1 %v8415_v62 }
0x24b0   :  { %10742 = vmatprep.mubr.msk.f32.mxu1 %vm11902_vm1, %v11900_v0 }
0x257a   :  { %v8505_v53 = vpop.f32.mrb[168].mxu1 }
0x257b   :  { %v8506_v35 = vadd.f32 %v9450_v56, %v8505_v53  ;;  %v10694_v40 = vpop.f32.mrb[169].mxu1 }
0x257d   :  { %v8519_v61 = vmax.f32 %v8506_v35, 0.0 }
0x257e   :  { %v8510_v63 = vpop.f32.mrb[170].mxu1 }
0x257f   :  { %v8511_v27 = vadd.f32 %v9450_v56, %v8510_v63  ;;  %v10697_v3 = vpop.f32.mrb[171].mxu1  ;;  %10718 = vmatmul.mubr.msk.f32.vlgmr.msra.gmra.mrb[168].mxu0 %vm1579_vm7, %v8519_v61 }
0x2580   :  { %10720 = vmatprep.mubr.msk.f32.mxu0 %vm11902_vm1, %v11900_v0 }
0x2581   :  { %v8520_v1 = vmax.f32 %v8511_v27, 0.0 }
0x2582   :  { %v8515_v2 = vpop.f32.mrb[172].mxu1 }
0x2583   :  { %v8516_v28 = vadd.f32 %v9450_v56, %v8515_v2  ;;  %v10700_v20 = vpop.f32.mrb[173].mxu1  ;;  %10721 = vmatmul.mubr.msk.f32.gmra.mrb[170].mxu0 %vm1579_vm7, %v8520_v1  ;;  %v15310_v56 = vcvt.s32.f32 %v8634_v33  ;;  %v8802_v33 = vld [vmem:[%s15551_s19] sm:$0x1] }
0x2584   :  { %10723 = vmatprep.mubr.msk.f32.mxu0 %vm11902_vm1, %v11900_v0 }
0x2585   :  { %v8521_v17 = vmax.f32 %v8516_v28, 0.0 }
0x2587   :  { %10724 = vmatmul.mubr.msk.f32.gmra.mrb[172].mxu0 %vm1579_vm7, %v8521_v17 }
0x2652   :  { %v8612_v36 = vpop.f32.mrb[168].mxu0 }
0x2653   :  { %v15243_v32 = vadd.f32 %v9451_v25, %v8612_v36  ;;  %v10719_v52 = vpop.f32.mrb[169].mxu0 }
0x2655   :  { %v8646_v48 = vmul.f32 %v9455_v12, %v15243_v32 }
0x2656   :  { %v8617_v10 = vpop.f32.mrb[170].mxu0 }
0x2657   :  { %v15246_v47 = vadd.f32 %v9451_v25, %v8617_v10  ;;  %v10722_v0 = vpop.f32.mrb[171].mxu0  ;;  %v8649_v6 = vsel %vm1579_vm7, %v8646_v48, 0.0  ;;  %v8794_v48 = vld [vmem:[%s15550_s18] sm:$0xff]  ;;  %v8795_v10 = vld [vmem:[%s15550_s18 + $0x8] sm:$0xff] }
0x2658   :  { %8650 = vadd.xlane.f32.xlu0 %v8649_v6  ;;  %v11128_v0 = vpack.c.bf16 %v8795_v10, %v8794_v48  ;;  %v8796_v6 = vld [vmem:[%s15550_s18 + $0x10] sm:$0xff] }
0x2659   :  { %v8647_v4 = vmul.f32 %v9455_v12, %v15246_v47 }
0x265a   :  { %v8622_v13 = vpop.f32.mrb[172].mxu0  ;;  %11129 = vmatpush3.bf16.msra.mxu1 %v11128_v0 }
0x265b   :  { %v15250_v7 = vadd.f32 %v9451_v25, %v8622_v13  ;;  %v10725_v14 = vpop.f32.mrb[173].mxu0  ;;  %v8652_v60 = vsel %vm1579_vm7, %v8647_v4, 0.0  ;;  %11130 = vmatprep.subr.bf16.mxu1 %v11901_v16  ;;  %v8797_v4 = vld [vmem:[%s15550_s18 + $0x18] sm:$0xff] }
0x265c   :  { %8653 = vadd.xlane.f32.xlu1 %v8652_v60  ;;  %v11131_v13 = vpack.c.bf16 %v8797_v4, %v8796_v6  ;;  %v8798_v14 = vld [vmem:[%s15550_s18 + $0x20] sm:$0xff]  ;;  %v8799_v60 = vld [vmem:[%s15550_s18 + $0x28] sm:$0xff] }
0x265d   :  { %v8648_v8 = vmul.f32 %v9455_v12, %v15250_v7 }
0x265e   :  { %11132 = vmatpush3.bf16.msra.mxu1 %v11131_v13 }
0x265f   :  { %v8656_v26 = vsel %vm8655_vm9, %v8648_v8, 0.0  ;;  %11133 = vmatprep.subr.bf16.mxu1 %v11901_v16  ;;  %v11134_v8 = vpack.c.bf16 %v8799_v60, %v8798_v14 }
0x2660   :  { %8657 = vadd.xlane.f32.xlu0 %v8656_v26  ;;  %v8800_v26 = vld [vmem:[%s15550_s18 + $0x30] sm:$0xff] }
0x2662   :  { %11135 = vmatpush3.bf16.msra.mxu1 %v11134_v8 }
0x2663   :  { %11136 = vmatprep.subr.bf16.mxu1 %v11901_v16 }
0x26e5   :  { %v8651_v41 = vpop.xlane.xlu0 %8650 }
0x26e6   :  { %v15266_v37 = vadd.f32 %v8651_v41, %v15258_v45 }
0x26e8   :  { %v8662_v34 = vadd.f32 %v15266_v37, %v15271_v49 }
0x26e9   :  { %v8654_v44 = vpop.xlane.xlu1 %8653 }
0x26ea   :  { %v15279_v22 = vadd.f32 %v8654_v44, %v15263_v9  ;;  %v8666_v57 = vsel %vm8665_vm10, %v8662_v34, -inf }
0x26ec   :  { %v8663_v59 = vadd.f32 %v15279_v22, %v15276_v39 }
0x26ed   :  { %v8658_v30 = vpop.xlane.xlu0 %8657 }
0x26ee   :  { %v8667_v43 = vsel %vm8665_vm10, %v8663_v59, -inf  ;;  %v15297_v42 = vadd.f32 %v8658_v30, %v15284_v5 }
0x26ef   :  { %v8670_v54 = vmax.f32 %v8666_v57, %v8667_v43 }
0x26f0   :  { %v8664_v51 = vadd.f32 %v15297_v42, %v15293_v38 }
0x26f2   :  { %v8669_v50 = vsel %vm8668_vm11, %v8664_v51, -inf }
0x26f3   :  { %v8671_v58 = vmax.f32 %v8670_v54, %v8669_v50 }
0x26f5   :  { %v8672_v55 = vrot.slane %v8671_v58, 4 }
0x26f7   :  { %v8673_v23 = vmax.f32 %v8671_v58, %v8672_v55 }
0x26f9   :  { %v8674_v15 = vrot.slane %v8673_v23, 2 }
0x26fb   :  { %v8675_v31 = vmax.f32 %v8673_v23, %v8674_v15 }
0x26fd   :  { %v8676_v62 = vrot.slane %v8675_v31, 1 }
0x26ff   :  { %v8677_v11 = vmax.f32 %v8675_v31, %v8676_v62 }
0x2701   :  { %vm8678_vm12 = vcmp.ge.f32.partialorder %v8662_v34, %v8677_v11  ;;  %vm8680_vm13 = vcmp.ge.f32.partialorder %v8664_v51, %v8677_v11  ;;  %vm8679_vm14 = vcmp.ge.f32.partialorder %v8663_v59, %v8677_v11 }
0x2702   :  { %v8681_v53 = vsel %vm8678_vm12, %v15306_v46, 20.0  ;;  %v8683_v35 = vsel %vm8680_vm13, %v15308_v29, 20.0  ;;  %v8682_v40 = vsel %vm8679_vm14, %v15310_v56, 20.0  ;;  %vm9009_vm13 = vcmask 15360  }
0x2703   :  { %v8684_v61 = vsel %vm8665_vm10, %v8681_v53, inf  ;;  %v8685_v63 = vsel %vm8665_vm10, %v8682_v40, inf  ;;  %v8686_v27 = vsel %vm8668_vm11, %v8683_v35, inf  ;;  %vm9012_vm14 = vcmask 11264  }
0x2704   :  { %v8687_v18 = vmin.f32 %v8684_v61, %v8685_v63 }
0x2706   :  { %v8688_v3 = vmin.f32 %v8687_v18, %v8686_v27 }
0x2708   :  { %v8689_v1 = vrot.slane %v8688_v3, 4 }
0x270a   :  { %v8690_v2 = vmin.f32 %v8688_v3, %v8689_v1 }
0x270c   :  { %v8691_v28 = vrot.slane %v8690_v2, 2 }
0x270e   :  { %v8692_v20 = vmin.f32 %v8690_v2, %v8691_v28 }
0x2710   :  { %v8693_v17 = vrot.slane %v8692_v20, 1 }
0x2712   :  { %v15318_v25 = vmin.f32 %v8692_v20, %v8693_v17 }
0x2714   :  { %vm8696_vm15 = vcmp.eq.f32.partialorder %v15310_v56, %v15318_v25  ;;  %vm8695_vm0 = vcmp.eq.f32.partialorder %v15306_v46, %v15318_v25  ;;  %vm8697_vm1 = vcmp.eq.f32.partialorder %v15308_v29, %v15318_v25 }
0x2715   :  { %v8766_v36 = vsel %vm8696_vm15, 1, %v11905_v24  ;;  %v8765_v12 = vsel %vm8695_vm0, 1, %v11905_v24  ;;  %v8767_v52 = vsel %vm8697_vm1, 1, %v11905_v24  ;;  %v8801_v24 = vld [vmem:[%s15550_s18 + $0x38] sm:$0xff] }
0x2716   :  { %8772 = vperm.xlu0 %11314, %v8766_v36   ;;  %8769 = vperm.xlu1 %11313, %v8765_v12  }
0x271a   :  { %8775 = vperm.xlu1 %11313, %v8767_v52  }
0x271e   :  { %8753 = vrot.lane.b32.xlu1 %v15258_v45, %s11906_s6  ;;  %v11137_v45 = vpack.c.bf16 %v8801_v24, %v8800_v26 }
0x2720   :  { %11138 = vmatpush3.bf16.msra.mxu1 %v11137_v45 }
0x2795   :  { %v8773_v41 = vpop.permute.xlu0 %8772  ;;  %v8770_v44 = vpop.permute.xlu1 %8769 }
0x2796   :  { %vm8778_vm2 = vcmp.eq.s32.totalorder %v8773_v41, 1  ;;  %vm8777_vm3 = vcmp.eq.s32.totalorder %v8770_v44, 1 }
0x2797   :  { %v8781_v34 = vsel %vm8778_vm2, %v15246_v47, 0.0  ;;  %v8780_v59 = vsel %vm8777_vm3, %v15243_v32, 0.0 }
0x2798   :  { %v8784_v16 = vsel %vm1579_vm7, %v8781_v34, 0.0  ;;  %v8783_v30 = vsel %vm1579_vm7, %v8780_v59, 0.0 }
0x2799   :  { %v8776_v43 = vpop.permute.xlu1 %8775  ;;  %v8785_v57 = vadd.f32 %v8784_v16, %v8783_v30 }
0x279a   :  { %vm8779_vm4 = vcmp.eq.s32.totalorder %v8776_v43, 1 }
0x279b   :  { %v8782_v51 = vsel %vm8779_vm4, %v15250_v7, 0.0 }
0x279c   :  { %v8786_v54 = vsel %vm8655_vm9, %v8782_v51, 0.0 }
0x279d   :  { %v8787_v50 = vadd.f32 %v8786_v54, %v8785_v57 }
0x279f   :  { %v8788_v58 = vrot.slane %v8787_v50, 4 }
0x27a1   :  { %v8789_v55 = vadd.f32 %v8788_v58, %v8787_v50 }
0x27a3   :  { %v8790_v23 = vrot.slane %v8789_v55, 2 }
0x27a5   :  { %v8791_v15 = vadd.f32 %v8790_v23, %v8789_v55 }
0x27a7   :  { %v8792_v19 = vrot.slane %v8791_v15, 1 }
0x27a9   :  { %v8793_v31 = vadd.f32 %v8792_v19, %v8791_v15 }
0x27ab   :  { %10743 = vmatmul.mubr.msk.f32.vlgmr.msra.gmra.mrb[174].mxu1 %vm1579_vm7, %v8793_v31 }
0x287e   :  { %v8872_v62 = vpop.f32.mrb[174].mxu1 }
0x287f   :  { %v8873_v11 = vadd.f32 %v8872_v62, %v8802_v33  ;;  %v10744_v53 = vpop.f32.mrb[175].mxu1 }
0x2881   :  { %11625 = vtanh.f32 %v8873_v11 }
0x288b   :  { %v11626_v35 = vpop.eup %11625 }
0x288c   :  { %v8880_v40 = vrot.slane %v11626_v35, %v12195_v21 }
0x288e   :  { %v8882_v61 = vmul.f32 %v8880_v40, %v15246_v47  ;;  %v8881_v63 = vmul.f32 %v8880_v40, %v15243_v32  ;;  %v8883_v21 = vmul.f32 %v8880_v40, %v15250_v7  ;;  %v8754_v47 = vpop.permute.xlu1 %8753 }
0x2890   :  { %v8887_v18 = vsel %vm1579_vm7, %v8882_v61, 0.0  ;;  %v8884_v27 = vsel %vm1579_vm7, %v8881_v63, 0.0  ;;  %v8890_v32 = vsel %vm8655_vm9, %v8883_v21, 0.0 }
0x2891   :  { %8888 = vadd.xlane.f32.xlu0 %v8887_v18  ;;  %8885 = vadd.xlane.f32.xlu1 %v8884_v27 }
0x28a2   :  { %8757 = vrot.lane.b32.xlu1 %v15284_v5, %s11906_s6  ;;  %v8762_v5 = vsel %vm8695_vm0, 0.0, %v8754_v47 }
0x28a6   :  { %8899 = vrot.lane.b32.xlu1 %v15271_v49, %s11906_s6 }
0x28a7   :  { %8755 = vrot.lane.b32.xlu0 %v15263_v9, %s11906_s6 }
0x28aa   :  { %8901 = vrot.lane.b32.xlu1 %v15276_v39, %s11906_s6 }
0x28ce   :  { %8891 = vadd.xlane.f32.xlu1 %v8890_v32 }
0x28df   :  { %8903 = vrot.lane.b32.xlu1 %v15293_v38, %s11906_s6 }
0x291e   :  { %v8886_v49 = vpop.xlane.xlu1 %8885  ;;  %v8889_v9 = vpop.xlane.xlu0 %8888 }
0x291f   :  { %v15394_v3 = vadd.f32 %v8886_v49, %v8762_v5 }
0x2921   :  { %8997 = vrot.lane.b32.xlu0 %v15394_v3, %s11889_s4  ;;  %v8942_v52 = vsel %vm8665_vm10, %v15394_v3, -inf }
0x2922   :  { %v8758_v39 = vpop.permute.xlu1 %8757  ;;  %v8756_v7 = vpop.permute.xlu0 %8755 }
0x2923   :  { %v8763_v2 = vsel %vm8696_vm15, 0.0, %v8756_v7  ;;  %v8764_v36 = vsel %vm8697_vm1, 0.0, %v8758_v39 }
0x2924   :  { %v15401_v38 = vadd.f32 %v8889_v9, %v8763_v2 }
0x2926   :  { %v8900_v1 = vpop.permute.xlu1 %8899  ;;  %v8943_v20 = vsel %vm8665_vm10, %v15401_v38, -inf }
0x2927   :  { %v8908_v48 = vadd.f32 %v8900_v1, %v15394_v3  ;;  %v8945_v0 = vmax.f32 %v8942_v52, %v8943_v20 }
0x2929   :  { %v8911_v60 = vsel %vm8665_vm10, %v8908_v48, -inf }
0x292a   :  { %v8902_v28 = vpop.permute.xlu1 %8901 }
0x292b   :  { %v8909_v17 = vadd.f32 %v8902_v28, %v15401_v38 }
0x292d   :  { %v8912_v6 = vsel %vm8665_vm10, %v8909_v17, -inf }
0x292e   :  { %v8914_v26 = vmax.f32 %v8911_v60, %v8912_v6 }
0x295b   :  { %v8892_v12 = vpop.xlane.xlu1 %8891 }
0x295c   :  { %v15412_v10 = vadd.f32 %v8892_v12, %v8764_v36 }
0x295e   :  { %v8944_v4 = vsel %vm8668_vm11, %v15412_v10, -inf  ;;  %9001 = vrot.lane.b32.xlu0 %v15412_v10, %s11889_s4 }
0x295f   :  { %v8946_v13 = vmax.f32 %v8945_v0, %v8944_v4  ;;  %v8904_v14 = vpop.permute.xlu1 %8903 }
0x2960   :  { %v8910_v8 = vadd.f32 %v8904_v14, %v15412_v10 }
0x2961   :  { %v8947_v24 = vrot.slane %v8946_v13, 4 }
0x2962   :  { %v8913_v45 = vsel %vm8668_vm11, %v8910_v8, -inf }
0x2963   :  { %v8948_v41 = vmax.f32 %v8946_v13, %v8947_v24  ;;  %v8915_v44 = vmax.f32 %v8914_v26, %v8913_v45 }
0x2965   :  { %v8949_v34 = vrot.slane %v8948_v41, 2  ;;  %v8916_v59 = vrot.slane %v8915_v44, 4 }
0x2967   :  { %v8950_v16 = vmax.f32 %v8948_v41, %v8949_v34  ;;  %v8917_v30 = vmax.f32 %v8915_v44, %v8916_v59 }
0x2969   :  { %v8951_v43 = vrot.slane %v8950_v16, 1  ;;  %v8918_v57 = vrot.slane %v8917_v30, 2 }
0x296b   :  { %v15422_v51 = vmax.f32 %v8950_v16, %v8951_v43  ;;  %v8919_v54 = vmax.f32 %v8917_v30, %v8918_v57 }
0x296d   :  { %v8953_v50 = vsub.f32 %v15394_v3, %v15422_v51  ;;  %v8954_v58 = vsub.f32 %v15401_v38, %v15422_v51  ;;  %v8955_v55 = vsub.f32 %v15412_v10, %v15422_v51  ;;  %v8920_v23 = vrot.slane %v8919_v54, 1 }
0x296f   :  { %v8956_v15 = vmax.f32 %v8953_v50, -60.0  ;;  %v8957_v19 = vmax.f32 %v8954_v58, -60.0  ;;  %v8958_v31 = vmax.f32 %v8955_v55, -60.0  ;;  %v8921_v33 = vmax.f32 %v8919_v54, %v8920_v23 }
0x2970   :  { %v8699_v23 = vsel %vm8665_vm10, %v15279_v22, -inf }
0x2971   :  { %v8959_v62 = vmul.f32 1.442695, %v8956_v15  ;;  %v8961_v11 = vmul.f32 1.442695, %v8957_v19  ;;  %v8963_v53 = vmul.f32 1.442695, %v8958_v31  ;;  %vm8922_vm5 = vcmp.ge.f32.partialorder %v8908_v48, %v8921_v33 }
0x2972   :  { %vm8923_vm6 = vcmp.ge.f32.partialorder %v8909_v17, %v8921_v33  ;;  %vm8924_vm7 = vcmp.ge.f32.partialorder %v8910_v8, %v8921_v33  ;;  %v8925_v35 = vsel %vm8922_vm5, %v15306_v46, 20.0  ;;  %v8698_v19 = vsel %vm8665_vm10, %v15266_v37, -inf }
0x2973   :  { %11627 = vpow2.f32 %v8959_v62  ;;  %v8926_v40 = vsel %vm8923_vm6, %v15310_v56, 20.0  ;;  %v8927_v61 = vsel %vm8924_vm7, %v15308_v29, 20.0  ;;  %v8928_v63 = vsel %vm8665_vm10, %v8925_v35, inf }
0x2974   :  { %11629 = vpow2.f32 %v8961_v11  ;;  %v8929_v18 = vsel %vm8665_vm10, %v8926_v40, inf  ;;  %v8930_v21 = vsel %vm8668_vm11, %v8927_v61, inf  ;;  %v8700_v31 = vsel %vm8668_vm11, %v15297_v42, -inf }
0x2975   :  { %11631 = vpow2.f32 %v8963_v53  ;;  %v8931_v27 = vmin.f32 %v8928_v63, %v8929_v18  ;;  %v8701_v33 = vmax.f32 %v8698_v19, %v8699_v23 }
0x2977   :  { %v8932_v32 = vmin.f32 %v8931_v27, %v8930_v21  ;;  %v8702_v62 = vmax.f32 %v8701_v33, %v8700_v31 }
0x2979   :  { %v8933_v47 = vrot.slane %v8932_v32, 4  ;;  %v8703_v11 = vrot.slane %v8702_v62, 4 }
0x297b   :  { %v8934_v5 = vmin.f32 %v8932_v32, %v8933_v47 }
0x297d   :  { %v11628_v49 = vpop.eup %11627  ;;  %v8935_v9 = vrot.slane %v8934_v5, 2 }
0x297e   :  { %v11630_v39 = vpop.eup %11629  ;;  %v8965_v7 = vsel %vm8665_vm10, %v11628_v49, 0.0 }
0x297f   :  { %v11632_v1 = vpop.eup %11631  ;;  %v8936_v2 = vmin.f32 %v8934_v5, %v8935_v9  ;;  %v8966_v28 = vsel %vm8665_vm10, %v11630_v39, 0.0 }
0x2980   :  { %v8967_v20 = vadd.f32 %v8966_v28, %v8965_v7  ;;  %v8968_v36 = vsel %vm8668_vm11, %v11632_v1, 0.0 }
0x2981   :  { %v8937_v17 = vrot.slane %v8936_v2, 1 }
0x2982   :  { %v8969_v12 = vadd.f32 %v8968_v36, %v8967_v20 }
0x2983   :  { %v8938_v52 = vmin.f32 %v8936_v2, %v8937_v17 }
0x2984   :  { %v8970_v48 = vrot.slane %v8969_v12, 4 }
0x2985   :  { %9015 = vrot.lane.b32.xlu1 %v8938_v52, %s11889_s4  ;;  %vm8939_vm8 = vcmp.eq.f32.partialorder %v15306_v46, %v8938_v52  ;;  %vm8940_vm9 = vcmp.eq.f32.partialorder %v15310_v56, %v8938_v52  ;;  %vm8941_vm12 = vcmp.eq.f32.partialorder %v15308_v29, %v8938_v52 }
0x2986   :  { %v8971_v0 = vadd.f32 %v8970_v48, %v8969_v12  ;;  %v8979_v6 = vsel %vm8939_vm8, %v15394_v3, 0.0  ;;  %v8980_v4 = vsel %vm8940_vm9, %v15401_v38, 0.0  ;;  %v8981_v13 = vsel %vm8941_vm12, %v15412_v10, 0.0 }
0x2987   :  { %v8982_v14 = vsel %vm8665_vm10, %v8979_v6, 0.0  ;;  %v8983_v60 = vsel %vm8665_vm10, %v8980_v4, 0.0  ;;  %v8985_v24 = vsel %vm8668_vm11, %v8981_v13, 0.0  ;;  %v8736_v6 = vsel %vm8696_vm15, %v15279_v22, 0.0 }
0x2988   :  { %v8972_v8 = vrot.slane %v8971_v0, 2  ;;  %v8984_v26 = vadd.f32 %v8983_v60, %v8982_v14  ;;  %v8735_v4 = vsel %vm8695_vm0, %v15266_v37, 0.0  ;;  %v8739_v13 = vsel %vm8665_vm10, %v8736_v6, 0.0 }
0x2989   :  { %v8738_v14 = vsel %vm8665_vm10, %v8735_v4, 0.0  ;;  %vm9020_vm15 = vcmask 8192  }
0x298a   :  { %v8973_v45 = vadd.f32 %v8972_v8, %v8971_v0  ;;  %v8986_v41 = vadd.f32 %v8985_v24, %v8984_v26  ;;  %v8740_v8 = vadd.f32 %v8739_v13, %v8738_v14  ;;  %v8737_v26 = vsel %vm8697_vm1, %v15297_v42, 0.0 }
0x298b   :  { %v8741_v56 = vsel %vm8668_vm11, %v8737_v26, 0.0 }
0x298c   :  { %v8974_v44 = vrot.slane %v8973_v45, 1  ;;  %v8987_v34 = vrot.slane %v8986_v41, 4 }
0x298e   :  { %v8975_v59 = vadd.f32 %v8974_v44, %v8973_v45  ;;  %v8988_v16 = vadd.f32 %v8987_v34, %v8986_v41  ;;  %v8742_v41 = vadd.f32 %v8741_v56, %v8740_v8 }
0x2990   :  { %11633 = vlog2.f32 %v8975_v59  ;;  %v8989_v3 = vrot.slane %v8988_v16, 2  ;;  %v8743_v59 = vrot.slane %v8742_v41, 4 }
0x2992   :  { %v8990_v43 = vadd.f32 %v8989_v3, %v8988_v16 }
0x2993   :  { %v8998_v30 = vpop.permute.xlu0 %8997 }
0x2994   :  { %v9006_v10 = vsel %vm8665_vm10, %v15266_v37, %v8998_v30  ;;  %v8991_v57 = vrot.slane %v8990_v43, 1 }
0x2995   :  { %9010 = vst.msk [vmem:[%s15592_s24] sm:$0xff] %vm9009_vm13, %v9006_v10 }
0x2996   :  { %v8992_v55 = vadd.f32 %v8991_v57, %v8990_v43 }
0x299a   :  { %v11634_v54 = vpop.eup %11633 }
0x299b   :  { %v8977_v50 = vmul.f32 0.6931472, %v11634_v54 }
0x299d   :  { %v8978_v58 = vadd.f32 %v8977_v50, %v15422_v51  ;;  %v8704_v51 = vmax.f32 %v8702_v62, %v8703_v11 }
0x299f   :  { %v8993_v15 = vsub.f32 %v8992_v55, %v8978_v58  ;;  %v8705_v53 = vrot.slane %v8704_v51, 2 }
0x29a1   :  { %9023 = vrot.lane.b32.xlu1 %v8993_v15, %s11889_s4  ;;  %v8706_v35 = vmax.f32 %v8704_v51, %v8705_v53 }
0x29a3   :  { %v8707_v40 = vrot.slane %v8706_v35, 1 }
0x29a5   :  { %8999 = vrot.lane.b32.xlu1 %v15401_v38, %s11889_s4  ;;  %v15465_v61 = vmax.f32 %v8706_v35, %v8707_v40 }
0x29a7   :  { %v8709_v63 = vsub.f32 %v15266_v37, %v15465_v61  ;;  %v8710_v18 = vsub.f32 %v15279_v22, %v15465_v61  ;;  %v8711_v32 = vsub.f32 %v15297_v42, %v15465_v61 }
0x29a9   :  { %v8712_v27 = vmax.f32 %v8709_v63, -60.0  ;;  %v8713_v21 = vmax.f32 %v8710_v18, -60.0  ;;  %v8714_v5 = vmax.f32 %v8711_v32, -60.0 }
0x29ab   :  { %v8715_v47 = vmul.f32 1.442695, %v8712_v27  ;;  %v8717_v38 = vmul.f32 1.442695, %v8713_v21  ;;  %v8719_v49 = vmul.f32 1.442695, %v8714_v5 }
0x29ad   :  { %11635 = vpow2.f32 %v8715_v47 }
0x29ae   :  { %11637 = vpow2.f32 %v8717_v38 }
0x29af   :  { %11639 = vpow2.f32 %v8719_v49 }
0x29b7   :  { %v11636_v7 = vpop.eup %11635 }
0x29b8   :  { %v11638_v1 = vpop.eup %11637  ;;  %v8721_v2 = vsel %vm8665_vm10, %v11636_v7, 0.0 }
0x29b9   :  { %v8722_v28 = vsel %vm8665_vm10, %v11638_v1, 0.0  ;;  %v11640_v20 = vpop.eup %11639 }
0x29ba   :  { %v8723_v17 = vadd.f32 %v8722_v28, %v8721_v2  ;;  %v8724_v36 = vsel %vm8668_vm11, %v11640_v20, 0.0 }
0x29bc   :  { %v8725_v12 = vadd.f32 %v8724_v36, %v8723_v17 }
0x29be   :  { %v8726_v52 = vrot.slane %v8725_v12, 4 }
0x29c0   :  { %v8727_v48 = vadd.f32 %v8726_v52, %v8725_v12 }
0x29c2   :  { %v8728_v0 = vrot.slane %v8727_v48, 2 }
0x29c4   :  { %v8729_v60 = vadd.f32 %v8728_v0, %v8727_v48 }
0x29c6   :  { %v8730_v24 = vrot.slane %v8729_v60, 1 }
0x29c8   :  { %v8731_v44 = vadd.f32 %v8730_v24, %v8729_v60 }
0x29ca   :  { %11641 = vlog2.f32 %v8731_v44 }
0x29d0   :  { %v9002_v9 = vpop.permute.xlu0 %9001 }
0x29d1   :  { %v9008_v39 = vsel %vm8665_vm10, %v15297_v42, %v9002_v9 }
0x29d2   :  { %9013 = vst.msk [vmem:[%s15592_s24 + $0x10] sm:$0xf] %vm9012_vm14, %v9008_v39 }
0x29f7   :  { %v9016_v45 = vpop.permute.xlu1 %9015 }
0x29f8   :  { %v9018_v46 = vsel %vm8665_vm10, %v15318_v25, %v9016_v45 }
0x29f9   :  { %v11139_v37 = vtrunc.f32 %v9018_v46 }
0x29fb   :  { %v11140_v34 = vcvt.f32.s32 %v11139_v37 }
0x29fd   :  { %9021 = vst.msk [vmem:[#allocation14] sm:$0x1] %vm9020_vm15, %v11140_v34 }
0x29fe   :  { %11842 = shalt.err (!%p11839_p4)
}
0x29ff   :  { %s15593_s27 = sld [smem:[#allocation33_spill]] }
0x2a05   :  { %s11843_s20 = scalar_lea.hbm %s15593_s27, 16 }
0x2a06   :  { %p11844_p5 = scmp.ne.s32.totalorder %s15593_s27, %s11843_s20  ;;  %p11847_p6 = scmp.lt.u32.totalorder %s11843_s20, %s15593_s27 }
0x2a08   :  { %p11849_p7 = pnand %p11847_p6, %p11844_p5 }
0x2a0a   :  { %11852 = shalt.err (!%p11849_p7)
}
0x2a0b   :  { %9039 = dma.vmem_to_hbm [thread:$0]  %s9037_s14, 16, %s15593_s27, [#allocation4]   ;;  %v8744_v42 = vadd.f32 %v8743_v59, %v8742_v41  ;;  %v11642_v25 = vpop.eup %11641 }
0x2a0c   :  { %v8733_v3 = vmul.f32 0.6931472, %v11642_v25  ;;  %s11908_s3 = smov [#allocation15]  }
0x2a0d   :  { %v8745_v29 = vrot.slane %v8744_v42, 2  ;;  %s9046_s12 = sshll.u32 %s11908_s3, 4  ;;  %s9047_s12 = int_to_ptr.vmem [resolvable:$true] %s9046_s12 }
0x2a0e   :  { %v8734_v10 = vadd.f32 %v8733_v3, %v15465_v61  ;;  %s11853_s28 = scalar_lea.vmem %s9047_s12, 16  ;;  %s11857_s0 = scalar_lea.vmem %s9047_s12, 32 }
0x2a0f   :  { %v8746_v16 = vadd.f32 %v8745_v29, %v8744_v42  ;;  %p11854_p8 = scmp.ne.s32.totalorder %s9047_s12, %s11853_s28  ;;  %p11858_p9 = scmp.lt.s32.totalorder %s9047_s12, %s9047_s12 }
0x2a10   :  { %p11859_p10 = scmp.lt.s32.totalorder %s11857_s0, %s11853_s28 }
0x2a11   :  { %v8747_v30 = vrot.slane %v8746_v16, 1 }
0x2a12   :  { %p11860_p11 = por %p11859_p10, %p11858_p9 }
0x2a13   :  { %v8748_v43 = vadd.f32 %v8747_v30, %v8746_v16  ;;  %v9024_v54 = vpop.permute.xlu1 %9023 }
0x2a14   :  { %p11861_p12 = pnand %p11860_p11, %p11854_p8 }
0x2a15   :  { %v8749_v57 = vsub.f32 %v8748_v43, %v8734_v10 }
0x2a17   :  { %v9026_v50 = vsel %vm8665_vm10, %v8749_v57, %v9024_v54 }
0x2a18   :  { %9027 = vst.msk [vmem:[#allocation15] sm:$0x1] %vm9020_vm15, %v9026_v50 }
0x2a19   :  { %11864 = shalt.err (!%p11861_p12)
}
0x2a1a   :  { %s15594_s8 = sld [smem:[#allocation34_spill]] }
0x2a20   :  { %s11865_s25 = scalar_lea.hbm %s15594_s8, 16 }
0x2a21   :  { %p11866_p13 = scmp.ne.s32.totalorder %s15594_s8, %s11865_s25  ;;  %p11869_p0 = scmp.lt.u32.totalorder %s11865_s25, %s15594_s8 }
0x2a23   :  { %p11871_p1 = pnand %p11869_p0, %p11866_p13 }
0x2a25   :  { %11874 = shalt.err (!%p11871_p1)
}
0x2a26   :  { %9049 = dma.vmem_to_hbm [thread:$0]  %s9047_s12, 16, %s15594_s8, [#allocation16]   ;;  %v9000_v58 = vpop.permute.xlu1 %8999 }
0x2a27   :  { %v9007_v55 = vsel %vm8665_vm10, %v15279_v22, %v9000_v58 }
0x2a28   :  { %9011 = vst.msk [vmem:[%s15592_s24 + $0x8] sm:$0xff] %vm9009_vm13, %v9007_v55 }
0x2a29   :  { %11883 = dma.done.wait [#allocation4], 16  }
0x2a2a   :  { %11884 = vsyncadd [#allocation4], 4294967280 }
0x2a2b   :  { %11885 = dma.done.wait [#allocation16], 16  }
0x2a2c   :  { %11886 = vsyncadd [#allocation16], 4294967280 }
0x2a2d   :  { %9058 = vsyncpa [#allocation3], 1 }
0x2a2e   :  { %9059 = vsyncpa [#allocation6], 1 }
0x2a2f   :  { %9060 = vsyncpa [#allocation9], 1 }
0x2a30   :  { %9061 = vsyncpa [#allocation12], 1 }
0x2a31   :  { %9062 = vsyncpa [#allocation4], 1 }
0x2a32   :  { %9063 = vsyncpa [#allocation16], 1 }

</bundles_post_ra>
